<compile_context>
chip_gen: v7x
topology: tpu7x:2x2x1
jax: 0.10.0
libtpu: 0.0.40
codegen_flags: <defaults>
</compile_context>

<pallas_src>
import functools

import jax
import jax.numpy as jnp
from jax.experimental import pallas as pl
from jax.experimental.pallas import tpu as pltpu


# ---------------------------------------------------------------------------
# Kernel 1: Linear + BatchNorm1d (training-mode batch statistics, one pass).
# bf16 MXU operands, f32 accumulation and BN math.
# ---------------------------------------------------------------------------
def _linear_bn_kernel(z_ref, w_ref, b_ref, g_ref, beta_ref, o_ref, *, eps):
    y = jnp.dot(z_ref[...].astype(jnp.bfloat16), w_ref[...],
                preferred_element_type=jnp.float32) + b_ref[...]
    n = y.shape[0]
    s1 = jnp.sum(y, axis=0, keepdims=True)
    s2 = jnp.sum(y * y, axis=0, keepdims=True)
    mean = s1 / n
    var = jnp.maximum(s2 / n - mean * mean, 0.0)        # biased var (PyTorch norm)
    scale = g_ref[...] * jax.lax.rsqrt(var + eps)
    o_ref[...] = ((y - mean) * scale + beta_ref[...]).astype(o_ref.dtype)


def linear_bn(z, w, b, g, beta, eps=1e-5):
    # TODO(synk): for large N, tile the batch and emit sum/sumsq per tile instead
    # of holding the whole (N, feat) activation in one VMEM block.
    N, K = z.shape
    F = w.shape[1]
    return pl.pallas_call(
        functools.partial(_linear_bn_kernel, eps=eps),
        out_shape=jax.ShapeDtypeStruct((N, F), jnp.float32),
        grid=(1,),
        in_specs=[
            pl.BlockSpec((N, K), lambda i: (0, 0)),
            pl.BlockSpec((K, F), lambda i: (0, 0)),
            pl.BlockSpec((1, F), lambda i: (0, 0)),
            pl.BlockSpec((1, F), lambda i: (0, 0)),
            pl.BlockSpec((1, F), lambda i: (0, 0)),
        ],
        out_specs=pl.BlockSpec((N, F), lambda i: (0, 0)),
    )(z, w, b, g, beta)


# ---------------------------------------------------------------------------
# Kernel 2: fused [affine BN + LeakyReLU] prologue -> ConvTranspose2d(k3,s2,p1,op1)
#           -> per-channel sum/sumsq (for the following BatchNorm2d).
#
# Output-phase decomposition (from PyTorch's scatter definition):
#   out[2u  , 2v  ] = a[u,v]@W(1,1)
#   out[2u  , 2v+1] = a[u,v]@W(1,2) + a[u,v+1]@W(1,0)
#   out[2u+1, 2v  ] = a[u,v]@W(2,1) + a[u+1,v]@W(0,1)
#   out[2u+1, 2v+1] = a[u,v]@W(2,2) + a[u,v+1]@W(2,0) + a[u+1,v]@W(0,2) + a[u+1,v+1]@W(0,0)
# The two column phases are folded into 2C=128-wide weights (lane-dense MXU output),
# the two row phases into the (H, 2, W, 2C) output block: two dense slice stores,
# and (N, H, 2, W, 2C) reshapes for free to (N, 2H, 2W, C).
# ---------------------------------------------------------------------------
def _conv_transpose_kernel(x_ref, scale_ref, shift_ref, w_ref, b_ref,
                           y_ref, stats_ref, apad_ref, *, slope):
    _, H, W, Cin = x_ref.shape
    C2 = b_ref.shape[1]                                  # 2 * Cout (=128)

    # prologue: previous layer's folded BatchNorm affine + LeakyReLU (f32 VPU math),
    # cast once to bf16 on the scratch write.
    v = x_ref[0].astype(jnp.float32) * scale_ref[...] + shift_ref[...]
    a = jnp.where(v > 0, v, slope * v).astype(jnp.bfloat16)

    # zero only the pad ring (last row / col); the interior is fully overwritten.
    apad_ref[H:H + 1, :, :] = jnp.zeros((1, W + 1, Cin), jnp.bfloat16)
    apad_ref[0:H, W:W + 1, :] = jnp.zeros((H, 1, Cin), jnp.bfloat16)
    apad_ref[0:H, 0:W, :] = a

    def tap(u0, v0):                                     # in-VMEM im2col, bf16
        return apad_ref[u0:u0 + H, v0:v0 + W, :].reshape(H * W, Cin)

    a00, a01, a10, a11 = tap(0, 0), tap(0, 1), tap(1, 0), tap(1, 1)
    dot = lambda t, k: jnp.dot(t, w_ref[k], preferred_element_type=jnp.float32)
    bias = b_ref[...]
    even = dot(a00, 0) + dot(a01, 1) + bias                                  # rows 2u
    odd = dot(a00, 2) + dot(a01, 3) + dot(a10, 4) + dot(a11, 5) + bias       # rows 2u+1

    # BatchNorm statistics (sum / sumsq) as a free byproduct of the conv pass.
    stats_ref[0, 0:1, :] = (jnp.sum(even, axis=0, keepdims=True)
                            + jnp.sum(odd, axis=0, keepdims=True))
    stats_ref[0, 1:2, :] = (jnp.sum(even * even, axis=0, keepdims=True)
                            + jnp.sum(odd * odd, axis=0, keepdims=True))

    # Two dense stores: phase slot 0 = even rows, slot 1 = odd rows.
    y_ref[0, :, 0:1, :, :] = even.reshape(H, 1, W, C2).astype(y_ref.dtype)
    y_ref[0, :, 1:2, :, :] = odd.reshape(H, 1, W, C2).astype(y_ref.dtype)


def conv_transpose_lrelu(x, scale, shift, w6, b2, slope=0.2):
    N, H, W, Cin = x.shape
    C2 = b2.shape[1]
    y, stats = pl.pallas_call(
        functools.partial(_conv_transpose_kernel, slope=slope),
        out_shape=(
            jax.ShapeDtypeStruct((N, H, 2, W, C2), jnp.bfloat16),   # bf16 activations
            jax.ShapeDtypeStruct((N, 2, C2), jnp.float32),
        ),
        grid=(N,),
        in_specs=[
            pl.BlockSpec((1, H, W, Cin), lambda n: (n, 0, 0, 0)),
            pl.BlockSpec((1, Cin), lambda n: (0, 0)),
            pl.BlockSpec((1, Cin), lambda n: (0, 0)),
            pl.BlockSpec((6, Cin, C2), lambda n: (0, 0, 0)),
            pl.BlockSpec((1, C2), lambda n: (0, 0)),
        ],
        out_specs=(
            pl.BlockSpec((1, H, 2, W, C2), lambda n: (n, 0, 0, 0, 0)),
            pl.BlockSpec((1, 2, C2), lambda n: (n, 0, 0)),
        ),
        scratch_shapes=[pltpu.VMEM((H + 1, W + 1, Cin), jnp.bfloat16)],
        compiler_params=pltpu.CompilerParams(dimension_semantics=("parallel",)),
    )(x, scale, shift, w6, b2)
    # free (metadata-only) reshape back to standard NHWC
    return y.reshape(N, 2 * H, 2 * W, C2 // 2), stats


# ---------------------------------------------------------------------------
# Kernel 3: fused [BN affine + LeakyReLU] -> Conv2d(3x3, pad 1) -> Tanh.
# Cout is zero-padded to 128 so the output stores are lane-dense.
# ---------------------------------------------------------------------------
def _conv3x3_tanh_kernel(x_ref, scale_ref, shift_ref, w_ref, b_ref, o_ref, apad_ref, *, slope):
    _, H, W, Cin = x_ref.shape
    Cout = b_ref.shape[1]

    v = x_ref[0].astype(jnp.float32) * scale_ref[...] + shift_ref[...]
    a = jnp.where(v > 0, v, slope * v).astype(jnp.bfloat16)

    # zero only the pad ring; interior fully overwritten each step.
    apad_ref[0:1, :, :] = jnp.zeros((1, W + 2, Cin), jnp.bfloat16)
    apad_ref[H + 1:H + 2, :, :] = jnp.zeros((1, W + 2, Cin), jnp.bfloat16)
    apad_ref[1:H + 1, 0:1, :] = jnp.zeros((H, 1, Cin), jnp.bfloat16)
    apad_ref[1:H + 1, W + 1:W + 2, :] = jnp.zeros((H, 1, Cin), jnp.bfloat16)
    apad_ref[1:H + 1, 1:W + 1, :] = a

    acc = jnp.zeros((H * W, Cout), jnp.float32)
    for kh in range(3):                                  # in-kernel im2col: 9 taps
        for kw in range(3):
            t = apad_ref[kh:kh + H, kw:kw + W, :].reshape(H * W, Cin)
            acc += jnp.dot(t, w_ref[3 * kh + kw], preferred_element_type=jnp.float32)
    y = jnp.tanh(acc + b_ref[...])
    o_ref[0] = y.reshape(H, W, Cout).astype(o_ref.dtype)


def conv3x3_tanh(x, scale, shift, w9, b, slope=0.2):
    N, H, W, Cin = x.shape
    Cout = b.shape[1]
    return pl.pallas_call(
        functools.partial(_conv3x3_tanh_kernel, slope=slope),
        out_shape=jax.ShapeDtypeStruct((N, H, W, Cout), jnp.float32),
        grid=(N,),
        in_specs=[
            pl.BlockSpec((1, H, W, Cin), lambda n: (n, 0, 0, 0)),
            pl.BlockSpec((1, Cin), lambda n: (0, 0)),
            pl.BlockSpec((1, Cin), lambda n: (0, 0)),
            pl.BlockSpec((9, Cin, Cout), lambda n: (0, 0, 0)),
            pl.BlockSpec((1, Cout), lambda n: (0, 0)),
        ],
        out_specs=pl.BlockSpec((1, H, W, Cout), lambda n: (n, 0, 0, 0)),
        scratch_shapes=[pltpu.VMEM((H + 2, W + 2, Cin), jnp.bfloat16)],
        compiler_params=pltpu.CompilerParams(dimension_semantics=("parallel",)),
    )(x, scale, shift, w9, b)


# ---------------------------------------------------------------------------
# Tiny per-channel glue (scale/shift folding of BatchNorm2d, train-mode stats).
# ---------------------------------------------------------------------------
def _fold_bn(stats, gamma, beta, count, eps=1e-5):
    """stats: (N, 2, 2C) column-phase-folded sum/sumsq -> (1,C) scale / shift."""
    s = jnp.sum(stats, axis=0)                           # (2, 2C)
    C = gamma.shape[0]
    s1 = s[0, :C] + s[0, C:]
    s2 = s[1, :C] + s[1, C:]
    mean = s1 / count
    var = jnp.maximum(s2 / count - mean * mean, 0.0)
    scale = gamma * jax.lax.rsqrt(var + eps)
    shift = beta - mean * scale
    return scale.reshape(1, C), shift.reshape(1, C)


def _pack_convT_weights(w_t, b):
    """w_t: (Cin, Cout, 3, 3) ConvTranspose2d weight -> (6, Cin, 2*Cout) bf16 phase taps."""
    W = lambda i, j: w_t[:, :, i, j]                     # (Cin, Cout)
    Z = jnp.zeros_like(W(0, 0))
    taps = [
        jnp.concatenate([W(1, 1), W(1, 2)], axis=1),     # even rows, tap a[u, v]
        jnp.concatenate([Z,       W(1, 0)], axis=1),     # even rows, tap a[u, v+1]
        jnp.concatenate([W(2, 1), W(2, 2)], axis=1),     # odd  rows, tap a[u, v]
        jnp.concatenate([Z,       W(2, 0)], axis=1),     # odd  rows, tap a[u, v+1]
        jnp.concatenate([W(0, 1), W(0, 2)], axis=1),     # odd  rows, tap a[u+1, v]
        jnp.concatenate([Z,       W(0, 0)], axis=1),     # odd  rows, tap a[u+1, v+1]
    ]
    w6 = jnp.stack(taps, axis=0).astype(jnp.bfloat16)
    b2 = jnp.concatenate([b, b]).reshape(1, -1).astype(jnp.float32)
    return w6, b2


# ---------------------------------------------------------------------------
# Generator module
# ---------------------------------------------------------------------------
class GeneratorPallas:
    def __init__(self, latent_dim, channels, width, height, key):
        assert width % 4 == 0 and height % 4 == 0 and channels <= 128
        self.latent_dim, self.channels = latent_dim, channels
        self.width, self.height = width, height
        Wq, Hq = width // 4, height // 4
        feat = 64 * width // 4 * height // 4             # same expression as the PyTorch module
        self.feat, self.Wq, self.Hq = feat, Wq, Hq

        ks = jax.random.split(key, 8)
        s = 0.05                                         # small deterministic init scale
        w_fc = jax.random.normal(ks[0], (feat, latent_dim), jnp.float32) * s
        b_fc = jax.random.normal(ks[1], (feat,), jnp.float32) * s
        bn1_g = jnp.ones((feat,), jnp.float32)
        bn1_b = jnp.zeros((feat,), jnp.float32)
        w_ct1 = jax.random.normal(ks[2], (64, 64, 3, 3), jnp.float32) * s   # (in, out, kh, kw)
        b_ct1 = jax.random.normal(ks[3], (64,), jnp.float32) * s
        w_ct2 = jax.random.normal(ks[4], (64, 64, 3, 3), jnp.float32) * s
        b_ct2 = jax.random.normal(ks[5], (64,), jnp.float32) * s
        w_cv = jax.random.normal(ks[6], (channels, 64, 3, 3), jnp.float32) * s  # (out, in, kh, kw)
        b_cv = jax.random.normal(ks[7], (channels,), jnp.float32) * s
        self.bn2_g = jnp.ones((64,), jnp.float32)
        self.bn2_b = jnp.zeros((64,), jnp.float32)
        self.bn3_g = jnp.ones((64,), jnp.float32)
        self.bn3_b = jnp.zeros((64,), jnp.float32)

        # Linear: transpose to (K, feat) and permute columns (c,wq,hq) -> (wq,hq,c) so the
        # kernel output reshapes to NHWC for free (no HBM transpose of the activation).
        # Weight stored bf16 (MXU-native), bias / BN params stay f32.
        def perm_cols(v):
            return v.reshape(64, Wq, Hq).transpose(1, 2, 0).reshape(feat)
        self.w_fc_p = (w_fc.T.reshape(latent_dim, 64, Wq, Hq)
                       .transpose(0, 2, 3, 1).reshape(latent_dim, feat)).astype(jnp.bfloat16)
        self.b_fc_p = perm_cols(b_fc).reshape(1, feat)
        self.bn1_g_p = perm_cols(bn1_g).reshape(1, feat)
        self.bn1_b_p = perm_cols(bn1_b).reshape(1, feat)

        # ConvTranspose2d phase-combined weights (bf16) + duplicated bias.
        self.w_ct1_p, self.b_ct1_p = _pack_convT_weights(w_ct1, b_ct1)
        self.w_ct2_p, self.b_ct2_p = _pack_convT_weights(w_ct2, b_ct2)

        # Final Conv2d: (Cout,Cin,3,3) -> (9, Cin, 128) lane-dense (zero-padded Cout), bf16.
        w9 = jnp.transpose(w_cv, (2, 3, 1, 0)).reshape(9, 64, channels)
        self.w_cv_p = jnp.pad(w9, ((0, 0), (0, 0), (0, 128 - channels))).astype(jnp.bfloat16)
        self.b_cv_p = jnp.pad(b_cv, (0, 128 - channels)).reshape(1, 128).astype(jnp.float32)

        # Identity affine for the first LeakyReLU (BN1 already applied in the linear kernel).
        self.id_scale = jnp.ones((1, 64), jnp.float32)
        self.id_shift = jnp.zeros((1, 64), jnp.float32)

    def __call__(self, z):
        """z: (N, latent_dim) -> (N, channels, width, height)  (matches the PyTorch module)."""
        N = z.shape[0]
        Wq, Hq, C = self.Wq, self.Hq, 64

        # Linear + BatchNorm1d (batch stats); LeakyReLU deferred to the next kernel's prologue.
        h = linear_bn(z, self.w_fc_p, self.b_fc_p, self.bn1_g_p, self.bn1_b_p)    # (N, feat) f32
        x1 = h.reshape(N, Wq, Hq, C)                                              # free (pre-permuted)

        # ConvTranspose #1: prologue LeakyReLU (identity affine); emits BN2 stats.
        y1, st1 = conv_transpose_lrelu(x1, self.id_scale, self.id_shift,
                                       self.w_ct1_p, self.b_ct1_p)                # bf16 (N, 2Wq, 2Hq, 64)
        s2, t2 = _fold_bn(st1, self.bn2_g, self.bn2_b, N * (2 * Wq) * (2 * Hq))

        # ConvTranspose #2: prologue applies BN2 + LeakyReLU on the fly; emits BN3 stats.
        y2, st2 = conv_transpose_lrelu(y1, s2, t2, self.w_ct2_p, self.b_ct2_p)    # bf16 (N, 4Wq, 4Hq, 64)
        s3, t3 = _fold_bn(st2, self.bn3_g, self.bn3_b, N * (4 * Wq) * (4 * Hq))

        # Final Conv2d: prologue BN3 + LeakyReLU, epilogue tanh; 128-lane f32 output, slice + NCHW.
        out = conv3x3_tanh(y2, s3, t3, self.w_cv_p, self.b_cv_p)                  # (N, W, H, 128)
        out = out[..., : self.channels]
        return jnp.transpose(out, (0, 3, 1, 2))


# ---------------------------------------------------------------------------
if __name__ == "__main__":
    latent_dim, channels, width, height = 32, 3, 16, 16
    batch = 2

    key = jax.random.PRNGKey(0)
    k_params, k_input = jax.random.split(key)

    gen = GeneratorPallas(latent_dim, channels, width, height, k_params)
    z = jax.random.normal(k_input, (batch, latent_dim), jnp.float32)

    out = jax.jit(gen.__call__)(z)
    out = jax.block_until_ready(out)

    assert out.shape == (batch, channels, width, height), out.shape
    assert out.dtype == jnp.float32
    assert bool(jnp.all(jnp.isfinite(out)))
    assert bool(jnp.all(jnp.abs(out) <= 1.0))  # tanh range
    print("KERNEL_OK")
</pallas_src>

<mosaic_0001>
module attributes {stable_mosaic.version = 11 : i64} {
  func.func @_linear_bn_kernel(%arg0: i32, %arg1: memref<2x32xf32, #tpu.memory_space<vmem>>, %arg2: memref<32x1024xbf16, #tpu.memory_space<vmem>>, %arg3: memref<1x1024xf32, #tpu.memory_space<vmem>>, %arg4: memref<1x1024xf32, #tpu.memory_space<vmem>>, %arg5: memref<1x1024xf32, #tpu.memory_space<vmem>>, %arg6: memref<2x1024xf32, #tpu.memory_space<vmem>>) attributes {dimension_semantics = [#tpu.dimension_semantics<arbitrary>], iteration_bounds = array<i64: 1>, scalar_prefetch = 0 : i64, scratch_operands = 0 : i64, tpu.core_type = #tpu.core_type<tc>, window_params = [{pipeline_mode = #tpu.pipeline_mode<synchronous>, transform_indices = @transform_0, window_bounds = array<i64: 2, 32>}, {pipeline_mode = #tpu.pipeline_mode<synchronous>, transform_indices = @transform_1, window_bounds = array<i64: 32, 1024>}, {pipeline_mode = #tpu.pipeline_mode<synchronous>, transform_indices = @transform_2, window_bounds = array<i64: 1, 1024>}, {pipeline_mode = #tpu.pipeline_mode<synchronous>, transform_indices = @transform_3, window_bounds = array<i64: 1, 1024>}, {pipeline_mode = #tpu.pipeline_mode<synchronous>, transform_indices = @transform_4, window_bounds = array<i64: 1, 1024>}, {pipeline_mode = #tpu.pipeline_mode<synchronous>, transform_indices = @transform_5, window_bounds = array<i64: 2, 1024>}]} {
    %c0 = arith.constant 0 : index
    %c0_0 = arith.constant 0 : index
    %0 = vector.load %arg1[%c0, %c0_0] : memref<2x32xf32, #tpu.memory_space<vmem>>, vector<2x32xf32>
    %1 = arith.truncf %0 : vector<2x32xf32> to vector<2x32xbf16>
    %c0_1 = arith.constant 0 : index
    %c0_2 = arith.constant 0 : index
    %2 = vector.load %arg2[%c0_1, %c0_2] : memref<32x1024xbf16, #tpu.memory_space<vmem>>, vector<32x1024xbf16>
    %cst = arith.constant dense<0.000000e+00> : vector<2x1024xf32>
    %3 = tpu.matmul %1, %2, %cst {dimension_numbers = #tpu.dot_dimension_numbers<[1], [0], [0], [1], [0, 0, 1, 1], [], []>} : vector<2x32xbf16>, vector<32x1024xbf16>, vector<2x1024xf32> -> vector<2x1024xf32>
    %c0_3 = arith.constant 0 : index
    %c0_4 = arith.constant 0 : index
    %4 = vector.load %arg3[%c0_3, %c0_4] : memref<1x1024xf32, #tpu.memory_space<vmem>>, vector<1x1024xf32>
    %5 = vector.broadcast %4 : vector<1x1024xf32> to vector<2x1024xf32>
    %6 = arith.addf %3, %5 : vector<2x1024xf32>
    %cst_5 = arith.constant dense<0.000000e+00> : vector<1024xf32>
    %7 = vector.multi_reduction <add>, %6, %cst_5 [0] : vector<2x1024xf32> to vector<1024xf32>
    %8 = vector.shape_cast %7 : vector<1024xf32> to vector<1x1024xf32>
    %9 = arith.mulf %6, %6 : vector<2x1024xf32>
    %cst_6 = arith.constant dense<0.000000e+00> : vector<1024xf32>
    %10 = vector.multi_reduction <add>, %9, %cst_6 [0] : vector<2x1024xf32> to vector<1024xf32>
    %11 = vector.shape_cast %10 : vector<1024xf32> to vector<1x1024xf32>
    %cst_7 = arith.constant 2.000000e+00 : f32
    %12 = vector.broadcast %cst_7 : f32 to vector<1x1024xf32>
    %13 = arith.divf %8, %12 : vector<1x1024xf32>
    %cst_8 = arith.constant 2.000000e+00 : f32
    %14 = vector.broadcast %cst_8 : f32 to vector<1x1024xf32>
    %15 = arith.divf %11, %14 : vector<1x1024xf32>
    %16 = arith.mulf %13, %13 : vector<1x1024xf32>
    %17 = arith.subf %15, %16 : vector<1x1024xf32>
    %cst_9 = arith.constant 0.000000e+00 : f32
    %18 = vector.broadcast %cst_9 : f32 to vector<1x1024xf32>
    %19 = arith.maximumf %17, %18 : vector<1x1024xf32>
    %c0_10 = arith.constant 0 : index
    %c0_11 = arith.constant 0 : index
    %20 = vector.load %arg4[%c0_10, %c0_11] : memref<1x1024xf32, #tpu.memory_space<vmem>>, vector<1x1024xf32>
    %cst_12 = arith.constant 9.99999974E-6 : f32
    %21 = vector.broadcast %cst_12 : f32 to vector<1x1024xf32>
    %22 = arith.addf %19, %21 : vector<1x1024xf32>
    %23 = math.rsqrt %22 : vector<1x1024xf32>
    %24 = arith.mulf %20, %23 : vector<1x1024xf32>
    %25 = vector.broadcast %13 : vector<1x1024xf32> to vector<2x1024xf32>
    %26 = arith.subf %6, %25 : vector<2x1024xf32>
    %27 = vector.broadcast %24 : vector<1x1024xf32> to vector<2x1024xf32>
    %28 = arith.mulf %26, %27 : vector<2x1024xf32>
    %c0_13 = arith.constant 0 : index
    %c0_14 = arith.constant 0 : index
    %29 = vector.load %arg5[%c0_13, %c0_14] : memref<1x1024xf32, #tpu.memory_space<vmem>>, vector<1x1024xf32>
    %30 = vector.broadcast %29 : vector<1x1024xf32> to vector<2x1024xf32>
    %31 = arith.addf %28, %30 : vector<2x1024xf32>
    %c0_15 = arith.constant 0 : index
    %c0_16 = arith.constant 0 : index
    %32 = vector.load %arg6[%c0_15, %c0_16] : memref<2x1024xf32, #tpu.memory_space<vmem>>, vector<2x1024xf32>
    tpu.vector_store %arg6[%c0_15, %c0_16], %31 {strides = array<i32>} : memref<2x1024xf32, #tpu.memory_space<vmem>>, vector<2x1024xf32>,
    return
  }
  func.func @transform_0(%arg0: i32) -> (i32, i32) {
    %c0_i32 = arith.constant 0 : i32
    %c0_i32_0 = arith.constant 0 : i32
    %c0_i32_1 = arith.constant 0 : i32
    return %c0_i32, %c0_i32_0 : i32, i32
  }
  func.func @transform_1(%arg0: i32) -> (i32, i32) {
    %c0_i32 = arith.constant 0 : i32
    %c0_i32_0 = arith.constant 0 : i32
    %c0_i32_1 = arith.constant 0 : i32
    return %c0_i32, %c0_i32_0 : i32, i32
  }
  func.func @transform_2(%arg0: i32) -> (i32, i32) {
    %c0_i32 = arith.constant 0 : i32
    %c0_i32_0 = arith.constant 0 : i32
    %c0_i32_1 = arith.constant 0 : i32
    return %c0_i32, %c0_i32_0 : i32, i32
  }
  func.func @transform_3(%arg0: i32) -> (i32, i32) {
    %c0_i32 = arith.constant 0 : i32
    %c0_i32_0 = arith.constant 0 : i32
    %c0_i32_1 = arith.constant 0 : i32
    return %c0_i32, %c0_i32_0 : i32, i32
  }
  func.func @transform_4(%arg0: i32) -> (i32, i32) {
    %c0_i32 = arith.constant 0 : i32
    %c0_i32_0 = arith.constant 0 : i32
    %c0_i32_1 = arith.constant 0 : i32
    return %c0_i32, %c0_i32_0 : i32, i32
  }
  func.func @transform_5(%arg0: i32) -> (i32, i32) {
    %c0_i32 = arith.constant 0 : i32
    %c0_i32_0 = arith.constant 0 : i32
    %c0_i32_1 = arith.constant 0 : i32
    return %c0_i32, %c0_i32_0 : i32, i32
  }
}

module attributes {stable_mosaic.version = 11 : i64} {
  func.func @_conv_transpose_kernel(%arg0: i32, %arg1: memref<1x4x4x64xf32, #tpu.memory_space<vmem>>, %arg2: memref<1x64xf32, #tpu.memory_space<vmem>>, %arg3: memref<1x64xf32, #tpu.memory_space<vmem>>, %arg4: memref<6x64x128xbf16, #tpu.memory_space<vmem>>, %arg5: memref<1x128xf32, #tpu.memory_space<vmem>>, %arg6: memref<1x4x2x4x128xbf16, #tpu.memory_space<vmem>>, %arg7: memref<1x2x128xf32, #tpu.memory_space<vmem>>, %arg8: memref<5x5x64xbf16, #tpu.memory_space<vmem>>) attributes {dimension_semantics = [#tpu.dimension_semantics<parallel>], iteration_bounds = array<i64: 2>, scalar_prefetch = 0 : i64, scratch_operands = 1 : i64, tpu.core_type = #tpu.core_type<tc>, window_params = [{transform_indices = @transform_0, window_bounds = array<i64: 1, 4, 4, 64>}, {pipeline_mode = #tpu.pipeline_mode<synchronous>, transform_indices = @transform_1, window_bounds = array<i64: 1, 64>}, {pipeline_mode = #tpu.pipeline_mode<synchronous>, transform_indices = @transform_2, window_bounds = array<i64: 1, 64>}, {pipeline_mode = #tpu.pipeline_mode<synchronous>, transform_indices = @transform_3, window_bounds = array<i64: 6, 64, 128>}, {pipeline_mode = #tpu.pipeline_mode<synchronous>, transform_indices = @transform_4, window_bounds = array<i64: 1, 128>}, {transform_indices = @transform_5, window_bounds = array<i64: 1, 4, 2, 4, 128>}, {transform_indices = @transform_6, window_bounds = array<i64: 1, 2, 128>}]} {
    %c0 = arith.constant 0 : index
    %c0_0 = arith.constant 0 : index
    %c0_1 = arith.constant 0 : index
    %c0_2 = arith.constant 0 : index
    %0 = vector.load %arg1[%c0, %c0_0, %c0_1, %c0_2] : memref<1x4x4x64xf32, #tpu.memory_space<vmem>>, vector<1x4x4x64xf32>
    %1 = vector.shape_cast %0 : vector<1x4x4x64xf32> to vector<4x4x64xf32>
    %c0_3 = arith.constant 0 : index
    %c0_4 = arith.constant 0 : index
    %2 = vector.load %arg2[%c0_3, %c0_4] : memref<1x64xf32, #tpu.memory_space<vmem>>, vector<1x64xf32>
    %3 = vector.shape_cast %2 : vector<1x64xf32> to vector<1x1x64xf32>
    %4 = vector.broadcast %3 : vector<1x1x64xf32> to vector<4x4x64xf32>
    %5 = arith.mulf %1, %4 : vector<4x4x64xf32>
    %c0_5 = arith.constant 0 : index
    %c0_6 = arith.constant 0 : index
    %6 = vector.load %arg3[%c0_5, %c0_6] : memref<1x64xf32, #tpu.memory_space<vmem>>, vector<1x64xf32>
    %7 = vector.shape_cast %6 : vector<1x64xf32> to vector<1x1x64xf32>
    %8 = vector.broadcast %7 : vector<1x1x64xf32> to vector<4x4x64xf32>
    %9 = arith.addf %5, %8 : vector<4x4x64xf32>
    %cst = arith.constant 0.000000e+00 : f32
    %10 = vector.broadcast %cst : f32 to vector<4x4x64xf32>
    %11 = arith.cmpf ogt, %9, %10 : vector<4x4x64xf32>
    %cst_7 = arith.constant 2.000000e-01 : f32
    %12 = vector.broadcast %cst_7 : f32 to vector<4x4x64xf32>
    %13 = arith.mulf %12, %9 : vector<4x4x64xf32>
    %14 = arith.select %11, %9, %13 : vector<4x4x64xi1>, vector<4x4x64xf32>
    %15 = arith.truncf %14 : vector<4x4x64xf32> to vector<4x4x64xbf16>
    %cst_8 = arith.constant 0.000000e+00 : bf16
    %16 = vector.broadcast %cst_8 : bf16 to vector<1x5x64xbf16>
    %c4 = arith.constant 4 : index
    %c0_9 = arith.constant 0 : index
    %c0_10 = arith.constant 0 : index
    %17 = vector.load %arg8[%c4, %c0_9, %c0_10] : memref<5x5x64xbf16, #tpu.memory_space<vmem>>, vector<1x5x64xbf16>
    tpu.vector_store %arg8[%c4, %c0_9, %c0_10], %16 {strides = array<i32>} : memref<5x5x64xbf16, #tpu.memory_space<vmem>>, vector<1x5x64xbf16>,
    %cst_11 = arith.constant 0.000000e+00 : bf16
    %18 = vector.broadcast %cst_11 : bf16 to vector<4x1x64xbf16>
    %c0_12 = arith.constant 0 : index
    %c4_13 = arith.constant 4 : index
    %c0_14 = arith.constant 0 : index
    %19 = vector.load %arg8[%c0_12, %c4_13, %c0_14] : memref<5x5x64xbf16, #tpu.memory_space<vmem>>, vector<4x1x64xbf16>
    tpu.vector_store %arg8[%c0_12, %c4_13, %c0_14], %18 {strides = array<i32>} : memref<5x5x64xbf16, #tpu.memory_space<vmem>>, vector<4x1x64xbf16>,
    %c0_15 = arith.constant 0 : index
    %c0_16 = arith.constant 0 : index
    %c0_17 = arith.constant 0 : index
    %20 = vector.load %arg8[%c0_15, %c0_16, %c0_17] : memref<5x5x64xbf16, #tpu.memory_space<vmem>>, vector<4x4x64xbf16>
    tpu.vector_store %arg8[%c0_15, %c0_16, %c0_17], %15 {strides = array<i32>} : memref<5x5x64xbf16, #tpu.memory_space<vmem>>, vector<4x4x64xbf16>,
    %c0_18 = arith.constant 0 : index
    %c0_19 = arith.constant 0 : index
    %c0_20 = arith.constant 0 : index
    %21 = vector.load %arg8[%c0_18, %c0_19, %c0_20] : memref<5x5x64xbf16, #tpu.memory_space<vmem>>, vector<4x4x64xbf16>
    %22 = vector.shape_cast %21 : vector<4x4x64xbf16> to vector<16x64xbf16>
    %c0_21 = arith.constant 0 : index
    %c1 = arith.constant 1 : index
    %c0_22 = arith.constant 0 : index
    %23 = vector.load %arg8[%c0_21, %c1, %c0_22] : memref<5x5x64xbf16, #tpu.memory_space<vmem>>, vector<4x4x64xbf16>
    %24 = vector.shape_cast %23 : vector<4x4x64xbf16> to vector<16x64xbf16>
    %c1_23 = arith.constant 1 : index
    %c0_24 = arith.constant 0 : index
    %c0_25 = arith.constant 0 : index
    %25 = vector.load %arg8[%c1_23, %c0_24, %c0_25] : memref<5x5x64xbf16, #tpu.memory_space<vmem>>, vector<4x4x64xbf16>
    %26 = vector.shape_cast %25 : vector<4x4x64xbf16> to vector<16x64xbf16>
    %c1_26 = arith.constant 1 : index
    %c1_27 = arith.constant 1 : index
    %c0_28 = arith.constant 0 : index
    %27 = vector.load %arg8[%c1_26, %c1_27, %c0_28] : memref<5x5x64xbf16, #tpu.memory_space<vmem>>, vector<4x4x64xbf16>
    %28 = vector.shape_cast %27 : vector<4x4x64xbf16> to vector<16x64xbf16>
    %c0_29 = arith.constant 0 : index
    %c0_30 = arith.constant 0 : index
    %29 = vector.load %arg5[%c0_29, %c0_30] : memref<1x128xf32, #tpu.memory_space<vmem>>, vector<1x128xf32>
    %c0_31 = arith.constant 0 : index
    %c0_32 = arith.constant 0 : index
    %c0_33 = arith.constant 0 : index
    %30 = vector.load %arg4[%c0_31, %c0_32, %c0_33] : memref<6x64x128xbf16, #tpu.memory_space<vmem>>, vector<1x64x128xbf16>
    %31 = vector.shape_cast %30 : vector<1x64x128xbf16> to vector<64x128xbf16>
    %cst_34 = arith.constant dense<0.000000e+00> : vector<16x128xf32>
    %32 = tpu.matmul %22, %31, %cst_34 {dimension_numbers = #tpu.dot_dimension_numbers<[1], [0], [0], [1], [0, 0, 1, 1], [], []>} : vector<16x64xbf16>, vector<64x128xbf16>, vector<16x128xf32> -> vector<16x128xf32>
    %c1_35 = arith.constant 1 : index
    %c0_36 = arith.constant 0 : index
    %c0_37 = arith.constant 0 : index
    %33 = vector.load %arg4[%c1_35, %c0_36, %c0_37] : memref<6x64x128xbf16, #tpu.memory_space<vmem>>, vector<1x64x128xbf16>
    %34 = vector.shape_cast %33 : vector<1x64x128xbf16> to vector<64x128xbf16>
    %cst_38 = arith.constant dense<0.000000e+00> : vector<16x128xf32>
    %35 = tpu.matmul %24, %34, %cst_38 {dimension_numbers = #tpu.dot_dimension_numbers<[1], [0], [0], [1], [0, 0, 1, 1], [], []>} : vector<16x64xbf16>, vector<64x128xbf16>, vector<16x128xf32> -> vector<16x128xf32>
    %36 = arith.addf %32, %35 : vector<16x128xf32>
    %37 = vector.broadcast %29 : vector<1x128xf32> to vector<16x128xf32>
    %38 = arith.addf %36, %37 : vector<16x128xf32>
    %c2 = arith.constant 2 : index
    %c0_39 = arith.constant 0 : index
    %c0_40 = arith.constant 0 : index
    %39 = vector.load %arg4[%c2, %c0_39, %c0_40] : memref<6x64x128xbf16, #tpu.memory_space<vmem>>, vector<1x64x128xbf16>
    %40 = vector.shape_cast %39 : vector<1x64x128xbf16> to vector<64x128xbf16>
    %cst_41 = arith.constant dense<0.000000e+00> : vector<16x128xf32>
    %41 = tpu.matmul %22, %40, %cst_41 {dimension_numbers = #tpu.dot_dimension_numbers<[1], [0], [0], [1], [0, 0, 1, 1], [], []>} : vector<16x64xbf16>, vector<64x128xbf16>, vector<16x128xf32> -> vector<16x128xf32>
    %c3 = arith.constant 3 : index
    %c0_42 = arith.constant 0 : index
    %c0_43 = arith.constant 0 : index
    %42 = vector.load %arg4[%c3, %c0_42, %c0_43] : memref<6x64x128xbf16, #tpu.memory_space<vmem>>, vector<1x64x128xbf16>
    %43 = vector.shape_cast %42 : vector<1x64x128xbf16> to vector<64x128xbf16>
    %cst_44 = arith.constant dense<0.000000e+00> : vector<16x128xf32>
    %44 = tpu.matmul %24, %43, %cst_44 {dimension_numbers = #tpu.dot_dimension_numbers<[1], [0], [0], [1], [0, 0, 1, 1], [], []>} : vector<16x64xbf16>, vector<64x128xbf16>, vector<16x128xf32> -> vector<16x128xf32>
    %45 = arith.addf %41, %44 : vector<16x128xf32>
    %c4_45 = arith.constant 4 : index
    %c0_46 = arith.constant 0 : index
    %c0_47 = arith.constant 0 : index
    %46 = vector.load %arg4[%c4_45, %c0_46, %c0_47] : memref<6x64x128xbf16, #tpu.memory_space<vmem>>, vector<1x64x128xbf16>
    %47 = vector.shape_cast %46 : vector<1x64x128xbf16> to vector<64x128xbf16>
    %cst_48 = arith.constant dense<0.000000e+00> : vector<16x128xf32>
    %48 = tpu.matmul %26, %47, %cst_48 {dimension_numbers = #tpu.dot_dimension_numbers<[1], [0], [0], [1], [0, 0, 1, 1], [], []>} : vector<16x64xbf16>, vector<64x128xbf16>, vector<16x128xf32> -> vector<16x128xf32>
    %49 = arith.addf %45, %48 : vector<16x128xf32>
    %c5 = arith.constant 5 : index
    %c0_49 = arith.constant 0 : index
    %c0_50 = arith.constant 0 : index
    %50 = vector.load %arg4[%c5, %c0_49, %c0_50] : memref<6x64x128xbf16, #tpu.memory_space<vmem>>, vector<1x64x128xbf16>
    %51 = vector.shape_cast %50 : vector<1x64x128xbf16> to vector<64x128xbf16>
    %cst_51 = arith.constant dense<0.000000e+00> : vector<16x128xf32>
    %52 = tpu.matmul %28, %51, %cst_51 {dimension_numbers = #tpu.dot_dimension_numbers<[1], [0], [0], [1], [0, 0, 1, 1], [], []>} : vector<16x64xbf16>, vector<64x128xbf16>, vector<16x128xf32> -> vector<16x128xf32>
    %53 = arith.addf %49, %52 : vector<16x128xf32>
    %54 = vector.broadcast %29 : vector<1x128xf32> to vector<16x128xf32>
    %55 = arith.addf %53, %54 : vector<16x128xf32>
    %cst_52 = arith.constant dense<0.000000e+00> : vector<128xf32>
    %56 = vector.multi_reduction <add>, %38, %cst_52 [0] : vector<16x128xf32> to vector<128xf32>
    %57 = vector.shape_cast %56 : vector<128xf32> to vector<1x128xf32>
    %cst_53 = arith.constant dense<0.000000e+00> : vector<128xf32>
    %58 = vector.multi_reduction <add>, %55, %cst_53 [0] : vector<16x128xf32> to vector<128xf32>
    %59 = vector.shape_cast %58 : vector<128xf32> to vector<1x128xf32>
    %60 = arith.addf %57, %59 : vector<1x128xf32>
    %c0_54 = arith.constant 0 : index
    %c0_55 = arith.constant 0 : index
    %c0_56 = arith.constant 0 : index
    %61 = vector.load %arg7[%c0_54, %c0_55, %c0_56] : memref<1x2x128xf32, #tpu.memory_space<vmem>>, vector<1x1x128xf32>
    %62 = vector.shape_cast %61 : vector<1x1x128xf32> to vector<1x128xf32>
    %63 = vector.shape_cast %60 : vector<1x128xf32> to vector<1x1x128xf32>
    tpu.vector_store %arg7[%c0_54, %c0_55, %c0_56], %63 {strides = array<i32>} : memref<1x2x128xf32, #tpu.memory_space<vmem>>, vector<1x1x128xf32>,
    %64 = arith.mulf %38, %38 : vector<16x128xf32>
    %cst_57 = arith.constant dense<0.000000e+00> : vector<128xf32>
    %65 = vector.multi_reduction <add>, %64, %cst_57 [0] : vector<16x128xf32> to vector<128xf32>
    %66 = vector.shape_cast %65 : vector<128xf32> to vector<1x128xf32>
    %67 = arith.mulf %55, %55 : vector<16x128xf32>
    %cst_58 = arith.constant dense<0.000000e+00> : vector<128xf32>
    %68 = vector.multi_reduction <add>, %67, %cst_58 [0] : vector<16x128xf32> to vector<128xf32>
    %69 = vector.shape_cast %68 : vector<128xf32> to vector<1x128xf32>
    %70 = arith.addf %66, %69 : vector<1x128xf32>
    %c0_59 = arith.constant 0 : index
    %c1_60 = arith.constant 1 : index
    %c0_61 = arith.constant 0 : index
    %71 = vector.load %arg7[%c0_59, %c1_60, %c0_61] : memref<1x2x128xf32, #tpu.memory_space<vmem>>, vector<1x1x128xf32>
    %72 = vector.shape_cast %71 : vector<1x1x128xf32> to vector<1x128xf32>
    %73 = vector.shape_cast %70 : vector<1x128xf32> to vector<1x1x128xf32>
    tpu.vector_store %arg7[%c0_59, %c1_60, %c0_61], %73 {strides = array<i32>} : memref<1x2x128xf32, #tpu.memory_space<vmem>>, vector<1x1x128xf32>,
    %74 = vector.shape_cast %38 : vector<16x128xf32> to vector<4x1x4x128xf32>
    %75 = arith.truncf %74 : vector<4x1x4x128xf32> to vector<4x1x4x128xbf16>
    %c0_62 = arith.constant 0 : index
    %c0_63 = arith.constant 0 : index
    %c0_64 = arith.constant 0 : index
    %c0_65 = arith.constant 0 : index
    %c0_66 = arith.constant 0 : index
    %76 = vector.load %arg6[%c0_62, %c0_63, %c0_64, %c0_65, %c0_66] : memref<1x4x2x4x128xbf16, #tpu.memory_space<vmem>>, vector<1x4x1x4x128xbf16>
    %77 = vector.shape_cast %76 : vector<1x4x1x4x128xbf16> to vector<4x1x4x128xbf16>
    %78 = vector.shape_cast %75 : vector<4x1x4x128xbf16> to vector<1x4x1x4x128xbf16>
    tpu.vector_store %arg6[%c0_62, %c0_63, %c0_64, %c0_65, %c0_66], %78 {strides = array<i32>} : memref<1x4x2x4x128xbf16, #tpu.memory_space<vmem>>, vector<1x4x1x4x128xbf16>,
    %79 = vector.shape_cast %55 : vector<16x128xf32> to vector<4x1x4x128xf32>
    %80 = arith.truncf %79 : vector<4x1x4x128xf32> to vector<4x1x4x128xbf16>
    %c0_67 = arith.constant 0 : index
    %c0_68 = arith.constant 0 : index
    %c1_69 = arith.constant 1 : index
    %c0_70 = arith.constant 0 : index
    %c0_71 = arith.constant 0 : index
    %81 = vector.load %arg6[%c0_67, %c0_68, %c1_69, %c0_70, %c0_71] : memref<1x4x2x4x128xbf16, #tpu.memory_space<vmem>>, vector<1x4x1x4x128xbf16>
    %82 = vector.shape_cast %81 : vector<1x4x1x4x128xbf16> to vector<4x1x4x128xbf16>
    %83 = vector.shape_cast %80 : vector<4x1x4x128xbf16> to vector<1x4x1x4x128xbf16>
    tpu.vector_store %arg6[%c0_67, %c0_68, %c1_69, %c0_70, %c0_71], %83 {strides = array<i32>} : memref<1x4x2x4x128xbf16, #tpu.memory_space<vmem>>, vector<1x4x1x4x128xbf16>,
    return
  }
  func.func @transform_0(%arg0: i32) -> (i32, i32, i32, i32) {
    %c0_i32 = arith.constant 0 : i32
    %c0_i32_0 = arith.constant 0 : i32
    %c0_i32_1 = arith.constant 0 : i32
    %c0_i32_2 = arith.constant 0 : i32
    return %arg0, %c0_i32, %c0_i32_0, %c0_i32_1 : i32, i32, i32, i32
  }
  func.func @transform_1(%arg0: i32) -> (i32, i32) {
    %c0_i32 = arith.constant 0 : i32
    %c0_i32_0 = arith.constant 0 : i32
    %c0_i32_1 = arith.constant 0 : i32
    return %c0_i32, %c0_i32_0 : i32, i32
  }
  func.func @transform_2(%arg0: i32) -> (i32, i32) {
    %c0_i32 = arith.constant 0 : i32
    %c0_i32_0 = arith.constant 0 : i32
    %c0_i32_1 = arith.constant 0 : i32
    return %c0_i32, %c0_i32_0 : i32, i32
  }
  func.func @transform_3(%arg0: i32) -> (i32, i32, i32) {
    %c0_i32 = arith.constant 0 : i32
    %c0_i32_0 = arith.constant 0 : i32
    %c0_i32_1 = arith.constant 0 : i32
    %c0_i32_2 = arith.constant 0 : i32
    return %c0_i32, %c0_i32_0, %c0_i32_1 : i32, i32, i32
  }
  func.func @transform_4(%arg0: i32) -> (i32, i32) {
    %c0_i32 = arith.constant 0 : i32
    %c0_i32_0 = arith.constant 0 : i32
    %c0_i32_1 = arith.constant 0 : i32
    return %c0_i32, %c0_i32_0 : i32, i32
  }
  func.func @transform_5(%arg0: i32) -> (i32, i32, i32, i32, i32) {
    %c0_i32 = arith.constant 0 : i32
    %c0_i32_0 = arith.constant 0 : i32
    %c0_i32_1 = arith.constant 0 : i32
    %c0_i32_2 = arith.constant 0 : i32
    %c0_i32_3 = arith.constant 0 : i32
    return %arg0, %c0_i32, %c0_i32_0, %c0_i32_1, %c0_i32_2 : i32, i32, i32, i32, i32
  }
  func.func @transform_6(%arg0: i32) -> (i32, i32, i32) {
    %c0_i32 = arith.constant 0 : i32
    %c0_i32_0 = arith.constant 0 : i32
    %c0_i32_1 = arith.constant 0 : i32
    return %arg0, %c0_i32, %c0_i32_0 : i32, i32, i32
  }
}

module attributes {stable_mosaic.version = 11 : i64} {
  func.func @_conv_transpose_kernel(%arg0: i32, %arg1: memref<1x8x8x64xbf16, #tpu.memory_space<vmem>>, %arg2: memref<1x64xf32, #tpu.memory_space<vmem>>, %arg3: memref<1x64xf32, #tpu.memory_space<vmem>>, %arg4: memref<6x64x128xbf16, #tpu.memory_space<vmem>>, %arg5: memref<1x128xf32, #tpu.memory_space<vmem>>, %arg6: memref<1x8x2x8x128xbf16, #tpu.memory_space<vmem>>, %arg7: memref<1x2x128xf32, #tpu.memory_space<vmem>>, %arg8: memref<9x9x64xbf16, #tpu.memory_space<vmem>>) attributes {dimension_semantics = [#tpu.dimension_semantics<parallel>], iteration_bounds = array<i64: 2>, scalar_prefetch = 0 : i64, scratch_operands = 1 : i64, tpu.core_type = #tpu.core_type<tc>, window_params = [{transform_indices = @transform_0, window_bounds = array<i64: 1, 8, 8, 64>}, {pipeline_mode = #tpu.pipeline_mode<synchronous>, transform_indices = @transform_1, window_bounds = array<i64: 1, 64>}, {pipeline_mode = #tpu.pipeline_mode<synchronous>, transform_indices = @transform_2, window_bounds = array<i64: 1, 64>}, {pipeline_mode = #tpu.pipeline_mode<synchronous>, transform_indices = @transform_3, window_bounds = array<i64: 6, 64, 128>}, {pipeline_mode = #tpu.pipeline_mode<synchronous>, transform_indices = @transform_4, window_bounds = array<i64: 1, 128>}, {transform_indices = @transform_5, window_bounds = array<i64: 1, 8, 2, 8, 128>}, {transform_indices = @transform_6, window_bounds = array<i64: 1, 2, 128>}]} {
    %c0 = arith.constant 0 : index
    %c0_0 = arith.constant 0 : index
    %c0_1 = arith.constant 0 : index
    %c0_2 = arith.constant 0 : index
    %0 = vector.load %arg1[%c0, %c0_0, %c0_1, %c0_2] : memref<1x8x8x64xbf16, #tpu.memory_space<vmem>>, vector<1x8x8x64xbf16>
    %1 = vector.shape_cast %0 : vector<1x8x8x64xbf16> to vector<8x8x64xbf16>
    %2 = arith.extf %1 : vector<8x8x64xbf16> to vector<8x8x64xf32>
    %c0_3 = arith.constant 0 : index
    %c0_4 = arith.constant 0 : index
    %3 = vector.load %arg2[%c0_3, %c0_4] : memref<1x64xf32, #tpu.memory_space<vmem>>, vector<1x64xf32>
    %4 = vector.shape_cast %3 : vector<1x64xf32> to vector<1x1x64xf32>
    %5 = vector.broadcast %4 : vector<1x1x64xf32> to vector<8x8x64xf32>
    %6 = arith.mulf %2, %5 : vector<8x8x64xf32>
    %c0_5 = arith.constant 0 : index
    %c0_6 = arith.constant 0 : index
    %7 = vector.load %arg3[%c0_5, %c0_6] : memref<1x64xf32, #tpu.memory_space<vmem>>, vector<1x64xf32>
    %8 = vector.shape_cast %7 : vector<1x64xf32> to vector<1x1x64xf32>
    %9 = vector.broadcast %8 : vector<1x1x64xf32> to vector<8x8x64xf32>
    %10 = arith.addf %6, %9 : vector<8x8x64xf32>
    %cst = arith.constant 0.000000e+00 : f32
    %11 = vector.broadcast %cst : f32 to vector<8x8x64xf32>
    %12 = arith.cmpf ogt, %10, %11 : vector<8x8x64xf32>
    %cst_7 = arith.constant 2.000000e-01 : f32
    %13 = vector.broadcast %cst_7 : f32 to vector<8x8x64xf32>
    %14 = arith.mulf %13, %10 : vector<8x8x64xf32>
    %15 = arith.select %12, %10, %14 : vector<8x8x64xi1>, vector<8x8x64xf32>
    %16 = arith.truncf %15 : vector<8x8x64xf32> to vector<8x8x64xbf16>
    %cst_8 = arith.constant 0.000000e+00 : bf16
    %17 = vector.broadcast %cst_8 : bf16 to vector<1x9x64xbf16>
    %c8 = arith.constant 8 : index
    %c0_9 = arith.constant 0 : index
    %c0_10 = arith.constant 0 : index
    %18 = vector.load %arg8[%c8, %c0_9, %c0_10] : memref<9x9x64xbf16, #tpu.memory_space<vmem>>, vector<1x9x64xbf16>
    tpu.vector_store %arg8[%c8, %c0_9, %c0_10], %17 {strides = array<i32>} : memref<9x9x64xbf16, #tpu.memory_space<vmem>>, vector<1x9x64xbf16>,
    %cst_11 = arith.constant 0.000000e+00 : bf16
    %19 = vector.broadcast %cst_11 : bf16 to vector<8x1x64xbf16>
    %c0_12 = arith.constant 0 : index
    %c8_13 = arith.constant 8 : index
    %c0_14 = arith.constant 0 : index
    %20 = vector.load %arg8[%c0_12, %c8_13, %c0_14] : memref<9x9x64xbf16, #tpu.memory_space<vmem>>, vector<8x1x64xbf16>
    tpu.vector_store %arg8[%c0_12, %c8_13, %c0_14], %19 {strides = array<i32>} : memref<9x9x64xbf16, #tpu.memory_space<vmem>>, vector<8x1x64xbf16>,
    %c0_15 = arith.constant 0 : index
    %c0_16 = arith.constant 0 : index
    %c0_17 = arith.constant 0 : index
    %21 = vector.load %arg8[%c0_15, %c0_16, %c0_17] : memref<9x9x64xbf16, #tpu.memory_space<vmem>>, vector<8x8x64xbf16>
    tpu.vector_store %arg8[%c0_15, %c0_16, %c0_17], %16 {strides = array<i32>} : memref<9x9x64xbf16, #tpu.memory_space<vmem>>, vector<8x8x64xbf16>,
    %c0_18 = arith.constant 0 : index
    %c0_19 = arith.constant 0 : index
    %c0_20 = arith.constant 0 : index
    %22 = vector.load %arg8[%c0_18, %c0_19, %c0_20] : memref<9x9x64xbf16, #tpu.memory_space<vmem>>, vector<8x8x64xbf16>
    %23 = vector.shape_cast %22 : vector<8x8x64xbf16> to vector<64x64xbf16>
    %c0_21 = arith.constant 0 : index
    %c1 = arith.constant 1 : index
    %c0_22 = arith.constant 0 : index
    %24 = vector.load %arg8[%c0_21, %c1, %c0_22] : memref<9x9x64xbf16, #tpu.memory_space<vmem>>, vector<8x8x64xbf16>
    %25 = vector.shape_cast %24 : vector<8x8x64xbf16> to vector<64x64xbf16>
    %c1_23 = arith.constant 1 : index
    %c0_24 = arith.constant 0 : index
    %c0_25 = arith.constant 0 : index
    %26 = vector.load %arg8[%c1_23, %c0_24, %c0_25] : memref<9x9x64xbf16, #tpu.memory_space<vmem>>, vector<8x8x64xbf16>
    %27 = vector.shape_cast %26 : vector<8x8x64xbf16> to vector<64x64xbf16>
    %c1_26 = arith.constant 1 : index
    %c1_27 = arith.constant 1 : index
    %c0_28 = arith.constant 0 : index
    %28 = vector.load %arg8[%c1_26, %c1_27, %c0_28] : memref<9x9x64xbf16, #tpu.memory_space<vmem>>, vector<8x8x64xbf16>
    %29 = vector.shape_cast %28 : vector<8x8x64xbf16> to vector<64x64xbf16>
    %c0_29 = arith.constant 0 : index
    %c0_30 = arith.constant 0 : index
    %30 = vector.load %arg5[%c0_29, %c0_30] : memref<1x128xf32, #tpu.memory_space<vmem>>, vector<1x128xf32>
    %c0_31 = arith.constant 0 : index
    %c0_32 = arith.constant 0 : index
    %c0_33 = arith.constant 0 : index
    %31 = vector.load %arg4[%c0_31, %c0_32, %c0_33] : memref<6x64x128xbf16, #tpu.memory_space<vmem>>, vector<1x64x128xbf16>
    %32 = vector.shape_cast %31 : vector<1x64x128xbf16> to vector<64x128xbf16>
    %cst_34 = arith.constant dense<0.000000e+00> : vector<64x128xf32>
    %33 = tpu.matmul %23, %32, %cst_34 {dimension_numbers = #tpu.dot_dimension_numbers<[1], [0], [0], [1], [0, 0, 1, 1], [], []>} : vector<64x64xbf16>, vector<64x128xbf16>, vector<64x128xf32> -> vector<64x128xf32>
    %c1_35 = arith.constant 1 : index
    %c0_36 = arith.constant 0 : index
    %c0_37 = arith.constant 0 : index
    %34 = vector.load %arg4[%c1_35, %c0_36, %c0_37] : memref<6x64x128xbf16, #tpu.memory_space<vmem>>, vector<1x64x128xbf16>
    %35 = vector.shape_cast %34 : vector<1x64x128xbf16> to vector<64x128xbf16>
    %cst_38 = arith.constant dense<0.000000e+00> : vector<64x128xf32>
    %36 = tpu.matmul %25, %35, %cst_38 {dimension_numbers = #tpu.dot_dimension_numbers<[1], [0], [0], [1], [0, 0, 1, 1], [], []>} : vector<64x64xbf16>, vector<64x128xbf16>, vector<64x128xf32> -> vector<64x128xf32>
    %37 = arith.addf %33, %36 : vector<64x128xf32>
    %38 = vector.broadcast %30 : vector<1x128xf32> to vector<64x128xf32>
    %39 = arith.addf %37, %38 : vector<64x128xf32>
    %c2 = arith.constant 2 : index
    %c0_39 = arith.constant 0 : index
    %c0_40 = arith.constant 0 : index
    %40 = vector.load %arg4[%c2, %c0_39, %c0_40] : memref<6x64x128xbf16, #tpu.memory_space<vmem>>, vector<1x64x128xbf16>
    %41 = vector.shape_cast %40 : vector<1x64x128xbf16> to vector<64x128xbf16>
    %cst_41 = arith.constant dense<0.000000e+00> : vector<64x128xf32>
    %42 = tpu.matmul %23, %41, %cst_41 {dimension_numbers = #tpu.dot_dimension_numbers<[1], [0], [0], [1], [0, 0, 1, 1], [], []>} : vector<64x64xbf16>, vector<64x128xbf16>, vector<64x128xf32> -> vector<64x128xf32>
    %c3 = arith.constant 3 : index
    %c0_42 = arith.constant 0 : index
    %c0_43 = arith.constant 0 : index
    %43 = vector.load %arg4[%c3, %c0_42, %c0_43] : memref<6x64x128xbf16, #tpu.memory_space<vmem>>, vector<1x64x128xbf16>
    %44 = vector.shape_cast %43 : vector<1x64x128xbf16> to vector<64x128xbf16>
    %cst_44 = arith.constant dense<0.000000e+00> : vector<64x128xf32>
    %45 = tpu.matmul %25, %44, %cst_44 {dimension_numbers = #tpu.dot_dimension_numbers<[1], [0], [0], [1], [0, 0, 1, 1], [], []>} : vector<64x64xbf16>, vector<64x128xbf16>, vector<64x128xf32> -> vector<64x128xf32>
    %46 = arith.addf %42, %45 : vector<64x128xf32>
    %c4 = arith.constant 4 : index
    %c0_45 = arith.constant 0 : index
    %c0_46 = arith.constant 0 : index
    %47 = vector.load %arg4[%c4, %c0_45, %c0_46] : memref<6x64x128xbf16, #tpu.memory_space<vmem>>, vector<1x64x128xbf16>
    %48 = vector.shape_cast %47 : vector<1x64x128xbf16> to vector<64x128xbf16>
    %cst_47 = arith.constant dense<0.000000e+00> : vector<64x128xf32>
    %49 = tpu.matmul %27, %48, %cst_47 {dimension_numbers = #tpu.dot_dimension_numbers<[1], [0], [0], [1], [0, 0, 1, 1], [], []>} : vector<64x64xbf16>, vector<64x128xbf16>, vector<64x128xf32> -> vector<64x128xf32>
    %50 = arith.addf %46, %49 : vector<64x128xf32>
    %c5 = arith.constant 5 : index
    %c0_48 = arith.constant 0 : index
    %c0_49 = arith.constant 0 : index
    %51 = vector.load %arg4[%c5, %c0_48, %c0_49] : memref<6x64x128xbf16, #tpu.memory_space<vmem>>, vector<1x64x128xbf16>
    %52 = vector.shape_cast %51 : vector<1x64x128xbf16> to vector<64x128xbf16>
    %cst_50 = arith.constant dense<0.000000e+00> : vector<64x128xf32>
    %53 = tpu.matmul %29, %52, %cst_50 {dimension_numbers = #tpu.dot_dimension_numbers<[1], [0], [0], [1], [0, 0, 1, 1], [], []>} : vector<64x64xbf16>, vector<64x128xbf16>, vector<64x128xf32> -> vector<64x128xf32>
    %54 = arith.addf %50, %53 : vector<64x128xf32>
    %55 = vector.broadcast %30 : vector<1x128xf32> to vector<64x128xf32>
    %56 = arith.addf %54, %55 : vector<64x128xf32>
    %cst_51 = arith.constant dense<0.000000e+00> : vector<128xf32>
    %57 = vector.multi_reduction <add>, %39, %cst_51 [0] : vector<64x128xf32> to vector<128xf32>
    %58 = vector.shape_cast %57 : vector<128xf32> to vector<1x128xf32>
    %cst_52 = arith.constant dense<0.000000e+00> : vector<128xf32>
    %59 = vector.multi_reduction <add>, %56, %cst_52 [0] : vector<64x128xf32> to vector<128xf32>
    %60 = vector.shape_cast %59 : vector<128xf32> to vector<1x128xf32>
    %61 = arith.addf %58, %60 : vector<1x128xf32>
    %c0_53 = arith.constant 0 : index
    %c0_54 = arith.constant 0 : index
    %c0_55 = arith.constant 0 : index
    %62 = vector.load %arg7[%c0_53, %c0_54, %c0_55] : memref<1x2x128xf32, #tpu.memory_space<vmem>>, vector<1x1x128xf32>
    %63 = vector.shape_cast %62 : vector<1x1x128xf32> to vector<1x128xf32>
    %64 = vector.shape_cast %61 : vector<1x128xf32> to vector<1x1x128xf32>
    tpu.vector_store %arg7[%c0_53, %c0_54, %c0_55], %64 {strides = array<i32>} : memref<1x2x128xf32, #tpu.memory_space<vmem>>, vector<1x1x128xf32>,
    %65 = arith.mulf %39, %39 : vector<64x128xf32>
    %cst_56 = arith.constant dense<0.000000e+00> : vector<128xf32>
    %66 = vector.multi_reduction <add>, %65, %cst_56 [0] : vector<64x128xf32> to vector<128xf32>
    %67 = vector.shape_cast %66 : vector<128xf32> to vector<1x128xf32>
    %68 = arith.mulf %56, %56 : vector<64x128xf32>
    %cst_57 = arith.constant dense<0.000000e+00> : vector<128xf32>
    %69 = vector.multi_reduction <add>, %68, %cst_57 [0] : vector<64x128xf32> to vector<128xf32>
    %70 = vector.shape_cast %69 : vector<128xf32> to vector<1x128xf32>
    %71 = arith.addf %67, %70 : vector<1x128xf32>
    %c0_58 = arith.constant 0 : index
    %c1_59 = arith.constant 1 : index
    %c0_60 = arith.constant 0 : index
    %72 = vector.load %arg7[%c0_58, %c1_59, %c0_60] : memref<1x2x128xf32, #tpu.memory_space<vmem>>, vector<1x1x128xf32>
    %73 = vector.shape_cast %72 : vector<1x1x128xf32> to vector<1x128xf32>
    %74 = vector.shape_cast %71 : vector<1x128xf32> to vector<1x1x128xf32>
    tpu.vector_store %arg7[%c0_58, %c1_59, %c0_60], %74 {strides = array<i32>} : memref<1x2x128xf32, #tpu.memory_space<vmem>>, vector<1x1x128xf32>,
    %75 = vector.shape_cast %39 : vector<64x128xf32> to vector<8x1x8x128xf32>
    %76 = arith.truncf %75 : vector<8x1x8x128xf32> to vector<8x1x8x128xbf16>
    %c0_61 = arith.constant 0 : index
    %c0_62 = arith.constant 0 : index
    %c0_63 = arith.constant 0 : index
    %c0_64 = arith.constant 0 : index
    %c0_65 = arith.constant 0 : index
    %77 = vector.load %arg6[%c0_61, %c0_62, %c0_63, %c0_64, %c0_65] : memref<1x8x2x8x128xbf16, #tpu.memory_space<vmem>>, vector<1x8x1x8x128xbf16>
    %78 = vector.shape_cast %77 : vector<1x8x1x8x128xbf16> to vector<8x1x8x128xbf16>
    %79 = vector.shape_cast %76 : vector<8x1x8x128xbf16> to vector<1x8x1x8x128xbf16>
    tpu.vector_store %arg6[%c0_61, %c0_62, %c0_63, %c0_64, %c0_65], %79 {strides = array<i32>} : memref<1x8x2x8x128xbf16, #tpu.memory_space<vmem>>, vector<1x8x1x8x128xbf16>,
    %80 = vector.shape_cast %56 : vector<64x128xf32> to vector<8x1x8x128xf32>
    %81 = arith.truncf %80 : vector<8x1x8x128xf32> to vector<8x1x8x128xbf16>
    %c0_66 = arith.constant 0 : index
    %c0_67 = arith.constant 0 : index
    %c1_68 = arith.constant 1 : index
    %c0_69 = arith.constant 0 : index
    %c0_70 = arith.constant 0 : index
    %82 = vector.load %arg6[%c0_66, %c0_67, %c1_68, %c0_69, %c0_70] : memref<1x8x2x8x128xbf16, #tpu.memory_space<vmem>>, vector<1x8x1x8x128xbf16>
    %83 = vector.shape_cast %82 : vector<1x8x1x8x128xbf16> to vector<8x1x8x128xbf16>
    %84 = vector.shape_cast %81 : vector<8x1x8x128xbf16> to vector<1x8x1x8x128xbf16>
    tpu.vector_store %arg6[%c0_66, %c0_67, %c1_68, %c0_69, %c0_70], %84 {strides = array<i32>} : memref<1x8x2x8x128xbf16, #tpu.memory_space<vmem>>, vector<1x8x1x8x128xbf16>,
    return
  }
  func.func @transform_0(%arg0: i32) -> (i32, i32, i32, i32) {
    %c0_i32 = arith.constant 0 : i32
    %c0_i32_0 = arith.constant 0 : i32
    %c0_i32_1 = arith.constant 0 : i32
    %c0_i32_2 = arith.constant 0 : i32
    return %arg0, %c0_i32, %c0_i32_0, %c0_i32_1 : i32, i32, i32, i32
  }
  func.func @transform_1(%arg0: i32) -> (i32, i32) {
    %c0_i32 = arith.constant 0 : i32
    %c0_i32_0 = arith.constant 0 : i32
    %c0_i32_1 = arith.constant 0 : i32
    return %c0_i32, %c0_i32_0 : i32, i32
  }
  func.func @transform_2(%arg0: i32) -> (i32, i32) {
    %c0_i32 = arith.constant 0 : i32
    %c0_i32_0 = arith.constant 0 : i32
    %c0_i32_1 = arith.constant 0 : i32
    return %c0_i32, %c0_i32_0 : i32, i32
  }
  func.func @transform_3(%arg0: i32) -> (i32, i32, i32) {
    %c0_i32 = arith.constant 0 : i32
    %c0_i32_0 = arith.constant 0 : i32
    %c0_i32_1 = arith.constant 0 : i32
    %c0_i32_2 = arith.constant 0 : i32
    return %c0_i32, %c0_i32_0, %c0_i32_1 : i32, i32, i32
  }
  func.func @transform_4(%arg0: i32) -> (i32, i32) {
    %c0_i32 = arith.constant 0 : i32
    %c0_i32_0 = arith.constant 0 : i32
    %c0_i32_1 = arith.constant 0 : i32
    return %c0_i32, %c0_i32_0 : i32, i32
  }
  func.func @transform_5(%arg0: i32) -> (i32, i32, i32, i32, i32) {
    %c0_i32 = arith.constant 0 : i32
    %c0_i32_0 = arith.constant 0 : i32
    %c0_i32_1 = arith.constant 0 : i32
    %c0_i32_2 = arith.constant 0 : i32
    %c0_i32_3 = arith.constant 0 : i32
    return %arg0, %c0_i32, %c0_i32_0, %c0_i32_1, %c0_i32_2 : i32, i32, i32, i32, i32
  }
  func.func @transform_6(%arg0: i32) -> (i32, i32, i32) {
    %c0_i32 = arith.constant 0 : i32
    %c0_i32_0 = arith.constant 0 : i32
    %c0_i32_1 = arith.constant 0 : i32
    return %arg0, %c0_i32, %c0_i32_0 : i32, i32, i32
  }
}

module attributes {stable_mosaic.version = 11 : i64} {
  func.func @_conv3x3_tanh_kernel(%arg0: i32, %arg1: memref<1x16x16x64xbf16, #tpu.memory_space<vmem>>, %arg2: memref<1x64xf32, #tpu.memory_space<vmem>>, %arg3: memref<1x64xf32, #tpu.memory_space<vmem>>, %arg4: memref<9x64x128xbf16, #tpu.memory_space<vmem>>, %arg5: memref<1x128xf32, #tpu.memory_space<vmem>>, %arg6: memref<1x16x16x128xf32, #tpu.memory_space<vmem>>, %arg7: memref<18x18x64xbf16, #tpu.memory_space<vmem>>) attributes {dimension_semantics = [#tpu.dimension_semantics<parallel>], iteration_bounds = array<i64: 2>, scalar_prefetch = 0 : i64, scratch_operands = 1 : i64, tpu.core_type = #tpu.core_type<tc>, window_params = [{transform_indices = @transform_0, window_bounds = array<i64: 1, 16, 16, 64>}, {pipeline_mode = #tpu.pipeline_mode<synchronous>, transform_indices = @transform_1, window_bounds = array<i64: 1, 64>}, {pipeline_mode = #tpu.pipeline_mode<synchronous>, transform_indices = @transform_2, window_bounds = array<i64: 1, 64>}, {pipeline_mode = #tpu.pipeline_mode<synchronous>, transform_indices = @transform_3, window_bounds = array<i64: 9, 64, 128>}, {pipeline_mode = #tpu.pipeline_mode<synchronous>, transform_indices = @transform_4, window_bounds = array<i64: 1, 128>}, {transform_indices = @transform_5, window_bounds = array<i64: 1, 16, 16, 128>}]} {
    %c0 = arith.constant 0 : index
    %c0_0 = arith.constant 0 : index
    %c0_1 = arith.constant 0 : index
    %c0_2 = arith.constant 0 : index
    %0 = vector.load %arg1[%c0, %c0_0, %c0_1, %c0_2] : memref<1x16x16x64xbf16, #tpu.memory_space<vmem>>, vector<1x16x16x64xbf16>
    %1 = vector.shape_cast %0 : vector<1x16x16x64xbf16> to vector<16x16x64xbf16>
    %2 = arith.extf %1 : vector<16x16x64xbf16> to vector<16x16x64xf32>
    %c0_3 = arith.constant 0 : index
    %c0_4 = arith.constant 0 : index
    %3 = vector.load %arg2[%c0_3, %c0_4] : memref<1x64xf32, #tpu.memory_space<vmem>>, vector<1x64xf32>
    %4 = vector.shape_cast %3 : vector<1x64xf32> to vector<1x1x64xf32>
    %5 = vector.broadcast %4 : vector<1x1x64xf32> to vector<16x16x64xf32>
    %6 = arith.mulf %2, %5 : vector<16x16x64xf32>
    %c0_5 = arith.constant 0 : index
    %c0_6 = arith.constant 0 : index
    %7 = vector.load %arg3[%c0_5, %c0_6] : memref<1x64xf32, #tpu.memory_space<vmem>>, vector<1x64xf32>
    %8 = vector.shape_cast %7 : vector<1x64xf32> to vector<1x1x64xf32>
    %9 = vector.broadcast %8 : vector<1x1x64xf32> to vector<16x16x64xf32>
    %10 = arith.addf %6, %9 : vector<16x16x64xf32>
    %cst = arith.constant 0.000000e+00 : f32
    %11 = vector.broadcast %cst : f32 to vector<16x16x64xf32>
    %12 = arith.cmpf ogt, %10, %11 : vector<16x16x64xf32>
    %cst_7 = arith.constant 2.000000e-01 : f32
    %13 = vector.broadcast %cst_7 : f32 to vector<16x16x64xf32>
    %14 = arith.mulf %13, %10 : vector<16x16x64xf32>
    %15 = arith.select %12, %10, %14 : vector<16x16x64xi1>, vector<16x16x64xf32>
    %16 = arith.truncf %15 : vector<16x16x64xf32> to vector<16x16x64xbf16>
    %cst_8 = arith.constant 0.000000e+00 : bf16
    %17 = vector.broadcast %cst_8 : bf16 to vector<1x18x64xbf16>
    %c0_9 = arith.constant 0 : index
    %c0_10 = arith.constant 0 : index
    %c0_11 = arith.constant 0 : index
    %18 = vector.load %arg7[%c0_9, %c0_10, %c0_11] : memref<18x18x64xbf16, #tpu.memory_space<vmem>>, vector<1x18x64xbf16>
    tpu.vector_store %arg7[%c0_9, %c0_10, %c0_11], %17 {strides = array<i32>} : memref<18x18x64xbf16, #tpu.memory_space<vmem>>, vector<1x18x64xbf16>,
    %cst_12 = arith.constant 0.000000e+00 : bf16
    %19 = vector.broadcast %cst_12 : bf16 to vector<1x18x64xbf16>
    %c17 = arith.constant 17 : index
    %c0_13 = arith.constant 0 : index
    %c0_14 = arith.constant 0 : index
    %20 = vector.load %arg7[%c17, %c0_13, %c0_14] : memref<18x18x64xbf16, #tpu.memory_space<vmem>>, vector<1x18x64xbf16>
    tpu.vector_store %arg7[%c17, %c0_13, %c0_14], %19 {strides = array<i32>} : memref<18x18x64xbf16, #tpu.memory_space<vmem>>, vector<1x18x64xbf16>,
    %cst_15 = arith.constant 0.000000e+00 : bf16
    %21 = vector.broadcast %cst_15 : bf16 to vector<16x1x64xbf16>
    %c1 = arith.constant 1 : index
    %c0_16 = arith.constant 0 : index
    %c0_17 = arith.constant 0 : index
    %22 = vector.load %arg7[%c1, %c0_16, %c0_17] : memref<18x18x64xbf16, #tpu.memory_space<vmem>>, vector<16x1x64xbf16>
    tpu.vector_store %arg7[%c1, %c0_16, %c0_17], %21 {strides = array<i32>} : memref<18x18x64xbf16, #tpu.memory_space<vmem>>, vector<16x1x64xbf16>,
    %cst_18 = arith.constant 0.000000e+00 : bf16
    %23 = vector.broadcast %cst_18 : bf16 to vector<16x1x64xbf16>
    %c1_19 = arith.constant 1 : index
    %c17_20 = arith.constant 17 : index
    %c0_21 = arith.constant 0 : index
    %24 = vector.load %arg7[%c1_19, %c17_20, %c0_21] : memref<18x18x64xbf16, #tpu.memory_space<vmem>>, vector<16x1x64xbf16>
    tpu.vector_store %arg7[%c1_19, %c17_20, %c0_21], %23 {strides = array<i32>} : memref<18x18x64xbf16, #tpu.memory_space<vmem>>, vector<16x1x64xbf16>,
    %c1_22 = arith.constant 1 : index
    %c1_23 = arith.constant 1 : index
    %c0_24 = arith.constant 0 : index
    %25 = vector.load %arg7[%c1_22, %c1_23, %c0_24] : memref<18x18x64xbf16, #tpu.memory_space<vmem>>, vector<16x16x64xbf16>
    tpu.vector_store %arg7[%c1_22, %c1_23, %c0_24], %16 {strides = array<i32>} : memref<18x18x64xbf16, #tpu.memory_space<vmem>>, vector<16x16x64xbf16>,
    %cst_25 = arith.constant 0.000000e+00 : f32
    %26 = vector.broadcast %cst_25 : f32 to vector<256x128xf32>
    %c0_26 = arith.constant 0 : index
    %c0_27 = arith.constant 0 : index
    %c0_28 = arith.constant 0 : index
    %27 = vector.load %arg7[%c0_26, %c0_27, %c0_28] : memref<18x18x64xbf16, #tpu.memory_space<vmem>>, vector<16x16x64xbf16>
    %28 = vector.shape_cast %27 : vector<16x16x64xbf16> to vector<256x64xbf16>
    %c0_29 = arith.constant 0 : index
    %c0_30 = arith.constant 0 : index
    %c0_31 = arith.constant 0 : index
    %29 = vector.load %arg4[%c0_29, %c0_30, %c0_31] : memref<9x64x128xbf16, #tpu.memory_space<vmem>>, vector<1x64x128xbf16>
    %30 = vector.shape_cast %29 : vector<1x64x128xbf16> to vector<64x128xbf16>
    %cst_32 = arith.constant dense<0.000000e+00> : vector<256x128xf32>
    %31 = tpu.matmul %28, %30, %cst_32 {dimension_numbers = #tpu.dot_dimension_numbers<[1], [0], [0], [1], [0, 0, 1, 1], [], []>} : vector<256x64xbf16>, vector<64x128xbf16>, vector<256x128xf32> -> vector<256x128xf32>
    %32 = arith.addf %26, %31 : vector<256x128xf32>
    %c0_33 = arith.constant 0 : index
    %c1_34 = arith.constant 1 : index
    %c0_35 = arith.constant 0 : index
    %33 = vector.load %arg7[%c0_33, %c1_34, %c0_35] : memref<18x18x64xbf16, #tpu.memory_space<vmem>>, vector<16x16x64xbf16>
    %34 = vector.shape_cast %33 : vector<16x16x64xbf16> to vector<256x64xbf16>
    %c1_36 = arith.constant 1 : index
    %c0_37 = arith.constant 0 : index
    %c0_38 = arith.constant 0 : index
    %35 = vector.load %arg4[%c1_36, %c0_37, %c0_38] : memref<9x64x128xbf16, #tpu.memory_space<vmem>>, vector<1x64x128xbf16>
    %36 = vector.shape_cast %35 : vector<1x64x128xbf16> to vector<64x128xbf16>
    %cst_39 = arith.constant dense<0.000000e+00> : vector<256x128xf32>
    %37 = tpu.matmul %34, %36, %cst_39 {dimension_numbers = #tpu.dot_dimension_numbers<[1], [0], [0], [1], [0, 0, 1, 1], [], []>} : vector<256x64xbf16>, vector<64x128xbf16>, vector<256x128xf32> -> vector<256x128xf32>
    %38 = arith.addf %32, %37 : vector<256x128xf32>
    %c0_40 = arith.constant 0 : index
    %c2 = arith.constant 2 : index
    %c0_41 = arith.constant 0 : index
    %39 = vector.load %arg7[%c0_40, %c2, %c0_41] : memref<18x18x64xbf16, #tpu.memory_space<vmem>>, vector<16x16x64xbf16>
    %40 = vector.shape_cast %39 : vector<16x16x64xbf16> to vector<256x64xbf16>
    %c2_42 = arith.constant 2 : index
    %c0_43 = arith.constant 0 : index
    %c0_44 = arith.constant 0 : index
    %41 = vector.load %arg4[%c2_42, %c0_43, %c0_44] : memref<9x64x128xbf16, #tpu.memory_space<vmem>>, vector<1x64x128xbf16>
    %42 = vector.shape_cast %41 : vector<1x64x128xbf16> to vector<64x128xbf16>
    %cst_45 = arith.constant dense<0.000000e+00> : vector<256x128xf32>
    %43 = tpu.matmul %40, %42, %cst_45 {dimension_numbers = #tpu.dot_dimension_numbers<[1], [0], [0], [1], [0, 0, 1, 1], [], []>} : vector<256x64xbf16>, vector<64x128xbf16>, vector<256x128xf32> -> vector<256x128xf32>
    %44 = arith.addf %38, %43 : vector<256x128xf32>
    %c1_46 = arith.constant 1 : index
    %c0_47 = arith.constant 0 : index
    %c0_48 = arith.constant 0 : index
    %45 = vector.load %arg7[%c1_46, %c0_47, %c0_48] : memref<18x18x64xbf16, #tpu.memory_space<vmem>>, vector<16x16x64xbf16>
    %46 = vector.shape_cast %45 : vector<16x16x64xbf16> to vector<256x64xbf16>
    %c3 = arith.constant 3 : index
    %c0_49 = arith.constant 0 : index
    %c0_50 = arith.constant 0 : index
    %47 = vector.load %arg4[%c3, %c0_49, %c0_50] : memref<9x64x128xbf16, #tpu.memory_space<vmem>>, vector<1x64x128xbf16>
    %48 = vector.shape_cast %47 : vector<1x64x128xbf16> to vector<64x128xbf16>
    %cst_51 = arith.constant dense<0.000000e+00> : vector<256x128xf32>
    %49 = tpu.matmul %46, %48, %cst_51 {dimension_numbers = #tpu.dot_dimension_numbers<[1], [0], [0], [1], [0, 0, 1, 1], [], []>} : vector<256x64xbf16>, vector<64x128xbf16>, vector<256x128xf32> -> vector<256x128xf32>
    %50 = arith.addf %44, %49 : vector<256x128xf32>
    %c1_52 = arith.constant 1 : index
    %c1_53 = arith.constant 1 : index
    %c0_54 = arith.constant 0 : index
    %51 = vector.load %arg7[%c1_52, %c1_53, %c0_54] : memref<18x18x64xbf16, #tpu.memory_space<vmem>>, vector<16x16x64xbf16>
    %52 = vector.shape_cast %51 : vector<16x16x64xbf16> to vector<256x64xbf16>
    %c4 = arith.constant 4 : index
    %c0_55 = arith.constant 0 : index
    %c0_56 = arith.constant 0 : index
    %53 = vector.load %arg4[%c4, %c0_55, %c0_56] : memref<9x64x128xbf16, #tpu.memory_space<vmem>>, vector<1x64x128xbf16>
    %54 = vector.shape_cast %53 : vector<1x64x128xbf16> to vector<64x128xbf16>
    %cst_57 = arith.constant dense<0.000000e+00> : vector<256x128xf32>
    %55 = tpu.matmul %52, %54, %cst_57 {dimension_numbers = #tpu.dot_dimension_numbers<[1], [0], [0], [1], [0, 0, 1, 1], [], []>} : vector<256x64xbf16>, vector<64x128xbf16>, vector<256x128xf32> -> vector<256x128xf32>
    %56 = arith.addf %50, %55 : vector<256x128xf32>
    %c1_58 = arith.constant 1 : index
    %c2_59 = arith.constant 2 : index
    %c0_60 = arith.constant 0 : index
    %57 = vector.load %arg7[%c1_58, %c2_59, %c0_60] : memref<18x18x64xbf16, #tpu.memory_space<vmem>>, vector<16x16x64xbf16>
    %58 = vector.shape_cast %57 : vector<16x16x64xbf16> to vector<256x64xbf16>
    %c5 = arith.constant 5 : index
    %c0_61 = arith.constant 0 : index
    %c0_62 = arith.constant 0 : index
    %59 = vector.load %arg4[%c5, %c0_61, %c0_62] : memref<9x64x128xbf16, #tpu.memory_space<vmem>>, vector<1x64x128xbf16>
    %60 = vector.shape_cast %59 : vector<1x64x128xbf16> to vector<64x128xbf16>
    %cst_63 = arith.constant dense<0.000000e+00> : vector<256x128xf32>
    %61 = tpu.matmul %58, %60, %cst_63 {dimension_numbers = #tpu.dot_dimension_numbers<[1], [0], [0], [1], [0, 0, 1, 1], [], []>} : vector<256x64xbf16>, vector<64x128xbf16>, vector<256x128xf32> -> vector<256x128xf32>
    %62 = arith.addf %56, %61 : vector<256x128xf32>
    %c2_64 = arith.constant 2 : index
    %c0_65 = arith.constant 0 : index
    %c0_66 = arith.constant 0 : index
    %63 = vector.load %arg7[%c2_64, %c0_65, %c0_66] : memref<18x18x64xbf16, #tpu.memory_space<vmem>>, vector<16x16x64xbf16>
    %64 = vector.shape_cast %63 : vector<16x16x64xbf16> to vector<256x64xbf16>
    %c6 = arith.constant 6 : index
    %c0_67 = arith.constant 0 : index
    %c0_68 = arith.constant 0 : index
    %65 = vector.load %arg4[%c6, %c0_67, %c0_68] : memref<9x64x128xbf16, #tpu.memory_space<vmem>>, vector<1x64x128xbf16>
    %66 = vector.shape_cast %65 : vector<1x64x128xbf16> to vector<64x128xbf16>
    %cst_69 = arith.constant dense<0.000000e+00> : vector<256x128xf32>
    %67 = tpu.matmul %64, %66, %cst_69 {dimension_numbers = #tpu.dot_dimension_numbers<[1], [0], [0], [1], [0, 0, 1, 1], [], []>} : vector<256x64xbf16>, vector<64x128xbf16>, vector<256x128xf32> -> vector<256x128xf32>
    %68 = arith.addf %62, %67 : vector<256x128xf32>
    %c2_70 = arith.constant 2 : index
    %c1_71 = arith.constant 1 : index
    %c0_72 = arith.constant 0 : index
    %69 = vector.load %arg7[%c2_70, %c1_71, %c0_72] : memref<18x18x64xbf16, #tpu.memory_space<vmem>>, vector<16x16x64xbf16>
    %70 = vector.shape_cast %69 : vector<16x16x64xbf16> to vector<256x64xbf16>
    %c7 = arith.constant 7 : index
    %c0_73 = arith.constant 0 : index
    %c0_74 = arith.constant 0 : index
    %71 = vector.load %arg4[%c7, %c0_73, %c0_74] : memref<9x64x128xbf16, #tpu.memory_space<vmem>>, vector<1x64x128xbf16>
    %72 = vector.shape_cast %71 : vector<1x64x128xbf16> to vector<64x128xbf16>
    %cst_75 = arith.constant dense<0.000000e+00> : vector<256x128xf32>
    %73 = tpu.matmul %70, %72, %cst_75 {dimension_numbers = #tpu.dot_dimension_numbers<[1], [0], [0], [1], [0, 0, 1, 1], [], []>} : vector<256x64xbf16>, vector<64x128xbf16>, vector<256x128xf32> -> vector<256x128xf32>
    %74 = arith.addf %68, %73 : vector<256x128xf32>
    %c2_76 = arith.constant 2 : index
    %c2_77 = arith.constant 2 : index
    %c0_78 = arith.constant 0 : index
    %75 = vector.load %arg7[%c2_76, %c2_77, %c0_78] : memref<18x18x64xbf16, #tpu.memory_space<vmem>>, vector<16x16x64xbf16>
    %76 = vector.shape_cast %75 : vector<16x16x64xbf16> to vector<256x64xbf16>
    %c8 = arith.constant 8 : index
    %c0_79 = arith.constant 0 : index
    %c0_80 = arith.constant 0 : index
    %77 = vector.load %arg4[%c8, %c0_79, %c0_80] : memref<9x64x128xbf16, #tpu.memory_space<vmem>>, vector<1x64x128xbf16>
    %78 = vector.shape_cast %77 : vector<1x64x128xbf16> to vector<64x128xbf16>
    %cst_81 = arith.constant dense<0.000000e+00> : vector<256x128xf32>
    %79 = tpu.matmul %76, %78, %cst_81 {dimension_numbers = #tpu.dot_dimension_numbers<[1], [0], [0], [1], [0, 0, 1, 1], [], []>} : vector<256x64xbf16>, vector<64x128xbf16>, vector<256x128xf32> -> vector<256x128xf32>
    %80 = arith.addf %74, %79 : vector<256x128xf32>
    %c0_82 = arith.constant 0 : index
    %c0_83 = arith.constant 0 : index
    %81 = vector.load %arg5[%c0_82, %c0_83] : memref<1x128xf32, #tpu.memory_space<vmem>>, vector<1x128xf32>
    %82 = vector.broadcast %81 : vector<1x128xf32> to vector<256x128xf32>
    %83 = arith.addf %80, %82 : vector<256x128xf32>
    %84 = math.tanh %83 : vector<256x128xf32>
    %85 = vector.shape_cast %84 : vector<256x128xf32> to vector<16x16x128xf32>
    %c0_84 = arith.constant 0 : index
    %c0_85 = arith.constant 0 : index
    %c0_86 = arith.constant 0 : index
    %c0_87 = arith.constant 0 : index
    %86 = vector.load %arg6[%c0_84, %c0_85, %c0_86, %c0_87] : memref<1x16x16x128xf32, #tpu.memory_space<vmem>>, vector<1x16x16x128xf32>
    %87 = vector.shape_cast %86 : vector<1x16x16x128xf32> to vector<16x16x128xf32>
    %88 = vector.shape_cast %85 : vector<16x16x128xf32> to vector<1x16x16x128xf32>
    tpu.vector_store %arg6[%c0_84, %c0_85, %c0_86, %c0_87], %88 {strides = array<i32>} : memref<1x16x16x128xf32, #tpu.memory_space<vmem>>, vector<1x16x16x128xf32>,
    return
  }
  func.func @transform_0(%arg0: i32) -> (i32, i32, i32, i32) {
    %c0_i32 = arith.constant 0 : i32
    %c0_i32_0 = arith.constant 0 : i32
    %c0_i32_1 = arith.constant 0 : i32
    %c0_i32_2 = arith.constant 0 : i32
    return %arg0, %c0_i32, %c0_i32_0, %c0_i32_1 : i32, i32, i32, i32
  }
  func.func @transform_1(%arg0: i32) -> (i32, i32) {
    %c0_i32 = arith.constant 0 : i32
    %c0_i32_0 = arith.constant 0 : i32
    %c0_i32_1 = arith.constant 0 : i32
    return %c0_i32, %c0_i32_0 : i32, i32
  }
  func.func @transform_2(%arg0: i32) -> (i32, i32) {
    %c0_i32 = arith.constant 0 : i32
    %c0_i32_0 = arith.constant 0 : i32
    %c0_i32_1 = arith.constant 0 : i32
    return %c0_i32, %c0_i32_0 : i32, i32
  }
  func.func @transform_3(%arg0: i32) -> (i32, i32, i32) {
    %c0_i32 = arith.constant 0 : i32
    %c0_i32_0 = arith.constant 0 : i32
    %c0_i32_1 = arith.constant 0 : i32
    %c0_i32_2 = arith.constant 0 : i32
    return %c0_i32, %c0_i32_0, %c0_i32_1 : i32, i32, i32
  }
  func.func @transform_4(%arg0: i32) -> (i32, i32) {
    %c0_i32 = arith.constant 0 : i32
    %c0_i32_0 = arith.constant 0 : i32
    %c0_i32_1 = arith.constant 0 : i32
    return %c0_i32, %c0_i32_0 : i32, i32
  }
  func.func @transform_5(%arg0: i32) -> (i32, i32, i32, i32) {
    %c0_i32 = arith.constant 0 : i32
    %c0_i32_0 = arith.constant 0 : i32
    %c0_i32_1 = arith.constant 0 : i32
    %c0_i32_2 = arith.constant 0 : i32
    return %arg0, %c0_i32, %c0_i32_0, %c0_i32_1 : i32, i32, i32, i32
  }
}

</mosaic_0001>

<bundles_post_ra>
// kernel: a_call__.4
= control target key start
LH: loop header
LB: loop body
LE: loop exit
PB: predicated region body
PF: predicated region fallthrough
CT: control target
= control target key end

     0   :  { %v763_v3 = vmov 0   ;;  %vm161_vm0 = vcmask 261120   ;;  %v41_v35 = vlaneseq  ;;  %vm329_vm1 = vcmask 1041408   ;;  %s1046_s1 = inlined_call_operand.vmem [shape: bf16[32,1024], index: 1, kind: input, shape index: {}]   ;;  %s1047_s0 = inlined_call_operand.vmem [shape: f32[2,32], index: 0, kind: input, shape index: {}]   ;;  %s1048_s2 = inlined_call_operand.vmem [shape: f32[1,1024], index: 2, kind: input, shape index: {}]   ;;  %s1049_s4 = inlined_call_operand.vmem [shape: f32[1,1024], index: 4, kind: input, shape index: {}]   ;;  %s1050_s3 = inlined_call_operand.vmem [shape: f32[1,1024], index: 3, kind: input, shape index: {}]   ;;  %s1051_s5 = inlined_call_operand.vmem [shape: f32[2,1024], index: 5, kind: output, shape index: {}]  }
   0x1   :  { %v23_v0 = vld [vmem:[%s1046_s1] sm:$0xff]  ;;  %v24_v2 = vld [vmem:[%s1046_s1 + $0x8] sm:$0xff]  ;;  %197 = vmatprep.mubr.bf16.mxu0 %v763_v3  ;;  %238 = vmatprep.mubr.bf16.mxu1 %v763_v3  ;;  %v25_v15 = vld [vmem:[%s1046_s1 + $0x10] sm:$0xff]  ;;  %v764_v61 = vmov 1966171168  }
   0x2   :  { %v27_v1 = vld [vmem:[%s1046_s1 + $0x20] sm:$0xff]  ;;  %v28_v5 = vld [vmem:[%s1046_s1 + $0x28] sm:$0xff]  ;;  %v29_v16 = vld [vmem:[%s1046_s1 + $0x30] sm:$0xff]  ;;  %v851_v36 = vshrl.u32 %v41_v35, 7  ;;  %v902_v62 = vunpack.c.l.s4 %v764_v61 }
   0x3   :  { %v725_v4 = vcombine.high %v23_v0, %v27_v1  ;;  %v724_v6 = vcombine.low %v23_v0, %v27_v1  ;;  %v31_v7 = vld [vmem:[%s1046_s1 + $0x40] sm:$0xff]  ;;  %v727_v9 = vcombine.high %v24_v2, %v28_v5  ;;  %v726_v10 = vcombine.low %v24_v2, %v28_v5  ;;  %v32_v12 = vld [vmem:[%s1046_s1 + $0x48] sm:$0xff]  ;;  %v26_v17 = vld [vmem:[%s1046_s1 + $0x18] sm:$0xff] }
   0x4   :  { %v35_v8 = vld [vmem:[%s1046_s1 + $0x60] sm:$0xff]  ;;  %v36_v13 = vld [vmem:[%s1046_s1 + $0x68] sm:$0xff]  ;;  %v30_v20 = vld [vmem:[%s1046_s1 + $0x38] sm:$0xff]  ;;  %v729_v22 = vcombine.high %v25_v15, %v29_v16  ;;  %v728_v29 = vcombine.low %v25_v15, %v29_v16  ;;  %v854_v37 = vsub.s32 0, %v851_v36  ;;  %v862_v39 = vsub.s32 2, %v851_v36 }
   0x5   :  { %v733_v11 = vcombine.high %v31_v7, %v35_v8  ;;  %165 = vmatprep.subr.bf16.mxu0 %v725_v4  ;;  %v735_v14 = vcombine.high %v32_v12, %v36_v13  ;;  %206 = vmatprep.subr.bf16.mxu1 %v727_v9  ;;  %v732_v18 = vcombine.low %v31_v7, %v35_v8  ;;  %v21_v19 = vld [vmem:[%s1047_s0] sm:$0x3]  ;;  %v33_v24 = vld [vmem:[%s1046_s1 + $0x50] sm:$0xff]  ;;  %v34_v27 = vld [vmem:[%s1046_s1 + $0x58] sm:$0xff]  ;;  %v865_v40 = vsub.s32 1, %v851_v36 }
   0x6   :  { %166 = vmatpush1.bf16.msra.mxu0 %v724_v6  ;;  %207 = vmatpush1.bf16.msra.mxu1 %v726_v10  ;;  %v734_v21 = vcombine.low %v32_v12, %v36_v13  ;;  %v731_v23 = vcombine.high %v26_v17, %v30_v20  ;;  %v37_v25 = vld [vmem:[%s1046_s1 + $0x70] sm:$0xff]  ;;  %v22_v26 = vpack.c.bf16 %v21_v19, %v21_v19  ;;  %v38_v28 = vld [vmem:[%s1046_s1 + $0x78] sm:$0xff]  ;;  %v859_v38 = vld [vmem:[%s1048_s2] sm:$0xff]  ;;  %v868_v41 = vsub.s32 3, %v851_v36 }
   0x7   :  { %167 = vmatprep.subr.bf16.mxu0 %v733_v11  ;;  %208 = vmatprep.subr.bf16.mxu1 %v735_v14  ;;  %v730_v30 = vcombine.low %v26_v17, %v30_v20  ;;  %v737_v31 = vcombine.high %v33_v24, %v37_v25  ;;  %v739_v32 = vcombine.high %v34_v27, %v38_v28  ;;  %v873_v43 = vsub.s32 4, %v851_v36 }
   0x8   :  { %v736_v33 = vcombine.low %v33_v24, %v37_v25  ;;  %v738_v34 = vcombine.low %v34_v27, %v38_v28  ;;  %v44_v42 = vrot.slane %v859_v38, %v854_v37  ;;  %v52_v44 = vrot.slane %v859_v38, %v862_v39 }
   0x9   :  { %v48_v45 = vrot.slane %v859_v38, %v865_v40  ;;  %v56_v46 = vrot.slane %v859_v38, %v868_v41  ;;  %v60_v51 = vrot.slane %v859_v38, %v873_v43  ;;  %v886_v52 = vsub.s32 6, %v851_v36 }
   0xa   :  { %168 = vmatpush1.bf16.msra.mxu0 %v732_v18  ;;  %209 = vmatpush1.bf16.msra.mxu1 %v734_v21  ;;  %v893_v57 = vsub.s32 5, %v851_v36  ;;  %v896_v58 = vsub.s32 7, %v851_v36 }
   0xb   :  { %247 = vmatprep.subr.bf16.mxu0 %v729_v22  ;;  %288 = vmatprep.subr.bf16.mxu1 %v731_v23 }
   0xd   :  { %740 = vmatmul.mubr.msk.bf16.vlgmr.msra.gmra.mrb[0].mxu0 %vm161_vm0, %v22_v26  ;;  %741 = vmatmul.mubr.msk.bf16.vlgmr.msra.gmra.mrb[0].mxu1 %vm161_vm0, %v22_v26 }
   0xe   :  { %248 = vmatpush1.bf16.msra.mxu0 %v728_v29  ;;  %289 = vmatpush1.bf16.msra.mxu1 %v730_v30 }
   0xf   :  { %249 = vmatprep.subr.bf16.mxu0 %v737_v31  ;;  %290 = vmatprep.subr.bf16.mxu1 %v739_v32 }
  0x10   :  { %279 = vmatprep.mubr.bf16.mxu0 %v763_v3  ;;  %320 = vmatprep.mubr.bf16.mxu1 %v763_v3 }
  0x12   :  { %250 = vmatpush1.bf16.msra.mxu0 %v736_v33  ;;  %291 = vmatpush1.bf16.msra.mxu1 %v738_v34 }
  0x15   :  { %742 = vmatmul.mubr.msk.bf16.vlgmr.msra.gmra.mrb[4].mxu0 %vm161_vm0, %v22_v26  ;;  %743 = vmatmul.mubr.msk.bf16.vlgmr.msra.gmra.mrb[4].mxu1 %vm161_vm0, %v22_v26 }
  0xe0   :  { %v199_v47 = vpop.f32.mrb[0].mxu0  ;;  %v240_v49 = vpop.f32.mrb[0].mxu1 }
  0xe1   :  { %v881_v48 = vadd.f32 %v199_v47, %v44_v42  ;;  %v201_v50 = vpop.f32.mrb[1].mxu0  ;;  %v888_v53 = vadd.f32 %v240_v49, %v52_v44  ;;  %v242_v55 = vpop.f32.mrb[1].mxu1 }
  0xe2   :  { %v890_v54 = vadd.f32 %v201_v50, %v48_v45  ;;  %v203_v56 = vpop.f32.mrb[2].mxu0  ;;  %v904_v63 = vadd.f32 %v242_v55, %v56_v46  ;;  %v244_v0 = vpop.f32.mrb[2].mxu1 }
  0xe3   :  { %v330_v59 = vsel %vm329_vm1, %v881_v48, 0.0  ;;  %v386_v60 = vmul.f32 %v881_v48, %v881_v48  ;;  %v204_v1 = vpop.f32.mrb[3].mxu0  ;;  %v344_v3 = vsel %vm329_vm1, %v888_v53, 0.0  ;;  %v388_v4 = vmul.f32 %v888_v53, %v888_v53  ;;  %v245_v6 = vpop.f32.mrb[3].mxu1 }
  0xe4   :  { %v331_v2 = vrot.slane %v330_v59, 4  ;;  %v337_v5 = vsel %vm329_vm1, %v890_v54, 0.0  ;;  %v345_v8 = vrot.slane %v344_v3, 4  ;;  %v387_v10 = vmul.f32 %v890_v54, %v890_v54 }
  0xe5   :  { %v394_v7 = vsel %vm329_vm1, %v386_v60, 0.0  ;;  %v338_v9 = vrot.slane %v337_v5, 4  ;;  %v408_v13 = vsel %vm329_vm1, %v388_v4, 0.0  ;;  %v351_v14 = vsel %vm329_vm1, %v904_v63, 0.0 }
  0xe6   :  { %v332_v11 = vadd.f32 %v331_v2, %v330_v59  ;;  %v395_v12 = vrot.slane %v394_v7, 4  ;;  %v346_v15 = vadd.f32 %v345_v8, %v344_v3  ;;  %v409_v16 = vrot.slane %v408_v13, 4 }
  0xe7   :  { %v339_v17 = vadd.f32 %v338_v9, %v337_v5  ;;  %v401_v18 = vsel %vm329_vm1, %v387_v10, 0.0  ;;  %v352_v22 = vrot.slane %v351_v14, 4  ;;  %v389_v27 = vmul.f32 %v904_v63, %v904_v63 }
  0xe8   :  { %v333_v19 = vrot.slane %v332_v11, 2  ;;  %v396_v20 = vadd.f32 %v395_v12, %v394_v7  ;;  %v402_v21 = vrot.slane %v401_v18, 4  ;;  %v281_v23 = vpop.f32.mrb[4].mxu0  ;;  %v347_v24 = vrot.slane %v346_v15, 2  ;;  %v322_v28 = vpop.f32.mrb[4].mxu1 }
  0xe9   :  { %v410_v25 = vadd.f32 %v409_v16, %v408_v13  ;;  %v340_v26 = vrot.slane %v339_v17, 2  ;;  %v921_v29 = vpop.f32.mrb[5].mxu0  ;;  %v353_v33 = vadd.f32 %v352_v22, %v351_v14  ;;  %v923_v34 = vpop.f32.mrb[5].mxu1  ;;  %v415_v46 = vsel %vm329_vm1, %v389_v27, 0.0 }
  0xea   :  { %v334_v30 = vadd.f32 %v333_v19, %v332_v11  ;;  %v397_v31 = vrot.slane %v396_v20, 2  ;;  %v403_v32 = vadd.f32 %v402_v21, %v401_v18  ;;  %v285_v35 = vpop.f32.mrb[6].mxu0  ;;  %v348_v42 = vadd.f32 %v347_v24, %v346_v15  ;;  %v326_v47 = vpop.f32.mrb[6].mxu1 }
  0xeb   :  { %v411_v44 = vrot.slane %v410_v25, 2  ;;  %v341_v45 = vadd.f32 %v340_v26, %v339_v17  ;;  %v286_v49 = vpop.f32.mrb[7].mxu0  ;;  %v354_v59 = vrot.slane %v353_v33, 2  ;;  %v327_v60 = vpop.f32.mrb[7].mxu1  ;;  %v416_v2 = vrot.slane %v415_v46, 4 }
  0xec   :  { %v335_v50 = vrot.slane %v334_v30, 1  ;;  %v398_v55 = vadd.f32 %v397_v31, %v396_v20  ;;  %v404_v56 = vrot.slane %v403_v32, 2  ;;  %v349_v61 = vrot.slane %v348_v42, 1 }
  0xed   :  { %v412_v0 = vadd.f32 %v411_v44, %v410_v25  ;;  %v342_v1 = vrot.slane %v341_v45, 1  ;;  %v355_v6 = vadd.f32 %v354_v59, %v353_v33  ;;  %v417_v10 = vadd.f32 %v416_v2, %v415_v46 }
  0xee   :  { %v336_v3 = vadd.f32 %v335_v50, %v334_v30  ;;  %v399_v4 = vrot.slane %v398_v55, 1  ;;  %v405_v5 = vadd.f32 %v404_v56, %v403_v32  ;;  %v350_v7 = vadd.f32 %v349_v61, %v348_v42 }
  0xef   :  { %v413_v8 = vrot.slane %v412_v0, 1  ;;  %v343_v9 = vadd.f32 %v342_v1, %v341_v45  ;;  %v356_v14 = vrot.slane %v355_v6, 1  ;;  %v418_v18 = vrot.slane %v417_v10, 2 }
  0xf0   :  { %v400_v11 = vadd.f32 %v399_v4, %v398_v55  ;;  %v926_v12 = vmul.f32 0.5, %v336_v3  ;;  %v406_v13 = vrot.slane %v405_v5, 1  ;;  %v928_v16 = vmul.f32 0.5, %v350_v7 }
  0xf1   :  { %v414_v15 = vadd.f32 %v413_v8, %v412_v0  ;;  %v930_v17 = vmul.f32 0.5, %v343_v9  ;;  %v68_v22 = vrot.slane %v859_v38, %v886_v52  ;;  %v64_v27 = vrot.slane %v859_v38, %v893_v57 }
  0xf2   :  { %v459_v19 = vmul.f32 0.5, %v400_v11  ;;  %v467_v20 = vmul.f32 %v926_v12, %v926_v12  ;;  %v407_v21 = vadd.f32 %v406_v13, %v405_v5  ;;  %v469_v25 = vmul.f32 %v928_v16, %v928_v16 }
  0xf3   :  { %v461_v24 = vmul.f32 0.5, %v414_v15  ;;  %v468_v26 = vmul.f32 %v930_v17, %v930_v17  ;;  %v357_v32 = vadd.f32 %v356_v14, %v355_v6  ;;  %v72_v33 = vrot.slane %v859_v38, %v896_v58 }
  0xf4   :  { %v475_v30 = vsub.f32 %v459_v19, %v467_v20  ;;  %v460_v31 = vmul.f32 0.5, %v407_v21  ;;  %v522_v42 = vunpack.c.0.s8 %v902_v62  ;;  %v419_v44 = vadd.f32 %v418_v18, %v417_v10 }
  0xf5   :  { %v477_v35 = vsub.f32 %v461_v24, %v469_v25  ;;  %v948_v45 = vadd.f32 %v281_v23, %v60_v51  ;;  %v950_v49 = vmul.f32 0.5, %v357_v32  ;;  %v952_v50 = vadd.f32 %v322_v28, %v68_v22 }
  0xf6   :  { %v483_v46 = vmax.f32 %v475_v30, 0.0  ;;  %v476_v47 = vsub.f32 %v460_v31, %v468_v26  ;;  %v420_v56 = vrot.slane %v419_v44, 1  ;;  %v961_v51 = vadd.f32 %v921_v29, %v64_v27 }
  0xf7   :  { %v485_v55 = vmax.f32 %v477_v35, 0.0  ;;  %v358_v59 = vsel %vm329_vm1, %v948_v45, 0.0  ;;  %v390_v60 = vmul.f32 %v948_v45, %v948_v45  ;;  %v470_v38 = vmul.f32 %v950_v49, %v950_v49 }
  0xf8   :  { %v492_v61 = vadd.f32 1e-05, %v483_v46  ;;  %v484_v0 = vmax.f32 %v476_v47, 0.0  ;;  %v421_v1 = vadd.f32 %v420_v56, %v419_v44  ;;  %v359_v28 = vrot.slane %v358_v59, 4 }
  0xf9   :  { %v494_v23 = vadd.f32 1e-05, %v485_v55  ;;  %v422_v2 = vsel %vm329_vm1, %v390_v60, 0.0  ;;  %v372_v5 = vsel %vm329_vm1, %v952_v50, 0.0  ;;  %v392_v29 = vmul.f32 %v952_v50, %v952_v50 }
  0xfa   :  { %747 = vrsqrt.f32 %v492_v61  ;;  %v493_v3 = vadd.f32 1e-05, %v484_v0  ;;  %v423_v4 = vrot.slane %v422_v2, 4  ;;  %v462_v6 = vmul.f32 0.5, %v421_v1 }
  0xfb   :  { %749 = vrsqrt.f32 %v494_v23  ;;  %v360_v7 = vadd.f32 %v359_v28, %v358_v59  ;;  %v373_v8 = vrot.slane %v372_v5, 4  ;;  %v365_v10 = vsel %vm329_vm1, %v961_v51, 0.0 }
  0xfc   :  { %751 = vrsqrt.f32 %v493_v3  ;;  %v424_v9 = vadd.f32 %v423_v4, %v422_v2  ;;  %v478_v11 = vsub.f32 %v462_v6, %v470_v38  ;;  %v366_v15 = vrot.slane %v365_v10, 4 }
  0xfd   :  { %v361_v13 = vrot.slane %v360_v7, 2  ;;  %v374_v14 = vadd.f32 %v373_v8, %v372_v5  ;;  %v436_v19 = vsel %vm329_vm1, %v392_v29, 0.0  ;;  %v391_v20 = vmul.f32 %v961_v51, %v961_v51 }
  0xfe   :  { %v425_v18 = vrot.slane %v424_v9, 2  ;;  %v974_v21 = vadd.f32 %v923_v34, %v72_v33  ;;  %v486_v22 = vmax.f32 %v478_v11, 0.0  ;;  %v437_v26 = vrot.slane %v436_v19, 4 }
  0xff   :  { %v362_v24 = vadd.f32 %v361_v13, %v360_v7  ;;  %v375_v25 = vrot.slane %v374_v14, 2  ;;  %v367_v30 = vadd.f32 %v366_v15, %v365_v10  ;;  %v429_v31 = vsel %vm329_vm1, %v391_v20, 0.0 }
 0x100   :  { %v426_v27 = vadd.f32 %v425_v18, %v424_v9  ;;  %v379_v32 = vsel %vm329_vm1, %v974_v21, 0.0  ;;  %v495_v35 = vadd.f32 1e-05, %v486_v22  ;;  %v438_v47 = vadd.f32 %v437_v26, %v436_v19 }
 0x101   :  { %v363_v44 = vrot.slane %v362_v24, 1  ;;  %v376_v46 = vadd.f32 %v375_v25, %v374_v14  ;;  %v368_v56 = vrot.slane %v367_v30, 2  ;;  %v430_v59 = vrot.slane %v429_v31, 4 }
 0x102   :  { %v427_v55 = vrot.slane %v426_v27, 1  ;;  %v380_v34 = vrot.slane %v379_v32, 4  ;;  %753 = vrsqrt.f32 %v495_v35  ;;  %v439_v61 = vrot.slane %v438_v47, 2 }
 0x103   :  { %v364_v33 = vadd.f32 %v363_v44, %v362_v24  ;;  %v377_v60 = vrot.slane %v376_v46, 1  ;;  %v369_v23 = vadd.f32 %v368_v56, %v367_v30  ;;  %v431_v1 = vadd.f32 %v430_v59, %v429_v31 }
 0x104   :  { %v748_v0 = vpop.eup %747  ;;  %v428_v38 = vadd.f32 %v427_v55, %v426_v27  ;;  %v381_v28 = vadd.f32 %v380_v34, %v379_v32  ;;  %v440_v5 = vadd.f32 %v439_v61, %v438_v47  ;;  %v393_v6 = vmul.f32 %v974_v21, %v974_v21 }
 0x105   :  { %v750_v2 = vpop.eup %749  ;;  %v979_v3 = vmul.f32 0.5, %v364_v33  ;;  %v378_v4 = vadd.f32 %v377_v60, %v376_v46  ;;  %v370_v9 = vrot.slane %v369_v23, 1  ;;  %v432_v29 = vrot.slane %v431_v1, 2 }
 0x106   :  { %v752_v7 = vpop.eup %751  ;;  %v463_v8 = vmul.f32 0.5, %v428_v38  ;;  %v382_v10 = vrot.slane %v381_v28, 2  ;;  %v441_v14 = vrot.slane %v440_v5, 1  ;;  %v443_v25 = vsel %vm329_vm1, %v393_v6, 0.0 }
 0x107   :  { %v516_v11 = vcombine.low %v748_v0, %v752_v7  ;;  %v471_v13 = vmul.f32 %v979_v3, %v979_v3  ;;  %v371_v15 = vadd.f32 %v370_v9, %v369_v23  ;;  %v433_v18 = vadd.f32 %v432_v29, %v431_v1 }
 0x108   :  { %v383_v19 = vadd.f32 %v382_v10, %v381_v28  ;;  %v442_v22 = vadd.f32 %v441_v14, %v440_v5  ;;  %v985_v24 = vmul.f32 0.5, %v378_v4  ;;  %v525_v26 = vsub.s32 %v522_v42, %v851_v36 }
 0x109   :  { %v479_v20 = vsub.f32 %v463_v8, %v471_v13  ;;  %v434_v27 = vrot.slane %v433_v18, 1  ;;  %v991_v30 = vmul.f32 0.5, %v371_v15  ;;  %v444_v32 = vrot.slane %v443_v25, 4 }
 0x10a   :  { %v384_v31 = vrot.slane %v383_v19, 1  ;;  %v465_v55 = vmul.f32 0.5, %v442_v22  ;;  %v473_v56 = vmul.f32 %v985_v24, %v985_v24  ;;  %v526_v33 = vrot.slane %v516_v11, %v525_v26 }
 0x10b   :  { %v487_v35 = vmax.f32 %v479_v20, 0.0  ;;  %v435_v44 = vadd.f32 %v434_v27, %v433_v18  ;;  %v472_v46 = vmul.f32 %v991_v30, %v991_v30  ;;  %v445_v34 = vadd.f32 %v444_v32, %v443_v25 }
 0x10c   :  { %v754_v47 = vpop.eup %753  ;;  %v385_v59 = vadd.f32 %v384_v31, %v383_v19  ;;  %v481_v23 = vsub.f32 %v465_v55, %v473_v56  ;;  %v765_v31 = vmov 1983009808  }
 0x10d   :  { %v517_v62 = vcombine.low %v750_v2, %v754_v47  ;;  %v464_v42 = vmul.f32 0.5, %v435_v44  ;;  %v446_v60 = vrot.slane %v445_v34, 2  ;;  %v496_v0 = vadd.f32 1e-05, %v487_v35  ;;  %v624_v44 = vld [vmem:[%s1049_s4] sm:$0xff] }
 0x10e   :  { %v997_v28 = vmul.f32 0.5, %v385_v59  ;;  %v489_v8 = vmax.f32 %v481_v23, 0.0  ;;  %v685_v32 = vunpack.c.l.s4 %v765_v31  ;;  %v629_v59 = vrot.slane %v624_v44, %v854_v37 }
 0x10f   :  { %v533_v61 = vrot.slane %v517_v62, %v525_v26  ;;  %v480_v38 = vsub.f32 %v464_v42, %v472_v46  ;;  %v447_v1 = vadd.f32 %v446_v60, %v445_v34  ;;  %755 = vrsqrt.f32 %v496_v0  ;;  %v491_v62 = vld [vmem:[%s1050_s3] sm:$0xff] }
 0x110   :  { %v474_v29 = vmul.f32 %v997_v28, %v997_v28  ;;  %v498_v10 = vadd.f32 1e-05, %v489_v8  ;;  %v686_v47 = vunpack.c.0.s8 %v685_v32  ;;  %v637_v34 = vrot.slane %v624_v44, %v862_v39 }
 0x111   :  { %v548_v4 = vcombine.low %v526_v33, %v533_v61  ;;  %v488_v5 = vmax.f32 %v480_v38, 0.0  ;;  %v448_v6 = vrot.slane %v447_v1, 1  ;;  %v633_v33 = vrot.slane %v624_v44, %v865_v40 }
 0x112   :  { %v641_v42 = vrot.slane %v624_v44, %v868_v41  ;;  %v645_v60 = vrot.slane %v624_v44, %v873_v43  ;;  %v653_v61 = vrot.slane %v624_v44, %v886_v52  ;;  %v649_v38 = vrot.slane %v624_v44, %v893_v57 }
 0x113   :  { %v497_v7 = vadd.f32 1e-05, %v488_v5  ;;  %v449_v9 = vadd.f32 %v448_v6, %v447_v1  ;;  %v556_v55 = vrot.slane %v548_v4, %v525_v26  ;;  %v657_v23 = vrot.slane %v624_v44, %v896_v58 }
 0x114   :  { %v689_v1 = vsub.s32 %v686_v47, %v851_v36  ;;  %v569_v4 = vsub.f32 %v888_v53, %v928_v16  ;;  %v568_v5 = vsub.f32 %v890_v54, %v930_v17  ;;  %v570_v6 = vsub.f32 %v904_v63, %v950_v49 }
 0x115   :  { %757 = vrsqrt.f32 %v497_v7  ;;  %v466_v2 = vmul.f32 0.5, %v449_v9  ;;  %v571_v8 = vsub.f32 %v948_v45, %v979_v3  ;;  %v574_v36 = vsub.f32 %v974_v21, %v997_v28 }
 0x116   :  { %759 = vrsqrt.f32 %v498_v10 }
 0x117   :  { %v482_v11 = vsub.f32 %v466_v2, %v474_v29 }
 0x119   :  { %v490_v13 = vmax.f32 %v482_v11, 0.0  ;;  %v756_v15 = vpop.eup %755 }
 0x11b   :  { %v499_v14 = vadd.f32 1e-05, %v490_v13 }
 0x11d   :  { %761 = vrsqrt.f32 %v499_v14 }
 0x11f   :  { %v758_v18 = vpop.eup %757 }
 0x120   :  { %v518_v19 = vcombine.low %v756_v15, %v758_v18  ;;  %v760_v20 = vpop.eup %759 }
 0x122   :  { %v540_v25 = vrot.slane %v518_v19, %v525_v26 }
 0x127   :  { %v762_v22 = vpop.eup %761 }
 0x128   :  { %v519_v27 = vcombine.low %v760_v20, %v762_v22 }
 0x12a   :  { %v547_v35 = vrot.slane %v519_v27, %v525_v26 }
 0x12c   :  { %v549_v46 = vcombine.low %v540_v25, %v547_v35 }
 0x12e   :  { %v563_v56 = vrot.slane %v549_v46, %v525_v26  ;;  %v567_v26 = vsub.f32 %v881_v48, %v926_v12  ;;  %v573_v48 = vsub.f32 %v952_v50, %v985_v24  ;;  %v572_v12 = vsub.f32 %v961_v51, %v991_v30 }
 0x130   :  { %v564_v0 = vcombine.low %v556_v55, %v563_v56 }
 0x132   :  { %v566_v7 = vmul.f32 %v564_v0, %v491_v62 }
 0x134   :  { %v579_v53 = vrot.slane %v566_v7, %v854_v37  ;;  %v583_v54 = vrot.slane %v566_v7, %v865_v40  ;;  %v587_v16 = vrot.slane %v566_v7, %v862_v39  ;;  %v591_v63 = vrot.slane %v566_v7, %v868_v41 }
 0x135   :  { %v595_v17 = vrot.slane %v566_v7, %v873_v43  ;;  %v599_v45 = vrot.slane %v566_v7, %v893_v57  ;;  %v603_v49 = vrot.slane %v566_v7, %v886_v52  ;;  %v607_v50 = vrot.slane %v566_v7, %v896_v58 }
 0x136   :  { %v616_v51 = vmul.f32 %v579_v53, %v567_v26  ;;  %v617_v3 = vmul.f32 %v583_v54, %v568_v5  ;;  %v618_v24 = vmul.f32 %v587_v16, %v569_v4  ;;  %v619_v21 = vmul.f32 %v591_v63, %v570_v6 }
 0x137   :  { %v620_v30 = vmul.f32 %v595_v17, %v571_v8  ;;  %v621_v37 = vmul.f32 %v599_v45, %v572_v12  ;;  %v622_v28 = vmul.f32 %v603_v49, %v573_v48  ;;  %v623_v40 = vmul.f32 %v607_v50, %v574_v36 }
 0x138   :  { %v666_v9 = vadd.f32 %v629_v59, %v616_v51  ;;  %v667_v39 = vadd.f32 %v633_v33, %v617_v3  ;;  %v668_v29 = vadd.f32 %v637_v34, %v618_v24  ;;  %v669_v41 = vadd.f32 %v641_v42, %v619_v21 }
 0x139   :  { %v670_v2 = vadd.f32 %v645_v60, %v620_v30  ;;  %v671_v43 = vadd.f32 %v649_v38, %v621_v37  ;;  %v672_v10 = vadd.f32 %v653_v61, %v622_v28  ;;  %v673_v57 = vadd.f32 %v657_v23, %v623_v40 }
 0x13a   :  { %v682_v11 = vcombine.low %v666_v9, %v667_v39  ;;  %v683_v52 = vcombine.low %v668_v29, %v669_v41 }
 0x13b   :  { %v699_v13 = vcombine.low %v670_v2, %v671_v43  ;;  %v700_v58 = vcombine.low %v672_v10, %v673_v57 }
 0x13c   :  { %v690_v14 = vrot.slane %v682_v11, %v689_v1  ;;  %v697_v15 = vrot.slane %v683_v52, %v689_v1 }
 0x13d   :  { %v707_v18 = vrot.slane %v699_v13, %v689_v1  ;;  %v714_v19 = vrot.slane %v700_v58, %v689_v1 }
 0x13e   :  { %v698_v20 = vcombine.low %v690_v14, %v697_v15 }
 0x13f   :  { %v715_v22 = vcombine.low %v707_v18, %v714_v19 }
 0x140   :  { %718 = vst [vmem:[%s1051_s5] sm:$0xff] %v698_v20 }
 0x141   :  { %719 = vst [vmem:[%s1051_s5 + $0x8] sm:$0xff] %v715_v22 }

// kernel: a_call__.6
= control target key start
LH: loop header
LB: loop body
LE: loop exit
PB: predicated region body
PF: predicated region fallthrough
CT: control target
= control target key end

     0   :  { %s1982_s21 = smov 0   ;;  %s2374_s0 = inlined_call_operand.vmem [shape: bf16[2,8,8,64], index: 0, kind: input, shape index: {}]   ;;  %s2375_s1 = inlined_call_operand.vmem [shape: f32[1,64], index: 1, kind: input, shape index: {}]   ;;  %s2376_s2 = inlined_call_operand.vmem [shape: f32[1,64], index: 2, kind: input, shape index: {}]   ;;  %s2377_s3 = inlined_call_operand.vmem [shape: bf16[6,64,128], index: 3, kind: input, shape index: {}]   ;;  %s2378_s4 = inlined_call_operand.vmem [shape: f32[1,128], index: 4, kind: input, shape index: {}]   ;;  %s2379_s5 = inlined_call_operand.vmem [shape: bf16[2,8,2,8,128], index: 5, kind: output, shape index: {0}]   ;;  %s2380_s6 = inlined_call_operand.vmem [shape: f32[2,2,128], index: 6, kind: output, shape index: {1}]  }
   0x1 LB: > { %s1573_s22 = sadd.s32 4294967295, %s1944_s21   ;;  %p1577_p0 = scmp.ge.s32.totalorder %s1944_s21, 1  ;;  %s1944_s21 = sphi %s1982_s21, %s17_s21  }
   0x2   : > { %p215_p1 = scmp.lt.s32.totalorder %s1944_s21, 3 }
   0x4   : > { %p216_p2 = pnand %p1577_p0, %p215_p1 }
   0x5   : > { %v1906_v0 = vld [vmem:[%s2377_s3 + $0x40] sm:$0xff] (!%p216_p2)   ;;  %p249_p3 = scmp.lt.s32.totalorder (!%p216_p2), %s1573_s22, 1  ;;  %v1907_v1 = vld [vmem:[%s2377_s3 + $0x48] sm:$0xff] (!%p216_p2)   ;;  %v1909_v3 = vld [vmem:[%s2377_s3 + $0x50] sm:$0xff] (!%p216_p2)   ;;  %vm343_vm0 = vcmask (!%p216_p2), 519168   ;;  %v1946_v13 = vmov (!%p216_p2), 0  }
   0x6   : > { %219 = sbr.rel (%p216_p2) target bundleno = 347 (0x15b), region = 40  ;;  %1817 = vmatprep.subr.bf16.mxu1 (!%p216_p2), %v1906_v0  ;;  %v1908_v2 = vld [vmem:[%s2377_s3 + $0x20] sm:$0xff] (!%p216_p2)   ;;  %v1910_v4 = vld [vmem:[%s2377_s3 + $0x28] sm:$0xff] (!%p216_p2)   ;;  %v1911_v5 = vld [vmem:[%s2377_s3 + $0x58] sm:$0xff] (!%p216_p2)   ;;  %344 = vst.msk [vmem:[#allocation2 + $0x40] sm:$0xf] (!%p216_p2), %vm343_vm0, %v1946_v13 }
   0x7   : > { %1818 = vmatpush3.bf16.msra.mxu1 (!%p216_p2), %v1906_v0  ;;  %1769 = vmatprep.subr.bf16.mxu0 (!%p216_p2), %v1908_v2  ;;  %v2020_v7 = vld [vmem:[%s2375_s1] ss:$0 sm:$0xff] (!%p216_p2)  ;;  %v1913_v11 = vld [vmem:[%s2377_s3 + $0x30] sm:$0xff] (!%p216_p2)   ;;  %v1916_v18 = vld [vmem:[%s2377_s3 + $0x38] sm:$0xff] (!%p216_p2)   ;;  %vm345_vm1 = vcmask (!%p216_p2), 516096   ;;  %vm697_vm10 = vcmask (!%p216_p2), 523264  }
   0x8   : > { %1819 = vmatprep.subr.bf16.mxu1 (!%p216_p2), %v1907_v1  ;;  %1770 = vmatpush3.bf16.msra.mxu0 (!%p216_p2), %v1908_v2  ;;  %v2025_v8 = vld [vmem:[%s2376_s2] ss:$0 sm:$0xff] (!%p216_p2)  ;;  %vm346_vm2 = vsmask.f32 (!%p216_p2), 256  ;;  %v351_v27 = vld [vmem:[#allocation2 + $0x4] sm:$0x1] (!%p216_p2) }
   0x9   : > { %1771 = vmatprep.subr.bf16.mxu0 (!%p216_p2), %v1910_v4  ;;  %v2044_v23 = vld [vmem:[%s2377_s3 + $0x80] sm:$0xff] (!%p216_p2)   ;;  %v354_v28 = vld [vmem:[#allocation2 + $0xc] sm:$0x1] (!%p216_p2)  ;;  %vm2048_vm5 = vmand (!%p216_p2), %vm345_vm1, %vm346_vm2  ;;  %vm399_vm11 = vsmask.f32 (!%p216_p2), 3328 }
   0xa   : > { %v2059_v36 = vld [vmem:[%s2377_s3] sm:$0xff] (!%p216_p2)   ;;  %v352_v39 = vsel (!%p216_p2), %vm2048_vm5, 0, %v351_v27  ;;  %v355_v40 = vsel (!%p216_p2), %vm2048_vm5, 0, %v354_v28  ;;  %v357_v44 = vld [vmem:[#allocation2 + $0x14] sm:$0x1] (!%p216_p2) }
   0xb   : > { %1820 = vmatpush3.bf16.msra.mxu1 (!%p216_p2), %v1907_v1  ;;  %353 = vst [vmem:[#allocation2 + $0x4] sm:$0x1] (!%p216_p2), %v352_v39  ;;  %356 = vst [vmem:[#allocation2 + $0xc] sm:$0x1] (!%p216_p2), %v355_v40  ;;  %v358_v51 = vsel (!%p216_p2), %vm2048_vm5, 0, %v357_v44 }
   0xc   : > { %1821 = vmatprep.subr.bf16.mxu1 (!%p216_p2), %v1909_v3  ;;  %1772 = vmatpush3.bf16.msra.mxu0 (!%p216_p2), %v1910_v4  ;;  %v360_v52 = vld [vmem:[#allocation2 + $0x1c] sm:$0x1] (!%p216_p2)  ;;  %359 = vst [vmem:[#allocation2 + $0x14] sm:$0x1] (!%p216_p2), %v358_v51  ;;  %vm400_vm12 = vsmask.f32 (!%p216_p2), 7440 }
   0xd   : > { %s2386_s22 = smov (!%p249_p3, %s1573_s22), 1  ;;  %1773 = vmatprep.subr.bf16.mxu0 %v1913_v11  ;;  %v361_v61 = vsel %vm2048_vm5, 0, %v360_v52  ;;  %v363_v62 = vld [vmem:[#allocation2 + $0x24] sm:$0x1]  ;;  %v366_v63 = vld [vmem:[#allocation2 + $0x2c] sm:$0x1]  ;;  %vm2105_vm15 = vmor %vm399_vm11, %vm400_vm12 }
   0xe   : > { %s1700_s9 = sshll.u32 %s2386_s22, 5  ;;  %362 = vst [vmem:[#allocation2 + $0x1c] sm:$0x1] %v361_v61  ;;  %v364_v2 = vsel %vm2048_vm5, 0, %v363_v62  ;;  %s1701_s13 = sshll.u32 %s2386_s22, 6 }
   0xf   : > { %s2011_s12 = scalar_lea.vmem %s2374_s0, %s1700_s9  ;;  %1822 = vmatpush3.bf16.msra.mxu1 %v1909_v3  ;;  %v367_v3 = vsel %vm2048_vm5, 0, %v366_v63  ;;  %365 = vst [vmem:[#allocation2 + $0x24] sm:$0x1] %v364_v2  ;;  %s2334_s16 = scalar_lea.vmem %s2379_s5, %s1701_s13 }
  0x10   : > { %v1703_v6 = vld [vmem:[%s2011_s12] sm:$0xff]   ;;  %v1718_v12 = vld [vmem:[%s2011_s12 + $0x8] sm:$0xff]   ;;  %v1719_v24 = vld [vmem:[%s2011_s12 + $0x10] sm:$0xff]   ;;  %1823 = vmatprep.subr.bf16.mxu1 %v1911_v5  ;;  %1774 = vmatpush3.bf16.msra.mxu0 %v1913_v11  ;;  %368 = vst [vmem:[#allocation2 + $0x2c] sm:$0x1] %v367_v3  ;;  %s1582_s17 = sshll.u32 %s2386_s22, 1 }
  0x11   : > { %v1704_v9 = vunpack.c.l.bf16 %v1703_v6  ;;  %v1705_v10 = vunpack.c.h.bf16 %v1703_v6  ;;  %v1708_v16 = vunpack.c.l.bf16 %v1718_v12  ;;  %v1709_v17 = vunpack.c.h.bf16 %v1718_v12  ;;  %1775 = vmatprep.subr.bf16.mxu0 %v1916_v18  ;;  %v1720_v41 = vld [vmem:[%s2011_s12 + $0x18] sm:$0xff]   ;;  %s262_s20 = scalar_lea.vmem %s2380_s6, %s1582_s17 }
  0x12   : > { %v1712_v25 = vunpack.c.l.bf16 %v1719_v24  ;;  %v1713_v26 = vunpack.c.h.bf16 %v1719_v24  ;;  %v1716_v49 = vunpack.c.l.bf16 %v1720_v41  ;;  %v1717_v50 = vunpack.c.h.bf16 %v1720_v41  ;;  %v391_v6 = vld [vmem:[#allocation2 + $0x4] sm:$0x1] }
  0x13   : > { %v287_v14 = vmul.f32 %v1704_v9, %v2020_v7  ;;  %v288_v15 = vmul.f32 %v1705_v10, %v2020_v7  ;;  %v289_v21 = vmul.f32 %v1708_v16, %v2020_v7  ;;  %v290_v22 = vmul.f32 %v1709_v17, %v2020_v7  ;;  %1824 = vmatpush3.bf16.msra.mxu1 %v1911_v5 }
  0x14   : > { %v291_v34 = vmul.f32 %v1712_v25, %v2020_v7  ;;  %v292_v35 = vmul.f32 %v1713_v26, %v2020_v7  ;;  %1833 = vmatprep.subr.bf16.mxu1 %v2044_v23  ;;  %1776 = vmatpush3.bf16.msra.mxu0 %v1916_v18  ;;  %v293_v59 = vmul.f32 %v1716_v49, %v2020_v7  ;;  %v412_v11 = vshll.u32 %v391_v6, 16 }
  0x15   : > { %v302_v19 = vadd.f32 %v2025_v8, %v287_v14  ;;  %v303_v20 = vadd.f32 %v2025_v8, %v288_v15  ;;  %v304_v32 = vadd.f32 %v2025_v8, %v289_v21  ;;  %v305_v33 = vadd.f32 %v2025_v8, %v290_v22  ;;  %1785 = vmatprep.subr.bf16.mxu0 %v2059_v36 }
  0x16   : > { %v306_v47 = vadd.f32 %v2025_v8, %v291_v34  ;;  %v307_v48 = vadd.f32 %v2025_v8, %v292_v35  ;;  %v294_v60 = vmul.f32 %v1717_v50, %v2020_v7  ;;  %v392_v7 = vld [vmem:[#allocation2 + $0xc] sm:$0x1]  ;;  %v308_v9 = vadd.f32 %v2025_v8, %v293_v59  ;;  %v394_v59 = vld [vmem:[#allocation2 + $0x1c] sm:$0x1] }
  0x17   : > { %vm310_vm3 = vcmp.gt.f32.partialorder %v302_v19, 0.0  ;;  %vm311_vm4 = vcmp.gt.f32.partialorder %v303_v20, 0.0  ;;  %v318_v29 = vmul.f32 0.2, %v302_v19  ;;  %v319_v30 = vmul.f32 0.2, %v303_v20 }
  0x18   : > { %vm312_vm6 = vcmp.gt.f32.partialorder %v304_v32, 0.0  ;;  %vm313_vm7 = vcmp.gt.f32.partialorder %v305_v33, 0.0  ;;  %v320_v45 = vmul.f32 0.2, %v304_v32  ;;  %v321_v46 = vmul.f32 0.2, %v305_v33 }
  0x19   : > { %v326_v37 = vsel %vm310_vm3, %v302_v19, %v318_v29  ;;  %v327_v38 = vsel %vm311_vm4, %v303_v20, %v319_v30  ;;  %vm314_vm8 = vcmp.gt.f32.partialorder %v306_v47, 0.0  ;;  %vm315_vm9 = vcmp.gt.f32.partialorder %v307_v48, 0.0 }
  0x1a   : > { %v334_v42 = vpack.c.bf16 %v326_v37, %v326_v37  ;;  %v335_v43 = vpack.c.bf16 %v327_v38, %v327_v38  ;;  %v328_v53 = vsel %vm312_vm6, %v304_v32, %v320_v45  ;;  %v329_v54 = vsel %vm313_vm7, %v305_v33, %v321_v46  ;;  %v1917_v38 = vld [vmem:[%s2377_s3 + $0x88] sm:$0xff]  }
  0x1b   : > { %v336_v55 = vpack.c.bf16 %v328_v53, %v328_v53  ;;  %v337_v56 = vpack.c.bf16 %v329_v54, %v329_v54  ;;  %v322_v57 = vmul.f32 0.2, %v306_v47  ;;  %v323_v58 = vmul.f32 0.2, %v307_v48  ;;  %v1921_v53 = vld [vmem:[%s2377_s3 + $0x90] sm:$0xff]  }
  0x1c   : > { %375 = vst.msk [vmem:[#allocation2] sm:$0xf] %vm343_vm0, %v334_v42  ;;  %376 = vst.msk [vmem:[#allocation2 + $0x8] sm:$0xf] %vm343_vm0, %v335_v43  ;;  %v309_v10 = vadd.f32 %v2025_v8, %v294_v60  ;;  %v426_v12 = vshll.u32 %v392_v7, 16  ;;  %vm316_vm13 = vcmp.gt.f32.partialorder %v308_v9, 0.0 }
  0x1d   : > { %377 = vst.msk [vmem:[#allocation2 + $0x10] sm:$0xf] %vm343_vm0, %v336_v55  ;;  %378 = vst.msk [vmem:[#allocation2 + $0x18] sm:$0xf] %vm343_vm0, %v337_v56  ;;  %v330_v0 = vsel %vm314_vm8, %v306_v47, %v322_v57  ;;  %v331_v1 = vsel %vm315_vm9, %v307_v48, %v323_v58  ;;  %v414_v20 = vrot.slane %v412_v11, 5 }
  0x1e   : > { %v338_v4 = vpack.c.bf16 %v330_v0, %v330_v0  ;;  %v339_v5 = vpack.c.bf16 %v331_v1, %v331_v1  ;;  %vm317_vm14 = vcmp.gt.f32.partialorder %v309_v10, 0.0  ;;  %v428_v8 = vrot.slane %v426_v12, 5  ;;  %v393_v58 = vld [vmem:[#allocation2 + $0x14] sm:$0x1]  ;;  %v2327_v47 = vld [vmem:[%s2378_s4] ss:$0 sm:$0xff] }
  0x1f   : > { %v324_v21 = vmul.f32 0.2, %v308_v9  ;;  %v325_v29 = vmul.f32 0.2, %v309_v10  ;;  %v440_v6 = vshll.u32 %v393_v58, 16 }
  0x20   : > { %379 = vst.msk [vmem:[#allocation2 + $0x20] sm:$0xf] %vm343_vm0, %v338_v4  ;;  %380 = vst.msk [vmem:[#allocation2 + $0x28] sm:$0xf] %vm343_vm0, %v339_v5 }
  0x21   : > { %v332_v30 = vsel %vm316_vm13, %v308_v9, %v324_v21  ;;  %v333_v41 = vsel %vm317_vm14, %v309_v10, %v325_v29  ;;  %v454_v9 = vshll.u32 %v394_v59, 16  ;;  %v1923_v10 = vld [vmem:[%s2377_s3 + $0x98] sm:$0xff]   ;;  %v1922_v21 = vld [vmem:[%s2377_s3 + $0x8] sm:$0xff]  }
  0x22   : > { %v340_v57 = vpack.c.bf16 %v332_v30, %v332_v30  ;;  %v341_v4 = vpack.c.bf16 %v333_v41, %v333_v41 }
  0x23   : > { %v383_v13 = vld [vmem:[#allocation2] sm:$0xf]  ;;  %v384_v14 = vld [vmem:[#allocation2 + $0x8] sm:$0xf] }
  0x24   : > { %v403_v15 = vshrl.u32 %v383_v13, 16  ;;  %v406_v16 = vshll.u32 %v383_v13, 16  ;;  %v417_v17 = vshrl.u32 %v384_v14, 16  ;;  %v420_v18 = vshll.u32 %v384_v14, 16  ;;  %v385_v27 = vld [vmem:[#allocation2 + $0x10] sm:$0xf] }
  0x25   : > { %v2092_v19 = vcombine.low %v383_v13, %v384_v14  ;;  %v386_v28 = vld [vmem:[#allocation2 + $0x18] sm:$0xf]  ;;  %v431_v32 = vshrl.u32 %v385_v27, 16  ;;  %v434_v33 = vshll.u32 %v385_v27, 16  ;;  %v2121_v0 = vld [vmem:[#allocation2 + $0x8] sm:$0xf] }
  0x26   : > { %v405_v22 = vrot.slane %v403_v15, 4  ;;  %v408_v24 = vrot.slane %v406_v16, 5  ;;  %v419_v25 = vrot.slane %v417_v17, 4  ;;  %v422_v26 = vrot.slane %v420_v18, 5  ;;  %v2123_v1 = vld [vmem:[#allocation2 + $0x10] sm:$0xf] }
  0x27   : > { %1825 = vmatprep.mubr.msk.bf16.mxu1 %vm697_vm10, %v2092_v19  ;;  %v445_v34 = vshrl.u32 %v386_v28, 16  ;;  %v448_v35 = vshll.u32 %v386_v28, 16  ;;  %v2097_v37 = vcombine.low %v385_v27, %v386_v28  ;;  %v433_v42 = vrot.slane %v431_v32, 4  ;;  %v387_v46 = vld [vmem:[#allocation2 + $0x20] sm:$0xf] }
  0x28   : > { %v409_v39 = vor.u32 %v408_v24, %v405_v22  ;;  %v423_v40 = vor.u32 %v422_v26, %v419_v25  ;;  %v436_v43 = vrot.slane %v434_v33, 5  ;;  %v388_v48 = vld [vmem:[#allocation2 + $0x28] sm:$0xf]  ;;  %v459_v49 = vshrl.u32 %v387_v46, 16  ;;  %381 = vst.msk [vmem:[#allocation2 + $0x30] sm:$0xf] %vm343_vm0, %v340_v57 }
  0x29   : > { %v447_v44 = vrot.slane %v445_v34, 4  ;;  %v450_v45 = vrot.slane %v448_v35, 5  ;;  %1826 = vmatmul.mubr.msk.bf16.vlgmr.msra.gmra.mrb[0].mxu1 %vm697_vm10, %v2097_v37  ;;  %v462_v50 = vshll.u32 %v387_v46, 16  ;;  %v473_v54 = vshrl.u32 %v388_v48, 16  ;;  %382 = vst.msk [vmem:[#allocation2 + $0x38] sm:$0xf] %vm343_vm0, %v341_v4 }
  0x2a   : > { %v410_v51 = vrot.slane %v409_v39, 4  ;;  %v424_v52 = vrot.slane %v423_v40, 4  ;;  %1834 = vmatpush3.bf16.msra.mxu1 %v2044_v23  ;;  %v476_v55 = vshll.u32 %v388_v48, 16  ;;  %v2115_v56 = vcombine.low %v387_v46, %v388_v48  ;;  %v395_v15 = vld [vmem:[#allocation2 + $0x24] sm:$0x1] }
  0x2b   : > { %1835 = vmatprep.subr.bf16.mxu1 %v1917_v38  ;;  %v461_v60 = vrot.slane %v459_v49, 4  ;;  %v464_v61 = vrot.slane %v462_v50, 5  ;;  %v475_v23 = vrot.slane %v473_v54, 4  ;;  %v437_v5 = vor.u32 %v436_v43, %v433_v42  ;;  %v2157_v32 = vld [vmem:[#allocation2 + $0x18] sm:$0xf]  ;;  %v2162_v33 = vld [vmem:[%s2377_s3 + $0xa0] sm:$0xff]  }
  0x2c   : > { %v415_v62 = vsel %vm2105_vm15, %v410_v51, %v414_v20  ;;  %v429_v63 = vsel %vm2105_vm15, %v424_v52, %v428_v8  ;;  %v478_v2 = vrot.slane %v476_v55, 5  ;;  %1829 = vmatprep.mubr.msk.bf16.mxu1 %vm697_vm10, %v2115_v56  ;;  %v451_v7 = vor.u32 %v450_v45, %v447_v44  ;;  %v396_v8 = vld [vmem:[#allocation2 + $0x2c] sm:$0x1]  ;;  %v2166_v40 = vld [vmem:[#allocation2 + $0x20] sm:$0xf] }
  0x2d   : > { %v2127_v3 = vcombine.low %v415_v62, %v429_v63  ;;  %v532_v11 = vshrl.u32 %v2121_v0, 16  ;;  %v535_v12 = vshll.u32 %v2121_v0, 16  ;;  %v546_v13 = vshrl.u32 %v2123_v1, 16  ;;  %v369_v51 = vld [vmem:[#allocation2 + $0x34] sm:$0x1] }
  0x2e   : > { %1836 = vmatpush3.bf16.msra.mxu1 %v1917_v38  ;;  %v549_v14 = vshll.u32 %v2123_v1, 16  ;;  %v438_v16 = vrot.slane %v437_v5, 4  ;;  %v442_v17 = vrot.slane %v440_v6, 5  ;;  %v452_v18 = vrot.slane %v451_v7, 4  ;;  %v372_v62 = vld [vmem:[#allocation2 + $0x3c] sm:$0x1] }
  0x2f   : > { %1777 = vmatprep.mubr.msk.bf16.mxu0 %vm697_vm10, %v2127_v3  ;;  %1837 = vmatprep.subr.bf16.mxu1 %v1921_v53  ;;  %v456_v20 = vrot.slane %v454_v9, 5  ;;  %v2143_v22 = vrot.slane %v532_v11, 4  ;;  %v2145_v24 = vrot.slane %v535_v12, 5  ;;  %v2147_v25 = vrot.slane %v546_v13, 4  ;;  %v389_v41 = vld [vmem:[#allocation2 + $0x30] sm:$0xf] }
  0x30   : > { %v2149_v26 = vrot.slane %v549_v14, 5  ;;  %v443_v27 = vsel %vm2105_vm15, %v438_v16, %v442_v17  ;;  %v1658_v29 = vcombine.low %v2121_v0, %v2123_v1  ;;  %v465_v30 = vor.u32 %v464_v61, %v461_v60  ;;  %v390_v52 = vld [vmem:[#allocation2 + $0x38] sm:$0xf]  ;;  %v1925_v1 = vld [vmem:[%s2377_s3 + $0x10] sm:$0xff]  }
  0x31   : > { %v457_v28 = vsel %vm2105_vm15, %v452_v18, %v456_v20  ;;  %v468_v35 = vshll.u32 %v395_v15, 16  ;;  %v479_v38 = vor.u32 %v478_v2, %v475_v23  ;;  %v482_v39 = vshll.u32 %v396_v8, 16  ;;  %v2191_v2 = vld [vmem:[#allocation2 + $0x28] sm:$0xf]  ;;  %v520_v12 = vld [vmem:[#allocation2 + $0x30] sm:$0xf] }
  0x32   : > { %v2164_v34 = vcombine.low %v443_v27, %v457_v28  ;;  %1838 = vmatpush3.bf16.msra.mxu1 %v1921_v53  ;;  %v466_v42 = vrot.slane %v465_v30, 4  ;;  %v560_v43 = vshrl.u32 %v2157_v32, 16  ;;  %v563_v44 = vshll.u32 %v2157_v32, 16  ;;  %v1928_v14 = vld [vmem:[%s2377_s3 + $0x18] sm:$0xff]  }
  0x33   : > { %1839 = vmatprep.subr.bf16.mxu1 %v1923_v10  ;;  %v574_v45 = vshrl.u32 %v2166_v40, 16  ;;  %v487_v46 = vshrl.u32 %v389_v41, 16  ;;  %v490_v48 = vshll.u32 %v389_v41, 16  ;;  %v470_v49 = vrot.slane %v468_v35, 5  ;;  %v2211_v18 = vld [vmem:[#allocation2 + $0x38] sm:$0xf] }
  0x34   : > { %1778 = vmatmul.mubr.msk.bf16.vlgmr.msra.gmra.mrb[0].mxu0 %vm697_vm10, %v2164_v34  ;;  %v480_v50 = vrot.slane %v479_v38, 4  ;;  %v484_v53 = vrot.slane %v482_v39, 5  ;;  %v2174_v54 = vrot.slane %v560_v43, 4  ;;  %v2176_v55 = vrot.slane %v563_v44, 5  ;;  %v524_v35 = vld [vmem:[#allocation2 + $0x14] sm:$0x1] }
  0x35   : > { %1786 = vmatpush3.bf16.msra.mxu0 %v2059_v36  ;;  %v2178_v57 = vrot.slane %v574_v45, 4  ;;  %v489_v58 = vrot.slane %v487_v46, 4  ;;  %v492_v59 = vrot.slane %v490_v48, 5  ;;  %v501_v60 = vshrl.u32 %v390_v52, 16  ;;  %v1929_v38 = vld [vmem:[%s2377_s3 + $0xa8] sm:$0xff]  }
  0x36   : > { %v504_v61 = vshll.u32 %v390_v52, 16  ;;  %1787 = vmatprep.subr.bf16.mxu0 %v1922_v21  ;;  %1840 = vmatpush3.bf16.msra.mxu1 %v1923_v10  ;;  %v2180_v63 = vcombine.low %v389_v41, %v390_v52  ;;  %v471_v0 = vsel %vm2105_vm15, %v466_v42, %v470_v49  ;;  %v485_v36 = vsel %vm2105_vm15, %v480_v50, %v484_v53  ;;  %v525_v52 = vld [vmem:[#allocation2 + $0x1c] sm:$0x1] }
  0x37   : > { %v577_v23 = vshll.u32 %v2166_v40, 16  ;;  %1849 = vmatprep.subr.bf16.mxu1 %v2162_v33  ;;  %v503_v4 = vrot.slane %v501_v60, 4  ;;  %v2193_v6 = vcombine.low %v471_v0, %v485_v36  ;;  %v370_v9 = vsel %vm2048_vm5, 0, %v369_v51  ;;  %v526_v60 = vld [vmem:[#allocation2 + $0x24] sm:$0x1] }
  0x38   : > { %v506_v5 = vrot.slane %v504_v61, 5  ;;  %1830 = vmatmul.mubr.msk.bf16.gmra.mrb[4].mxu1 %vm697_vm10, %v2180_v63  ;;  %v373_v10 = vsel %vm2048_vm5, 0, %v372_v62  ;;  %v493_v11 = vor.u32 %v492_v59, %v489_v58  ;;  %371 = vst [vmem:[#allocation2 + $0x34] sm:$0x1] %v370_v9  ;;  %v588_v15 = vshrl.u32 %v2191_v2, 16 }
  0x39   : > { %1788 = vmatpush3.bf16.msra.mxu0 %v1922_v21  ;;  %v2197_v7 = vrot.slane %v577_v23, 5  ;;  %1841 = vmatprep.mubr.msk.bf16.mxu1 %vm697_vm10, %v1658_v29  ;;  %374 = vst [vmem:[#allocation2 + $0x3c] sm:$0x1] %v373_v10  ;;  %v591_v16 = vshll.u32 %v2191_v2, 16  ;;  %v602_v17 = vshrl.u32 %v520_v12, 16  ;;  %v605_v20 = vshll.u32 %v520_v12, 16 }
  0x3a   : > { %1781 = vmatprep.mubr.msk.bf16.mxu0 %vm697_vm10, %v2193_v6  ;;  %v507_v13 = vor.u32 %v506_v5, %v503_v4  ;;  %1789 = vmatprep.subr.bf16.mxu0 %v1925_v1  ;;  %v616_v8 = vshrl.u32 %v2211_v18, 16  ;;  %v523_v21 = vld [vmem:[#allocation2 + $0xc] sm:$0x1]  ;;  %v1659_v27 = vcombine.low %v2157_v32, %v2166_v40  ;;  %v2216_v28 = vrot.slane %v493_v11, 4  ;;  %v2232_v32 = vld [vmem:[#allocation2 + $0x40] sm:$0xf] }
  0x3b   : > { %v1660_v30 = vcombine.low %v2191_v2, %v520_v12  ;;  %v2224_v39 = vrot.slane %v588_v15, 4  ;;  %v2226_v41 = vrot.slane %v591_v16, 5  ;;  %v2228_v42 = vrot.slane %v602_v17, 4  ;;  %v2237_v40 = vld [vmem:[%s2377_s3 + $0x60] sm:$0xff]   ;;  %v527_v2 = vld [vmem:[#allocation2 + $0x2c] sm:$0x1] }
  0x3c   : > { %v2218_v29 = vrot.slane %v507_v13, 4  ;;  %v2230_v43 = vrot.slane %v605_v20, 5  ;;  %v2239_v44 = vrot.slane %v616_v8, 4  ;;  %v619_v45 = vshll.u32 %v2211_v18, 16 }
  0x3d   : > { %1790 = vmatpush3.bf16.msra.mxu0 %v1925_v1  ;;  %v538_v46 = vor.u32 %v2145_v24, %v2143_v22  ;;  %v541_v48 = vshll.u32 %v523_v21, 16  ;;  %v630_v49 = vshrl.u32 %v2232_v32, 16  ;;  %v552_v50 = vor.u32 %v2149_v26, %v2147_v25  ;;  %v1933_v25 = vld [vmem:[%s2377_s3 + $0xb0] sm:$0xff]  }
  0x3e   : > { %1791 = vmatprep.subr.bf16.mxu0 %v1928_v14  ;;  %v555_v51 = vshll.u32 %v524_v35, 16  ;;  %v633_v53 = vshll.u32 %v2232_v32, 16  ;;  %v566_v61 = vor.u32 %v2176_v55, %v2174_v54  ;;  %v1661_v24 = vcombine.low %v2211_v18, %v2232_v32 }
  0x3f   : > { %v539_v58 = vrot.slane %v538_v46, 4  ;;  %v543_v59 = vrot.slane %v541_v48, 5  ;;  %v397_v62 = vld [vmem:[#allocation2 + $0x34] sm:$0x1]  ;;  %v553_v26 = vrot.slane %v552_v50, 4  ;;  %v580_v36 = vor.u32 %v2197_v7, %v2178_v57 }
  0x40   : > { %1842 = vmatmul.mubr.msk.bf16.vlgmr.msra.gmra.mrb[0].mxu1 %vm697_vm10, %v1659_v27  ;;  %v398_v22 = vld [vmem:[#allocation2 + $0x3c] sm:$0x1]  ;;  %v557_v0 = vrot.slane %v555_v51, 5  ;;  %v496_v1 = vshll.u32 %v397_v62, 16  ;;  %v621_v54 = vrot.slane %v619_v45, 5  ;;  %v567_v55 = vrot.slane %v566_v61, 4 }
  0x41   : > { %1792 = vmatpush3.bf16.msra.mxu0 %v1928_v14  ;;  %v510_v23 = vshll.u32 %v398_v22, 16  ;;  %1850 = vmatpush3.bf16.msra.mxu1 %v2162_v33  ;;  %v544_v4 = vsel %vm2105_vm15, %v539_v58, %v543_v59  ;;  %v569_v5 = vshll.u32 %v525_v52, 16  ;;  %v583_v9 = vshll.u32 %v526_v60, 16  ;;  %v528_v10 = vld [vmem:[#allocation2 + $0x34] sm:$0x1] }
  0x42   : > { %1845 = vmatprep.mubr.msk.bf16.mxu1 %vm697_vm10, %v1660_v30  ;;  %1851 = vmatprep.subr.bf16.mxu1 %v1929_v38  ;;  %v594_v57 = vor.u32 %v2226_v41, %v2224_v39  ;;  %v348_v7 = vld [vmem:[#allocation2 + $0x44] sm:$0x1]  ;;  %v498_v11 = vrot.slane %v496_v1, 5  ;;  %v558_v12 = vsel %vm2105_vm15, %v553_v26, %v557_v0  ;;  %v581_v13 = vrot.slane %v580_v36, 4  ;;  %v1935_v39 = vld [vmem:[%s2377_s3 + $0xb8] sm:$0xff]   ;;  %v1936_v22 = vld [vmem:[%s2377_s3 + $0x70] sm:$0xff]  }
  0x43   : > { %1801 = vmatprep.subr.bf16.mxu0 %v2237_v40  ;;  %v512_v33 = vrot.slane %v510_v23, 5  ;;  %v571_v14 = vrot.slane %v569_v5, 5  ;;  %v585_v15 = vrot.slane %v583_v9, 5  ;;  %v597_v16 = vshll.u32 %v527_v2, 16 }
  0x44   : > { %v608_v17 = vor.u32 %v2230_v43, %v2228_v42  ;;  %v499_v18 = vsel %vm2105_vm15, %v2216_v28, %v498_v11  ;;  %v611_v8 = vshll.u32 %v528_v10, 16  ;;  %v349_v21 = vsel %vm2048_vm5, 0, %v348_v7  ;;  %v529_v28 = vld [vmem:[#allocation2 + $0x3c] sm:$0x1] }
  0x45   : > { %v513_v20 = vsel %vm2105_vm15, %v2218_v29, %v512_v33  ;;  %1852 = vmatpush3.bf16.msra.mxu1 %v1929_v38  ;;  %v632_v30 = vrot.slane %v630_v49, 4  ;;  %v635_v35 = vrot.slane %v633_v53, 5  ;;  %v1678_v41 = vcombine.low %v544_v4, %v558_v12  ;;  %350 = vst [vmem:[#allocation2 + $0x44] sm:$0x1] %v349_v21 }
  0x46   : > { %v1596_v27 = vcombine.low %v499_v18, %v513_v20  ;;  %1853 = vmatprep.subr.bf16.mxu1 %v1933_v25  ;;  %v595_v42 = vrot.slane %v594_v57, 4  ;;  %v599_v43 = vrot.slane %v597_v16, 5  ;;  %v609_v32 = vrot.slane %v608_v17, 4 }
  0x47   : > { %v613_v29 = vrot.slane %v611_v8, 5  ;;  %v572_v31 = vsel %vm2105_vm15, %v567_v55, %v571_v14  ;;  %v586_v38 = vsel %vm2105_vm15, %v581_v13, %v585_v15  ;;  %v622_v45 = vor.u32 %v621_v54, %v2239_v44  ;;  %v1934_v44 = vld [vmem:[%s2377_s3 + $0x68] sm:$0xff]  }
  0x48   : > { %1782 = vmatmul.mubr.msk.bf16.gmra.mrb[4].mxu0 %vm697_vm10, %v1596_v27  ;;  %1846 = vmatmul.mubr.msk.bf16.gmra.mrb[4].mxu1 %vm697_vm10, %v1661_v24  ;;  %v625_v46 = vshll.u32 %v529_v28, 16  ;;  %v636_v48 = vor.u32 %v635_v35, %v632_v30  ;;  %v600_v49 = vsel %vm2105_vm15, %v595_v42, %v599_v43  ;;  %v1679_v50 = vcombine.low %v572_v31, %v586_v38 }
  0x49   : > { %1793 = vmatprep.mubr.msk.bf16.mxu0 %vm697_vm10, %v2092_v19  ;;  %1854 = vmatpush3.bf16.msra.mxu1 %v1933_v25  ;;  %v614_v19 = vsel %vm2105_vm15, %v609_v32, %v613_v29  ;;  %v623_v52 = vrot.slane %v622_v45, 4 }
  0x4a   : > { %1855 = vmatprep.subr.bf16.mxu1 %v1935_v39  ;;  %1857 = vmatprep.mubr.msk.bf16.mxu1 %vm697_vm10, %v1678_v41  ;;  %v627_v53 = vrot.slane %v625_v46, 5  ;;  %v1680_v58 = vcombine.low %v600_v49, %v614_v19  ;;  %v637_v59 = vrot.slane %v636_v48, 4 }
  0x4c   : > { %v530_v51 = vld [vmem:[#allocation2 + $0x44] sm:$0x1]  ;;  %v628_v62 = vsel %vm2105_vm15, %v623_v52, %v627_v53 }
  0x4d   : > { %1856 = vmatpush3.bf16.msra.mxu1 %v1935_v39  ;;  %v639_v60 = vshll.u32 %v530_v51, 16 }
  0x4f   : > { %v641_v61 = vrot.slane %v639_v60, 5 }
  0x50   : > { %1794 = vmatmul.mubr.msk.bf16.vlgmr.msra.gmra.mrb[0].mxu0 %vm697_vm10, %v2097_v37  ;;  %1858 = vmatmul.mubr.msk.bf16.vlgmr.msra.gmra.mrb[0].mxu1 %vm697_vm10, %v1679_v50 }
  0x51   : > { %1802 = vmatpush3.bf16.msra.mxu0 %v2237_v40  ;;  %1797 = vmatprep.mubr.msk.bf16.mxu0 %vm697_vm10, %v2115_v56  ;;  %v642_v37 = vsel %vm2105_vm15, %v637_v59, %v641_v61  ;;  %v1937_v56 = vld [vmem:[%s2377_s3 + $0x78] sm:$0xff]  }
  0x52   : > { %1803 = vmatprep.subr.bf16.mxu0 %v1934_v44  ;;  %1861 = vmatprep.mubr.msk.bf16.mxu1 %vm697_vm10, %v1680_v58  ;;  %v1681_v24 = vcombine.low %v628_v62, %v642_v37 }
  0x55   : > { %1804 = vmatpush3.bf16.msra.mxu0 %v1934_v44 }
  0x56   : > { %1805 = vmatprep.subr.bf16.mxu0 %v1936_v22 }
  0x58   : > { %1798 = vmatmul.mubr.msk.bf16.gmra.mrb[4].mxu0 %vm697_vm10, %v2180_v63  ;;  %1862 = vmatmul.mubr.msk.bf16.gmra.mrb[4].mxu1 %vm697_vm10, %v1681_v24 }
  0x59   : > { %1806 = vmatpush3.bf16.msra.mxu0 %v1936_v22  ;;  %1809 = vmatprep.mubr.msk.bf16.mxu0 %vm697_vm10, %v2127_v3 }
  0x5a   : > { %1807 = vmatprep.subr.bf16.mxu0 %v1937_v56 }
  0x5d   : > { %1808 = vmatpush3.bf16.msra.mxu0 %v1937_v56 }
  0x60   : > { %1810 = vmatmul.mubr.msk.bf16.vlgmr.msra.gmra.mrb[8].mxu0 %vm697_vm10, %v2164_v34 }
  0x61   : > { %1813 = vmatprep.mubr.msk.bf16.mxu0 %vm697_vm10, %v2193_v6 }
  0x68   : > { %1814 = vmatmul.mubr.msk.bf16.gmra.mrb[12].mxu0 %vm697_vm10, %v1596_v27 }
 0x123   : > { %v1795_v63 = vpop.f32.mrb[0].mxu0  ;;  %v1859_v40 = vpop.f32.mrb[0].mxu1 }
 0x124   : > { %v904_v3 = vadd.f32 %v1795_v63, %v2327_v47  ;;  %v865_v25 = vpop.f32.mrb[1].mxu0  ;;  %v1335_v26 = vpop.f32.mrb[1].mxu1 }
 0x125   : > { %v902_v34 = vadd.f32 %v2327_v47, %v865_v25  ;;  %v1796_v6 = vpop.f32.mrb[2].mxu0  ;;  %v1860_v0 = vpop.f32.mrb[2].mxu1 }
 0x126   : > { %v1456_v36 = vpack.c.bf16 %v904_v3, %v904_v3  ;;  %v905_v1 = vadd.f32 %v1796_v6, %v2327_v47  ;;  %v868_v23 = vpop.f32.mrb[3].mxu0  ;;  %v1338_v54 = vpop.f32.mrb[3].mxu1  ;;  %v1412_v7 = vmul.f32 %v904_v3, %v904_v3 }
 0x127   : > { %v1454_v55 = vpack.c.bf16 %v902_v34, %v902_v34  ;;  %v903_v2 = vadd.f32 %v2327_v47, %v868_v23  ;;  %v1410_v5 = vmul.f32 %v902_v34, %v902_v34 }
 0x128   : > { %1464 = vst [vmem:[%s2334_s16 + $0x10] sm:$0xf] %v1456_v36  ;;  %v1457_v4 = vpack.c.bf16 %v905_v1, %v905_v1  ;;  %v1413_v17 = vmul.f32 %v905_v1, %v905_v1 }
 0x129   : > { %1462 = vst [vmem:[%s2334_s16] sm:$0xf] %v1454_v55  ;;  %v1382_v9 = vadd.f32 %v903_v2, %v902_v34  ;;  %v1411_v10 = vmul.f32 %v903_v2, %v903_v2  ;;  %v1455_v57 = vpack.c.bf16 %v903_v2, %v903_v2 }
 0x12a   : > { %1465 = vst [vmem:[%s2334_s16 + $0x18] sm:$0xf] %v1457_v4 }
 0x12b   : > { %v1383_v11 = vadd.f32 %v1382_v9, %v904_v3  ;;  %v1418_v33 = vadd.f32 %v1411_v10, %v1410_v5  ;;  %1463 = vst [vmem:[%s2334_s16 + $0x8] sm:$0xf] %v1455_v57  ;;  %v1799_v12 = vpop.f32.mrb[4].mxu0  ;;  %v1863_v13 = vpop.f32.mrb[4].mxu1 }
 0x12c   : > { %v908_v14 = vadd.f32 %v1799_v12, %v2327_v47  ;;  %v881_v15 = vpop.f32.mrb[5].mxu0  ;;  %v1351_v16 = vpop.f32.mrb[5].mxu1 }
 0x12d   : > { %v1419_v18 = vadd.f32 %v1418_v33, %v1412_v7  ;;  %v906_v20 = vadd.f32 %v2327_v47, %v881_v15  ;;  %v1384_v8 = vadd.f32 %v1383_v11, %v905_v1  ;;  %v1800_v21 = vpop.f32.mrb[6].mxu0  ;;  %v1864_v27 = vpop.f32.mrb[6].mxu1 }
 0x12e   : > { %v1460_v30 = vpack.c.bf16 %v908_v14, %v908_v14  ;;  %v909_v35 = vadd.f32 %v1800_v21, %v2327_v47  ;;  %v884_v39 = vpop.f32.mrb[7].mxu0  ;;  %v1354_v41 = vpop.f32.mrb[7].mxu1  ;;  %v1416_v19 = vmul.f32 %v908_v14, %v908_v14 }
 0x12f   : > { %v1385_v28 = vadd.f32 %v1384_v8, %v906_v20  ;;  %v1414_v42 = vmul.f32 %v906_v20, %v906_v20  ;;  %v1420_v43 = vadd.f32 %v1419_v18, %v1413_v17  ;;  %v1458_v32 = vpack.c.bf16 %v906_v20, %v906_v20 }
 0x130   : > { %1468 = vst [vmem:[%s2334_s16 + $0x30] sm:$0xf] %v1460_v30  ;;  %v1461_v29 = vpack.c.bf16 %v909_v35, %v909_v35  ;;  %v907_v31 = vadd.f32 %v2327_v47, %v884_v39  ;;  %v1417_v44 = vmul.f32 %v909_v35, %v909_v35 }
 0x131   : > { %v1421_v38 = vadd.f32 %v1420_v43, %v1414_v42  ;;  %1466 = vst [vmem:[%s2334_s16 + $0x20] sm:$0xf] %v1458_v32 }
 0x132   : > { %1469 = vst [vmem:[%s2334_s16 + $0x38] sm:$0xf] %v1461_v29  ;;  %v1386_v45 = vadd.f32 %v1385_v28, %v907_v31  ;;  %v1415_v46 = vmul.f32 %v907_v31, %v907_v31  ;;  %v1459_v48 = vpack.c.bf16 %v907_v31, %v907_v31 }
 0x133   : > { %v1811_v49 = vpop.f32.mrb[8].mxu0 }
 0x134   : > { %v1387_v50 = vadd.f32 %v1386_v45, %v908_v14  ;;  %v1422_v51 = vadd.f32 %v1421_v38, %v1415_v46  ;;  %1467 = vst [vmem:[%s2334_s16 + $0x28] sm:$0xf] %v1459_v48  ;;  %v1865_v52 = vadd.f32 %v1859_v40, %v1811_v49  ;;  %v986_v53 = vpop.f32.mrb[9].mxu0 }
 0x135   : > { %v1866_v58 = vadd.f32 %v1335_v26, %v986_v53  ;;  %v1812_v59 = vpop.f32.mrb[10].mxu0 }
 0x136   : > { %v1388_v60 = vadd.f32 %v1387_v50, %v909_v35  ;;  %v1423_v61 = vadd.f32 %v1422_v51, %v1416_v19  ;;  %v1376_v62 = vadd.f32 %v1865_v52, %v2327_v47  ;;  %v1867_v22 = vadd.f32 %v1860_v0, %v1812_v59  ;;  %v989_v37 = vpop.f32.mrb[11].mxu0 }
 0x137   : > { %v1374_v24 = vadd.f32 %v1866_v58, %v2327_v47  ;;  %v1868_v56 = vadd.f32 %v1338_v54, %v989_v37 }
 0x138   : > { %v1424_v63 = vadd.f32 %v1423_v61, %v1417_v44  ;;  %v1472_v3 = vpack.c.bf16 %v1376_v62, %v1376_v62  ;;  %v1377_v40 = vadd.f32 %v1867_v22, %v2327_v47  ;;  %v1433_v54 = vmul.f32 %v1376_v62, %v1376_v62 }
 0x139   : > { %v1470_v25 = vpack.c.bf16 %v1374_v24, %v1374_v24  ;;  %v1375_v34 = vadd.f32 %v1868_v56, %v2327_v47  ;;  %v1431_v26 = vmul.f32 %v1374_v24, %v1374_v24  ;;  %v1389_v17 = vrot.slane %v1388_v60, 4 }
 0x13a   : > { %1692 = vst [vmem:[%s2334_s16 + $0x14] sm:$0xf] %v1472_v3  ;;  %v1473_v6 = vpack.c.bf16 %v1377_v40, %v1377_v40  ;;  %v1434_v57 = vmul.f32 %v1377_v40, %v1377_v40  ;;  %v1425_v35 = vrot.slane %v1424_v63, 4 }
 0x13b   : > { %1690 = vst [vmem:[%s2334_s16 + $0x4] sm:$0xf] %v1470_v25  ;;  %v1395_v36 = vadd.f32 %v1375_v34, %v1374_v24  ;;  %v1432_v1 = vmul.f32 %v1375_v34, %v1375_v34  ;;  %v1815_v0 = vpop.f32.mrb[12].mxu0  ;;  %v1471_v23 = vpack.c.bf16 %v1375_v34, %v1375_v34  ;;  %v1390_v28 = vadd.f32 %v1389_v17, %v1388_v60 }
 0x13c   : > { %v1869_v55 = vadd.f32 %v1863_v13, %v1815_v0  ;;  %v1002_v2 = vpop.f32.mrb[13].mxu0  ;;  %1693 = vst [vmem:[%s2334_s16 + $0x1c] sm:$0xf] %v1473_v6  ;;  %v1426_v31 = vadd.f32 %v1425_v35, %v1424_v63 }
 0x13d   : > { %v1396_v4 = vadd.f32 %v1395_v36, %v1376_v62  ;;  %v1439_v5 = vadd.f32 %v1432_v1, %v1431_v26  ;;  %v1870_v9 = vadd.f32 %v1351_v16, %v1002_v2  ;;  %v1816_v10 = vpop.f32.mrb[14].mxu0  ;;  %1691 = vst [vmem:[%s2334_s16 + $0xc] sm:$0xf] %v1471_v23  ;;  %v1391_v46 = vrot.slane %v1390_v28, 2 }
 0x13e   : > { %v1380_v7 = vadd.f32 %v1869_v55, %v2327_v47  ;;  %v1871_v11 = vadd.f32 %v1864_v27, %v1816_v10  ;;  %v1005_v33 = vpop.f32.mrb[15].mxu0  ;;  %v1427_v50 = vrot.slane %v1426_v31, 2 }
 0x13f   : > { %v1440_v12 = vadd.f32 %v1439_v5, %v1433_v54  ;;  %v1378_v14 = vadd.f32 %v1870_v9, %v2327_v47  ;;  %v1397_v15 = vadd.f32 %v1396_v4, %v1377_v40  ;;  %v1872_v13 = vadd.f32 %v1354_v41, %v1005_v33 }
 0x140   : > { %v1476_v18 = vpack.c.bf16 %v1380_v7, %v1380_v7  ;;  %v1381_v30 = vadd.f32 %v1871_v11, %v2327_v47  ;;  %v1437_v38 = vmul.f32 %v1380_v7, %v1380_v7  ;;  %v1392_v52 = vadd.f32 %v1391_v46, %v1390_v28 }
 0x141   : > { %v1398_v20 = vadd.f32 %v1397_v15, %v1378_v14  ;;  %v1435_v8 = vmul.f32 %v1378_v14, %v1378_v14  ;;  %v1441_v16 = vadd.f32 %v1440_v12, %v1434_v57  ;;  %v1474_v21 = vpack.c.bf16 %v1378_v14, %v1378_v14 }
 0x142   : > { %1696 = vst [vmem:[%s2334_s16 + $0x34] sm:$0xf] %v1476_v18  ;;  %v1379_v27 = vadd.f32 %v1872_v13, %v2327_v47  ;;  %v1477_v42 = vpack.c.bf16 %v1381_v30, %v1381_v30  ;;  %v1438_v49 = vmul.f32 %v1381_v30, %v1381_v30  ;;  %v1428_v59 = vadd.f32 %v1427_v50, %v1426_v31 }
 0x143   : > { %v1442_v39 = vadd.f32 %v1441_v16, %v1435_v8  ;;  %1694 = vst [vmem:[%s2334_s16 + $0x24] sm:$0xf] %v1474_v21  ;;  %v1393_v61 = vrot.slane %v1392_v52, 1 }
 0x144   : > { %v1399_v43 = vadd.f32 %v1398_v20, %v1379_v27  ;;  %v1436_v41 = vmul.f32 %v1379_v27, %v1379_v27  ;;  %v1475_v32 = vpack.c.bf16 %v1379_v27, %v1379_v27  ;;  %1697 = vst [vmem:[%s2334_s16 + $0x3c] sm:$0xf] %v1477_v42  ;;  %v1429_v24 = vrot.slane %v1428_v59, 1 }
 0x145   : > { %v1394_v63 = vadd.f32 %v1393_v61, %v1392_v52 }
 0x146   : > { %v1400_v29 = vadd.f32 %v1399_v43, %v1380_v7  ;;  %v1443_v45 = vadd.f32 %v1442_v39, %v1436_v41  ;;  %1695 = vst [vmem:[%s2334_s16 + $0x2c] sm:$0xf] %v1475_v32  ;;  %v1430_v34 = vadd.f32 %v1429_v24, %v1428_v59 }
 0x148   : > { %v1401_v48 = vadd.f32 %v1400_v29, %v1381_v30  ;;  %v1444_v19 = vadd.f32 %v1443_v45, %v1437_v38 }
 0x14a   : > { %v1402_v47 = vrot.slane %v1401_v48, 4  ;;  %v1445_v51 = vadd.f32 %v1444_v19, %v1438_v49 }
 0x14c   : > { %v1403_v53 = vadd.f32 %v1402_v47, %v1401_v48  ;;  %v1446_v44 = vrot.slane %v1445_v51, 4 }
 0x14e   : > { %v1404_v58 = vrot.slane %v1403_v53, 2  ;;  %v1447_v60 = vadd.f32 %v1446_v44, %v1445_v51 }
 0x150   : > { %v1405_v62 = vadd.f32 %v1404_v58, %v1403_v53  ;;  %v1448_v22 = vrot.slane %v1447_v60, 2 }
 0x152   : > { %v1406_v37 = vrot.slane %v1405_v62, 1  ;;  %v1449_v56 = vadd.f32 %v1448_v22, %v1447_v60 }
 0x154   : > { %v1407_v3 = vadd.f32 %v1406_v37, %v1405_v62  ;;  %v1450_v25 = vrot.slane %v1449_v56, 1 }
 0x156   : > { %v1408_v40 = vadd.f32 %v1407_v3, %v1394_v63  ;;  %v1451_v26 = vadd.f32 %v1450_v25, %v1449_v56 }
 0x158   : > { %1409 = vst [vmem:[%s262_s20] sm:$0x1] %v1408_v40  ;;  %v1452_v6 = vadd.f32 %v1451_v26, %v1430_v34 }
 0x15a   : > { %1453 = vst [vmem:[%s262_s20 + $0x1] sm:$0x1] %v1452_v6 }
 0x15b PF: > { %s17_s21 = sadd.s32 1, %s1944_s21  }
 0x15c   : > { %p14_p4 = scmp.ge.s32.totalorder %s17_s21, 4  }
 0x15e   :  { %16 = sbr.rel (!%p14_p4) target bundleno = 1 (0x1), region = 90 }

// kernel: a_call__.5
= control target key start
LH: loop header
LB: loop body
LE: loop exit
PB: predicated region body
PF: predicated region fallthrough
CT: control target
= control target key end

     0   :  { %s1528_s21 = smov 0   ;;  %s1744_s0 = inlined_call_operand.vmem [shape: f32[2,4,4,64], index: 0, kind: input, shape index: {}]   ;;  %s1745_s1 = inlined_call_operand.vmem [shape: f32[1,64], index: 1, kind: input, shape index: {}]   ;;  %s1746_s2 = inlined_call_operand.vmem [shape: f32[1,64], index: 2, kind: input, shape index: {}]   ;;  %s1747_s3 = inlined_call_operand.vmem [shape: bf16[6,64,128], index: 3, kind: input, shape index: {}]   ;;  %s1748_s4 = inlined_call_operand.vmem [shape: f32[1,128], index: 4, kind: input, shape index: {}]   ;;  %s1749_s5 = inlined_call_operand.vmem [shape: bf16[2,4,2,4,128], index: 5, kind: output, shape index: {0}]   ;;  %s1750_s6 = inlined_call_operand.vmem [shape: f32[2,2,128], index: 6, kind: output, shape index: {1}]  }
   0x1 LB: > { %s1238_s22 = sadd.s32 4294967295, %s1488_s21   ;;  %p1242_p0 = scmp.ge.s32.totalorder %s1488_s21, 1  ;;  %s1488_s21 = sphi %s1528_s21, %s17_s21  }
   0x2   : > { %p215_p1 = scmp.lt.s32.totalorder %s1488_s21, 3 }
   0x4   : > { %p216_p2 = pnand %p1242_p0, %p215_p1 }
   0x5   : > { %v1450_v0 = vld [vmem:[%s1747_s3] sm:$0xff] (!%p216_p2)   ;;  %v1490_v1 = vmov (!%p216_p2), 0.0   ;;  %v1452_v3 = vld [vmem:[%s1747_s3 + $0x8] sm:$0xff] (!%p216_p2)   ;;  %vm1491_vm0 = vmmov (!%p216_p2), 0   ;;  %p249_p3 = scmp.lt.s32.totalorder (!%p216_p2), %s1238_s22, 1  ;;  %v1454_v5 = vld [vmem:[%s1747_s3 + $0x10] sm:$0xff] (!%p216_p2)   ;;  %v563_v33 = vlaneseq (!%p216_p2) }
   0x6   : > { %219 = sbr.rel (%p216_p2) target bundleno = 327 (0x147), region = 40  ;;  %1379 = vmatprep.subr.bf16.mxu1 (!%p216_p2), %v1490_v1  ;;  %1367 = vmatprep.subr.bf16.mxu0 (!%p216_p2), %v1490_v1  ;;  %v1451_v2 = vld [vmem:[%s1747_s3 + $0x20] sm:$0xff] (!%p216_p2)   ;;  %v1453_v4 = vld [vmem:[%s1747_s3 + $0x28] sm:$0xff] (!%p216_p2)   ;;  %v1455_v6 = vld [vmem:[%s1747_s3 + $0x30] sm:$0xff] (!%p216_p2)   ;;  %vm308_vm1 = vsmask.f32 (!%p216_p2), 2304 }
   0x7   : > { %1380 = vmatpush3.bf16.msra.mxu1 (!%p216_p2), %v1450_v0  ;;  %1387 = vmatprep.mubr.msk.bf16.mxu1 (!%p216_p2), %vm1491_vm0, %v1490_v1  ;;  %v1248_v11 = vld [vmem:[%s1745_s1] ss:$0 sm:$0xff] (!%p216_p2)  ;;  %v1456_v13 = vld [vmem:[%s1747_s3 + $0x18] sm:$0xff] (!%p216_p2)   ;;  %vm313_vm2 = vcmask (!%p216_p2), 518146   ;;  %v315_v24 = vld [vmem:[#allocation2] sm:$0x4] (!%p216_p2) }
   0x8   : > { %1368 = vmatpush3.bf16.msra.mxu0 (!%p216_p2), %v1451_v2  ;;  %1381 = vmatprep.subr.bf16.mxu1 (!%p216_p2), %v1490_v1  ;;  %v1249_v12 = vld [vmem:[%s1746_s2] ss:$0 sm:$0xff] (!%p216_p2)  ;;  %v1457_v18 = vld [vmem:[%s1747_s3 + $0x38] sm:$0xff] (!%p216_p2)   ;;  %vm1587_vm3 = vmand (!%p216_p2), %vm313_vm2, %vm308_vm1  ;;  %vm327_vm8 = vcmask (!%p216_p2), 517120   ;;  %v1492_v40 = vmov (!%p216_p2), 1983009808  }
   0x9   : > { %1369 = vmatprep.subr.bf16.mxu0 (!%p216_p2), %v1490_v1  ;;  %1375 = vmatprep.mubr.msk.bf16.mxu0 (!%p216_p2), %vm1491_vm0, %v1490_v1  ;;  %v318_v25 = vld [vmem:[#allocation2 + $0x4] sm:$0x4] (!%p216_p2)  ;;  %v316_v26 = vsel (!%p216_p2), %vm1587_vm3, 0, %v315_v24  ;;  %v321_v28 = vld [vmem:[#allocation2 + $0x8] sm:$0x4] (!%p216_p2)  ;;  %v561_v41 = vunpack.c.l.s4 (!%p216_p2), %v1492_v40  ;;  %v564_v48 = vshrl.u32 (!%p216_p2), %v563_v33, 7 }
   0xa   : > { %v319_v27 = vsel (!%p216_p2), %vm1587_vm3, 0, %v318_v25  ;;  %v324_v29 = vld [vmem:[#allocation2 + $0xc] sm:$0x4] (!%p216_p2)  ;;  %317 = vst [vmem:[#allocation2] sm:$0x4] (!%p216_p2), %v316_v26  ;;  %v322_v35 = vsel (!%p216_p2), %vm1587_vm3, 0, %v321_v28 }
   0xb   : > { %1382 = vmatpush3.bf16.msra.mxu1 (!%p216_p2), %v1452_v3  ;;  %320 = vst [vmem:[#allocation2 + $0x4] sm:$0x4] (!%p216_p2), %v319_v27  ;;  %v325_v36 = vsel (!%p216_p2), %vm1587_vm3, 0, %v324_v29  ;;  %323 = vst [vmem:[#allocation2 + $0x8] sm:$0x4] (!%p216_p2), %v322_v35  ;;  %v562_v47 = vunpack.c.0.s8 (!%p216_p2), %v561_v41  ;;  %vm599_vm13 = vcmask (!%p216_p2), 523264  }
   0xc   : > { %1370 = vmatpush3.bf16.msra.mxu0 (!%p216_p2), %v1453_v4  ;;  %1383 = vmatprep.subr.bf16.mxu1 (!%p216_p2), %v1490_v1  ;;  %326 = vst [vmem:[#allocation2 + $0xc] sm:$0x4] (!%p216_p2), %v325_v36  ;;  %vm376_vm9 = vsmask.f32 (!%p216_p2), 1280  ;;  %vm377_vm10 = vsmask.f32 (!%p216_p2), 3336 }
   0xd   : > { %s1758_s22 = smov (!%p249_p3, %s1238_s22), 1  ;;  %1371 = vmatprep.subr.bf16.mxu0 %v1490_v1  ;;  %vm379_vm11 = vsmask.f32 5392  ;;  %v1609_v49 = vsub.s32 %v562_v47, %v564_v48  ;;  %vm381_vm12 = vsmask.f32 7448  ;;  %vm307_vm14 = vcmask 518144   ;;  %vm378_vm15 = vmor %vm376_vm9, %vm377_vm10 }
   0xe   : > { %s1335_s9 = sshll.u32 %s1758_s22, 4  ;;  %v1460_v53 = vld [vmem:[%s1747_s3 + $0x40] sm:$0xff]   ;;  %vm1617_vm2 = vmor %vm378_vm15, %vm379_vm11  ;;  %v1464_v26 = vld [vmem:[%s1747_s3 + $0x50] sm:$0xff]  }
   0xf   : > { %s253_s14 = scalar_lea.vmem %s1744_s0, %s1335_s9  ;;  %1384 = vmatpush3.bf16.msra.mxu1 %v1454_v5  ;;  %vm1631_vm3 = vmor %vm1617_vm2, %vm381_vm12  ;;  %v310_v36 = vld [vmem:[#allocation2 + $0x10] sm:$0x7]  ;;  %v1466_v41 = vld [vmem:[%s1747_s3 + $0x58] sm:$0xff]   ;;  %s1727_s17 = scalar_lea.vmem %s1749_s5, %s1335_s9 }
  0x10   : > { %v264_v7 = vld [vmem:[%s253_s14] sm:$0xf]  ;;  %v265_v8 = vld [vmem:[%s253_s14 + $0x4] sm:$0xf]  ;;  %v266_v9 = vld [vmem:[%s253_s14 + $0x8] sm:$0xf]  ;;  %1372 = vmatpush3.bf16.msra.mxu0 %v1455_v6  ;;  %1385 = vmatprep.subr.bf16.mxu1 %v1490_v1 }
  0x11   : > { %v267_v10 = vld [vmem:[%s253_s14 + $0xc] sm:$0xf]  ;;  %v275_v14 = vmul.f32 %v1248_v11, %v264_v7  ;;  %v276_v15 = vmul.f32 %v1248_v11, %v265_v8  ;;  %v277_v16 = vmul.f32 %v1248_v11, %v266_v9  ;;  %1373 = vmatprep.subr.bf16.mxu0 %v1490_v1  ;;  %v1461_v47 = vld [vmem:[%s1747_s3 + $0x60] sm:$0xff]   ;;  %v1467_v4 = vld [vmem:[%s1747_s3 + $0x78] sm:$0xff]   ;;  %s1247_s9 = sshll.u32 %s1758_s22, 1 }
  0x12   : > { %v278_v17 = vmul.f32 %v1248_v11, %v267_v10  ;;  %s262_s20 = scalar_lea.vmem %s1750_s6, %s1247_s9 }
  0x13   : > { %v286_v19 = vadd.f32 %v1249_v12, %v275_v14  ;;  %v287_v20 = vadd.f32 %v1249_v12, %v276_v15  ;;  %v288_v21 = vadd.f32 %v1249_v12, %v277_v16  ;;  %1386 = vmatpush3.bf16.msra.mxu1 %v1456_v13  ;;  %v1462_v16 = vld [vmem:[%s1747_s3 + $0x48] sm:$0xff]  }
  0x14   : > { %v289_v22 = vadd.f32 %v1249_v12, %v278_v17  ;;  %1374 = vmatpush3.bf16.msra.mxu0 %v1457_v18  ;;  %1403 = vmatprep.subr.bf16.mxu1 %v1490_v1 }
  0x15   : > { %vm290_vm4 = vcmp.gt.f32.partialorder %v286_v19, 0.0  ;;  %vm291_vm5 = vcmp.gt.f32.partialorder %v287_v20, 0.0  ;;  %vm292_vm6 = vcmp.gt.f32.partialorder %v288_v21, 0.0  ;;  %v294_v30 = vmul.f32 0.2, %v286_v19  ;;  %1391 = vmatprep.subr.bf16.mxu0 %v1490_v1 }
  0x16   : > { %vm293_vm7 = vcmp.gt.f32.partialorder %v289_v22, 0.0  ;;  %v295_v31 = vmul.f32 0.2, %v287_v20  ;;  %v296_v32 = vmul.f32 0.2, %v288_v21 }
  0x17   : > { %v297_v34 = vmul.f32 0.2, %v289_v22  ;;  %v298_v37 = vsel %vm290_vm4, %v286_v19, %v294_v30  ;;  %vm309_vm4 = vmand %vm307_vm14, %vm308_vm1 }
  0x18   : > { %v299_v38 = vsel %vm291_vm5, %v287_v20, %v295_v31  ;;  %v300_v39 = vsel %vm292_vm6, %v288_v21, %v296_v32  ;;  %v302_v43 = vpack.c.bf16 %v298_v37, %v298_v37  ;;  %v311_v40 = vsel %vm309_vm4, 0, %v310_v36 }
  0x19   : > { %v301_v42 = vsel %vm293_vm7, %v289_v22, %v297_v34  ;;  %v303_v44 = vpack.c.bf16 %v299_v38, %v299_v38  ;;  %v304_v45 = vpack.c.bf16 %v300_v39, %v300_v39  ;;  %312 = vst [vmem:[#allocation2 + $0x10] sm:$0x7] %v311_v40 }
  0x1a   : > { %v305_v46 = vpack.c.bf16 %v301_v42, %v301_v42  ;;  %328 = vst.msk [vmem:[#allocation2] sm:$0x3] %vm327_vm8, %v302_v43 }
  0x1b   : > { %329 = vst.msk [vmem:[#allocation2 + $0x4] sm:$0x3] %vm327_vm8, %v303_v44  ;;  %330 = vst.msk [vmem:[#allocation2 + $0x8] sm:$0x3] %vm327_vm8, %v304_v45 }
  0x1c   : > { %331 = vst.msk [vmem:[#allocation2 + $0xc] sm:$0x3] %vm327_vm8, %v305_v46  ;;  %v1468_v46 = vld [vmem:[%s1747_s3 + $0xa0] sm:$0xff]  }
  0x21   : > { %v1250_v52 = vld.sshfl [vmem:[#allocation2] sm:$0x13 pattern:$0x76325410] }
  0x22   : > { %v1478_v50 = vld.sshfl [vmem:[#allocation2] sm:$0xf pattern:$0x76325410]  ;;  %v351_v55 = vcombine.high %v1250_v52, %v1250_v52  ;;  %v384_v56 = vshrl.u32 %v1250_v52, 16  ;;  %v387_v59 = vshll.u32 %v1250_v52, 16 }
  0x23   : > { %v1479_v51 = vld.sshfl [vmem:[#allocation2 + $0x8] sm:$0xf pattern:$0x76325410] }
  0x24   : > { %v1251_v54 = vld.sshfl [vmem:[#allocation2 + $0x4] sm:$0x13 pattern:$0x76325410]  ;;  %v1614_v61 = vcombine.low %v1478_v50, %v1479_v51  ;;  %v386_v0 = vrot.slane %v384_v56, 6  ;;  %v393_v2 = vshll.u32 %v351_v55, 16 }
  0x25   : > { %v1252_v57 = vld.sshfl [vmem:[#allocation2 + $0x8] sm:$0x13 pattern:$0x76325410]  ;;  %v359_v58 = vcombine.high %v1251_v54, %v1251_v54  ;;  %v398_v60 = vshrl.u32 %v1251_v54, 16  ;;  %v389_v5 = vrot.slane %v387_v59, 7 }
  0x26   : > { %v1253_v62 = vld.sshfl [vmem:[#allocation2 + $0xc] sm:$0x13 pattern:$0x76325410]  ;;  %v367_v63 = vcombine.high %v1252_v57, %v1252_v57  ;;  %v401_v7 = vshll.u32 %v1251_v54, 16  ;;  %1388 = vmatmul.mubr.msk.bf16.vlgmr.msra.gmra.mrb[0].mxu1 %vm599_vm13, %v1614_v61  ;;  %v395_v8 = vrot.slane %v393_v2, 7 }
  0x27   : > { %v375_v3 = vcombine.high %v1253_v62, %v1253_v62  ;;  %v400_v6 = vrot.slane %v398_v60, 6  ;;  %v407_v9 = vshll.u32 %v359_v58, 16  ;;  %v412_v10 = vshrl.u32 %v1252_v57, 16  ;;  %1404 = vmatpush3.bf16.msra.mxu1 %v1460_v53  ;;  %1411 = vmatprep.mubr.msk.bf16.mxu1 %vm1491_vm0, %v1490_v1  ;;  %v1470_v51 = vld [vmem:[%s1747_s3 + $0xa8] sm:$0xff]   ;;  %v1472_v59 = vld [vmem:[%s1747_s3 + $0xb0] sm:$0xff]   ;;  %v1474_v2 = vld [vmem:[%s1747_s3 + $0xb8] sm:$0xff]  }
  0x28   : > { %v415_v11 = vshll.u32 %v1252_v57, 16  ;;  %v390_v12 = vor.u32 %v389_v5, %v386_v0  ;;  %v403_v13 = vrot.slane %v401_v7, 7  ;;  %v421_v14 = vshll.u32 %v367_v63, 16  ;;  %1405 = vmatprep.subr.bf16.mxu1 %v1490_v1  ;;  %v1463_v55 = vld [vmem:[%s1747_s3 + $0x68] sm:$0xff]  }
  0x29   : > { %v426_v15 = vshrl.u32 %v1253_v62, 16  ;;  %v409_v18 = vrot.slane %v407_v9, 7  ;;  %v414_v19 = vrot.slane %v412_v10, 6  ;;  %v429_v21 = vshll.u32 %v1253_v62, 16  ;;  %v1465_v62 = vld [vmem:[%s1747_s3 + $0x70] sm:$0xff]   ;;  %v1471_v10 = vld [vmem:[%s1747_s3 + $0x88] sm:$0xff]  }
  0x2a   : > { %v417_v20 = vrot.slane %v415_v11, 7  ;;  %v391_v22 = vrot.slane %v390_v12, 2  ;;  %v404_v23 = vor.u32 %v403_v13, %v400_v6  ;;  %v423_v24 = vrot.slane %v421_v14, 7  ;;  %v1473_v12 = vld [vmem:[%s1747_s3 + $0x90] sm:$0xff]   ;;  %v1475_v13 = vld [vmem:[%s1747_s3 + $0x98] sm:$0xff]  }
  0x2b   : > { %v428_v25 = vrot.slane %v426_v15, 6  ;;  %v431_v28 = vrot.slane %v429_v21, 7  ;;  %v435_v29 = vshll.u32 %v375_v3, 16  ;;  %1406 = vmatpush3.bf16.msra.mxu1 %v1462_v16 }
  0x2c   : > { %v418_v27 = vor.u32 %v417_v20, %v414_v19  ;;  %v396_v30 = vsel %vm1631_vm3, %v391_v22, %v395_v8  ;;  %v405_v31 = vrot.slane %v404_v23, 2  ;;  %1407 = vmatprep.subr.bf16.mxu1 %v1490_v1  ;;  %v1257_v50 = vld.sshfl [vmem:[#allocation2 + $0x10] sm:$0x13 pattern:$0x76325410]  ;;  %v1469_v8 = vld [vmem:[%s1747_s3 + $0x80] sm:$0xff]  }
  0x2d   : > { %v432_v33 = vor.u32 %v431_v28, %v428_v25  ;;  %v437_v34 = vrot.slane %v435_v29, 7  ;;  %v483_v52 = vcombine.high %v1257_v50, %v1257_v50  ;;  %v527_v53 = vshrl.u32 %v1257_v50, 16  ;;  %v1481_v11 = vld.sshfl [vmem:[#allocation2 + $0xc] sm:$0xf pattern:$0x76325410] }
  0x2e   : > { %v419_v32 = vrot.slane %v418_v27, 2  ;;  %v410_v35 = vsel %vm1631_vm3, %v405_v31, %v409_v18  ;;  %v530_v54 = vshll.u32 %v1257_v50, 16  ;;  %v1276_v20 = vld [vmem:[%s1748_s4] ss:$0 sm:$0xff] }
  0x2f   : > { %v433_v38 = vrot.slane %v432_v33, 2  ;;  %v558_v39 = vcombine.low %v396_v30, %v410_v35  ;;  %1408 = vmatpush3.bf16.msra.mxu1 %v1464_v26  ;;  %v529_v56 = vrot.slane %v527_v53, 6  ;;  %v536_v58 = vshll.u32 %v483_v52, 16 }
  0x30   : > { %v424_v37 = vsel %vm1631_vm3, %v419_v32, %v423_v24  ;;  %1409 = vmatprep.subr.bf16.mxu1 %v1490_v1  ;;  %v532_v57 = vrot.slane %v530_v54, 7 }
  0x31   : > { %v438_v42 = vsel %vm1631_vm3, %v433_v38, %v437_v34  ;;  %v566_v44 = vrot.slane %v558_v39, %v1609_v49  ;;  %v998_v63 = vcombine.low %v410_v35, %v424_v37 }
  0x32   : > { %v559_v43 = vcombine.low %v424_v37, %v438_v42  ;;  %v533_v60 = vor.u32 %v532_v57, %v529_v56 }
  0x33   : > { %1410 = vmatpush3.bf16.msra.mxu1 %v1466_v41  ;;  %v1006_v6 = vrot.slane %v998_v63, %v1609_v49 }
  0x34   : > { %v573_v45 = vrot.slane %v559_v43, %v1609_v49  ;;  %1427 = vmatprep.subr.bf16.mxu1 %v1490_v1  ;;  %v534_v0 = vrot.slane %v533_v60, 2 }
  0x36   : > { %v574_v48 = vcombine.low %v566_v44, %v573_v45  ;;  %1412 = vmatmul.mubr.msk.bf16.vlgmr.msra.gmra.mrb[4].mxu1 %vm599_vm13, %v1614_v61  ;;  %v538_v61 = vrot.slane %v536_v58, 7 }
  0x37   : > { %1428 = vmatpush3.bf16.msra.mxu1 %v1468_v46  ;;  %1435 = vmatprep.mubr.msk.bf16.mxu1 %vm1491_vm0, %v1490_v1 }
  0x38   : > { %1376 = vmatmul.mubr.msk.bf16.vlgmr.msra.gmra.mrb[0].mxu0 %vm599_vm13, %v574_v48  ;;  %1429 = vmatprep.subr.bf16.mxu1 %v1490_v1  ;;  %v539_v3 = vsel %vm1631_vm3, %v534_v0, %v538_v61 }
  0x39   : > { %1392 = vmatpush3.bf16.msra.mxu0 %v1461_v47  ;;  %1399 = vmatprep.mubr.msk.bf16.mxu0 %vm1491_vm0, %v1490_v1  ;;  %v999_v5 = vcombine.low %v438_v42, %v539_v3 }
  0x3a   : > { %1393 = vmatprep.subr.bf16.mxu0 %v1490_v1 }
  0x3b   : > { %1430 = vmatpush3.bf16.msra.mxu1 %v1470_v51  ;;  %v1013_v7 = vrot.slane %v999_v5, %v1609_v49  ;;  %v1480_v49 = vld.sshfl [vmem:[#allocation2 + $0x4] sm:$0xf pattern:$0x76325410] }
  0x3c   : > { %1431 = vmatprep.subr.bf16.mxu1 %v1490_v1  ;;  %v918_v14 = vcombine.low %v1480_v49, %v1481_v11 }
  0x3d   : > { %1394 = vmatpush3.bf16.msra.mxu0 %v1463_v55  ;;  %v1014_v9 = vcombine.low %v1006_v6, %v1013_v7 }
  0x3e   : > { %1395 = vmatprep.subr.bf16.mxu0 %v1490_v1 }
  0x3f   : > { %1432 = vmatpush3.bf16.msra.mxu1 %v1472_v59 }
  0x40   : > { %1433 = vmatprep.subr.bf16.mxu1 %v1490_v1 }
  0x41   : > { %1396 = vmatpush3.bf16.msra.mxu0 %v1465_v62 }
  0x42   : > { %1397 = vmatprep.subr.bf16.mxu0 %v1490_v1 }
  0x43   : > { %1434 = vmatpush3.bf16.msra.mxu1 %v1474_v2 }
  0x45   : > { %1398 = vmatpush3.bf16.msra.mxu0 %v1467_v4 }
  0x46   : > { %1415 = vmatprep.subr.bf16.mxu0 %v1490_v1  ;;  %1436 = vmatmul.mubr.msk.bf16.vlgmr.msra.gmra.mrb[8].mxu1 %vm599_vm13, %v1014_v9 }
  0x48   : > { %1400 = vmatmul.mubr.msk.bf16.vlgmr.msra.gmra.mrb[4].mxu0 %vm599_vm13, %v574_v48 }
  0x49   : > { %1416 = vmatpush3.bf16.msra.mxu0 %v1469_v8  ;;  %1423 = vmatprep.mubr.msk.bf16.mxu0 %vm1491_vm0, %v1490_v1 }
  0x4a   : > { %1417 = vmatprep.subr.bf16.mxu0 %v1490_v1 }
  0x4d   : > { %1418 = vmatpush3.bf16.msra.mxu0 %v1471_v10 }
  0x4e   : > { %1419 = vmatprep.subr.bf16.mxu0 %v1490_v1 }
  0x51   : > { %1420 = vmatpush3.bf16.msra.mxu0 %v1473_v12 }
  0x52   : > { %1421 = vmatprep.subr.bf16.mxu0 %v1490_v1 }
  0x55   : > { %1422 = vmatpush3.bf16.msra.mxu0 %v1475_v13 }
  0x58   : > { %1424 = vmatmul.mubr.msk.bf16.vlgmr.msra.gmra.mrb[8].mxu0 %vm599_vm13, %v918_v14 }
  0xf9   : > { %v726_v15 = vpop.f32.mrb[0].mxu1 }
  0xfa   : > { %v1389_v16 = vpop.f32.mrb[1].mxu1 }
  0xfb   : > { %v729_v17 = vpop.f32.mrb[2].mxu1 }
  0xfc   : > { %v1390_v18 = vpop.f32.mrb[3].mxu1 }
 0x109   : > { %v882_v19 = vpop.f32.mrb[4].mxu1 }
 0x10a   : > { %v1413_v22 = vpop.f32.mrb[5].mxu1 }
 0x10b   : > { %v637_v21 = vpop.f32.mrb[0].mxu0  ;;  %v885_v25 = vpop.f32.mrb[6].mxu1 }
 0x10c   : > { %v727_v23 = vadd.f32 %v726_v15, %v637_v21  ;;  %v1377_v24 = vpop.f32.mrb[1].mxu0  ;;  %v1414_v26 = vpop.f32.mrb[7].mxu1 }
 0x10d   : > { %v640_v1 = vpop.f32.mrb[2].mxu0 }
 0x10e   : > { %v739_v27 = vadd.f32 %v1276_v20, %v727_v23  ;;  %v730_v28 = vadd.f32 %v729_v17, %v640_v1  ;;  %v1378_v29 = vpop.f32.mrb[3].mxu0 }
 0x110   : > { %v1125_v30 = vcombine.high %v739_v27, %v739_v27  ;;  %v1129_v31 = vpack.c.bf16 %v739_v27, %v739_v27  ;;  %v740_v32 = vadd.f32 %v1276_v20, %v730_v28  ;;  %v1103_v33 = vmul.f32 %v739_v27, %v739_v27 }
 0x112   : > { %v1130_v34 = vpack.c.bf16 %v1125_v30, %v1125_v30  ;;  %1133 = vst [vmem:[%s1727_s17] sm:$0x3] %v1129_v31  ;;  %v1087_v35 = vadd.f32 %v740_v32, %v739_v27  ;;  %v1104_v36 = vmul.f32 %v740_v32, %v740_v32  ;;  %v1126_v37 = vcombine.high %v740_v32, %v740_v32 }
 0x113   : > { %v1131_v38 = vpack.c.bf16 %v740_v32, %v740_v32 }
 0x114   : > { %1134 = vst [vmem:[%s1727_s17 + $0x4] sm:$0x3] %v1130_v34  ;;  %v1105_v39 = vadd.f32 %v1104_v36, %v1103_v33  ;;  %v1132_v40 = vpack.c.bf16 %v1126_v37, %v1126_v37  ;;  %v1088_v52 = vrot.slane %v1087_v35, 4 }
 0x115   : > { %1135 = vst [vmem:[%s1727_s17 + $0x8] sm:$0x3] %v1131_v38 }
 0x116   : > { %1136 = vst [vmem:[%s1727_s17 + $0xc] sm:$0x3] %v1132_v40  ;;  %v1106_v57 = vrot.slane %v1105_v39, 4  ;;  %v1089_v61 = vadd.f32 %v1088_v52, %v1087_v35 }
 0x118   : > { %v1107_v0 = vadd.f32 %v1106_v57, %v1105_v39  ;;  %v1090_v5 = vrot.slane %v1089_v61, 2 }
 0x119   : > { %v1076_v41 = vpop.f32.mrb[8].mxu1 }
 0x11a   : > { %v1437_v43 = vpop.f32.mrb[9].mxu1  ;;  %v1108_v11 = vrot.slane %v1107_v0, 2  ;;  %v1091_v15 = vadd.f32 %v1090_v5, %v1089_v61 }
 0x11b   : > { %v817_v42 = vpop.f32.mrb[4].mxu0  ;;  %v1079_v46 = vpop.f32.mrb[10].mxu1 }
 0x11c   : > { %v883_v44 = vadd.f32 %v882_v19, %v817_v42  ;;  %v1401_v45 = vpop.f32.mrb[5].mxu0  ;;  %v1438_v48 = vpop.f32.mrb[11].mxu1  ;;  %v1109_v18 = vadd.f32 %v1108_v11, %v1107_v0  ;;  %v1092_v21 = vrot.slane %v1091_v15, 1 }
 0x11d   : > { %v820_v47 = vpop.f32.mrb[6].mxu0 }
 0x11e   : > { %v886_v50 = vadd.f32 %v885_v25, %v820_v47  ;;  %v1402_v51 = vpop.f32.mrb[7].mxu0  ;;  %v1110_v24 = vrot.slane %v1109_v18, 1  ;;  %v1093_v26 = vadd.f32 %v1092_v21, %v1091_v15 }
 0x120   : > { %v1111_v29 = vadd.f32 %v1110_v24, %v1109_v18 }
 0x12b   : > { %v980_v53 = vpop.f32.mrb[8].mxu0 }
 0x12c   : > { %v987_v54 = vadd.f32 %v980_v53, %v883_v44  ;;  %v1425_v55 = vpop.f32.mrb[9].mxu0 }
 0x12d   : > { %v983_v56 = vpop.f32.mrb[10].mxu0 }
 0x12e   : > { %v1083_v58 = vadd.f32 %v1076_v41, %v987_v54  ;;  %v988_v59 = vadd.f32 %v983_v56, %v886_v50  ;;  %v1426_v60 = vpop.f32.mrb[11].mxu0 }
 0x130   : > { %v1085_v62 = vadd.f32 %v1276_v20, %v1083_v58  ;;  %v1084_v63 = vadd.f32 %v1079_v46, %v988_v59 }
 0x132   : > { %v1139_v2 = vcombine.high %v1085_v62, %v1085_v62  ;;  %v1143_v3 = vpack.c.bf16 %v1085_v62, %v1085_v62  ;;  %v1086_v4 = vadd.f32 %v1276_v20, %v1084_v63  ;;  %v1112_v6 = vmul.f32 %v1085_v62, %v1085_v62 }
 0x134   : > { %v1144_v7 = vpack.c.bf16 %v1139_v2, %v1139_v2  ;;  %1329 = vst [vmem:[%s1727_s17 + $0x2] sm:$0x3] %v1143_v3  ;;  %v1094_v8 = vadd.f32 %v1086_v4, %v1085_v62  ;;  %v1113_v9 = vmul.f32 %v1086_v4, %v1086_v4  ;;  %v1140_v10 = vcombine.high %v1086_v4, %v1086_v4 }
 0x135   : > { %v1145_v49 = vpack.c.bf16 %v1086_v4, %v1086_v4 }
 0x136   : > { %1330 = vst [vmem:[%s1727_s17 + $0x6] sm:$0x3] %v1144_v7  ;;  %v1095_v12 = vrot.slane %v1094_v8, 4  ;;  %v1114_v13 = vadd.f32 %v1113_v9, %v1112_v6  ;;  %v1146_v14 = vpack.c.bf16 %v1140_v10, %v1140_v10 }
 0x137   : > { %1331 = vst [vmem:[%s1727_s17 + $0xa] sm:$0x3] %v1145_v49 }
 0x138   : > { %v1096_v16 = vadd.f32 %v1095_v12, %v1094_v8  ;;  %v1115_v17 = vrot.slane %v1114_v13, 4  ;;  %1332 = vst [vmem:[%s1727_s17 + $0xe] sm:$0x3] %v1146_v14 }
 0x13a   : > { %v1097_v19 = vrot.slane %v1096_v16, 2  ;;  %v1116_v20 = vadd.f32 %v1115_v17, %v1114_v13 }
 0x13c   : > { %v1098_v22 = vadd.f32 %v1097_v19, %v1096_v16  ;;  %v1117_v23 = vrot.slane %v1116_v20, 2 }
 0x13e   : > { %v1099_v25 = vrot.slane %v1098_v22, 1  ;;  %v1118_v1 = vadd.f32 %v1117_v23, %v1116_v20 }
 0x140   : > { %v1100_v27 = vadd.f32 %v1099_v25, %v1098_v22  ;;  %v1119_v28 = vrot.slane %v1118_v1, 1 }
 0x142   : > { %v1101_v30 = vadd.f32 %v1100_v27, %v1093_v26  ;;  %v1120_v31 = vadd.f32 %v1119_v28, %v1118_v1 }
 0x144   : > { %1102 = vst [vmem:[%s262_s20] sm:$0x1] %v1101_v30  ;;  %v1121_v32 = vadd.f32 %v1120_v31, %v1111_v29 }
 0x146   : > { %1122 = vst [vmem:[%s262_s20 + $0x1] sm:$0x1] %v1121_v32 }
 0x147 PF: > { %s17_s21 = sadd.s32 1, %s1488_s21  }
 0x148   : > { %p14_p4 = scmp.ge.s32.totalorder %s17_s21, 4  }
 0x14a   :  { %16 = sbr.rel (!%p14_p4) target bundleno = 1 (0x1), region = 90 }

// kernel: a_call__.7
= control target key start
LH: loop header
LB: loop body
LE: loop exit
PB: predicated region body
PF: predicated region fallthrough
CT: control target
= control target key end

     0   :  { %s7731_s18 = smov 0   ;;  %s9785_s0 = inlined_call_operand.vmem [shape: bf16[2,16,16,64], index: 0, kind: input, shape index: {}]   ;;  %s9786_s1 = inlined_call_operand.vmem [shape: f32[1,64], index: 1, kind: input, shape index: {}]   ;;  %s9787_s2 = inlined_call_operand.vmem [shape: f32[1,64], index: 2, kind: input, shape index: {}]   ;;  %s9788_s3 = inlined_call_operand.vmem [shape: bf16[9,64,128], index: 3, kind: input, shape index: {}]   ;;  %s9789_s4 = inlined_call_operand.vmem [shape: f32[1,128], index: 4, kind: input, shape index: {}]   ;;  %s9790_s5 = inlined_call_operand.vmem [shape: f32[2,16,16,128], index: 5, kind: output, shape index: {}]  }
   0x1 LB: > { %s6074_s19 = sadd.s32 4294967295, %s7698_s18   ;;  %p6078_p0 = scmp.ge.s32.totalorder %s7698_s18, 1  ;;  %s7698_s18 = sphi %s7731_s18, %s15_s18  }
   0x2   : > { %p187_p1 = scmp.lt.s32.totalorder %s7698_s18, 3 }
   0x4   : > { %p188_p2 = pnand %p6078_p0, %p187_p1 }
   0x6   : > { %191 = sbr.rel (%p188_p2) target bundleno = 720 (0x2d0), region = 40 }
   0xd   : > { %v7482_v0 = vld [vmem:[%s9788_s3 + $0x20] sm:$0xff]   ;;  %vm480_vm0 = vcmask 519168   ;;  %v7484_v2 = vld [vmem:[%s9788_s3 + $0x28] sm:$0xff]   ;;  %v7700_v3 = vmov 0   ;;  %vm483_vm1 = vcmask 516096   ;;  %v7486_v5 = vld [vmem:[%s9788_s3 + $0x30] sm:$0xff]  }
   0xe   : > { %v7483_v1 = vld [vmem:[%s9788_s3 + $0x80] sm:$0xff]   ;;  %6849 = vmatprep.subr.bf16.mxu1 %v7482_v0  ;;  %481 = vst.msk [vmem:[#allocation2] sm:$0xf] %vm480_vm0, %v7700_v3  ;;  %482 = vst.msk [vmem:[#allocation2 + $0x4] sm:$0xf] %vm480_vm0, %v7700_v3  ;;  %v7485_v4 = vld [vmem:[%s9788_s3 + $0x88] sm:$0xff]  }
   0xf   : > { %486 = vst.msk [vmem:[#allocation2 + $0xcc] sm:$0xf] %vm480_vm0, %v7700_v3  ;;  %487 = vst.msk [vmem:[#allocation2 + $0xd0] sm:$0xf] %vm480_vm0, %v7700_v3  ;;  %7009 = vmatprep.subr.bf16.mxu0 %v7483_v1  ;;  %6850 = vmatpush3.bf16.msra.mxu1 %v7482_v0  ;;  %p215_p3 = scmp.lt.s32.totalorder %s6074_s19, 1  ;;  %v7487_v6 = vld [vmem:[%s9788_s3 + $0x90] sm:$0xff]  }
  0x10   : > { %484 = vst.msk [vmem:[#allocation2 + $0x8] sm:$0x1] %vm483_vm1, %v7700_v3  ;;  %488 = vst.msk [vmem:[#allocation2 + $0xd4] sm:$0x1] %vm483_vm1, %v7700_v3  ;;  %7010 = vmatpush3.bf16.msra.mxu0 %v7483_v1  ;;  %6851 = vmatprep.subr.bf16.mxu1 %v7484_v2  ;;  %v7488_v7 = vld [vmem:[%s9788_s3 + $0x38] sm:$0xff]   ;;  %v7798_v32 = vld [vmem:[%s9788_s3] sm:$0xff]  }
  0x11   : > { %7011 = vmatprep.subr.bf16.mxu0 %v7485_v4  ;;  %s9892_s19 = smov (!%p215_p3, %s6074_s19), 1  ;;  %v7489_v8 = vld [vmem:[%s9788_s3 + $0x98] sm:$0xff]   ;;  %vm491_vm2 = vsmask.f32 256  ;;  %vm541_vm3 = vsmask.f32 7938 }
  0x12   : > { %vm7773_vm4 = vmand %vm483_vm1, %vm491_vm2  ;;  %vm1163_vm5 = vsmask.f32 3328  ;;  %vm1164_vm6 = vsmask.f32 7440  ;;  %s6556_s11 = sshll.u32 %s9892_s19, 7  ;;  %v7821_v41 = vld [vmem:[%s9788_s3 + $0xa0] sm:$0xff]  }
  0x13   : > { %6852 = vmatpush3.bf16.msra.mxu1 %v7484_v2  ;;  %vm7780_vm7 = vmand %vm483_vm1, %vm541_vm3  ;;  %s7787_s14 = scalar_lea.vmem %s9785_s0, %s6556_s11  ;;  %v7792_v23 = vld [vmem:[%s9786_s1] ss:$0 sm:$0xff]  ;;  %v493_v26 = vld [vmem:[#allocation2 + $0xc] sm:$0x1]  ;;  %vm1631_vm9 = vcmask 523264   ;;  %s6557_s8 = sshll.u32 %s9892_s19, 8 }
  0x14   : > { %7012 = vmatpush3.bf16.msra.mxu0 %v7485_v4  ;;  %6853 = vmatprep.subr.bf16.mxu1 %v7486_v5  ;;  %v6591_v25 = vld [vmem:[%s7787_s14] sm:$0xff]   ;;  %v543_v27 = vld [vmem:[#allocation2 + $0x14] sm:$0x1]  ;;  %vm7802_vm8 = vmor %vm1163_vm5, %vm1164_vm6  ;;  %v494_v35 = vsel %vm7773_vm4, 0, %v493_v26  ;;  %vm671_vm10 = vsmask.f32 4368  ;;  %s9718_s11 = scalar_lea.vmem %s9790_s5, %s6557_s8 }
  0x15   : > { %7013 = vmatprep.subr.bf16.mxu0 %v7487_v6  ;;  %v1107_v9 = vld [vmem:[#allocation2] sm:$0xf]  ;;  %v1108_v10 = vld [vmem:[#allocation2 + $0x4] sm:$0xf]  ;;  %v6592_v30 = vunpack.c.l.bf16 %v6591_v25  ;;  %v6593_v31 = vunpack.c.h.bf16 %v6591_v25  ;;  %v544_v36 = vsel %vm7780_vm7, 0, %v543_v27  ;;  %v6654_v42 = vld [vmem:[%s7787_s14 + $0x8] sm:$0xff]  }
  0x16   : > { %v1167_v12 = vshrl.u32 %v1107_v9, 16  ;;  %v1170_v13 = vshll.u32 %v1107_v9, 16  ;;  %v1176_v14 = vshll.u32 %v1108_v10, 16  ;;  %v1180_v15 = vshrl.u32 %v1108_v10, 16  ;;  %v7809_v34 = vld [vmem:[%s9787_s2] ss:$0 sm:$0xff]  ;;  %vm7850_vm15 = vmand %vm480_vm0, %vm541_vm3 }
  0x17   : > { %v1147_v11 = vld [vmem:[#allocation2 + $0x8] sm:$0x1]  ;;  %6854 = vmatpush3.bf16.msra.mxu1 %v7486_v5  ;;  %v297_v39 = vmul.f32 %v6592_v30, %v7792_v23  ;;  %v298_v40 = vmul.f32 %v6593_v31, %v7792_v23  ;;  %495 = vst [vmem:[#allocation2 + $0xc] sm:$0x1] %v494_v35  ;;  %545 = vst [vmem:[#allocation2 + $0x14] sm:$0x1] %v544_v36  ;;  %v6596_v52 = vunpack.c.l.bf16 %v6654_v42  ;;  %v6597_v53 = vunpack.c.h.bf16 %v6654_v42 }
  0x18   : > { %v1186_v17 = vshll.u32 %v1147_v11, 16  ;;  %7014 = vmatpush3.bf16.msra.mxu0 %v7487_v6  ;;  %6855 = vmatprep.subr.bf16.mxu1 %v7488_v7  ;;  %v1169_v19 = vrot.slane %v1167_v12, 4  ;;  %v1172_v20 = vrot.slane %v1170_v13, 5  ;;  %v1178_v21 = vrot.slane %v1176_v14, 5  ;;  %v496_v43 = vld [vmem:[#allocation2 + $0x18] sm:$0x1]  ;;  %vm7858_vm1 = vmor %vm491_vm2, %vm671_vm10 }
  0x19   : > { %v1182_v22 = vrot.slane %v1180_v15, 4  ;;  %7015 = vmatprep.subr.bf16.mxu0 %v7489_v8  ;;  %v336_v46 = vadd.f32 %v7809_v34, %v297_v39  ;;  %v337_v47 = vadd.f32 %v7809_v34, %v298_v40  ;;  %v546_v48 = vld [vmem:[#allocation2 + $0x20] sm:$0x1]  ;;  %v6655_v49 = vld [vmem:[%s7787_s14 + $0x10] sm:$0xff]   ;;  %v499_v50 = vld [vmem:[#allocation2 + $0x24] sm:$0x1]  ;;  %v299_v57 = vmul.f32 %v6596_v52, %v7792_v23 }
  0x1a   : > { %v1188_v24 = vrot.slane %v1186_v17, 5  ;;  %v1173_v28 = vor.u32 %v1172_v20, %v1169_v19  ;;  %v497_v54 = vsel %vm7773_vm4, 0, %v496_v43  ;;  %v300_v58 = vmul.f32 %v6597_v53, %v7792_v23  ;;  %v549_v61 = vld [vmem:[#allocation2 + $0x2c] sm:$0x1]  ;;  %v6656_v62 = vld [vmem:[%s7787_s14 + $0x18] sm:$0xff]  }
  0x1b   : > { %v1183_v29 = vor.u32 %v1182_v22, %v1178_v21  ;;  %6856 = vmatpush3.bf16.msra.mxu1 %v7488_v7  ;;  %vm368_vm11 = vcmp.gt.f32.partialorder %v336_v46, 0.0  ;;  %vm369_vm12 = vcmp.gt.f32.partialorder %v337_v47, 0.0  ;;  %v400_v55 = vmul.f32 0.2, %v336_v46  ;;  %498 = vst [vmem:[#allocation2 + $0x18] sm:$0x1] %v497_v54 }
  0x1c   : > { %7016 = vmatpush3.bf16.msra.mxu0 %v7489_v8  ;;  %v1174_v37 = vrot.slane %v1173_v28, 4  ;;  %6889 = vmatprep.subr.bf16.mxu1 %v7798_v32  ;;  %v401_v56 = vmul.f32 0.2, %v337_v47  ;;  %v547_v59 = vsel %vm7780_vm7, 0, %v546_v48  ;;  %v6600_v60 = vunpack.c.l.bf16 %v6655_v49  ;;  %v502_v42 = vld [vmem:[#allocation2 + $0x30] sm:$0x1] }
  0x1d   : > { %v1184_v38 = vrot.slane %v1183_v29, 4  ;;  %7049 = vmatprep.subr.bf16.mxu0 %v7821_v41  ;;  %v432_v63 = vsel %vm368_vm11, %v336_v46, %v400_v55  ;;  %548 = vst [vmem:[#allocation2 + $0x20] sm:$0x1] %v547_v59  ;;  %v6601_v1 = vunpack.c.h.bf16 %v6655_v49  ;;  %v500_v2 = vsel %vm7773_vm4, 0, %v499_v50 }
  0x1e   : > { %v1179_v44 = vsel %vm7802_vm8, %v1174_v37, %v1178_v21  ;;  %v433_v0 = vsel %vm369_vm12, %v337_v47, %v401_v56  ;;  %v6558_v3 = vpack.c.bf16 %v432_v63, %v432_v63  ;;  %v338_v5 = vadd.f32 %v7809_v34, %v299_v57  ;;  %501 = vst [vmem:[#allocation2 + $0x24] sm:$0x1] %v500_v2  ;;  %v995_v26 = vld [vmem:[#allocation2 + $0xc] sm:$0xf]  ;;  %v999_v27 = vld [vmem:[#allocation2 + $0x14] sm:$0x1] }
  0x1f   : > { %v1189_v45 = vsel %vm7802_vm8, %v1184_v38, %v1188_v24  ;;  %v6559_v4 = vpack.c.bf16 %v433_v0, %v433_v0  ;;  %v339_v6 = vadd.f32 %v7809_v34, %v300_v58  ;;  %v301_v7 = vmul.f32 %v6600_v60, %v7792_v23 }
  0x20   : > { %v6125_v51 = vcombine.low %v1179_v44, %v1189_v45  ;;  %v302_v8 = vmul.f32 %v6601_v1, %v7792_v23  ;;  %v550_v9 = vsel %vm7780_vm7, 0, %v549_v61  ;;  %v6604_v10 = vunpack.c.l.bf16 %v6656_v62 }
  0x21   : > { %v674_v11 = vshrl.u32 %v6558_v3, 16  ;;  %v677_v12 = vshll.u32 %v6558_v3, 16  ;;  %v682_v13 = vshrl.u32 %v6559_v4, 16  ;;  %v685_v14 = vshll.u32 %v6559_v4, 16  ;;  %551 = vst [vmem:[#allocation2 + $0x2c] sm:$0x1] %v550_v9 }
  0x22   : > { %6857 = vmatprep.mubr.msk.bf16.mxu1 %vm1631_vm9, %v6125_v51  ;;  %vm370_vm13 = vcmp.gt.f32.partialorder %v338_v5, 0.0  ;;  %vm371_vm14 = vcmp.gt.f32.partialorder %v339_v6, 0.0  ;;  %v402_v15 = vmul.f32 0.2, %v338_v5  ;;  %v403_v17 = vmul.f32 0.2, %v339_v6 }
  0x23   : > { %v676_v20 = vrot.slane %v674_v11, 7  ;;  %v684_v21 = vrot.slane %v682_v13, 7  ;;  %v340_v22 = vadd.f32 %v7809_v34, %v301_v7  ;;  %v341_v24 = vadd.f32 %v7809_v34, %v302_v8  ;;  %v1002_v57 = vld [vmem:[#allocation2 + $0x18] sm:$0xf]  ;;  %v7881_v4 = vld [vmem:[%s7787_s14 + $0x20] sm:$0xff]   ;;  %v7887_v7 = vld [vmem:[%s7787_s14 + $0x28] sm:$0xff]  }
  0x24   : > { %v434_v28 = vsel %vm370_vm13, %v338_v5, %v402_v15  ;;  %v435_v29 = vsel %vm371_vm14, %v339_v6, %v403_v17  ;;  %v6605_v30 = vunpack.c.h.bf16 %v6656_v62  ;;  %v303_v31 = vmul.f32 %v6604_v10, %v7792_v23  ;;  %v1006_v60 = vld [vmem:[#allocation2 + $0x20] sm:$0x1] }
  0x25   : > { %v679_v35 = vor.u32 %v677_v12, %v676_v20  ;;  %v680_v36 = vrot.slane %v676_v20, 4  ;;  %v687_v37 = vor.u32 %v685_v14, %v684_v21  ;;  %v689_v38 = vrot.slane %v684_v21, 4 }
  0x26   : > { %v6560_v39 = vpack.c.bf16 %v434_v28, %v434_v28  ;;  %v6561_v40 = vpack.c.bf16 %v435_v29, %v435_v29  ;;  %vm372_vm3 = vcmp.gt.f32.partialorder %v340_v22, 0.0  ;;  %vm373_vm5 = vcmp.gt.f32.partialorder %v341_v24, 0.0 }
  0x27   : > { %v688_v43 = vsel %vm7858_vm1, %v680_v36, %v687_v37  ;;  %v996_v44 = vsel %vm7850_vm15, %v679_v35, %v995_v26  ;;  %v1000_v45 = vsel %vm7773_vm4, %v689_v38, %v999_v27  ;;  %v404_v46 = vmul.f32 0.2, %v340_v22 }
  0x28   : > { %997 = vst [vmem:[#allocation2 + $0xc] sm:$0xf] %v996_v44  ;;  %998 = vst.msk [vmem:[#allocation2 + $0x10] sm:$0xf] %vm480_vm0, %v688_v43  ;;  %v691_v47 = vshrl.u32 %v6560_v39, 16  ;;  %v694_v48 = vshll.u32 %v6560_v39, 16  ;;  %v304_v53 = vmul.f32 %v6605_v30, %v7792_v23  ;;  %v342_v54 = vadd.f32 %v7809_v34, %v303_v31 }
  0x29   : > { %1001 = vst [vmem:[#allocation2 + $0x14] sm:$0x1] %v1000_v45  ;;  %v699_v49 = vshrl.u32 %v6561_v40, 16  ;;  %v702_v50 = vshll.u32 %v6561_v40, 16  ;;  %v405_v51 = vmul.f32 0.2, %v341_v24  ;;  %v436_v52 = vsel %vm372_vm3, %v340_v22, %v404_v46 }
  0x2a   : > { %v693_v55 = vrot.slane %v691_v47, 7  ;;  %v7872_v58 = vpack.c.bf16 %v436_v52, %v436_v52  ;;  %v503_v59 = vsel %vm7773_vm4, 0, %v502_v42  ;;  %v7878_v62 = vadd.f32 %v7809_v34, %v304_v53 }
  0x2b   : > { %v701_v56 = vrot.slane %v699_v49, 7  ;;  %v437_v61 = vsel %vm373_vm5, %v341_v24, %v405_v51  ;;  %vm374_vm2 = vcmp.gt.f32.partialorder %v342_v54, 0.0  ;;  %v406_v63 = vmul.f32 0.2, %v342_v54  ;;  %504 = vst [vmem:[#allocation2 + $0x30] sm:$0x1] %v503_v59 }
  0x2c   : > { %v696_v0 = vor.u32 %v694_v48, %v693_v55  ;;  %v697_v1 = vrot.slane %v693_v55, 4  ;;  %v708_v5 = vshrl.u32 %v7872_v58, 16  ;;  %v711_v6 = vshll.u32 %v7872_v58, 16 }
  0x2d   : > { %v704_v2 = vor.u32 %v702_v50, %v701_v56  ;;  %v706_v3 = vrot.slane %v701_v56, 4  ;;  %vm375_vm6 = vcmp.gt.f32.partialorder %v7878_v62, 0.0  ;;  %v407_v11 = vmul.f32 0.2, %v7878_v62 }
  0x2e   : > { %v1003_v9 = vsel %vm7850_vm15, %v696_v0, %v1002_v57  ;;  %v7897_v15 = vpack.c.bf16 %v437_v61, %v437_v61  ;;  %v7900_v17 = vsel %vm374_vm2, %v342_v54, %v406_v63  ;;  %v6608_v20 = vunpack.c.l.bf16 %v7881_v4 }
  0x2f   : > { %v705_v8 = vsel %vm7858_vm1, %v697_v1, %v704_v2  ;;  %v1007_v10 = vsel %vm7773_vm4, %v706_v3, %v1006_v60  ;;  %v1109_v12 = vld [vmem:[#allocation2 + $0xc] sm:$0xf]  ;;  %v1110_v13 = vld [vmem:[#allocation2 + $0x10] sm:$0xf]  ;;  %1004 = vst [vmem:[#allocation2 + $0x18] sm:$0xf] %v1003_v9  ;;  %v6609_v31 = vunpack.c.h.bf16 %v7881_v4  ;;  %v6612_v35 = vunpack.c.l.bf16 %v7887_v7 }
  0x30   : > { %v1148_v14 = vld [vmem:[#allocation2 + $0x14] sm:$0x1]  ;;  %1005 = vst.msk [vmem:[#allocation2 + $0x1c] sm:$0xf] %vm480_vm0, %v705_v8  ;;  %1008 = vst [vmem:[#allocation2 + $0x20] sm:$0x1] %v1007_v10  ;;  %v7921_v2 = vsel %vm375_vm6, %v7878_v62, %v407_v11 }
  0x31   : > { %v1191_v21 = vshrl.u32 %v1109_v12, 16  ;;  %v1194_v22 = vshll.u32 %v1109_v12, 16  ;;  %v1200_v24 = vshll.u32 %v1110_v13, 16  ;;  %v1204_v26 = vshrl.u32 %v1110_v13, 16  ;;  %v3025_v27 = vld [vmem:[#allocation2 + $0xc] sm:$0xf] }
  0x32   : > { %v1210_v28 = vshll.u32 %v1148_v14, 16  ;;  %v7903_v29 = vld [vmem:[#allocation2 + $0x10] sm:$0xf]  ;;  %v3074_v30 = vshrl.u32 %v3025_v27, 16  ;;  %v7907_v40 = vld [vmem:[#allocation2 + $0x14] sm:$0x1] }
  0x33   : > { %v1193_v36 = vrot.slane %v1191_v21, 4  ;;  %v1196_v37 = vrot.slane %v1194_v22, 5  ;;  %v1202_v38 = vrot.slane %v1200_v24, 5  ;;  %v1206_v39 = vrot.slane %v1204_v26, 4  ;;  %v7493_v24 = vld [vmem:[%s9788_s3 + $0x8] sm:$0xff]  }
  0x34   : > { %v1212_v42 = vrot.slane %v1210_v28, 5  ;;  %v3076_v43 = vrot.slane %v3074_v30, 4  ;;  %v3077_v44 = vshll.u32 %v3025_v27, 16  ;;  %v3083_v45 = vshll.u32 %v7903_v29, 16 }
  0x35   : > { %v1197_v46 = vor.u32 %v1196_v37, %v1193_v36  ;;  %v1207_v47 = vor.u32 %v1206_v39, %v1202_v38  ;;  %v3087_v48 = vshrl.u32 %v7903_v29, 16  ;;  %v3093_v49 = vshll.u32 %v7907_v40, 16 }
  0x36   : > { %v3079_v50 = vrot.slane %v3077_v44, 5  ;;  %v3085_v51 = vrot.slane %v3083_v45, 5  ;;  %v3845_v52 = vrot.slane %v7903_v29, 5  ;;  %v3848_v53 = vrot.slane %v7907_v40, 5  ;;  %v3028_v59 = vld [vmem:[#allocation2 + $0x18] sm:$0xf] }
  0x37   : > { %v1198_v54 = vrot.slane %v1197_v46, 4  ;;  %v1208_v55 = vrot.slane %v1207_v47, 4  ;;  %v3089_v56 = vrot.slane %v3087_v48, 4  ;;  %v3095_v57 = vrot.slane %v3093_v49, 5  ;;  %v7914_v61 = vld [vmem:[#allocation2 + $0x1c] sm:$0xf] }
  0x38   : > { %v3080_v60 = vor.u32 %v3079_v50, %v3076_v43  ;;  %v7916_v63 = vld [vmem:[#allocation2 + $0x20] sm:$0x1]  ;;  %v3098_v0 = vshrl.u32 %v3028_v59, 16  ;;  %v3101_v1 = vshll.u32 %v3028_v59, 16  ;;  %v3107_v10 = vshll.u32 %v7914_v61, 16  ;;  %v7496_v50 = vld [vmem:[%s9788_s3 + $0x10] sm:$0xff]  }
  0x39   : > { %v1203_v3 = vsel %vm7802_vm8, %v1198_v54, %v1202_v38  ;;  %v1213_v8 = vsel %vm7802_vm8, %v1208_v55, %v1212_v42  ;;  %v3090_v9 = vor.u32 %v3089_v56, %v3085_v51  ;;  %v1111_v22 = vld [vmem:[#allocation2 + $0x18] sm:$0xf]  ;;  %v3111_v26 = vshrl.u32 %v7914_v61, 16  ;;  %v1112_v38 = vld [vmem:[#allocation2 + $0x1c] sm:$0xf] }
  0x3a   : > { %v6126_v12 = vcombine.low %v1203_v3, %v1213_v8  ;;  %v3081_v13 = vrot.slane %v3080_v60, 4  ;;  %v3100_v14 = vrot.slane %v3098_v0, 4  ;;  %v3103_v21 = vrot.slane %v3101_v1, 5  ;;  %v1149_v44 = vld [vmem:[#allocation2 + $0x20] sm:$0x1] }
  0x3b   : > { %v3091_v62 = vrot.slane %v3090_v9, 4  ;;  %v3109_v11 = vrot.slane %v3107_v10, 5  ;;  %v3117_v27 = vshll.u32 %v7916_v63, 16  ;;  %v3852_v36 = vrot.slane %v7914_v61, 5  ;;  %v552_v56 = vld [vmem:[#allocation2 + $0x38] sm:$0x1] }
  0x3c   : > { %6858 = vmatmul.mubr.msk.bf16.vlgmr.msra.gmra.mrb[0].mxu1 %vm1631_vm9, %v6126_v12  ;;  %v3086_v28 = vsel %vm7802_vm8, %v3081_v13, %v3085_v51  ;;  %v3104_v30 = vor.u32 %v3103_v21, %v3100_v14  ;;  %v3855_v37 = vrot.slane %v7916_v63, 5  ;;  %v3113_v42 = vrot.slane %v3111_v26, 4  ;;  %v1009_v10 = vld [vmem:[#allocation2 + $0x24] sm:$0xf] }
  0x3d   : > { %v3096_v39 = vsel %vm7802_vm8, %v3091_v62, %v3095_v57  ;;  %6890 = vmatpush3.bf16.msra.mxu1 %v7798_v32  ;;  %v3119_v43 = vrot.slane %v3117_v27, 5  ;;  %v1215_v45 = vshrl.u32 %v1111_v22, 16  ;;  %v7943_v48 = vrot.slane %v3852_v36, 4  ;;  %v7492_v62 = vld [vmem:[%s9788_s3 + $0xa8] sm:$0xff]  }
  0x3e   : > { %v6309_v46 = vcombine.low %v3086_v28, %v3096_v39  ;;  %v3105_v47 = vrot.slane %v3104_v30, 4  ;;  %v1218_v49 = vshll.u32 %v1111_v22, 16  ;;  %6891 = vmatprep.subr.bf16.mxu1 %v7493_v24  ;;  %v3114_v51 = vor.u32 %v3113_v42, %v3109_v11  ;;  %v1013_v22 = vld [vmem:[#allocation2 + $0x2c] sm:$0x1]  ;;  %v505_v30 = vld [vmem:[#allocation2 + $0x3c] sm:$0x1] }
  0x3f   : > { %v1217_v54 = vrot.slane %v1215_v45, 4  ;;  %v1224_v55 = vshll.u32 %v1112_v38, 16  ;;  %v1228_v32 = vshrl.u32 %v1112_v38, 16  ;;  %v1234_v60 = vshll.u32 %v1149_v44, 16  ;;  %v555_v44 = vld [vmem:[#allocation2 + $0x44] sm:$0x1] }
  0x40   : > { %7017 = vmatprep.mubr.msk.bf16.mxu0 %vm1631_vm9, %v6309_v46  ;;  %v3110_v57 = vsel %vm7802_vm8, %v3105_v47, %v3109_v11  ;;  %v1220_v59 = vrot.slane %v1218_v49, 5  ;;  %v710_v0 = vrot.slane %v708_v5, 7  ;;  %v3115_v1 = vrot.slane %v3114_v51, 4 }
  0x41   : > { %v1226_v3 = vrot.slane %v1224_v55, 5  ;;  %v1230_v8 = vrot.slane %v1228_v32, 4  ;;  %v716_v9 = vshrl.u32 %v7897_v15, 16  ;;  %6892 = vmatpush3.bf16.msra.mxu1 %v7493_v24  ;;  %v1236_v13 = vrot.slane %v1234_v60, 5 }
  0x42   : > { %v1221_v12 = vor.u32 %v1220_v59, %v1217_v54  ;;  %v713_v14 = vor.u32 %v711_v6, %v710_v0  ;;  %v714_v21 = vrot.slane %v710_v0, 4  ;;  %6893 = vmatprep.subr.bf16.mxu1 %v7496_v50  ;;  %v3120_v5 = vsel %vm7802_vm8, %v3115_v1, %v3119_v43  ;;  %v7495_v0 = vld [vmem:[%s9788_s3 + $0xb8] sm:$0xff]  }
  0x43   : > { %v1231_v11 = vor.u32 %v1230_v8, %v1226_v3  ;;  %v718_v26 = vrot.slane %v716_v9, 7  ;;  %v719_v27 = vshll.u32 %v7897_v15, 16  ;;  %v6310_v24 = vcombine.low %v3110_v57, %v3120_v5  ;;  %v1016_v8 = vld [vmem:[#allocation2 + $0x30] sm:$0xf] }
  0x44   : > { %v1222_v28 = vrot.slane %v1221_v12, 4  ;;  %v1010_v58 = vsel %vm7850_vm15, %v713_v14, %v1009_v10  ;;  %v553_v6 = vsel %vm7780_vm7, 0, %v552_v56  ;;  %v6564_v43 = vpack.c.bf16 %v7900_v17, %v7900_v17 }
  0x45   : > { %v1232_v38 = vrot.slane %v1231_v11, 4  ;;  %v721_v39 = vor.u32 %v719_v27, %v718_v26  ;;  %v723_v42 = vrot.slane %v718_v26, 4  ;;  %1011 = vst [vmem:[#allocation2 + $0x24] sm:$0xf] %v1010_v58  ;;  %554 = vst [vmem:[#allocation2 + $0x38] sm:$0x1] %v553_v6  ;;  %6894 = vmatpush3.bf16.msra.mxu1 %v7496_v50  ;;  %7018 = vmatmul.mubr.msk.bf16.vlgmr.msra.gmra.mrb[0].mxu0 %vm1631_vm9, %v6310_v24  ;;  %v6613_v60 = vunpack.c.h.bf16 %v7887_v7 }
  0x46   : > { %v1227_v15 = vsel %vm7802_vm8, %v1222_v28, %v1226_v3  ;;  %v6565_v45 = vpack.c.bf16 %v7921_v2, %v7921_v2  ;;  %v305_v46 = vmul.f32 %v6608_v20, %v7792_v23  ;;  %v306_v47 = vmul.f32 %v6609_v31, %v7792_v23  ;;  %7050 = vmatpush3.bf16.msra.mxu0 %v7821_v41  ;;  %v7494_v41 = vld [vmem:[%s9788_s3 + $0xb0] sm:$0xff]   ;;  %v7497_v58 = vld [vmem:[%s9788_s3 + $0xc0] sm:$0xff]  }
  0x47   : > { %v1237_v17 = vsel %vm7802_vm8, %v1232_v38, %v1236_v13  ;;  %v722_v49 = vsel %vm7858_vm1, %v714_v21, %v721_v39  ;;  %v1014_v50 = vsel %vm7773_vm4, %v723_v42, %v1013_v22  ;;  %v725_v2 = vshrl.u32 %v6564_v43, 16  ;;  %7051 = vmatprep.subr.bf16.mxu0 %v7492_v62  ;;  %v8019_v28 = vld [vmem:[%s7787_s14 + $0x30] sm:$0xff]  }
  0x48   : > { %v6127_v51 = vcombine.low %v1227_v15, %v1237_v17  ;;  %1012 = vst.msk [vmem:[#allocation2 + $0x28] sm:$0xf] %vm480_vm0, %v722_v49  ;;  %1015 = vst [vmem:[#allocation2 + $0x2c] sm:$0x1] %v1014_v50  ;;  %v728_v20 = vshll.u32 %v6564_v43, 16  ;;  %v733_v4 = vshrl.u32 %v6565_v45, 16  ;;  %v7991_v55 = vadd.f32 %v7809_v34, %v305_v46 }
  0x49   : > { %v736_v31 = vshll.u32 %v6565_v45, 16  ;;  %v727_v54 = vrot.slane %v725_v2, 7  ;;  %v7994_v32 = vadd.f32 %v7809_v34, %v306_v47  ;;  %v506_v56 = vsel %vm7773_vm4, 0, %v505_v30 }
  0x4a   : > { %6861 = vmatprep.mubr.msk.bf16.mxu1 %vm1631_vm9, %v6127_v51  ;;  %v735_v57 = vrot.slane %v733_v4, 7  ;;  %507 = vst [vmem:[#allocation2 + $0x3c] sm:$0x1] %v506_v56  ;;  %v556_v59 = vsel %vm7780_vm7, 0, %v555_v44  ;;  %7052 = vmatpush3.bf16.msra.mxu0 %v7492_v62  ;;  %vm376_vm10 = vcmp.gt.f32.partialorder %v7991_v55, 0.0  ;;  %v307_v9 = vmul.f32 %v6612_v35, %v7792_v23 }
  0x4b   : > { %v730_v1 = vor.u32 %v728_v20, %v727_v54  ;;  %v731_v3 = vrot.slane %v727_v54, 4  ;;  %557 = vst [vmem:[#allocation2 + $0x44] sm:$0x1] %v556_v59  ;;  %vm377_vm11 = vcmp.gt.f32.partialorder %v7994_v32, 0.0  ;;  %7053 = vmatprep.subr.bf16.mxu0 %v7494_v41  ;;  %v308_v21 = vmul.f32 %v6613_v60, %v7792_v23 }
  0x4c   : > { %v1113_v10 = vld [vmem:[#allocation2 + $0x24] sm:$0xf]  ;;  %v738_v13 = vor.u32 %v736_v31, %v735_v57  ;;  %v740_v14 = vrot.slane %v735_v57, 4  ;;  %v1020_v26 = vld [vmem:[#allocation2 + $0x38] sm:$0x1]  ;;  %v8026_v42 = vadd.f32 %v7809_v34, %v307_v9  ;;  %v6616_v54 = vunpack.c.l.bf16 %v8019_v28 }
  0x4d   : > { %v3031_v12 = vld [vmem:[#allocation2 + $0x24] sm:$0xf]  ;;  %v1239_v22 = vshrl.u32 %v1113_v10, 16  ;;  %v1242_v5 = vshll.u32 %v1113_v10, 16  ;;  %v1017_v7 = vsel %vm7850_vm15, %v730_v1, %v1016_v8  ;;  %v408_v24 = vmul.f32 0.2, %v7991_v55 }
  0x4e   : > { %v3122_v62 = vshrl.u32 %v3031_v12, 16  ;;  %v3125_v11 = vshll.u32 %v3031_v12, 16  ;;  %v739_v27 = vsel %vm7858_vm1, %v731_v3, %v738_v13  ;;  %v1021_v35 = vsel %vm7773_vm4, %v740_v14, %v1020_v26  ;;  %1018 = vst [vmem:[#allocation2 + $0x30] sm:$0xf] %v1017_v7  ;;  %7054 = vmatpush3.bf16.msra.mxu0 %v7494_v41 }
  0x4f   : > { %v1114_v6 = vld [vmem:[#allocation2 + $0x28] sm:$0xf]  ;;  %v1150_v30 = vld [vmem:[#allocation2 + $0x2c] sm:$0x1]  ;;  %v1241_v38 = vrot.slane %v1239_v22, 4  ;;  %v1244_v39 = vrot.slane %v1242_v5, 5  ;;  %v8029_v43 = vadd.f32 %v7809_v34, %v308_v21  ;;  %7055 = vmatprep.subr.bf16.mxu0 %v7495_v0  ;;  %v440_v8 = vsel %vm376_vm10, %v7991_v55, %v408_v24 }
  0x50   : > { %1019 = vst.msk [vmem:[#allocation2 + $0x34] sm:$0xf] %vm480_vm0, %v739_v27  ;;  %1022 = vst [vmem:[#allocation2 + $0x38] sm:$0x1] %v1021_v35  ;;  %v1248_v44 = vshll.u32 %v1114_v6, 16  ;;  %v1252_v15 = vshrl.u32 %v1114_v6, 16  ;;  %v6566_v5 = vpack.c.bf16 %v440_v8, %v440_v8 }
  0x51   : > { %v1258_v45 = vshll.u32 %v1150_v30, 16  ;;  %v3032_v46 = vld [vmem:[#allocation2 + $0x28] sm:$0xf]  ;;  %v3124_v47 = vrot.slane %v3122_v62, 4  ;;  %v1245_v17 = vor.u32 %v1244_v39, %v1241_v38  ;;  %v3033_v49 = vld [vmem:[#allocation2 + $0x2c] sm:$0x1]  ;;  %v6617_v62 = vunpack.c.h.bf16 %v8019_v28 }
  0x52   : > { %v3127_v50 = vrot.slane %v3125_v11, 5  ;;  %v3131_v2 = vshll.u32 %v3032_v46, 16  ;;  %v3135_v51 = vshrl.u32 %v3032_v46, 16  ;;  %v1250_v20 = vrot.slane %v1248_v44, 5  ;;  %7056 = vmatpush3.bf16.msra.mxu0 %v7495_v0 }
  0x53   : > { %v1254_v4 = vrot.slane %v1252_v15, 4  ;;  %v3141_v31 = vshll.u32 %v3033_v49, 16  ;;  %v1246_v56 = vrot.slane %v1245_v17, 4  ;;  %v1260_v1 = vrot.slane %v1258_v45, 5  ;;  %7089 = vmatprep.subr.bf16.mxu0 %v7497_v58 }
  0x54   : > { %v3128_v57 = vor.u32 %v3127_v50, %v3124_v47  ;;  %v3133_v59 = vrot.slane %v3131_v2, 5  ;;  %v3137_v41 = vrot.slane %v3135_v51, 4  ;;  %v409_v3 = vmul.f32 0.2, %v7994_v32 }
  0x55   : > { %v1255_v60 = vor.u32 %v1254_v4, %v1250_v20  ;;  %v1251_v9 = vsel %vm7802_vm8, %v1246_v56, %v1250_v20  ;;  %v3143_v13 = vrot.slane %v3141_v31, 5  ;;  %v3034_v21 = vld [vmem:[#allocation2 + $0x30] sm:$0xf]  ;;  %vm378_vm12 = vcmp.gt.f32.partialorder %v8026_v42, 0.0 }
  0x56   : > { %v3129_v10 = vrot.slane %v3128_v57, 4  ;;  %v3138_v12 = vor.u32 %v3137_v41, %v3133_v59  ;;  %v441_v0 = vsel %vm377_vm11, %v7994_v32, %v409_v3  ;;  %v3146_v27 = vshrl.u32 %v3034_v21, 16  ;;  %v1115_v30 = vld [vmem:[#allocation2 + $0x30] sm:$0xf] }
  0x57   : > { %v1256_v14 = vrot.slane %v1255_v60, 4  ;;  %v3035_v22 = vld [vmem:[#allocation2 + $0x34] sm:$0xf]  ;;  %v3036_v26 = vld [vmem:[#allocation2 + $0x38] sm:$0x1]  ;;  %v3149_v7 = vshll.u32 %v3034_v21, 16  ;;  %v6567_v57 = vpack.c.bf16 %v441_v0, %v441_v0 }
  0x58   : > { %v3134_v55 = vsel %vm7802_vm8, %v3129_v10, %v3133_v59  ;;  %v3139_v11 = vrot.slane %v3138_v12, 4  ;;  %v3155_v24 = vshll.u32 %v3035_v22, 16  ;;  %v3159_v58 = vshrl.u32 %v3035_v22, 16  ;;  %v1116_v15 = vld [vmem:[#allocation2 + $0x34] sm:$0xf] }
  0x59   : > { %v1261_v35 = vsel %vm7802_vm8, %v1256_v14, %v1260_v1  ;;  %v3165_v6 = vshll.u32 %v3036_v26, 16  ;;  %v3148_v39 = vrot.slane %v3146_v27, 4  ;;  %v3151_v44 = vrot.slane %v3149_v7, 5  ;;  %v1151_v45 = vld [vmem:[#allocation2 + $0x38] sm:$0x1] }
  0x5a   : > { %v6128_v38 = vcombine.low %v1251_v9, %v1261_v35  ;;  %v3144_v32 = vsel %vm7802_vm8, %v3139_v11, %v3143_v13  ;;  %v3157_v47 = vrot.slane %v3155_v24, 5  ;;  %v3161_v17 = vrot.slane %v3159_v58, 4  ;;  %v1023_v22 = vld [vmem:[#allocation2 + $0x3c] sm:$0xf]  ;;  %v1027_v7 = vld [vmem:[#allocation2 + $0x44] sm:$0x1] }
  0x5b   : > { %v6311_v46 = vcombine.low %v3134_v55, %v3144_v32  ;;  %v3167_v49 = vrot.slane %v3165_v6, 5  ;;  %v3152_v50 = vor.u32 %v3151_v44, %v3148_v39  ;;  %v1263_v2 = vshrl.u32 %v1115_v30, 16  ;;  %v508_v55 = vld [vmem:[#allocation2 + $0x48] sm:$0x1]  ;;  %v558_v6 = vld [vmem:[#allocation2 + $0x50] sm:$0x1] }
  0x5c   : > { %6862 = vmatmul.mubr.msk.bf16.gmra.mrb[4].mxu1 %vm1631_vm9, %v6128_v38  ;;  %v1266_v51 = vshll.u32 %v1115_v30, 16  ;;  %v1272_v20 = vshll.u32 %v1116_v15, 16  ;;  %v3162_v4 = vor.u32 %v3161_v17, %v3157_v47  ;;  %v1276_v31 = vshrl.u32 %v1116_v15, 16  ;;  %v511_v39 = vld [vmem:[#allocation2 + $0x54] sm:$0x1] }
  0x5d   : > { %7021 = vmatprep.mubr.msk.bf16.mxu0 %vm1631_vm9, %v6311_v46  ;;  %v1282_v56 = vshll.u32 %v1151_v45, 16  ;;  %v3153_v59 = vrot.slane %v3152_v50, 4  ;;  %v1265_v41 = vrot.slane %v1263_v2, 4  ;;  %v742_v10 = vshrl.u32 %v6566_v5, 16  ;;  %v561_v44 = vld [vmem:[#allocation2 + $0x5c] sm:$0x1] }
  0x5e   : > { %v1268_v60 = vrot.slane %v1266_v51, 5  ;;  %v1274_v1 = vrot.slane %v1272_v20, 5  ;;  %v3163_v3 = vrot.slane %v3162_v4, 4  ;;  %v1278_v8 = vrot.slane %v1276_v31, 4  ;;  %v8071_v51 = vld [vmem:[%s7787_s14 + $0x38] sm:$0xff]  }
  0x5f   : > { %v1284_v9 = vrot.slane %v1282_v56, 5  ;;  %v3158_v12 = vsel %vm7802_vm8, %v3153_v59, %v3157_v47  ;;  %v745_v14 = vshll.u32 %v6566_v5, 16  ;;  %v750_v21 = vshrl.u32 %v6567_v57, 16 }
  0x60   : > { %v1269_v13 = vor.u32 %v1268_v60, %v1265_v41  ;;  %v3168_v11 = vsel %vm7802_vm8, %v3163_v3, %v3167_v49  ;;  %v1279_v0 = vor.u32 %v1278_v8, %v1274_v1  ;;  %v744_v26 = vrot.slane %v742_v10, 7 }
  0x61   : > { %v753_v27 = vshll.u32 %v6567_v57, 16  ;;  %v6312_v35 = vcombine.low %v3158_v12, %v3168_v11  ;;  %v752_v58 = vrot.slane %v750_v21, 7  ;;  %vm379_vm13 = vcmp.gt.f32.partialorder %v8029_v43, 0.0  ;;  %v514_v57 = vld [vmem:[#allocation2 + $0x60] sm:$0x1] }
  0x62   : > { %v1270_v24 = vrot.slane %v1269_v13, 4  ;;  %v1280_v30 = vrot.slane %v1279_v0, 4  ;;  %v747_v38 = vor.u32 %v745_v14, %v744_v26  ;;  %v748_v5 = vrot.slane %v744_v26, 4  ;;  %v7498_v26 = vld [vmem:[%s9788_s3 + $0x18] sm:$0xff]  }
  0x63   : > { %v410_v32 = vmul.f32 0.2, %v8026_v42  ;;  %7022 = vmatmul.mubr.msk.bf16.gmra.mrb[4].mxu0 %vm1631_vm9, %v6312_v35  ;;  %v755_v45 = vor.u32 %v753_v27, %v752_v58  ;;  %v757_v46 = vrot.slane %v752_v58, 4  ;;  %v411_v47 = vmul.f32 0.2, %v8029_v43  ;;  %6895 = vmatprep.subr.bf16.mxu1 %v7498_v26 }
  0x64   : > { %v1275_v15 = vsel %vm7802_vm8, %v1270_v24, %v1274_v1  ;;  %v1285_v17 = vsel %vm7802_vm8, %v1280_v30, %v1284_v9  ;;  %v1024_v49 = vsel %vm7850_vm15, %v747_v38, %v1023_v22  ;;  %v509_v2 = vsel %vm7773_vm4, 0, %v508_v55  ;;  %v564_v9 = vld [vmem:[#allocation2 + $0x68] sm:$0x1]  ;;  %6896 = vmatpush3.bf16.msra.mxu1 %v7498_v26  ;;  %v517_v26 = vld [vmem:[#allocation2 + $0x6c] sm:$0x1] }
  0x65   : > { %v442_v50 = vsel %vm378_vm12, %v8026_v42, %v410_v32  ;;  %v6129_v20 = vcombine.low %v1275_v15, %v1285_v17  ;;  %v756_v4 = vsel %vm7858_vm1, %v748_v5, %v755_v45  ;;  %1025 = vst [vmem:[#allocation2 + $0x3c] sm:$0xf] %v1024_v49  ;;  %v1028_v31 = vsel %vm7773_vm4, %v757_v46, %v1027_v7 }
  0x66   : > { %v443_v56 = vsel %vm379_vm13, %v8029_v43, %v411_v47  ;;  %510 = vst [vmem:[#allocation2 + $0x48] sm:$0x1] %v509_v2  ;;  %1026 = vst.msk [vmem:[#allocation2 + $0x40] sm:$0xf] %vm480_vm0, %v756_v4  ;;  %v559_v42 = vsel %vm7780_vm7, 0, %v558_v6  ;;  %v6568_v59 = vpack.c.bf16 %v442_v50, %v442_v50  ;;  %v309_v60 = vmul.f32 %v6616_v54, %v7792_v23 }
  0x67   : > { %1029 = vst [vmem:[#allocation2 + $0x44] sm:$0x1] %v1028_v31  ;;  %v6569_v41 = vpack.c.bf16 %v443_v56, %v443_v56  ;;  %6865 = vmatprep.mubr.msk.bf16.mxu1 %vm1631_vm9, %v6129_v20  ;;  %560 = vst [vmem:[#allocation2 + $0x50] sm:$0x1] %v559_v42  ;;  %v310_v43 = vmul.f32 %v6617_v62, %v7792_v23  ;;  %v512_v1 = vsel %vm7773_vm4, 0, %v511_v39  ;;  %v562_v3 = vsel %vm7780_vm7, 0, %v561_v44 }
  0x68   : > { %v6620_v8 = vunpack.c.l.bf16 %v8071_v51  ;;  %v759_v10 = vshrl.u32 %v6568_v59, 16  ;;  %v762_v12 = vshll.u32 %v6568_v59, 16  ;;  %513 = vst [vmem:[#allocation2 + $0x54] sm:$0x1] %v512_v1  ;;  %563 = vst [vmem:[#allocation2 + $0x5c] sm:$0x1] %v562_v3  ;;  %v348_v14 = vadd.f32 %v7809_v34, %v309_v60 }
  0x69   : > { %v767_v13 = vshrl.u32 %v6569_v41, 16  ;;  %v770_v54 = vshll.u32 %v6569_v41, 16  ;;  %v349_v28 = vadd.f32 %v7809_v34, %v310_v43  ;;  %v6621_v62 = vunpack.c.h.bf16 %v8071_v51 }
  0x6a   : > { %v8099_v21 = vmul.f32 %v6620_v8, %v7792_v23  ;;  %v761_v22 = vrot.slane %v759_v10, 7  ;;  %v515_v11 = vsel %vm7773_vm4, 0, %v514_v57  ;;  %v565_v0 = vsel %vm7780_vm7, 0, %v564_v9 }
  0x6b   : > { %v769_v55 = vrot.slane %v767_v13, 7  ;;  %vm380_vm14 = vcmp.gt.f32.partialorder %v348_v14, 0.0  ;;  %vm381_vm3 = vcmp.gt.f32.partialorder %v349_v28, 0.0  ;;  %v412_v34 = vmul.f32 0.2, %v348_v14 }
  0x6c   : > { %v413_v27 = vmul.f32 0.2, %v349_v28  ;;  %516 = vst [vmem:[#allocation2 + $0x60] sm:$0x1] %v515_v11  ;;  %566 = vst [vmem:[#allocation2 + $0x68] sm:$0x1] %v565_v0  ;;  %v764_v35 = vor.u32 %v762_v12, %v761_v22 }
  0x6d   : > { %v1117_v23 = vld [vmem:[#allocation2 + $0x3c] sm:$0xf]  ;;  %v765_v24 = vrot.slane %v761_v22, 4  ;;  %v772_v58 = vor.u32 %v770_v54, %v769_v55  ;;  %v774_v6 = vrot.slane %v769_v55, 4  ;;  %v1118_v30 = vld [vmem:[#allocation2 + $0x40] sm:$0xf]  ;;  %v444_v39 = vsel %vm380_vm14, %v348_v14, %v412_v34 }
  0x6e   : > { %v3037_v7 = vld [vmem:[#allocation2 + $0x3c] sm:$0xf]  ;;  %v1152_v38 = vld [vmem:[#allocation2 + $0x44] sm:$0x1]  ;;  %v1287_v5 = vshrl.u32 %v1117_v23, 16  ;;  %v1290_v32 = vshll.u32 %v1117_v23, 16  ;;  %v445_v44 = vsel %vm381_vm3, %v349_v28, %v413_v27  ;;  %v6570_v11 = vpack.c.bf16 %v444_v39, %v444_v39 }
  0x6f   : > { %v1296_v15 = vshll.u32 %v1118_v30, 16  ;;  %v1300_v45 = vshrl.u32 %v1118_v30, 16  ;;  %v1306_v46 = vshll.u32 %v1152_v38, 16  ;;  %v3038_v47 = vld [vmem:[#allocation2 + $0x40] sm:$0xf]  ;;  %v3170_v17 = vshrl.u32 %v3037_v7, 16 }
  0x70   : > { %v1289_v49 = vrot.slane %v1287_v5, 4  ;;  %v1292_v50 = vrot.slane %v1290_v32, 5  ;;  %v3039_v2 = vld [vmem:[#allocation2 + $0x44] sm:$0x1]  ;;  %v3173_v20 = vshll.u32 %v3037_v7, 16  ;;  %v3179_v4 = vshll.u32 %v3038_v47, 16 }
  0x71   : > { %v1298_v31 = vrot.slane %v1296_v15, 5  ;;  %v1302_v56 = vrot.slane %v1300_v45, 4  ;;  %v1308_v57 = vrot.slane %v1306_v46, 5  ;;  %v3172_v42 = vrot.slane %v3170_v17, 4  ;;  %v1030_v59 = vld [vmem:[#allocation2 + $0x48] sm:$0xf] }
  0x72   : > { %v1293_v41 = vor.u32 %v1292_v50, %v1289_v49  ;;  %v3175_v60 = vrot.slane %v3173_v20, 5  ;;  %v3181_v43 = vrot.slane %v3179_v4, 5  ;;  %v3183_v1 = vshrl.u32 %v3038_v47, 16  ;;  %v1034_v3 = vld [vmem:[#allocation2 + $0x50] sm:$0x1]  ;;  %v8133_v5 = vld [vmem:[%s7787_s14 + $0x48] sm:$0xff]  }
  0x73   : > { %v1303_v8 = vor.u32 %v1302_v56, %v1298_v31  ;;  %v3189_v9 = vshll.u32 %v3039_v2, 16  ;;  %v773_v10 = vsel %vm7858_vm1, %v765_v24, %v772_v58  ;;  %v1031_v12 = vsel %vm7850_vm15, %v764_v35, %v1030_v59  ;;  %v8122_v7 = vld [vmem:[%s9786_s1] ss:$0 sm:$0xff]  ;;  %v1037_v45 = vld [vmem:[#allocation2 + $0x54] sm:$0xf] }
  0x74   : > { %v1294_v13 = vrot.slane %v1293_v41, 4  ;;  %v3176_v54 = vor.u32 %v3175_v60, %v3172_v42  ;;  %v3185_v14 = vrot.slane %v3183_v1, 4  ;;  %1032 = vst [vmem:[#allocation2 + $0x48] sm:$0xf] %v1031_v12  ;;  %1033 = vst.msk [vmem:[#allocation2 + $0x4c] sm:$0xf] %vm480_vm0, %v773_v10  ;;  %v1035_v28 = vsel %vm7773_vm4, %v774_v6, %v1034_v3 }
  0x75   : > { %v1304_v22 = vrot.slane %v1303_v8, 4  ;;  %v3191_v55 = vrot.slane %v3189_v9, 5  ;;  %1036 = vst [vmem:[#allocation2 + $0x50] sm:$0x1] %v1035_v28  ;;  %v6571_v0 = vpack.c.bf16 %v445_v44, %v445_v44  ;;  %v312_v35 = vmul.f32 %v8122_v7, %v6621_v62  ;;  %v8128_v24 = vld [vmem:[%s7787_s14 + $0x40] sm:$0xff]  }
  0x76   : > { %v1299_v34 = vsel %vm7802_vm8, %v1294_v13, %v1298_v31  ;;  %v3177_v27 = vrot.slane %v3176_v54, 4  ;;  %v3186_v23 = vor.u32 %v3185_v14, %v3181_v43  ;;  %v776_v6 = vshrl.u32 %v6570_v11, 16  ;;  %v8140_v62 = vld [vmem:[%s9787_s2] ss:$0 sm:$0xff] }
  0x77   : > { %v1309_v58 = vsel %vm7802_vm8, %v1304_v22, %v1308_v57  ;;  %v779_v30 = vshll.u32 %v6570_v11, 16  ;;  %v784_v38 = vshrl.u32 %v6571_v0, 16  ;;  %v787_v15 = vshll.u32 %v6571_v0, 16  ;;  %v1041_v11 = vld [vmem:[#allocation2 + $0x5c] sm:$0x1] }
  0x78   : > { %v6130_v32 = vcombine.low %v1299_v34, %v1309_v58  ;;  %v3182_v39 = vsel %vm7802_vm8, %v3177_v27, %v3181_v43  ;;  %v3187_v44 = vrot.slane %v3186_v23, 4  ;;  %v778_v51 = vrot.slane %v776_v6, 7  ;;  %v8652_v19 = vld [vmem:[#allocation2 + $0x40] sm:$0xf] }
  0x79   : > { %v786_v46 = vrot.slane %v784_v38, 7  ;;  %v8144_v47 = vadd.f32 %v8140_v62, %v8099_v21  ;;  %v8147_v17 = vadd.f32 %v8140_v62, %v312_v35  ;;  %v6624_v50 = vunpack.c.l.bf16 %v8128_v24 }
  0x7a   : > { %6866 = vmatmul.mubr.msk.bf16.gmra.mrb[8].mxu1 %vm1631_vm9, %v6130_v32  ;;  %v3192_v49 = vsel %vm7802_vm8, %v3187_v44, %v3191_v55  ;;  %v6625_v2 = vunpack.c.h.bf16 %v8128_v24  ;;  %v518_v20 = vsel %vm7773_vm4, 0, %v517_v26  ;;  %v781_v57 = vor.u32 %v779_v30, %v778_v51 }
  0x7b   : > { %v6313_v4 = vcombine.low %v3182_v39, %v3192_v49  ;;  %v3040_v31 = vld [vmem:[#allocation2 + $0x48] sm:$0xf]  ;;  %v8156_v56 = vld [vmem:[#allocation2 + $0x4c] sm:$0xf]  ;;  %v789_v42 = vor.u32 %v787_v15, %v786_v46  ;;  %519 = vst [vmem:[#allocation2 + $0x6c] sm:$0x1] %v518_v20  ;;  %v6628_v59 = vunpack.c.l.bf16 %v8133_v5  ;;  %v313_v54 = vmul.f32 %v8122_v7, %v6624_v50 }
  0x7c   : > { %v1119_v21 = vld [vmem:[#allocation2 + $0x48] sm:$0xf]  ;;  %v8159_v41 = vld [vmem:[#allocation2 + $0x50] sm:$0x1]  ;;  %v3194_v60 = vshrl.u32 %v3040_v31, 16  ;;  %v3197_v43 = vshll.u32 %v3040_v31, 16  ;;  %v1038_v13 = vsel %vm7850_vm15, %v781_v57, %v1037_v45 }
  0x7d   : > { %v3203_v1 = vshll.u32 %v8156_v56, 16  ;;  %v3207_v3 = vshrl.u32 %v8156_v56, 16  ;;  %7025 = vmatprep.mubr.msk.bf16.mxu0 %vm1631_vm9, %v6313_v4  ;;  %v3213_v8 = vshll.u32 %v8159_v41, 16  ;;  %v1120_v9 = vld [vmem:[#allocation2 + $0x4c] sm:$0xf]  ;;  %v1311_v12 = vshrl.u32 %v1119_v21, 16 }
  0x7e   : > { %v1153_v10 = vld [vmem:[#allocation2 + $0x50] sm:$0x1]  ;;  %v3196_v14 = vrot.slane %v3194_v60, 4  ;;  %v3199_v28 = vrot.slane %v3197_v43, 5  ;;  %1039 = vst [vmem:[#allocation2 + $0x54] sm:$0xf] %v1038_v13  ;;  %v314_v60 = vmul.f32 %v8122_v7, %v6625_v2  ;;  %v8181_v43 = vadd.f32 %v8140_v62, %v313_v54 }
  0x7f   : > { %v3205_v22 = vrot.slane %v3203_v1, 5  ;;  %v3209_v55 = vrot.slane %v3207_v3, 4  ;;  %v3215_v0 = vrot.slane %v3213_v8, 5  ;;  %v1313_v26 = vrot.slane %v1311_v12, 4  ;;  %v7639_v25 = vld [vmem:[#allocation2 + $0x48] sm:$0xf] }
  0x80   : > { %v1314_v34 = vshll.u32 %v1119_v21, 16  ;;  %v1320_v27 = vshll.u32 %v1120_v9, 16  ;;  %v3200_v23 = vor.u32 %v3199_v28, %v3196_v14  ;;  %v1324_v24 = vshrl.u32 %v1120_v9, 16 }
  0x81   : > { %v3210_v35 = vor.u32 %v3209_v55, %v3205_v22  ;;  %v1330_v58 = vshll.u32 %v1153_v10, 16  ;;  %v782_v38 = vrot.slane %v778_v51, 4  ;;  %v791_v32 = vrot.slane %v786_v46, 4  ;;  %v8191_v55 = vld [vmem:[%s7787_s14 + $0x50] sm:$0xff]  }
  0x82   : > { %v1316_v6 = vrot.slane %v1314_v34, 5  ;;  %v1322_v30 = vrot.slane %v1320_v27, 5  ;;  %v3201_v39 = vrot.slane %v3200_v23, 4  ;;  %v1326_v15 = vrot.slane %v1324_v24, 4 }
  0x83   : > { %v3211_v44 = vrot.slane %v3210_v35, 4  ;;  %v1332_v45 = vrot.slane %v1330_v58, 5  ;;  %v790_v50 = vsel %vm7858_vm1, %v782_v38, %v789_v42  ;;  %v1042_v20 = vsel %vm7773_vm4, %v791_v32, %v1041_v11 }
  0x84   : > { %v1317_v49 = vor.u32 %v1316_v6, %v1313_v26  ;;  %vm382_vm5 = vcmp.gt.f32.partialorder %v8144_v47, 0.0  ;;  %v3206_v4 = vsel %vm7802_vm8, %v3201_v39, %v3205_v22  ;;  %v1327_v46 = vor.u32 %v1326_v15, %v1322_v30  ;;  %1040 = vst.msk [vmem:[#allocation2 + $0x58] sm:$0xf] %vm480_vm0, %v790_v50  ;;  %1043 = vst [vmem:[#allocation2 + $0x5c] sm:$0x1] %v1042_v20 }
  0x85   : > { %v3216_v51 = vsel %vm7802_vm8, %v3211_v44, %v3215_v0  ;;  %vm383_vm2 = vcmp.gt.f32.partialorder %v8147_v17, 0.0  ;;  %v1121_v57 = vld [vmem:[#allocation2 + $0x54] sm:$0xf]  ;;  %v414_v13 = vmul.f32 0.2, %v8144_v47  ;;  %v353_v24 = vadd.f32 %v8140_v62, %v314_v60 }
  0x86   : > { %v6314_v31 = vcombine.low %v3206_v4, %v3216_v51  ;;  %v1318_v21 = vrot.slane %v1317_v49, 4  ;;  %v3043_v42 = vld [vmem:[#allocation2 + $0x54] sm:$0xf]  ;;  %v1328_v1 = vrot.slane %v1327_v46, 4  ;;  %v1335_v3 = vshrl.u32 %v1121_v57, 16 }
  0x87   : > { %v1338_v8 = vshll.u32 %v1121_v57, 16  ;;  %v3218_v9 = vshrl.u32 %v3043_v42, 16  ;;  %v3221_v12 = vshll.u32 %v3043_v42, 16  ;;  %v415_v14 = vmul.f32 0.2, %v8147_v17 }
  0x88   : > { %7026 = vmatmul.mubr.msk.bf16.gmra.mrb[8].mxu0 %vm1631_vm9, %v6314_v31  ;;  %v1323_v10 = vsel %vm7802_vm8, %v1318_v21, %v1322_v30  ;;  %v1333_v2 = vsel %vm7802_vm8, %v1328_v1, %v1332_v45  ;;  %v1337_v28 = vrot.slane %v1335_v3, 4  ;;  %v446_v26 = vsel %vm382_vm5, %v8144_v47, %v414_v13  ;;  %v7500_v3 = vld [vmem:[%s9788_s3 + $0x40] sm:$0xff]  }
  0x89   : > { %v1340_v54 = vrot.slane %v1338_v8, 5  ;;  %v3220_v22 = vrot.slane %v3218_v9, 4  ;;  %v6131_v11 = vcombine.low %v1323_v10, %v1333_v2  ;;  %v3223_v0 = vrot.slane %v3221_v12, 5  ;;  %6929 = vmatprep.subr.bf16.mxu1 %v7500_v3 }
  0x8a   : > { %v447_v34 = vsel %vm383_vm2, %v8147_v17, %v415_v14  ;;  %v6572_v23 = vpack.c.bf16 %v446_v26, %v446_v26  ;;  %v6629_v32 = vunpack.c.h.bf16 %v8133_v5  ;;  %v8207_v47 = vmul.f32 %v8122_v7, %v6628_v59 }
  0x8b   : > { %v1341_v27 = vor.u32 %v1340_v54, %v1337_v28  ;;  %v6573_v35 = vpack.c.bf16 %v447_v34, %v447_v34  ;;  %6869 = vmatprep.mubr.msk.bf16.mxu1 %vm1631_vm9, %v6131_v11  ;;  %v1122_v58 = vld [vmem:[#allocation2 + $0x58] sm:$0xf]  ;;  %v1154_v6 = vld [vmem:[#allocation2 + $0x5c] sm:$0x1]  ;;  %v3224_v38 = vor.u32 %v3223_v0, %v3220_v22  ;;  %v6632_v17 = vunpack.c.l.bf16 %v8191_v55  ;;  %v1044_v28 = vld [vmem:[#allocation2 + $0x60] sm:$0xf] }
  0x8c   : > { %v8201_v30 = vld [vmem:[#allocation2 + $0x58] sm:$0xf]  ;;  %v1344_v44 = vshll.u32 %v1122_v58, 16  ;;  %v1348_v15 = vshrl.u32 %v1122_v58, 16  ;;  %v1354_v45 = vshll.u32 %v1154_v6, 16  ;;  %v793_v57 = vshrl.u32 %v6572_v23, 16 }
  0x8d   : > { %v1342_v39 = vrot.slane %v1341_v27, 4  ;;  %v3045_v49 = vld [vmem:[#allocation2 + $0x5c] sm:$0x1]  ;;  %v3225_v50 = vrot.slane %v3224_v38, 4  ;;  %v3227_v20 = vshll.u32 %v8201_v30, 16  ;;  %v3231_v4 = vshrl.u32 %v8201_v30, 16 }
  0x8e   : > { %v3237_v51 = vshll.u32 %v3045_v49, 16  ;;  %v1346_v46 = vrot.slane %v1344_v44, 5  ;;  %v1350_v31 = vrot.slane %v1348_v15, 4  ;;  %v1356_v21 = vrot.slane %v1354_v45, 5  ;;  %v567_v54 = vld [vmem:[#allocation2 + $0x74] sm:$0x1] }
  0x8f   : > { %v3229_v42 = vrot.slane %v3227_v20, 5  ;;  %v3233_v59 = vrot.slane %v3231_v4, 4  ;;  %v796_v1 = vshll.u32 %v6572_v23, 16  ;;  %v795_v10 = vrot.slane %v793_v57, 7  ;;  %v1048_v34 = vld [vmem:[#allocation2 + $0x68] sm:$0x1] }
  0x90   : > { %v3239_v60 = vrot.slane %v3237_v51, 5  ;;  %v1347_v8 = vsel %vm7802_vm8, %v1342_v39, %v1346_v46  ;;  %v1351_v9 = vor.u32 %v1350_v31, %v1346_v46  ;;  %v801_v12 = vshrl.u32 %v6573_v35, 16  ;;  %v3780_v20 = vld [vmem:[#allocation2 + $0x18] sm:$0xe] }
  0x91   : > { %v3230_v13 = vsel %vm7802_vm8, %v3225_v50, %v3229_v42  ;;  %v3234_v14 = vor.u32 %v3233_v59, %v3229_v42  ;;  %v804_v2 = vshll.u32 %v6573_v35, 16  ;;  %vm384_vm6 = vcmp.gt.f32.partialorder %v8181_v43, 0.0  ;;  %v3779_v50 = vld [vmem:[#allocation2 + $0xc] sm:$0xe] }
  0x92   : > { %v1352_v22 = vrot.slane %v1351_v9, 4  ;;  %v798_v11 = vor.u32 %v796_v1, %v795_v10  ;;  %v799_v0 = vrot.slane %v795_v10, 4  ;;  %v803_v26 = vrot.slane %v801_v12, 7  ;;  %v520_v1 = vld [vmem:[#allocation2 + $0x78] sm:$0x1] }
  0x93   : > { %v3235_v27 = vrot.slane %v3234_v14, 4  ;;  %vm385_vm10 = vcmp.gt.f32.partialorder %v353_v24, 0.0  ;;  %v416_v23 = vmul.f32 0.2, %v8181_v43  ;;  %v417_v58 = vmul.f32 0.2, %v353_v24 }
  0x94   : > { %v1357_v6 = vsel %vm7802_vm8, %v1352_v22, %v1356_v21  ;;  %v806_v38 = vor.u32 %v804_v2, %v803_v26  ;;  %v808_v35 = vrot.slane %v803_v26, 4  ;;  %v1045_v39 = vsel %vm7850_vm15, %v798_v11, %v1044_v28  ;;  %v570_v12 = vld [vmem:[#allocation2 + $0x80] sm:$0x1] }
  0x95   : > { %v6132_v44 = vcombine.low %v1347_v8, %v1357_v6  ;;  %v3240_v15 = vsel %vm7802_vm8, %v3235_v27, %v3239_v60  ;;  %1046 = vst [vmem:[#allocation2 + $0x60] sm:$0xf] %v1045_v39  ;;  %v448_v45 = vsel %vm384_vm6, %v8181_v43, %v416_v23  ;;  %v449_v49 = vsel %vm385_vm10, %v353_v24, %v417_v58 }
  0x96   : > { %v6315_v4 = vcombine.low %v3230_v13, %v3240_v15  ;;  %v807_v51 = vsel %vm7858_vm1, %v799_v0, %v806_v38  ;;  %v1049_v46 = vsel %vm7773_vm4, %v808_v35, %v1048_v34  ;;  %v568_v31 = vsel %vm7780_vm7, 0, %v567_v54 }
  0x97   : > { %6870 = vmatmul.mubr.msk.bf16.gmra.mrb[12].mxu1 %vm1631_vm9, %v6132_v44  ;;  %1047 = vst.msk [vmem:[#allocation2 + $0x64] sm:$0xf] %vm480_vm0, %v807_v51  ;;  %1050 = vst [vmem:[#allocation2 + $0x68] sm:$0x1] %v1049_v46  ;;  %v6574_v43 = vpack.c.bf16 %v448_v45, %v448_v45  ;;  %v6575_v24 = vpack.c.bf16 %v449_v49, %v449_v49  ;;  %vm2202_vm11 = vcmask 1042432   ;;  %vm2203_vm12 = vcmask 1046532  }
  0x98   : > { %569 = vst [vmem:[#allocation2 + $0x74] sm:$0x1] %v568_v31  ;;  %7029 = vmatprep.mubr.msk.bf16.mxu0 %vm1631_vm9, %v6315_v4  ;;  %vm8239_vm13 = vmor %vm2202_vm11, %vm2203_vm12  ;;  %v6345_v57 = vrot.slane %v3779_v50, 9  ;;  %v3847_v42 = vrot.slane %v3845_v52, 4  ;;  %v6346_v59 = vrot.slane %v3780_v20, 9  ;;  %v316_v60 = vmul.f32 %v8122_v7, %v6629_v32 }
  0x99   : > { %v810_v3 = vshrl.u32 %v6574_v43, 16  ;;  %v813_v8 = vshll.u32 %v6574_v43, 16  ;;  %v818_v9 = vshrl.u32 %v6575_v24, 16  ;;  %v821_v10 = vshll.u32 %v6575_v24, 16  ;;  %v1051_v20 = vld [vmem:[#allocation2 + $0x6c] sm:$0xf] }
  0x9a   : > { %v8252_v13 = vsel %vm8239_vm13, %v6345_v57, %v3845_v52  ;;  %v8258_v14 = vsel %vm8239_vm13, %v3847_v42, %v3848_v53  ;;  %v8264_v5 = vsel %vm8239_vm13, %v6346_v59, %v3852_v36  ;;  %v8271_v29 = vsel %vm8239_vm13, %v7943_v48, %v3855_v37 }
  0x9b   : > { %v812_v52 = vrot.slane %v810_v3, 7  ;;  %v820_v32 = vrot.slane %v818_v9, 7  ;;  %v6369_v40 = vcombine.low %v8252_v13, %v8258_v14  ;;  %v6370_v53 = vcombine.low %v8264_v5, %v8271_v29 }
  0x9c   : > { %v3046_v61 = vld [vmem:[#allocation2 + $0x60] sm:$0xf]  ;;  %v8279_v36 = vadd.f32 %v8140_v62, %v8207_v47  ;;  %v8282_v63 = vadd.f32 %v8140_v62, %v316_v60  ;;  %v521_v37 = vsel %vm7773_vm4, 0, %v520_v1  ;;  %v571_v48 = vsel %vm7780_vm7, 0, %v570_v12 }
  0x9d   : > { %v1123_v2 = vld [vmem:[#allocation2 + $0x60] sm:$0xf]  ;;  %v3242_v28 = vshrl.u32 %v3046_v61, 16  ;;  %v3245_v54 = vshll.u32 %v3046_v61, 16  ;;  %522 = vst [vmem:[#allocation2 + $0x78] sm:$0x1] %v521_v37  ;;  %v815_v34 = vor.u32 %v813_v8, %v812_v52  ;;  %v823_v27 = vor.u32 %v821_v10, %v820_v32 }
  0x9e   : > { %v1359_v22 = vshrl.u32 %v1123_v2, 16  ;;  %v1362_v11 = vshll.u32 %v1123_v2, 16  ;;  %572 = vst [vmem:[#allocation2 + $0x80] sm:$0x1] %v571_v48  ;;  %v8288_v0 = vld [vmem:[#allocation2 + $0x64] sm:$0xf]  ;;  %v6633_v23 = vunpack.c.h.bf16 %v8191_v55  ;;  %v317_v58 = vmul.f32 %v8122_v7, %v6632_v17 }
  0x9f   : > { %v8290_v26 = vld [vmem:[#allocation2 + $0x68] sm:$0x1]  ;;  %v1124_v47 = vld [vmem:[#allocation2 + $0x64] sm:$0xf]  ;;  %v3244_v6 = vrot.slane %v3242_v28, 4  ;;  %v3247_v38 = vrot.slane %v3245_v54, 5  ;;  %v1052_v10 = vsel %vm7850_vm15, %v815_v34, %v1051_v20 }
  0xa0   : > { %v3251_v35 = vshll.u32 %v8288_v0, 16  ;;  %v3255_v39 = vshrl.u32 %v8288_v0, 16  ;;  %v1155_v44 = vld [vmem:[#allocation2 + $0x68] sm:$0x1]  ;;  %v3261_v15 = vshll.u32 %v8290_v26, 16  ;;  %v1361_v45 = vrot.slane %v1359_v22, 4 }
  0xa1   : > { %v1364_v49 = vrot.slane %v1362_v11, 5  ;;  %v1368_v50 = vshll.u32 %v1124_v47, 16  ;;  %v3248_v4 = vor.u32 %v3247_v38, %v3244_v6  ;;  %v1372_v31 = vshrl.u32 %v1124_v47, 16  ;;  %v1055_v55 = vld [vmem:[#allocation2 + $0x74] sm:$0x1] }
  0xa2   : > { %v3253_v51 = vrot.slane %v3251_v35, 5  ;;  %v3257_v46 = vrot.slane %v3255_v39, 4  ;;  %v3263_v43 = vrot.slane %v3261_v15, 5  ;;  %v1378_v57 = vshll.u32 %v1155_v44, 16  ;;  %1053 = vst [vmem:[#allocation2 + $0x6c] sm:$0xf] %v1052_v10 }
  0xa3   : > { %v1365_v17 = vor.u32 %v1364_v49, %v1361_v45  ;;  %v1370_v24 = vrot.slane %v1368_v50, 5  ;;  %v3249_v42 = vrot.slane %v3248_v4, 4  ;;  %v1374_v60 = vrot.slane %v1372_v31, 4  ;;  %v523_v48 = vld [vmem:[#allocation2 + $0x84] sm:$0x1] }
  0xa4   : > { %v3258_v59 = vor.u32 %v3257_v46, %v3253_v51  ;;  %v816_v1 = vrot.slane %v812_v52, 4  ;;  %v1380_v8 = vrot.slane %v1378_v57, 5  ;;  %v825_v9 = vrot.slane %v820_v32, 4  ;;  %v573_v32 = vld [vmem:[#allocation2 + $0x8c] sm:$0x1] }
  0xa5   : > { %v1366_v3 = vrot.slane %v1365_v17, 4  ;;  %v3254_v12 = vsel %vm7802_vm8, %v3249_v42, %v3253_v51  ;;  %v1375_v2 = vor.u32 %v1374_v60, %v1370_v24  ;;  %vm386_vm14 = vcmp.gt.f32.partialorder %v8279_v36, 0.0  ;;  %v8320_v35 = vld [vmem:[#allocation2 + $0x24] sm:$0xe]  ;;  %v7616_v20 = vld [vmem:[#allocation2 + $0x28] sm:$0xf] }
  0xa6   : > { %v3259_v61 = vrot.slane %v3258_v59, 4  ;;  %v824_v37 = vsel %vm7858_vm1, %v816_v1, %v823_v27  ;;  %v1056_v52 = vsel %vm7773_vm4, %v825_v9, %v1055_v55  ;;  %vm387_vm3 = vcmp.gt.f32.partialorder %v8282_v63, 0.0  ;;  %v1058_v42 = vld [vmem:[#allocation2 + $0x78] sm:$0xf] }
  0xa7   : > { %v1371_v28 = vsel %vm7802_vm8, %v1366_v3, %v1370_v24  ;;  %1054 = vst.msk [vmem:[#allocation2 + $0x70] sm:$0xf] %vm480_vm0, %v824_v37  ;;  %v1376_v22 = vrot.slane %v1375_v2, 4  ;;  %1057 = vst [vmem:[#allocation2 + $0x74] sm:$0x1] %v1056_v52  ;;  %v318_v27 = vmul.f32 %v8122_v7, %v6633_v23  ;;  %v356_v6 = vadd.f32 %v8140_v62, %v317_v58 }
  0xa8   : > { %v3264_v54 = vsel %vm7802_vm8, %v3259_v61, %v3263_v43  ;;  %v418_v11 = vmul.f32 0.2, %v8279_v36  ;;  %v419_v47 = vmul.f32 0.2, %v8282_v63  ;;  %v524_v38 = vsel %vm7773_vm4, 0, %v523_v48 }
  0xa9   : > { %v6316_v34 = vcombine.low %v3254_v12, %v3264_v54  ;;  %v1381_v39 = vsel %vm7802_vm8, %v1376_v22, %v1380_v8  ;;  %525 = vst [vmem:[#allocation2 + $0x84] sm:$0x1] %v524_v38  ;;  %v574_v45 = vsel %vm7780_vm7, 0, %v573_v32  ;;  %v357_v50 = vadd.f32 %v8140_v62, %v318_v27  ;;  %v1125_v51 = vld [vmem:[#allocation2 + $0x6c] sm:$0xf] }
  0xaa   : > { %v450_v44 = vsel %vm386_vm14, %v8279_v36, %v418_v11  ;;  %v451_v15 = vsel %vm387_vm3, %v8282_v63, %v419_v47  ;;  %v6133_v23 = vcombine.low %v1371_v28, %v1381_v39  ;;  %575 = vst [vmem:[#allocation2 + $0x8c] sm:$0x1] %v574_v45  ;;  %vm388_vm5 = vcmp.gt.f32.partialorder %v356_v6, 0.0  ;;  %v1062_v48 = vld [vmem:[#allocation2 + $0x80] sm:$0x1]  ;;  %v7499_v28 = vld [vmem:[%s9788_s3 + $0xc8] sm:$0xff]  }
  0xab   : > { %7030 = vmatmul.mubr.msk.bf16.gmra.mrb[12].mxu0 %vm1631_vm9, %v6316_v34  ;;  %v6576_v58 = vpack.c.bf16 %v450_v44, %v450_v44  ;;  %v6577_v49 = vpack.c.bf16 %v451_v15, %v451_v15  ;;  %v420_v36 = vmul.f32 0.2, %v356_v6  ;;  %v6347_v63 = vrot.slane %v8320_v35, 9  ;;  %v7617_v35 = vld [vmem:[%s9788_s3 + $0xc0] sm:$0xff]  }
  0xac   : > { %7057 = vmatprep.mubr.msk.bf16.mxu0 %vm1631_vm9, %v6369_v40  ;;  %v3859_v4 = vrot.slane %v7616_v20, 5  ;;  %6873 = vmatprep.mubr.msk.bf16.mxu1 %vm1631_vm9, %v6133_v23  ;;  %v1383_v24 = vshrl.u32 %v1125_v51, 16  ;;  %v1386_v57 = vshll.u32 %v1125_v51, 16  ;;  %vm389_vm2 = vcmp.gt.f32.partialorder %v357_v50, 0.0  ;;  %v7501_v23 = vld [vmem:[%s9788_s3 + $0xd0] sm:$0xff]   ;;  %v6664_v20 = vld [vmem:[%s7787_s14 + $0x58] sm:$0xff]  }
  0xad   : > { %v827_v46 = vshrl.u32 %v6576_v58, 16  ;;  %v830_v31 = vshll.u32 %v6576_v58, 16  ;;  %v835_v55 = vshrl.u32 %v6577_v49, 16  ;;  %v838_v43 = vshll.u32 %v6577_v49, 16 }
  0xae   : > { %v1126_v17 = vld [vmem:[#allocation2 + $0x70] sm:$0xf]  ;;  %v452_v13 = vsel %vm388_vm5, %v356_v6, %v420_v36  ;;  %v1156_v14 = vld [vmem:[#allocation2 + $0x74] sm:$0x1]  ;;  %v1385_v3 = vrot.slane %v1383_v24, 4  ;;  %v1388_v8 = vrot.slane %v1386_v57, 5  ;;  %v3860_v45 = vsel %vm8239_vm13, %v6347_v63, %v3859_v4 }
  0xaf   : > { %v1392_v40 = vshll.u32 %v1126_v17, 16  ;;  %v1396_v59 = vshrl.u32 %v1126_v17, 16  ;;  %v829_v60 = vrot.slane %v827_v46, 7  ;;  %v837_v1 = vrot.slane %v835_v55, 7  ;;  %v3782_v6 = vld [vmem:[#allocation2 + $0x30] sm:$0xe] }
  0xb0   : > { %v1402_v9 = vshll.u32 %v1156_v14, 16  ;;  %v421_v10 = vmul.f32 0.2, %v357_v50  ;;  %v1389_v52 = vor.u32 %v1388_v8, %v1385_v3  ;;  %v6578_v27 = vpack.c.bf16 %v452_v13, %v452_v13  ;;  %v1065_v24 = vld [vmem:[#allocation2 + $0x84] sm:$0xf]  ;;  %v7503_v3 = vld [vmem:[%s9788_s3 + $0xd8] sm:$0xff]  }
  0xb1   : > { %v1394_v12 = vrot.slane %v1392_v40, 5  ;;  %v1398_v61 = vrot.slane %v1396_v59, 4  ;;  %v832_v2 = vor.u32 %v830_v31, %v829_v60  ;;  %v833_v37 = vrot.slane %v829_v60, 4  ;;  %v7618_v31 = vld [vmem:[#allocation2 + $0x2c] sm:$0x1] }
  0xb2   : > { %v1404_v32 = vrot.slane %v1402_v9, 5  ;;  %v840_v54 = vor.u32 %v838_v43, %v837_v1  ;;  %v842_v22 = vrot.slane %v837_v1, 4  ;;  %v453_v34 = vsel %vm389_vm2, %v357_v50, %v421_v10  ;;  %v7619_v57 = vld [vmem:[#allocation2 + $0x34] sm:$0xf]  ;;  %v7620_v13 = vld [vmem:[#allocation2 + $0x38] sm:$0x1] }
  0xb3   : > { %v1399_v11 = vor.u32 %v1398_v61, %v1394_v12  ;;  %7058 = vmatmul.mubr.msk.bf16.vlgmr.msra.gmra.mrb[0].mxu0 %vm1631_vm9, %v6370_v53  ;;  %v1059_v47 = vsel %vm7850_vm15, %v832_v2, %v1058_v42  ;;  %v1390_v38 = vrot.slane %v1389_v52, 4  ;;  %v6579_v29 = vpack.c.bf16 %v453_v34, %v453_v34  ;;  %v1069_v60 = vld [vmem:[#allocation2 + $0x8c] sm:$0x1]  ;;  %v526_v52 = vld [vmem:[#allocation2 + $0x90] sm:$0x1] }
  0xb4   : > { %7090 = vmatpush3.bf16.msra.mxu0 %v7617_v35  ;;  %v841_v39 = vsel %vm7858_vm1, %v833_v37, %v840_v54  ;;  %1060 = vst [vmem:[#allocation2 + $0x78] sm:$0xf] %v1059_v47  ;;  %v1063_v5 = vsel %vm7773_vm4, %v842_v22, %v1062_v48  ;;  %v844_v44 = vshrl.u32 %v6578_v27, 16  ;;  %v847_v15 = vshll.u32 %v6578_v27, 16 }
  0xb5   : > { %v1400_v53 = vrot.slane %v1399_v11, 4  ;;  %1061 = vst.msk [vmem:[#allocation2 + $0x7c] sm:$0xf] %vm480_vm0, %v841_v39  ;;  %1064 = vst [vmem:[#allocation2 + $0x80] sm:$0x1] %v1063_v5  ;;  %7091 = vmatprep.subr.bf16.mxu0 %v7499_v28  ;;  %v1395_v58 = vsel %vm7802_vm8, %v1390_v38, %v1394_v12  ;;  %v852_v49 = vshrl.u32 %v6579_v29, 16  ;;  %v6636_v1 = vunpack.c.l.bf16 %v6664_v20 }
  0xb6   : > { %v855_v50 = vshll.u32 %v6579_v29, 16  ;;  %v3861_v36 = vrot.slane %v3859_v4, 4  ;;  %v846_v46 = vrot.slane %v844_v44, 7  ;;  %v3862_v55 = vrot.slane %v7618_v31, 5  ;;  %v576_v39 = vld [vmem:[#allocation2 + $0x98] sm:$0x1] }
  0xb7   : > { %v1405_v51 = vsel %vm7802_vm8, %v1400_v53, %v1404_v32  ;;  %v6348_v43 = vrot.slane %v3782_v6, 9  ;;  %v854_v17 = vrot.slane %v852_v49, 7  ;;  %v3866_v42 = vrot.slane %v7619_v57, 5  ;;  %v529_v31 = vld [vmem:[#allocation2 + $0x9c] sm:$0x1] }
  0xb8   : > { %v6134_v63 = vcombine.low %v1395_v58, %v1405_v51  ;;  %v3869_v14 = vrot.slane %v7620_v13, 5  ;;  %7092 = vmatpush3.bf16.msra.mxu0 %v7499_v28  ;;  %v849_v40 = vor.u32 %v847_v15, %v846_v46  ;;  %v850_v59 = vrot.slane %v846_v46, 4  ;;  %v6665_v15 = vld [vmem:[%s7787_s14 + $0x60] sm:$0xff]  }
  0xb9   : > { %v3863_v4 = vsel %vm8239_vm13, %v3861_v36, %v3862_v55  ;;  %7093 = vmatprep.subr.bf16.mxu0 %v7501_v23  ;;  %v857_v8 = vor.u32 %v855_v50, %v854_v17  ;;  %v859_v9 = vrot.slane %v854_v17, 4  ;;  %v3867_v12 = vsel %vm8239_vm13, %v6348_v43, %v3866_v42 }
  0xba   : > { %6874 = vmatmul.mubr.msk.bf16.gmra.mrb[16].mxu1 %vm1631_vm9, %v6134_v63  ;;  %v6371_v10 = vcombine.low %v3860_v45, %v3863_v4  ;;  %v1066_v2 = vsel %vm7850_vm15, %v849_v40, %v1065_v24  ;;  %v3868_v37 = vrot.slane %v3866_v42, 4  ;;  %v6637_v48 = vunpack.c.h.bf16 %v6664_v20  ;;  %v7506_v45 = vld [vmem:[%s9788_s3 + $0xe0] sm:$0xff]  }
  0xbb   : > { %v1127_v61 = vld [vmem:[#allocation2 + $0x78] sm:$0xf]  ;;  %v319_v28 = vmul.f32 %v8122_v7, %v6636_v1  ;;  %v858_v47 = vsel %vm7858_vm1, %v850_v59, %v857_v8  ;;  %1067 = vst [vmem:[#allocation2 + $0x84] sm:$0xf] %v1066_v2  ;;  %v1070_v34 = vsel %vm7773_vm4, %v859_v9, %v1069_v60  ;;  %v527_v51 = vsel %vm7773_vm4, 0, %v526_v52 }
  0xbc   : > { %v1128_v32 = vld [vmem:[#allocation2 + $0x7c] sm:$0xf]  ;;  %v1157_v54 = vld [vmem:[#allocation2 + $0x80] sm:$0x1]  ;;  %v1407_v22 = vshrl.u32 %v1127_v61, 16  ;;  %v1410_v11 = vshll.u32 %v1127_v61, 16  ;;  %7061 = vmatprep.mubr.msk.bf16.mxu0 %vm1631_vm9, %v6371_v10  ;;  %7094 = vmatpush3.bf16.msra.mxu0 %v7501_v23  ;;  %v3870_v35 = vsel %vm8239_vm13, %v3868_v37, %v3869_v14  ;;  %v320_v44 = vmul.f32 %v8122_v7, %v6637_v48 }
  0xbd   : > { %v1416_v27 = vshll.u32 %v1128_v32, 16  ;;  %v1420_v6 = vshrl.u32 %v1128_v32, 16  ;;  %v1426_v38 = vshll.u32 %v1157_v54, 16  ;;  %1068 = vst.msk [vmem:[#allocation2 + $0x88] sm:$0xf] %vm480_vm0, %v858_v47  ;;  %7095 = vmatprep.subr.bf16.mxu0 %v7503_v3  ;;  %v6372_v53 = vcombine.low %v3867_v12, %v3870_v35 }
  0xbe   : > { %1071 = vst [vmem:[#allocation2 + $0x8c] sm:$0x1] %v1070_v34  ;;  %v1409_v5 = vrot.slane %v1407_v22, 4  ;;  %v1412_v29 = vrot.slane %v1410_v11, 5  ;;  %v358_v50 = vadd.f32 %v8140_v62, %v319_v28  ;;  %v359_v20 = vadd.f32 %v8140_v62, %v320_v44  ;;  %528 = vst [vmem:[#allocation2 + $0x90] sm:$0x1] %v527_v51 }
  0xbf   : > { %v1418_v23 = vrot.slane %v1416_v27, 5  ;;  %v1422_v58 = vrot.slane %v1420_v6, 4  ;;  %v1428_v49 = vrot.slane %v1426_v38, 5  ;;  %7062 = vmatmul.mubr.msk.bf16.gmra.mrb[4].mxu0 %vm1631_vm9, %v6372_v53  ;;  %v577_v46 = vsel %vm7780_vm7, 0, %v576_v39  ;;  %v579_v32 = vld [vmem:[#allocation2 + $0xa4] sm:$0x1] }
  0xc0   : > { %v1413_v36 = vor.u32 %v1412_v29, %v1409_v5  ;;  %vm390_vm6 = vcmp.gt.f32.partialorder %v358_v50, 0.0  ;;  %v422_v43 = vmul.f32 0.2, %v358_v50  ;;  %578 = vst [vmem:[#allocation2 + $0x98] sm:$0x1] %v577_v46  ;;  %v6640_v63 = vunpack.c.l.bf16 %v6665_v15  ;;  %7096 = vmatpush3.bf16.msra.mxu0 %v7503_v3 }
  0xc1   : > { %v1423_v55 = vor.u32 %v1422_v58, %v1418_v23  ;;  %vm391_vm10 = vcmp.gt.f32.partialorder %v359_v20, 0.0  ;;  %v423_v24 = vmul.f32 0.2, %v359_v20  ;;  %v6641_v57 = vunpack.c.h.bf16 %v6665_v15  ;;  %7129 = vmatprep.subr.bf16.mxu0 %v7506_v45  ;;  %v3783_v53 = vld [vmem:[#allocation2 + $0x3c] sm:$0xe] }
  0xc2   : > { %v1414_v17 = vrot.slane %v1413_v36, 4  ;;  %v8396_v13 = vld [vmem:[#allocation2 + $0x84] sm:$0xf]  ;;  %v454_v14 = vsel %vm390_vm6, %v358_v50, %v422_v43  ;;  %v321_v40 = vmul.f32 %v8122_v7, %v6640_v63  ;;  %v530_v59 = vsel %vm7773_vm4, 0, %v529_v31  ;;  %v3784_v31 = vld [vmem:[#allocation2 + $0x48] sm:$0xe] }
  0xc3   : > { %v1424_v42 = vrot.slane %v1423_v55, 4  ;;  %v1431_v3 = vshrl.u32 %v8396_v13, 16  ;;  %v1434_v8 = vshll.u32 %v8396_v13, 16  ;;  %v455_v9 = vsel %vm391_vm10, %v359_v20, %v423_v24  ;;  %531 = vst [vmem:[#allocation2 + $0x9c] sm:$0x1] %v530_v59 }
  0xc4   : > { %v1419_v60 = vsel %vm7802_vm8, %v1414_v17, %v1418_v23  ;;  %v8403_v4 = vld [vmem:[#allocation2 + $0x88] sm:$0xf]  ;;  %v6580_v52 = vpack.c.bf16 %v454_v14, %v454_v14  ;;  %v6581_v47 = vpack.c.bf16 %v455_v9, %v455_v9  ;;  %v322_v38 = vmul.f32 %v8122_v7, %v6641_v57  ;;  %v7622_v9 = vld [vmem:[#allocation2 + $0x44] sm:$0x1] }
  0xc5   : > { %v1158_v1 = vld [vmem:[#allocation2 + $0x8c] sm:$0x1]  ;;  %v1429_v10 = vsel %vm7802_vm8, %v1424_v42, %v1428_v49  ;;  %v1440_v12 = vshll.u32 %v8403_v4, 16  ;;  %v1444_v61 = vshrl.u32 %v8403_v4, 16  ;;  %v1433_v48 = vrot.slane %v1431_v3, 4 }
  0xc6   : > { %v1450_v2 = vshll.u32 %v1158_v1, 16  ;;  %v6135_v37 = vcombine.low %v1419_v60, %v1429_v10  ;;  %v1436_v28 = vrot.slane %v1434_v8, 5  ;;  %v861_v27 = vshrl.u32 %v6580_v52, 16  ;;  %v1072_v45 = vld [vmem:[#allocation2 + $0x90] sm:$0xf] }
  0xc7   : > { %v1442_v54 = vrot.slane %v1440_v12, 5  ;;  %v1446_v22 = vrot.slane %v1444_v61, 4  ;;  %v864_v6 = vshll.u32 %v6580_v52, 16  ;;  %v869_v39 = vshrl.u32 %v6581_v47, 16  ;;  %v1076_v46 = vld [vmem:[#allocation2 + $0x98] sm:$0x1] }
  0xc8   : > { %v1452_v11 = vrot.slane %v1450_v2, 5  ;;  %6877 = vmatprep.mubr.msk.bf16.mxu1 %vm1631_vm9, %v6135_v37  ;;  %v1437_v34 = vor.u32 %v1436_v28, %v1433_v48  ;;  %v872_v5 = vshll.u32 %v6581_v47, 16  ;;  %v360_v29 = vadd.f32 %v8140_v62, %v321_v40  ;;  %v7621_v3 = vld [vmem:[#allocation2 + $0x40] sm:$0xf]  ;;  %v6666_v61 = vld [vmem:[%s7787_s14 + $0x68] sm:$0xff]  }
  0xc9   : > { %v1447_v35 = vor.u32 %v1446_v22, %v1442_v54  ;;  %v863_v15 = vrot.slane %v861_v27, 7  ;;  %v361_v23 = vadd.f32 %v8140_v62, %v322_v38  ;;  %v580_v58 = vsel %vm7780_vm7, 0, %v579_v32  ;;  %v532_v52 = vld [vmem:[#allocation2 + $0xa8] sm:$0x1] }
  0xca   : > { %v1438_v44 = vrot.slane %v1437_v34, 4  ;;  %v871_v50 = vrot.slane %v869_v39, 7  ;;  %vm392_vm11 = vcmp.gt.f32.partialorder %v360_v29, 0.0  ;;  %v424_v36 = vmul.f32 0.2, %v360_v29 }
  0xcb   : > { %v1448_v49 = vrot.slane %v1447_v35, 4  ;;  %581 = vst [vmem:[#allocation2 + $0xa4] sm:$0x1] %v580_v58  ;;  %v866_v20 = vor.u32 %v864_v6, %v863_v15  ;;  %v867_v51 = vrot.slane %v863_v15, 4  ;;  %vm393_vm12 = vcmp.gt.f32.partialorder %v361_v23, 0.0 }
  0xcc   : > { %v1443_v7 = vsel %vm7802_vm8, %v1438_v44, %v1442_v54  ;;  %v874_v62 = vor.u32 %v872_v5, %v871_v50  ;;  %v876_v43 = vrot.slane %v871_v50, 4  ;;  %v425_v63 = vmul.f32 0.2, %v361_v23  ;;  %v1079_v35 = vld [vmem:[#allocation2 + $0x9c] sm:$0xf] }
  0xcd   : > { %v1453_v55 = vsel %vm7802_vm8, %v1448_v49, %v1452_v11  ;;  %v1073_v24 = vsel %vm7850_vm15, %v866_v20, %v1072_v45  ;;  %v456_v57 = vsel %vm392_vm11, %v360_v29, %v424_v36  ;;  %v6349_v42 = vrot.slane %v3783_v53, 9  ;;  %v8447_v50 = vld [vmem:[%s9786_s1] ss:$0 sm:$0xff] }
  0xce   : > { %v6136_v17 = vcombine.low %v1443_v7, %v1453_v55  ;;  %v875_v14 = vsel %vm7858_vm1, %v867_v51, %v874_v62  ;;  %1074 = vst [vmem:[#allocation2 + $0x90] sm:$0xf] %v1073_v24  ;;  %v1077_v40 = vsel %vm7773_vm4, %v876_v43, %v1076_v46  ;;  %v457_v59 = vsel %vm393_vm12, %v361_v23, %v425_v63  ;;  %v582_v24 = vld [vmem:[#allocation2 + $0xb0] sm:$0x1] }
  0xcf   : > { %v6582_v60 = vpack.c.bf16 %v456_v57, %v456_v57  ;;  %1075 = vst.msk [vmem:[#allocation2 + $0x94] sm:$0xf] %vm480_vm0, %v875_v14  ;;  %1078 = vst [vmem:[#allocation2 + $0x98] sm:$0x1] %v1077_v40  ;;  %v6583_v1 = vpack.c.bf16 %v457_v59, %v457_v59  ;;  %v3873_v8 = vrot.slane %v7621_v3, 5  ;;  %v3876_v10 = vrot.slane %v7622_v9, 5 }
  0xd0   : > { %6878 = vmatmul.mubr.msk.bf16.gmra.mrb[20].mxu1 %vm1631_vm9, %v6136_v17  ;;  %v6350_v12 = vrot.slane %v3784_v31, 9  ;;  %v3880_v48 = vrot.slane %v8156_v56, 5  ;;  %v3883_v28 = vrot.slane %v8159_v41, 5  ;;  %v6644_v6 = vunpack.c.l.bf16 %v6666_v61  ;;  %v6667_v57 = vld [vmem:[%s7787_s14 + $0x70] sm:$0xff]   ;;  %v8470_v59 = vld [vmem:[%s9787_s2] ss:$0 sm:$0xff] }
  0xd1   : > { %v878_v2 = vshrl.u32 %v6582_v60, 16  ;;  %v881_v37 = vshll.u32 %v6582_v60, 16  ;;  %v886_v32 = vshrl.u32 %v6583_v1, 16  ;;  %v889_v54 = vshll.u32 %v6583_v1, 16  ;;  %v535_v1 = vld [vmem:[#allocation2 + $0xb4] sm:$0x1] }
  0xd2   : > { %v3874_v22 = vsel %vm8239_vm13, %v6349_v42, %v3873_v8  ;;  %v3875_v11 = vrot.slane %v3873_v8, 4  ;;  %v3881_v34 = vsel %vm8239_vm13, %v6350_v12, %v3880_v48  ;;  %v3882_v27 = vrot.slane %v3880_v48, 4  ;;  %v1083_v58 = vld [vmem:[#allocation2 + $0xa4] sm:$0x1] }
  0xd3   : > { %v880_v47 = vrot.slane %v878_v2, 7  ;;  %v888_v38 = vrot.slane %v886_v32, 7  ;;  %v6645_v39 = vunpack.c.h.bf16 %v6666_v61  ;;  %v533_v41 = vsel %vm7773_vm4, 0, %v532_v52  ;;  %v585_v52 = vld [vmem:[#allocation2 + $0xbc] sm:$0x1] }
  0xd4   : > { %v3877_v56 = vsel %vm8239_vm13, %v3875_v11, %v3876_v10  ;;  %v3884_v44 = vsel %vm8239_vm13, %v3882_v27, %v3883_v28  ;;  %534 = vst [vmem:[#allocation2 + $0xa8] sm:$0x1] %v533_v41  ;;  %v323_v36 = vmul.f32 %v8447_v50, %v6644_v6  ;;  %v583_v2 = vsel %vm7780_vm7, 0, %v582_v24 }
  0xd5   : > { %v883_v5 = vor.u32 %v881_v37, %v880_v47  ;;  %v884_v29 = vrot.slane %v880_v47, 4  ;;  %v6373_v53 = vcombine.low %v3874_v22, %v3877_v56  ;;  %v8442_v15 = vld [vmem:[#allocation2 + $0x90] sm:$0xf]  ;;  %v891_v45 = vor.u32 %v889_v54, %v888_v38  ;;  %584 = vst [vmem:[#allocation2 + $0xb0] sm:$0x1] %v583_v2 }
  0xd6   : > { %v893_v23 = vrot.slane %v888_v38, 4  ;;  %v6374_v49 = vcombine.low %v3881_v34, %v3884_v44  ;;  %v8450_v7 = vld [vmem:[#allocation2 + $0x94] sm:$0xf]  ;;  %v1159_v20 = vld [vmem:[#allocation2 + $0x98] sm:$0x1]  ;;  %v1455_v51 = vshrl.u32 %v8442_v15, 16  ;;  %v324_v55 = vmul.f32 %v8447_v50, %v6645_v39 }
  0xd7   : > { %v1458_v46 = vshll.u32 %v8442_v15, 16  ;;  %v1080_v31 = vsel %vm7850_vm15, %v883_v5, %v1079_v35  ;;  %7065 = vmatprep.mubr.msk.bf16.mxu0 %vm1631_vm9, %v6373_v53  ;;  %v1464_v62 = vshll.u32 %v8450_v7, 16  ;;  %v1468_v43 = vshrl.u32 %v8450_v7, 16 }
  0xd8   : > { %v1474_v63 = vshll.u32 %v1159_v20, 16  ;;  %v892_v17 = vsel %vm7858_vm1, %v884_v29, %v891_v45  ;;  %1081 = vst [vmem:[#allocation2 + $0x9c] sm:$0xf] %v1080_v31  ;;  %7066 = vmatmul.mubr.msk.bf16.gmra.mrb[8].mxu0 %vm1631_vm9, %v6374_v49  ;;  %v1457_v42 = vrot.slane %v1455_v51, 4  ;;  %v1084_v40 = vsel %vm7773_vm4, %v893_v23, %v1083_v58 }
  0xd9   : > { %v1460_v14 = vrot.slane %v1458_v46, 5  ;;  %1082 = vst.msk [vmem:[#allocation2 + $0xa0] sm:$0xf] %vm480_vm0, %v892_v17  ;;  %v362_v60 = vadd.f32 %v8470_v59, %v323_v36  ;;  %v1466_v3 = vrot.slane %v1464_v62, 5  ;;  %v1470_v8 = vrot.slane %v1468_v43, 4 }
  0xda   : > { %v1476_v9 = vrot.slane %v1474_v63, 5  ;;  %1085 = vst [vmem:[#allocation2 + $0xa4] sm:$0x1] %v1084_v40  ;;  %v363_v10 = vadd.f32 %v8470_v59, %v324_v55  ;;  %v6648_v28 = vunpack.c.l.bf16 %v6667_v57  ;;  %v6649_v22 = vunpack.c.h.bf16 %v6667_v57  ;;  %v3785_v62 = vld [vmem:[#allocation2 + $0x54] sm:$0xe] }
  0xdb   : > { %v1461_v12 = vor.u32 %v1460_v14, %v1457_v42  ;;  %vm394_vm14 = vcmp.gt.f32.partialorder %v362_v60, 0.0  ;;  %v426_v61 = vmul.f32 0.2, %v362_v60  ;;  %v1471_v37 = vor.u32 %v1470_v8, %v1466_v3  ;;  %v1086_v57 = vld [vmem:[#allocation2 + $0xa8] sm:$0xf] }
  0xdc   : > { %vm395_vm3 = vcmp.gt.f32.partialorder %v363_v10, 0.0  ;;  %v427_v48 = vmul.f32 0.2, %v363_v10  ;;  %v536_v11 = vsel %vm7773_vm4, 0, %v535_v1  ;;  %v325_v6 = vmul.f32 %v8447_v50, %v6648_v28 }
  0xdd   : > { %v1462_v32 = vrot.slane %v1461_v12, 4  ;;  %v458_v54 = vsel %vm394_vm14, %v362_v60, %v426_v61  ;;  %v1472_v47 = vrot.slane %v1471_v37, 4  ;;  %537 = vst [vmem:[#allocation2 + $0xb4] sm:$0x1] %v536_v11  ;;  %v326_v39 = vmul.f32 %v8447_v50, %v6649_v22  ;;  %v1090_v61 = vld [vmem:[#allocation2 + $0xb0] sm:$0x1] }
  0xde   : > { %v459_v34 = vsel %vm395_vm3, %v363_v10, %v427_v48  ;;  %v6584_v27 = vpack.c.bf16 %v458_v54, %v458_v54  ;;  %v586_v41 = vsel %vm7780_vm7, 0, %v585_v52  ;;  %v364_v8 = vadd.f32 %v8470_v59, %v325_v6 }
  0xdf   : > { %v1467_v38 = vsel %vm7802_vm8, %v1462_v32, %v1466_v3  ;;  %v8481_v35 = vld [vmem:[#allocation2 + $0x9c] sm:$0xf]  ;;  %v6585_v56 = vpack.c.bf16 %v459_v34, %v459_v34  ;;  %v1477_v5 = vsel %vm7802_vm8, %v1472_v47, %v1476_v9  ;;  %587 = vst [vmem:[#allocation2 + $0xbc] sm:$0x1] %v586_v41  ;;  %v365_v9 = vadd.f32 %v8470_v59, %v326_v39  ;;  %v3786_v32 = vld [vmem:[#allocation2 + $0x60] sm:$0xe] }
  0xe0   : > { %v8488_v29 = vld [vmem:[#allocation2 + $0xa0] sm:$0xf]  ;;  %v1479_v53 = vshrl.u32 %v8481_v35, 16  ;;  %v1482_v44 = vshll.u32 %v8481_v35, 16  ;;  %v895_v45 = vshrl.u32 %v6584_v27, 16  ;;  %v6137_v23 = vcombine.low %v1467_v38, %v1477_v5 }
  0xe1   : > { %v1160_v58 = vld [vmem:[#allocation2 + $0xa4] sm:$0x1]  ;;  %v1488_v49 = vshll.u32 %v8488_v29, 16  ;;  %v1492_v36 = vshrl.u32 %v8488_v29, 16  ;;  %v898_v20 = vshll.u32 %v6584_v27, 16  ;;  %v903_v17 = vshrl.u32 %v6585_v56, 16 }
  0xe2   : > { %v1481_v51 = vrot.slane %v1479_v53, 4  ;;  %v1484_v46 = vrot.slane %v1482_v44, 5  ;;  %v1498_v31 = vshll.u32 %v1160_v58, 16  ;;  %v897_v55 = vrot.slane %v895_v45, 7  ;;  %6881 = vmatprep.mubr.msk.bf16.mxu1 %vm1631_vm9, %v6137_v23  ;;  %v7625_v5 = vld [vmem:[#allocation2 + $0x5c] sm:$0x1] }
  0xe3   : > { %v1490_v43 = vrot.slane %v1488_v49, 5  ;;  %v1494_v63 = vrot.slane %v1492_v36, 4  ;;  %v906_v24 = vshll.u32 %v6585_v56, 16  ;;  %v905_v3 = vrot.slane %v903_v17, 7  ;;  %v3787_v45 = vld [vmem:[#allocation2 + $0x6c] sm:$0xe] }
  0xe4   : > { %v1485_v42 = vor.u32 %v1484_v46, %v1481_v51  ;;  %v1500_v14 = vrot.slane %v1498_v31, 5  ;;  %v900_v40 = vor.u32 %v898_v20, %v897_v55  ;;  %v901_v60 = vrot.slane %v897_v55, 4  ;;  %v3050_v36 = vld [vmem:[#allocation2 + $0x70] sm:$0xf]  ;;  %v3051_v55 = vld [vmem:[#allocation2 + $0x74] sm:$0x1] }
  0xe5   : > { %v1495_v1 = vor.u32 %v1494_v63, %v1490_v43  ;;  %v6351_v2 = vrot.slane %v3785_v62, 9  ;;  %v3887_v37 = vrot.slane %v8201_v30, 5  ;;  %v908_v28 = vor.u32 %v906_v24, %v905_v3 }
  0xe6   : > { %v1486_v10 = vrot.slane %v1485_v42, 4  ;;  %v1087_v12 = vsel %vm7850_vm15, %v900_v40, %v1086_v57  ;;  %v910_v52 = vrot.slane %v905_v3, 4  ;;  %vm396_vm5 = vcmp.gt.f32.partialorder %v364_v8, 0.0 }
  0xe7   : > { %v1496_v48 = vrot.slane %v1495_v1, 4  ;;  %1088 = vst [vmem:[#allocation2 + $0xa8] sm:$0xf] %v1087_v12  ;;  %vm397_vm2 = vcmp.gt.f32.partialorder %v365_v9, 0.0  ;;  %v428_v22 = vmul.f32 0.2, %v364_v8  ;;  %v909_v34 = vsel %vm7858_vm1, %v901_v60, %v908_v28 }
  0xe8   : > { %v1491_v54 = vsel %vm7802_vm8, %v1486_v10, %v1490_v43  ;;  %v429_v11 = vmul.f32 0.2, %v365_v9  ;;  %v1091_v30 = vsel %vm7773_vm4, %v910_v52, %v1090_v61  ;;  %1089 = vst.msk [vmem:[#allocation2 + $0xac] sm:$0xf] %vm480_vm0, %v909_v34  ;;  %v3889_v56 = vrot.slane %v3887_v37, 4 }
  0xe9   : > { %v1501_v47 = vsel %vm7802_vm8, %v1496_v48, %v1500_v14  ;;  %1092 = vst [vmem:[#allocation2 + $0xb0] sm:$0x1] %v1091_v30  ;;  %v460_v6 = vsel %vm396_vm5, %v364_v8, %v428_v22  ;;  %v3890_v53 = vrot.slane %v7625_v5, 5  ;;  %v6352_v44 = vrot.slane %v3786_v32, 9  ;;  %v1093_v14 = vld [vmem:[#allocation2 + $0xb4] sm:$0xf] }
  0xea   : > { %v6138_v27 = vcombine.low %v1491_v54, %v1501_v47  ;;  %v461_v38 = vsel %vm397_vm2, %v365_v9, %v429_v11  ;;  %v6586_v39 = vpack.c.bf16 %v460_v6, %v460_v6  ;;  %v3888_v23 = vsel %vm8239_vm13, %v6351_v2, %v3887_v37  ;;  %v1097_v32 = vld [vmem:[#allocation2 + $0xbc] sm:$0x1] }
  0xeb   : > { %v6587_v41 = vpack.c.bf16 %v461_v38, %v461_v38  ;;  %v3894_v58 = vrot.slane %v8288_v0, 5  ;;  %v3897_v49 = vrot.slane %v8290_v26, 5  ;;  %v3891_v43 = vsel %vm8239_vm13, %v3889_v56, %v3890_v53  ;;  %v8533_v6 = vld [vmem:[#allocation2 + $0x7c] sm:$0xf]  ;;  %v3788_v38 = vld [vmem:[#allocation2 + $0x78] sm:$0xe] }
  0xec   : > { %6882 = vmatmul.mubr.msk.bf16.gmra.mrb[24].mxu1 %vm1631_vm9, %v6138_v27  ;;  %v912_v20 = vshrl.u32 %v6586_v39, 16  ;;  %v915_v51 = vshll.u32 %v6586_v39, 16  ;;  %v6353_v24 = vrot.slane %v3787_v45, 9  ;;  %v6375_v40 = vcombine.low %v3888_v23, %v3891_v43  ;;  %v8541_v45 = vld [vmem:[#allocation2 + $0x80] sm:$0x1] }
  0xed   : > { %v920_v46 = vshrl.u32 %v6587_v41, 16  ;;  %v923_v31 = vshll.u32 %v6587_v41, 16  ;;  %v3895_v63 = vsel %vm8239_vm13, %v6352_v44, %v3894_v58  ;;  %v3896_v17 = vrot.slane %v3894_v58, 4 }
  0xee   : > { %v8514_v62 = vld [vmem:[#allocation2 + $0xa8] sm:$0xf]  ;;  %v914_v57 = vrot.slane %v912_v20, 7  ;;  %v3901_v1 = vrot.slane %v3050_v36, 5  ;;  %v3904_v3 = vrot.slane %v3051_v55, 5  ;;  %7069 = vmatprep.mubr.msk.bf16.mxu0 %vm1631_vm9, %v6375_v40  ;;  %v6354_v58 = vrot.slane %v3788_v38, 9 }
  0xef   : > { %v1503_v0 = vshrl.u32 %v8514_v62, 16  ;;  %v1506_v26 = vshll.u32 %v8514_v62, 16  ;;  %v922_v42 = vrot.slane %v920_v46, 7  ;;  %v3898_v60 = vsel %vm8239_vm13, %v3896_v17, %v3897_v49  ;;  %v8524_v8 = vld [vmem:[#allocation2 + $0xac] sm:$0xf] }
  0xf0   : > { %v1161_v9 = vld [vmem:[#allocation2 + $0xb0] sm:$0x1]  ;;  %v917_v61 = vor.u32 %v915_v51, %v914_v57  ;;  %v1512_v37 = vshll.u32 %v8524_v8, 16  ;;  %v1516_v48 = vshrl.u32 %v8524_v8, 16  ;;  %v918_v52 = vrot.slane %v914_v57, 4 }
  0xf1   : > { %v1505_v10 = vrot.slane %v1503_v0, 4  ;;  %v1508_v12 = vrot.slane %v1506_v26, 5  ;;  %v925_v2 = vor.u32 %v923_v31, %v922_v42  ;;  %v1522_v28 = vshll.u32 %v1161_v9, 16  ;;  %v3056_v46 = vld [vmem:[#allocation2 + $0x88] sm:$0xf] }
  0xf2   : > { %v927_v22 = vrot.slane %v922_v42, 4  ;;  %v1094_v11 = vsel %vm7850_vm15, %v917_v61, %v1093_v14  ;;  %v6376_v47 = vcombine.low %v3895_v63, %v3898_v60  ;;  %v1514_v34 = vrot.slane %v1512_v37, 5  ;;  %v3789_v31 = vld [vmem:[#allocation2 + $0x84] sm:$0xe]  ;;  %v3790_v0 = vld [vmem:[#allocation2 + $0x90] sm:$0xe] }
  0xf3   : > { %v1509_v54 = vor.u32 %v1508_v12, %v1505_v10  ;;  %v1518_v30 = vrot.slane %v1516_v48, 4  ;;  %v926_v27 = vsel %vm7858_vm1, %v918_v52, %v925_v2  ;;  %1095 = vst [vmem:[#allocation2 + $0xb4] sm:$0xf] %v1094_v11  ;;  %v3902_v41 = vsel %vm8239_vm13, %v6353_v24, %v3901_v1  ;;  %v3057_v24 = vld [vmem:[#allocation2 + $0x8c] sm:$0x1] }
  0xf4   : > { %1096 = vst.msk [vmem:[#allocation2 + $0xb8] sm:$0xf] %vm480_vm0, %v926_v27  ;;  %v1098_v39 = vsel %vm7773_vm4, %v927_v22, %v1097_v32  ;;  %7070 = vmatmul.mubr.msk.bf16.gmra.mrb[12].mxu0 %vm1631_vm9, %v6376_v47  ;;  %v3903_v5 = vrot.slane %v3901_v1, 4  ;;  %v1524_v44 = vrot.slane %v1522_v28, 5  ;;  %v3908_v49 = vrot.slane %v8533_v6, 5 }
  0xf5   : > { %v1510_v56 = vrot.slane %v1509_v54, 4  ;;  %v1519_v53 = vor.u32 %v1518_v30, %v1514_v34  ;;  %1099 = vst [vmem:[#allocation2 + $0xbc] sm:$0x1] %v1098_v39  ;;  %v3911_v63 = vrot.slane %v8541_v45, 5  ;;  %v6355_v14 = vrot.slane %v3789_v31, 9 }
  0xf6   : > { %v3905_v23 = vsel %vm8239_vm13, %v3903_v5, %v3904_v3  ;;  %v3909_v55 = vsel %vm8239_vm13, %v6354_v58, %v3908_v49  ;;  %v3910_v43 = vrot.slane %v3908_v49, 4  ;;  %v3915_v40 = vrot.slane %v3056_v46, 5  ;;  %v3059_v60 = vld [vmem:[#allocation2 + $0x94] sm:$0xf]  ;;  %v3060_v12 = vld [vmem:[#allocation2 + $0x98] sm:$0x1] }
  0xf7   : > { %v1515_v36 = vsel %vm7802_vm8, %v1510_v56, %v1514_v34  ;;  %v1520_v20 = vrot.slane %v1519_v53, 4  ;;  %v6377_v51 = vcombine.low %v3902_v41, %v3905_v23  ;;  %v3791_v52 = vld [vmem:[#allocation2 + $0x9c] sm:$0xe]  ;;  %v3918_v11 = vrot.slane %v3057_v24, 5  ;;  %v3062_v47 = vld [vmem:[#allocation2 + $0xa0] sm:$0xf] }
  0xf8   : > { %v3912_v42 = vsel %vm8239_vm13, %v3910_v43, %v3911_v63  ;;  %v3916_v48 = vsel %vm8239_vm13, %v6355_v14, %v3915_v40  ;;  %v3917_v28 = vrot.slane %v3915_v40, 4  ;;  %v6356_v27 = vrot.slane %v3790_v0, 9  ;;  %v3063_v56 = vld [vmem:[#allocation2 + $0xa4] sm:$0x1]  ;;  %v7626_v46 = vld [vmem:[#allocation2] sm:$0xf] }
  0xf9   : > { %v1525_v17 = vsel %vm7802_vm8, %v1520_v20, %v1524_v44  ;;  %7073 = vmatprep.mubr.msk.bf16.mxu0 %vm1631_vm9, %v6377_v51  ;;  %v6378_v10 = vcombine.low %v3909_v55, %v3912_v42  ;;  %v3922_v38 = vrot.slane %v3059_v60, 5  ;;  %v3925_v53 = vrot.slane %v3060_v12, 5  ;;  %v3792_v20 = vld [vmem:[#allocation2 + $0xa8] sm:$0xe]  ;;  %v8575_v31 = vld [vmem:[#allocation2 + $0x4] sm:$0xf] }
  0xfa   : > { %v6139_v26 = vcombine.low %v1515_v36, %v1525_v17  ;;  %v8554_v57 = vld [vmem:[#allocation2 + $0xb4] sm:$0xf]  ;;  %v3919_v5 = vsel %vm8239_vm13, %v3917_v28, %v3918_v11  ;;  %v3065_v36 = vld [vmem:[#allocation2 + $0xac] sm:$0xf]  ;;  %v6161_v55 = vcombine.low %v7626_v46, %v8575_v31  ;;  %v6357_v43 = vrot.slane %v3791_v52, 9  ;;  %v6668_v28 = vld [vmem:[%s7787_s14 + $0x78] sm:$0xff]  }
  0xfb   : > { %v8558_v1 = vld [vmem:[#allocation2 + $0xb8] sm:$0xf]  ;;  %v1527_v3 = vshrl.u32 %v8554_v57, 16  ;;  %v1530_v9 = vshll.u32 %v8554_v57, 16  ;;  %v6379_v23 = vcombine.low %v3916_v48, %v3919_v5  ;;  %v3923_v58 = vsel %vm8239_vm13, %v6356_v27, %v3922_v38  ;;  %v3066_v63 = vld [vmem:[#allocation2 + $0xb0] sm:$0x1] }
  0xfc   : > { %6885 = vmatprep.mubr.msk.bf16.mxu1 %vm1631_vm9, %v6139_v26  ;;  %v8563_v61 = vld [vmem:[#allocation2 + $0xbc] sm:$0x1]  ;;  %v1536_v2 = vshll.u32 %v8558_v1, 16  ;;  %v1540_v37 = vshrl.u32 %v8558_v1, 16  ;;  %7074 = vmatmul.mubr.msk.bf16.gmra.mrb[16].mxu0 %vm1631_vm9, %v6378_v10  ;;  %v3924_v49 = vrot.slane %v3922_v38, 4  ;;  %v3929_v0 = vrot.slane %v3062_v47, 5 }
  0xfd   : > { %v1529_v32 = vrot.slane %v1527_v3, 4  ;;  %v1532_v54 = vrot.slane %v1530_v9, 5  ;;  %v1546_v22 = vshll.u32 %v8563_v61, 16  ;;  %7077 = vmatprep.mubr.msk.bf16.mxu0 %vm1631_vm9, %v6379_v23  ;;  %v3932_v26 = vrot.slane %v3063_v56, 5  ;;  %v3068_v3 = vld [vmem:[#allocation2 + $0xb8] sm:$0xf] }
  0xfe   : > { %v1538_v34 = vrot.slane %v1536_v2, 5  ;;  %v1542_v30 = vrot.slane %v1540_v37, 4  ;;  %v3926_v24 = vsel %vm8239_vm13, %v3924_v49, %v3925_v53  ;;  %v6358_v40 = vrot.slane %v3792_v20, 9  ;;  %v3793_v9 = vld [vmem:[#allocation2 + $0xb4] sm:$0xe] }
  0xff   : > { %v1533_v39 = vor.u32 %v1532_v54, %v1529_v32  ;;  %v1548_v41 = vrot.slane %v1546_v22, 5  ;;  %v6380_v14 = vcombine.low %v3923_v58, %v3926_v24  ;;  %v3936_v60 = vrot.slane %v3065_v36, 5  ;;  %v3069_v48 = vld [vmem:[#allocation2 + $0xbc] sm:$0x1]  ;;  %v8608_v46 = vld [vmem:[#allocation2 + $0x10] sm:$0xf] }
 0x100   : > { %v1543_v44 = vor.u32 %v1542_v30, %v1538_v34  ;;  %v3930_v12 = vsel %vm8239_vm13, %v6357_v43, %v3929_v0  ;;  %v3931_v2 = vrot.slane %v3929_v0, 4  ;;  %v3939_v37 = vrot.slane %v3066_v63, 5  ;;  %v588_v30 = vld [vmem:[#allocation2 + $0xc8] sm:$0x1]  ;;  %v8612_v24 = vld [vmem:[#allocation2 + $0x1c] sm:$0xf] }
 0x101   : > { %v1534_v51 = vrot.slane %v1533_v39, 4  ;;  %v3938_v32 = vrot.slane %v3936_v60, 4  ;;  %v3937_v22 = vsel %vm8239_vm13, %v6358_v40, %v3936_v60  ;;  %v6359_v11 = vrot.slane %v3793_v9, 9  ;;  %v7632_v40 = vld [vmem:[%s9788_s3 + $0x40] sm:$0xff]   ;;  %v7504_v9 = vld [vmem:[%s9788_s3 + $0x50] sm:$0xff]  }
 0x102   : > { %v1544_v17 = vrot.slane %v1543_v44, 4  ;;  %v3933_v54 = vsel %vm8239_vm13, %v3931_v2, %v3932_v26  ;;  %v3943_v47 = vrot.slane %v3068_v3, 5  ;;  %v3946_v56 = vrot.slane %v3069_v48, 5  ;;  %v7633_v2 = vld [vmem:[#allocation2 + $0x24] sm:$0xf] }
 0x103   : > { %v1539_v42 = vsel %vm7802_vm8, %v1534_v51, %v1538_v34  ;;  %v538_v34 = vld [vmem:[#allocation2 + $0xc0] sm:$0x1]  ;;  %v6381_v27 = vcombine.low %v3930_v12, %v3933_v54  ;;  %v3940_v38 = vsel %vm8239_vm13, %v3938_v32, %v3939_v37  ;;  %v6652_v39 = vunpack.c.l.bf16 %v6668_v28  ;;  %v7628_v51 = vld [vmem:[#allocation2 + $0xc] sm:$0xf]  ;;  %v8629_v37 = vld [vmem:[#allocation2 + $0x28] sm:$0xf] }
 0x104   : > { %v1549_v10 = vsel %vm7802_vm8, %v1544_v17, %v1548_v41  ;;  %7078 = vmatmul.mubr.msk.bf16.gmra.mrb[20].mxu0 %vm1631_vm9, %v6380_v14  ;;  %v3944_v41 = vsel %vm8239_vm13, %v6359_v11, %v3943_v47  ;;  %v3945_v5 = vrot.slane %v3943_v47, 4  ;;  %v6653_v53 = vunpack.c.h.bf16 %v6668_v28  ;;  %v7630_v17 = vld [vmem:[#allocation2 + $0x18] sm:$0xf]  ;;  %v7635_v32 = vld [vmem:[#allocation2 + $0x30] sm:$0xf] }
 0x105   : > { %v6140_v52 = vcombine.low %v1539_v42, %v1549_v10  ;;  %7081 = vmatprep.mubr.msk.bf16.mxu0 %vm1631_vm9, %v6381_v27  ;;  %v6382_v44 = vcombine.low %v3937_v22, %v3940_v38  ;;  %v327_v23 = vmul.f32 %v8447_v50, %v6652_v39  ;;  %v539_v58 = vsel %vm7773_vm4, 0, %v538_v34  ;;  %v8632_v54 = vld [vmem:[#allocation2 + $0x34] sm:$0xf] }
 0x106   : > { %v589_v49 = vsel %vm7780_vm7, 0, %v588_v30  ;;  %v3947_v36 = vsel %vm8239_vm13, %v3945_v5, %v3946_v56  ;;  %v328_v20 = vmul.f32 %v8447_v50, %v6653_v53  ;;  %540 = vst [vmem:[#allocation2 + $0xc0] sm:$0x1] %v539_v58  ;;  %v6163_v18 = vcombine.low %v7630_v17, %v8612_v24  ;;  %v7502_v50 = vld [vmem:[%s9788_s3 + $0x48] sm:$0xff]   ;;  %v7510_v30 = vld [vmem:[%s9788_s3 + $0x58] sm:$0xff]  }
 0x107   : > { %6886 = vmatmul.mubr.msk.bf16.gmra.mrb[28].mxu1 %vm1631_vm9, %v6140_v52  ;;  %590 = vst [vmem:[#allocation2 + $0xc8] sm:$0x1] %v589_v49  ;;  %v6383_v43 = vcombine.low %v3944_v41, %v3947_v36  ;;  %v366_v63 = vadd.f32 %v8470_v59, %v327_v23  ;;  %v6164_v48 = vcombine.low %v7633_v2, %v8629_v37  ;;  %v8649_v23 = vld [vmem:[%s9788_s3 + $0x60] sm:$0xff]   ;;  %v7637_v58 = vld [vmem:[#allocation2 + $0x3c] sm:$0xf]  ;;  %v3303_v17 = vshrl.u32 %v8533_v6, 16 }
 0x108   : > { %6897 = vmatprep.mubr.msk.bf16.mxu1 %vm1631_vm9, %v6161_v55  ;;  %v6162_v55 = vcombine.low %v7628_v51, %v8608_v46  ;;  %v367_v0 = vadd.f32 %v8470_v59, %v328_v20  ;;  %v6165_v22 = vcombine.low %v7635_v32, %v8632_v54  ;;  %v6166_v49 = vcombine.low %v7637_v58, %v8652_v19  ;;  %v8655_v36 = vld [vmem:[#allocation2 + $0x4c] sm:$0xf]  ;;  %v8693_v58 = vld [vmem:[#allocation2 + $0x7c] sm:$0xf] }
 0x109   : > { %vm398_vm7 = vcmp.gt.f32.partialorder %v366_v63, 0.0  ;;  %v430_v26 = vmul.f32 0.2, %v366_v63  ;;  %v6167_v16 = vcombine.low %v7639_v25, %v8655_v36  ;;  %v3309_v2 = vshll.u32 %v8541_v45, 16  ;;  %v7646_v45 = vld [vmem:[#allocation2 + $0x14] sm:$0x1] }
 0x10a   : > { %vm399_vm6 = vcmp.gt.f32.partialorder %v367_v0, 0.0  ;;  %v431_v42 = vmul.f32 0.2, %v367_v0 }
 0x10b   : > { %v462_v14 = vsel %vm398_vm7, %v366_v63, %v430_v26  ;;  %v3299_v63 = vshll.u32 %v8533_v6, 16  ;;  %v8663_v26 = vld [vmem:[#allocation2 + $0x58] sm:$0xf] }
 0x10c   : > { %7082 = vmatmul.mubr.msk.bf16.gmra.mrb[24].mxu0 %vm1631_vm9, %v6382_v44  ;;  %v463_v59 = vsel %vm399_vm6, %v367_v0, %v431_v42  ;;  %v6588_v60 = vpack.c.bf16 %v462_v14, %v462_v14 }
 0x10d   : > { %7085 = vmatprep.mubr.msk.bf16.mxu0 %vm1631_vm9, %v6383_v43  ;;  %v6589_v3 = vpack.c.bf16 %v463_v59, %v463_v59  ;;  %v1100_v34 = vld [vmem:[#allocation2 + $0xc0] sm:$0xf]  ;;  %v8672_v6 = vrot.slane %v3299_v63, 5 }
 0x10e   : > { %v929_v10 = vshrl.u32 %v6588_v60, 16  ;;  %v932_v12 = vshll.u32 %v6588_v60, 16  ;;  %v1104_v56 = vld [vmem:[#allocation2 + $0xc8] sm:$0x1]  ;;  %v7643_v59 = vld [vmem:[#allocation2 + $0x60] sm:$0xf] }
 0x10f   : > { %6898 = vmatmul.mubr.msk.bf16.vlgmr.msra.gmra.mrb[0].mxu1 %vm1631_vm9, %v6162_v55  ;;  %v937_v28 = vshrl.u32 %v6589_v3, 16  ;;  %v940_v52 = vshll.u32 %v6589_v3, 16  ;;  %v8668_v60 = vld [vmem:[#allocation2 + $0x64] sm:$0xf]  ;;  %9823 = vst [vmem:[#allocation3_spill] sm:$0xff] %v8672_v6 }
 0x110   : > { %6930 = vmatpush3.bf16.msra.mxu1 %v7632_v40  ;;  %6901 = vmatprep.mubr.msk.bf16.mxu1 %vm1631_vm9, %v6163_v18  ;;  %v931_v11 = vrot.slane %v929_v10, 7  ;;  %v6169_v3 = vcombine.low %v7643_v59, %v8668_v60  ;;  %v2207_v10 = vrot.slane %v8575_v31, 5  ;;  %v2235_v59 = vrot.slane %v8632_v54, 5  ;;  %v7512_v54 = vld [vmem:[%s9788_s3 + $0xe8] sm:$0xff]   ;;  %v8934_v6 = vld [vmem:[#allocation2 + $0x58] sm:$0xf] }
 0x111   : > { %6931 = vmatprep.subr.bf16.mxu1 %v7502_v50  ;;  %v939_v47 = vrot.slane %v937_v28, 7  ;;  %v7505_v28 = vld [vmem:[#allocation2 + $0x18] sm:$0xff]   ;;  %9833 = vst [vmem:[#allocation10_spill] sm:$0xff] %v8934_v6 }
 0x112   : > { %v934_v27 = vor.u32 %v932_v12, %v931_v11  ;;  %v935_v38 = vrot.slane %v931_v11, 4  ;;  %v8674_v12 = vrot.slane %v3303_v17, 4  ;;  %v2209_v31 = vrot.slane %v2207_v10, 4 }
 0x113   : > { %v942_v39 = vor.u32 %v940_v52, %v939_v47  ;;  %v944_v41 = vrot.slane %v939_v47, 4  ;;  %v7645_v52 = vld [vmem:[#allocation2 + $0x8] sm:$0x1] }
 0x114   : > { %6932 = vmatpush3.bf16.msra.mxu1 %v7502_v50  ;;  %v1101_v5 = vsel %vm7850_vm15, %v934_v27, %v1100_v34  ;;  %v7641_v50 = vld [vmem:[#allocation2 + $0x54] sm:$0xf]  ;;  %9824 = vst [vmem:[#allocation4_spill] sm:$0xff] %v8674_v12  ;;  %v2210_v32 = vrot.slane %v7645_v52, 5  ;;  %v2155_v34 = vld [vmem:[#allocation2 + $0xc] sm:$0xe] }
 0x115   : > { %6933 = vmatprep.subr.bf16.mxu1 %v7504_v9  ;;  %v943_v53 = vsel %vm7858_vm1, %v935_v38, %v942_v39  ;;  %1102 = vst [vmem:[#allocation2 + $0xc0] sm:$0xf] %v1101_v5  ;;  %v1105_v44 = vsel %vm7773_vm4, %v944_v41, %v1104_v56  ;;  %v6168_v42 = vcombine.low %v7641_v50, %v8663_v26  ;;  %v2221_v27 = vrot.slane %v8612_v24, 5  ;;  %v2157_v56 = vld [vmem:[#allocation2 + $0x24] sm:$0xe] }
 0x116   : > { %1103 = vst.msk [vmem:[#allocation2 + $0xc4] sm:$0xf] %vm480_vm0, %v943_v53  ;;  %1106 = vst [vmem:[#allocation2 + $0xc8] sm:$0x1] %v1105_v44  ;;  %v2217_v38 = vrot.slane %v7646_v45, 5  ;;  %v2228_v39 = vrot.slane %v8629_v37, 5 }
 0x117   : > { %6902 = vmatmul.mubr.msk.bf16.gmra.mrb[4].mxu1 %vm1631_vm9, %v6164_v48  ;;  %v8687_v41 = vrot.slane %v3309_v2, 5  ;;  %v7647_v5 = vld [vmem:[#allocation2 + $0x6c] sm:$0xf]  ;;  %v8689_v53 = vld [vmem:[#allocation2 + $0x70] sm:$0xf]  ;;  %v6198_v25 = vrot.slane %v2155_v34, 9  ;;  %v6175_v2 = vcombine.low %v8514_v62, %v8524_v8 }
 0x118   : > { %6905 = vmatprep.mubr.msk.bf16.mxu1 %vm1631_vm9, %v6165_v22  ;;  %6934 = vmatpush3.bf16.msra.mxu1 %v7504_v9  ;;  %v2154_v9 = vld [vmem:[#allocation2] sm:$0xe]  ;;  %v2214_v22 = vrot.slane %v8608_v46, 5  ;;  %v6170_v44 = vcombine.low %v7647_v5, %v8689_v53  ;;  %v7649_v24 = vld [vmem:[#allocation2 + $0x78] sm:$0xf]  ;;  %v6200_v17 = vrot.slane %v2157_v56, 9 }
 0x119   : > { %6935 = vmatprep.subr.bf16.mxu1 %v7510_v30  ;;  %v6197_v47 = vrot.slane %v2154_v9, 9  ;;  %9825 = vst [vmem:[#allocation5_spill] sm:$0xff] %v8687_v41  ;;  %v2230_v50 = vrot.slane %v2228_v39, 4  ;;  %v6173_v9 = vcombine.low %v8442_v15, %v8450_v7  ;;  %v4665_v34 = vld [vmem:[#allocation2 + $0x1c] sm:$0xf]  ;;  %v2237_v56 = vrot.slane %v2235_v59, 4 }
 0x11a   : > { %v7653_v5 = vld [vmem:[#allocation2 + $0x38] sm:$0x1] }
 0x11b   : > { %v8698_v37 = vsel %vm8239_vm13, %v6197_v47, %v2207_v10  ;;  %v6174_v10 = vcombine.low %v8481_v35, %v8488_v29  ;;  %v2242_v47 = vrot.slane %v8652_v19, 5 }
 0x11c   : > { %6936 = vmatpush3.bf16.msra.mxu1 %v7510_v30  ;;  %v3794_v20 = vld [vmem:[#allocation2 + $0xc0] sm:$0xe]  ;;  %v2156_v30 = vld [vmem:[#allocation2 + $0x18] sm:$0xe] }
 0x11d   : > { %6969 = vmatprep.subr.bf16.mxu1 %v8649_v23  ;;  %v3071_v51 = vld [vmem:[#allocation2 + $0xc4] sm:$0xf]  ;;  %v3072_v55 = vld [vmem:[#allocation2 + $0xc8] sm:$0x1]  ;;  %v6360_v43 = vrot.slane %v3794_v20, 9  ;;  %v6199_v20 = vrot.slane %v2156_v30, 9 }
 0x11e   : > { %v3950_v18 = vrot.slane %v3071_v51, 5  ;;  %v3953_v0 = vrot.slane %v3072_v55, 5  ;;  %v8702_v51 = vsel %vm8239_vm13, %v2209_v31, %v2210_v32  ;;  %v2223_v55 = vrot.slane %v2221_v27, 4  ;;  %v4664_v31 = vld [vmem:[#allocation2 + $0x18] sm:$0xf] }
 0x11f   : > { %6906 = vmatmul.mubr.msk.bf16.gmra.mrb[8].mxu1 %vm1631_vm9, %v6166_v49  ;;  %v6171_v49 = vcombine.low %v7649_v24, %v8693_v58  ;;  %v8723_v32 = vsel %vm8239_vm13, %v6198_v25, %v2214_v22  ;;  %v8733_v30 = vsel %vm8239_vm13, %v6199_v20, %v2221_v27  ;;  %v2160_v24 = vld [vmem:[#allocation2 + $0x48] sm:$0xe]  ;;  %v4716_v25 = vshll.u32 %v4664_v31, 16 }
 0x120   : > { %6909 = vmatprep.mubr.msk.bf16.mxu1 %vm1631_vm9, %v6167_v16  ;;  %v3951_v14 = vsel %vm8239_vm13, %v6360_v43, %v3950_v18  ;;  %v3952_v40 = vrot.slane %v3950_v18, 4  ;;  %v2216_v16 = vrot.slane %v2214_v22, 4  ;;  %v7651_v43 = vld [vmem:[#allocation2 + $0x20] sm:$0x1]  ;;  %v7507_v18 = vld [vmem:[#allocation2 + $0x24] sm:$0xff]   ;;  %v8741_v22 = vsel %vm8239_vm13, %v6200_v17, %v2228_v39 }
 0x121   : > { %v2224_v63 = vrot.slane %v7651_v43, 5  ;;  %v4713_v39 = vshrl.u32 %v4664_v31, 16  ;;  %v4726_v20 = vshrl.u32 %v4665_v34, 16  ;;  %v7518_v43 = vld [vmem:[%s9788_s3 + $0xf0] sm:$0xff]   ;;  %v7655_v17 = vld [vmem:[#allocation2 + $0x44] sm:$0x1] }
 0x122   : > { %v3954_v48 = vsel %vm8239_vm13, %v3952_v40, %v3953_v0  ;;  %v6172_v0 = vcombine.low %v8396_v13, %v8403_v4  ;;  %v2158_v40 = vld [vmem:[#allocation2 + $0x30] sm:$0xe]  ;;  %v2256_v31 = vrot.slane %v8663_v26, 5  ;;  %v4718_v26 = vrot.slane %v4716_v25, 5  ;;  %v4666_v25 = vld [vmem:[#allocation2 + $0x20] sm:$0x1] }
 0x123   : > { %v6384_v11 = vcombine.low %v3951_v14, %v3954_v48  ;;  %v8737_v45 = vsel %vm8239_vm13, %v2223_v55, %v2224_v63  ;;  %v2244_v63 = vrot.slane %v2242_v47, 4  ;;  %v4728_v55 = vrot.slane %v4726_v20, 4 }
 0x124   : > { %v2258_v4 = vrot.slane %v2256_v31, 4  ;;  %v2270_v20 = vrot.slane %v8689_v53, 5 }
 0x125   : > { %7086 = vmatmul.mubr.msk.bf16.gmra.mrb[28].mxu0 %vm1631_vm9, %v6384_v11  ;;  %v8727_v11 = vsel %vm8239_vm13, %v2216_v16, %v2217_v38  ;;  %v6201_v38 = vrot.slane %v2158_v40, 9  ;;  %v4722_v16 = vshll.u32 %v4665_v34, 16  ;;  %v7511_v34 = vld [vmem:[#allocation2 + $0x48] sm:$0xff]  }
 0x126   : > { %7097 = vmatprep.mubr.msk.bf16.mxu0 %vm1631_vm9, %v7505_v28  ;;  %v2159_v28 = vld [vmem:[#allocation2 + $0x3c] sm:$0xe] }
 0x127   : > { %6910 = vmatmul.mubr.msk.bf16.gmra.mrb[12].mxu1 %vm1631_vm9, %v6168_v42  ;;  %v7652_v42 = vld [vmem:[#allocation2 + $0x2c] sm:$0x1]  ;;  %v6202_v27 = vrot.slane %v2159_v28, 9  ;;  %v8762_v40 = vsel %vm8239_vm13, %v6201_v38, %v2235_v59  ;;  %v2161_v28 = vld [vmem:[#allocation2 + $0x54] sm:$0xe] }
 0x128   : > { %6913 = vmatprep.mubr.msk.bf16.mxu1 %vm1631_vm9, %v6169_v3  ;;  %v2231_v14 = vrot.slane %v7652_v42, 5  ;;  %v7508_v3 = vld [vmem:[#allocation2 + $0x30] sm:$0xff]   ;;  %v7509_v42 = vld [vmem:[#allocation2 + $0x3c] sm:$0xff]   ;;  %v4667_v38 = vld [vmem:[#allocation2 + $0x24] sm:$0xf] }
 0x129   : > { %v8775_v59 = vld [vmem:[#allocation2 + $0x60] sm:$0xe] }
 0x12a   : > { %v8746_v19 = vsel %vm8239_vm13, %v2230_v50, %v2231_v14  ;;  %v2249_v50 = vrot.slane %v8655_v36, 5  ;;  %v8773_v36 = vsel %vm8239_vm13, %v6202_v27, %v2242_v47  ;;  %v8777_v14 = vrot.slane %v4722_v16, 5  ;;  %v7657_v27 = vld [vmem:[#allocation2 + $0x5c] sm:$0x1]  ;;  %v2163_v16 = vld [vmem:[#allocation2 + $0x6c] sm:$0xe] }
 0x12b   : > { %v6205_v15 = vrot.slane %v8775_v59, 9 }
 0x12d   : > { %7098 = vmatmul.mubr.msk.bf16.vlgmr.msra.gmra.mrb[0].mxu0 %vm1631_vm9, %v7507_v18  ;;  %v2245_v18 = vrot.slane %v7655_v17, 5  ;;  %v7656_v17 = vld [vmem:[#allocation2 + $0x50] sm:$0x1] }
 0x12e   : > { %7101 = vmatprep.mubr.msk.bf16.mxu0 %vm1631_vm9, %v7508_v3  ;;  %v6203_v3 = vrot.slane %v2160_v24, 9  ;;  %v2252_v46 = vrot.slane %v7656_v17, 5  ;;  %v4715_v24 = vrot.slane %v4713_v39, 4  ;;  %v2259_v39 = vrot.slane %v7657_v27, 5 }
 0x12f   : > { %6914 = vmatmul.mubr.msk.bf16.gmra.mrb[16].mxu1 %vm1631_vm9, %v6170_v44  ;;  %v2238_v44 = vrot.slane %v7653_v5, 5  ;;  %v4668_v5 = vld [vmem:[#allocation2 + $0x28] sm:$0xf]  ;;  %v8785_v47 = vsel %vm8239_vm13, %v2244_v63, %v2245_v18  ;;  %v4737_v63 = vshrl.u32 %v4667_v38, 16  ;;  %v4740_v18 = vshll.u32 %v4667_v38, 16 }
 0x130   : > { %6917 = vmatprep.mubr.msk.bf16.mxu1 %vm1631_vm9, %v6171_v49  ;;  %v7654_v49 = vld [vmem:[%s9788_s3 + $0xe0] sm:$0xff]   ;;  %v8796_v13 = vsel %vm8239_vm13, %v6203_v3, %v2249_v50  ;;  %v4750_v17 = vshrl.u32 %v4668_v5, 16  ;;  %v4719_v7 = vor.u32 %v4718_v26, %v4715_v24  ;;  %v7659_v38 = vld [vmem:[#allocation2 + $0x74] sm:$0x1]  ;;  %v4669_v26 = vld [vmem:[#allocation2 + $0x2c] sm:$0x1] }
 0x131   : > { %7130 = vmatpush3.bf16.msra.mxu0 %v7654_v49  ;;  %v8769_v49 = vsel %vm8239_vm13, %v2237_v56, %v2238_v44  ;;  %v2251_v56 = vrot.slane %v2249_v50, 4  ;;  %v6204_v44 = vrot.slane %v2161_v28, 9  ;;  %v4746_v28 = vshll.u32 %v4668_v5, 16 }
 0x132   : > { %7131 = vmatprep.subr.bf16.mxu0 %v7512_v54  ;;  %v4732_v50 = vshll.u32 %v4666_v25, 16  ;;  %v6206_v5 = vrot.slane %v2163_v16, 9  ;;  %v2273_v24 = vrot.slane %v7659_v38, 5  ;;  %v4752_v27 = vrot.slane %v4750_v17, 4  ;;  %v7514_v25 = vld [vmem:[#allocation2 + $0x60] sm:$0xff]   ;;  %v7520_v16 = vld [vmem:[#allocation2 + $0x90] sm:$0xff]  }
 0x133   : > { %v8810_v53 = vsel %vm8239_vm13, %v6204_v44, %v2256_v31  ;;  %v4739_v31 = vrot.slane %v4737_v63, 4  ;;  %v8821_v44 = vrot.slane %v4746_v28, 5  ;;  %v4670_v28 = vld [vmem:[#allocation2 + $0x30] sm:$0xf]  ;;  %v2165_v17 = vld [vmem:[#allocation2 + $0x84] sm:$0xe] }
 0x134   : > { %v4734_v48 = vrot.slane %v4732_v50, 5  ;;  %v4761_v50 = vshrl.u32 %v4670_v28, 16  ;;  %v6208_v38 = vrot.slane %v2165_v17, 9  ;;  %v7662_v17 = vld [vmem:[#allocation2 + $0x8c] sm:$0x1] }
 0x135   : > { %7132 = vmatpush3.bf16.msra.mxu0 %v7512_v54  ;;  %v7524_v54 = vld [vmem:[%s9788_s3 + $0xf8] sm:$0xff]   ;;  %v2287_v35 = vrot.slane %v7662_v17, 5  ;;  %v4676_v63 = vld [vmem:[#allocation2 + $0x48] sm:$0xf] }
 0x136   : > { %7133 = vmatprep.subr.bf16.mxu0 %v7518_v43  ;;  %7102 = vmatmul.mubr.msk.bf16.gmra.mrb[4].mxu0 %vm1631_vm9, %v7509_v42  ;;  %v7658_v42 = vld [vmem:[#allocation2 + $0x68] sm:$0x1] }
 0x137   : > { %6918 = vmatmul.mubr.msk.bf16.gmra.mrb[20].mxu1 %vm1631_vm9, %v6172_v0  ;;  %v2263_v0 = vrot.slane %v8668_v60, 5  ;;  %7105 = vmatprep.mubr.msk.bf16.mxu0 %vm1631_vm9, %v7511_v34  ;;  %v8806_v60 = vsel %vm8239_vm13, %v2251_v56, %v2252_v46  ;;  %v2266_v3 = vrot.slane %v7658_v42, 5  ;;  %v7513_v34 = vld [vmem:[#allocation2 + $0x54] sm:$0xff]   ;;  %v2272_v46 = vrot.slane %v2270_v20, 4 }
 0x138   : > { %6921 = vmatprep.mubr.msk.bf16.mxu1 %vm1631_vm9, %v6173_v9  ;;  %v4729_v9 = vor.u32 %v4728_v55, %v8777_v14  ;;  %v8819_v55 = vsel %vm8239_vm13, %v2258_v4, %v2259_v39  ;;  %v4742_v56 = vrot.slane %v4740_v18, 5  ;;  %v4720_v42 = vrot.slane %v4719_v7, 4  ;;  %v2164_v39 = vld [vmem:[#allocation2 + $0x78] sm:$0xe]  ;;  %v4671_v7 = vld [vmem:[#allocation2 + $0x34] sm:$0xf] }
 0x139   : > { %7134 = vmatpush3.bf16.msra.mxu0 %v7518_v43  ;;  %v8815_v43 = vld [vmem:[%s9788_s3 + $0x100] sm:$0xff]   ;;  %v2265_v59 = vrot.slane %v2263_v0, 4  ;;  %v8835_v18 = vsel %vm8239_vm13, %v6205_v15, %v2263_v0  ;;  %v4756_v0 = vshll.u32 %v4669_v26, 16  ;;  %v8856_v62 = vsel %vm8239_vm13, %v2272_v46, %v2273_v24 }
 0x13a   : > { %7135 = vmatprep.subr.bf16.mxu0 %v7524_v54  ;;  %v4730_v52 = vrot.slane %v4729_v9, 4  ;;  %v6207_v15 = vrot.slane %v2164_v39, 9  ;;  %v4763_v24 = vrot.slane %v4761_v50, 4 }
 0x13b   : > { %v8847_v29 = vsel %vm8239_vm13, %v2265_v59, %v2266_v3  ;;  %v4764_v3 = vshll.u32 %v4670_v28, 16  ;;  %v7660_v59 = vld [vmem:[#allocation2 + $0x80] sm:$0x1]  ;;  %v4758_v26 = vrot.slane %v4756_v0, 5 }
 0x13c   : > { %v4735_v9 = vsel %vm7802_vm8, %v4730_v52, %v4734_v48  ;;  %v2280_v46 = vrot.slane %v7660_v59, 5  ;;  %v4674_v28 = vld [vmem:[#allocation2 + $0x40] sm:$0xf] }
 0x13d   : > { %7136 = vmatpush3.bf16.msra.mxu0 %v7524_v54  ;;  %v2277_v54 = vrot.slane %v8693_v58, 5  ;;  %v4743_v58 = vor.u32 %v4742_v56, %v4739_v31  ;;  %v4770_v31 = vshll.u32 %v4671_v7, 16  ;;  %v4774_v56 = vshrl.u32 %v4671_v7, 16 }
 0x13e   : > { %7169 = vmatprep.subr.bf16.mxu0 %v8815_v43  ;;  %7106 = vmatmul.mubr.msk.bf16.gmra.mrb[8].mxu0 %vm1631_vm9, %v7513_v34  ;;  %v4766_v0 = vrot.slane %v4764_v3, 5  ;;  %v9826_v7 = vcombine.low %v8554_v57, %v8558_v1  ;;  %v8893_v57 = vld [vmem:[#allocation2 + $0x38] sm:$0x1] }
 0x13f   : > { %6922 = vmatmul.mubr.msk.bf16.gmra.mrb[24].mxu1 %vm1631_vm9, %v6174_v10  ;;  %v8851_v10 = vsel %vm8239_vm13, %v6206_v5, %v2270_v20  ;;  %7109 = vmatprep.mubr.msk.bf16.mxu0 %vm1631_vm9, %v7514_v25  ;;  %v4725_v20 = vsel %vm7802_vm8, %v4720_v42, %v8777_v14  ;;  %v2279_v34 = vrot.slane %v2277_v54, 4  ;;  %v7515_v14 = vld [vmem:[#allocation2 + $0x6c] sm:$0xff]   ;;  %v4744_v48 = vrot.slane %v4743_v58, 4  ;;  %v7661_v42 = vld [vmem:[#allocation2 + $0x88] sm:$0xf]  ;;  %v7517_v5 = vld [vmem:[#allocation2 + $0x78] sm:$0xff]  }
 0x140   : > { %6925 = vmatprep.mubr.msk.bf16.mxu1 %vm1631_vm9, %v6175_v2  ;;  %v4753_v2 = vor.u32 %v4752_v27, %v8821_v44  ;;  %v4673_v27 = vld [vmem:[#allocation2 + $0x3c] sm:$0xf]  ;;  %v8869_v25 = vcombine.low %v4725_v20, %v4735_v9  ;;  %v2284_v39 = vrot.slane %v7661_v42, 5  ;;  %v8873_v59 = vsel %vm8239_vm13, %v6207_v15, %v2277_v54  ;;  %v8887_v20 = vld [vmem:[#allocation2 + $0x4c] sm:$0xf]  ;;  %9829 = vst [vmem:[#allocation7_spill] sm:$0xff] %v8893_v57 }
 0x141   : > { %v8881_v58 = vsel %vm8239_vm13, %v2279_v34, %v2280_v46  ;;  %v4785_v54 = vshrl.u32 %v4673_v27, 16  ;;  %v4788_v15 = vshll.u32 %v4673_v27, 16  ;;  %9827 = vst [vmem:[#allocation6_spill] sm:$0xff] %v8887_v20  ;;  %v9828_v9 = vcombine.low %v8698_v37, %v8702_v51 }
 0x142   : > { %v4754_v52 = vrot.slane %v4753_v2, 4  ;;  %v8885_v2 = vsel %vm8239_vm13, %v6208_v38, %v2284_v39  ;;  %v8895_v50 = vrot.slane %v4770_v31, 5  ;;  %v4776_v3 = vrot.slane %v4774_v56, 4 }
 0x143   : > { %v4794_v34 = vshll.u32 %v4674_v28, 16  ;;  %v4798_v46 = vshrl.u32 %v4674_v28, 16  ;;  %v4749_v38 = vsel %vm7802_vm8, %v4744_v48, %v8821_v44  ;;  %v4809_v42 = vshrl.u32 %v4676_v63, 16  ;;  %v4679_v28 = vld [vmem:[#allocation2 + $0x54] sm:$0xf] }
 0x144   : > { %v4759_v27 = vsel %vm7802_vm8, %v4754_v52, %v4758_v26  ;;  %v4812_v37 = vshll.u32 %v4676_v63, 16  ;;  %v2286_v51 = vrot.slane %v2284_v39, 4  ;;  %v4767_v17 = vor.u32 %v4766_v0, %v4763_v24  ;;  %v7522_v63 = vld [vmem:[%s9788_s3 + $0x68] sm:$0xff]   ;;  %v8915_v26 = vld [vmem:[#allocation2 + $0x44] sm:$0x1] }
 0x145   : > { %v4818_v31 = vshll.u32 %v8887_v20, 16  ;;  %v4822_v56 = vshrl.u32 %v8887_v20, 16  ;;  %v4787_v44 = vrot.slane %v4785_v54, 4  ;;  %v4790_v48 = vrot.slane %v4788_v15, 5  ;;  %9830 = vst [vmem:[#allocation8_spill] sm:$0xff] %v8915_v26 }
 0x146   : > { %7110 = vmatmul.mubr.msk.bf16.gmra.mrb[12].mxu0 %vm1631_vm9, %v7515_v14  ;;  %v4777_v24 = vor.u32 %v4776_v3, %v8895_v50  ;;  %v8917_v52 = vrot.slane %v4794_v34, 5  ;;  %v4800_v39 = vrot.slane %v4798_v46, 4  ;;  %v8919_v0 = vld [vmem:[#allocation2 + $0x90] sm:$0xe]  ;;  %v4811_v14 = vrot.slane %v4809_v42, 4 }
 0x147   : > { %6926 = vmatmul.mubr.msk.bf16.gmra.mrb[28].mxu1 %vm1631_vm9, %v9826_v7  ;;  %7113 = vmatprep.mubr.msk.bf16.mxu0 %vm1631_vm9, %v7517_v5  ;;  %v4780_v7 = vshll.u32 %v8893_v57, 16  ;;  %v8912_v5 = vcombine.low %v4749_v38, %v4759_v27  ;;  %v4814_v4 = vrot.slane %v4812_v37, 5  ;;  %v4833_v54 = vshrl.u32 %v4679_v28, 16  ;;  %v8925_v27 = vld [vmem:[#allocation2 + $0x50] sm:$0x1] }
 0x148   : > { %6937 = vmatprep.mubr.msk.bf16.mxu1 %vm1631_vm9, %v9828_v9  ;;  %v7519_v9 = vld [vmem:[#allocation2 + $0x84] sm:$0xff]   ;;  %v4836_v15 = vshll.u32 %v4679_v28, 16  ;;  %v8923_v57 = vsel %vm8239_vm13, %v2286_v51, %v2287_v35  ;;  %v4768_v38 = vrot.slane %v4767_v17, 4  ;;  %9831 = vst [vmem:[#allocation9_spill] sm:$0xff] %v8925_v27  ;;  %v8927_v3 = vrot.slane %v4818_v31, 5 }
 0x149   : > { %v4824_v41 = vrot.slane %v4822_v56, 4  ;;  %v9832_v34 = vcombine.low %v8723_v32, %v8727_v11  ;;  %v4782_v46 = vrot.slane %v4780_v7, 5  ;;  %v4791_v42 = vor.u32 %v4790_v48, %v4787_v44  ;;  %v7663_v28 = vld [vmem:[#allocation2 + $0x94] sm:$0xf]  ;;  %v7664_v17 = vld [vmem:[#allocation2 + $0xa0] sm:$0xf] }
 0x14a   : > { %v4804_v37 = vshll.u32 %v8915_v26, 16  ;;  %v2291_v20 = vrot.slane %v7663_v28, 5  ;;  %v9834_v35 = vcombine.low %v8733_v30, %v8737_v45  ;;  %v4778_v51 = vrot.slane %v4777_v24, 4  ;;  %v7528_v56 = vld [vmem:[%s9788_s3 + $0x70] sm:$0xff]  }
 0x14b   : > { %v4801_v32 = vor.u32 %v4800_v39, %v8917_v52  ;;  %v6209_v11 = vrot.slane %v8919_v0, 9  ;;  %v2298_v31 = vrot.slane %v7664_v17, 5  ;;  %v4815_v7 = vor.u32 %v4814_v4, %v4811_v14  ;;  %v7665_v4 = vld [vmem:[#allocation2 + $0x98] sm:$0x1]  ;;  %v7666_v17 = vld [vmem:[#allocation2 + $0xa4] sm:$0x1] }
 0x14c   : > { %v4828_v30 = vshll.u32 %v8925_v27, 16  ;;  %v4835_v45 = vrot.slane %v4833_v54, 4  ;;  %v4838_v44 = vrot.slane %v4836_v15, 5  ;;  %v4773_v48 = vsel %vm7802_vm8, %v4768_v38, %v8895_v50  ;;  %v8957_v38 = vld [vmem:[#allocation2 + $0x5c] sm:$0x1] }
 0x14d   : > { %v4825_v24 = vor.u32 %v4824_v41, %v8927_v3  ;;  %v4846_v39 = vshrl.u32 %v8934_v6, 16  ;;  %v4792_v0 = vrot.slane %v4791_v42, 4  ;;  %v2293_v28 = vrot.slane %v2291_v20, 4  ;;  %v7530_v42 = vld [vmem:[%s9788_s3 + $0x78] sm:$0xff]  }
 0x14e   : > { %7114 = vmatmul.mubr.msk.bf16.gmra.mrb[16].mxu0 %vm1631_vm9, %v7519_v9  ;;  %v4842_v9 = vshll.u32 %v8934_v6, 16  ;;  %v2294_v14 = vrot.slane %v7665_v4, 5  ;;  %v4802_v54 = vrot.slane %v4801_v32, 4  ;;  %v2301_v50 = vrot.slane %v7666_v17, 5  ;;  %v2168_v6 = vld [vmem:[#allocation2 + $0xa8] sm:$0xe] }
 0x14f   : > { %6938 = vmatmul.mubr.msk.bf16.vlgmr.msra.gmra.mrb[0].mxu1 %vm1631_vm9, %v9832_v34  ;;  %7117 = vmatprep.mubr.msk.bf16.mxu0 %vm1631_vm9, %v7520_v16  ;;  %v4806_v34 = vrot.slane %v4804_v37, 5  ;;  %v4783_v16 = vsel %vm7802_vm8, %v4778_v51, %v4782_v46  ;;  %v2300_v41 = vrot.slane %v2298_v31, 4  ;;  %v4816_v37 = vrot.slane %v4815_v7, 4 }
 0x150   : > { %6970 = vmatpush3.bf16.msra.mxu1 %v8649_v23  ;;  %6941 = vmatprep.mubr.msk.bf16.mxu1 %vm1631_vm9, %v9834_v35  ;;  %v2167_v23 = vld [vmem:[#allocation2 + $0x9c] sm:$0xe]  ;;  %v4830_v26 = vrot.slane %v4828_v30, 5  ;;  %v4839_v4 = vor.u32 %v4838_v44, %v4835_v45  ;;  %v4826_v27 = vrot.slane %v4825_v24, 4  ;;  %v8962_v12 = vrot.slane %v4842_v9, 5 }
 0x151   : > { %6971 = vmatprep.subr.bf16.mxu1 %v7522_v63  ;;  %v7521_v35 = vld [vmem:[#allocation2 + $0x9c] sm:$0xff]   ;;  %v6210_v15 = vrot.slane %v2167_v23, 9  ;;  %v4848_v46 = vrot.slane %v4846_v39, 4  ;;  %v2305_v51 = vrot.slane %v8524_v8, 5  ;;  %v9835_v32 = vcombine.low %v8741_v22, %v8746_v19  ;;  %v9009_v39 = vld [vmem:[#allocation2 + $0x64] sm:$0xf] }
 0x152   : > { %v8971_v17 = vcombine.low %v4773_v48, %v4783_v16  ;;  %v8975_v7 = vsel %vm8239_vm13, %v6209_v11, %v2291_v20  ;;  %v8979_v30 = vsel %vm8239_vm13, %v2293_v28, %v2294_v14  ;;  %v9836_v8 = vcombine.low %v8762_v40, %v8769_v49  ;;  %v4682_v45 = vld [vmem:[#allocation2 + $0x60] sm:$0xf]  ;;  %v2169_v48 = vld [vmem:[#allocation2 + $0xb4] sm:$0xe] }
 0x153   : > { %v4797_v22 = vsel %vm7802_vm8, %v4792_v0, %v8917_v52  ;;  %v4807_v19 = vsel %vm7802_vm8, %v4802_v54, %v4806_v34  ;;  %v4852_v20 = vshll.u32 %v8957_v38, 16  ;;  %v6211_v11 = vrot.slane %v2168_v6, 9  ;;  %v7667_v52 = vld [vmem:[#allocation2 + $0xb0] sm:$0x1]  ;;  %v9015_v34 = vld [vmem:[#allocation2 + $0x68] sm:$0x1] }
 0x154   : > { %6972 = vmatpush3.bf16.msra.mxu1 %v7522_v63  ;;  %v7523_v63 = vld [vmem:[#allocation2 + $0xa8] sm:$0xff]   ;;  %v8994_v44 = vsel %vm8239_vm13, %v6210_v15, %v2298_v31  ;;  %v8998_v40 = vsel %vm8239_vm13, %v2300_v41, %v2301_v50  ;;  %v4821_v49 = vsel %vm7802_vm8, %v4816_v37, %v8927_v3  ;;  %v4831_v6 = vsel %vm7802_vm8, %v4826_v27, %v4830_v26  ;;  %v9025_v15 = vld [vmem:[#allocation2 + $0x70] sm:$0xf]  ;;  %v7525_v50 = vld [vmem:[#allocation2 + $0xb4] sm:$0xff]  }
 0x155   : > { %6973 = vmatprep.subr.bf16.mxu1 %v7528_v56  ;;  %9837 = vst [vmem:[#allocation11_spill] sm:$0xff] %v8994_v44  ;;  %9838 = vst [vmem:[#allocation12_spill] sm:$0xff] %v8998_v40  ;;  %v9006_v24 = vrot.slane %v4839_v4, 4  ;;  %v4849_v31 = vor.u32 %v4848_v46, %v8962_v12  ;;  %v2307_v9 = vrot.slane %v2305_v51, 4  ;;  %v9011_v0 = vcombine.low %v4797_v22, %v4807_v19  ;;  %v4685_v54 = vld [vmem:[#allocation2 + $0x6c] sm:$0xf] }
 0x156   : > { %7118 = vmatmul.mubr.msk.bf16.gmra.mrb[20].mxu0 %vm1631_vm9, %v7521_v35  ;;  %9839 = vst [vmem:[#allocation13_spill] sm:$0xff] %v9015_v34  ;;  %v4857_v28 = vshrl.u32 %v4682_v45, 16  ;;  %v4860_v14 = vshll.u32 %v4682_v45, 16  ;;  %v9019_v26 = vrot.slane %v4852_v20, 5  ;;  %v9023_v27 = vsel %vm8239_vm13, %v6211_v11, %v2305_v51  ;;  %9841 = vst [vmem:[#allocation15_spill] sm:$0xff] %v9025_v15  ;;  %v7526_v51 = vld [vmem:[#allocation2 + $0xc0] sm:$0xff]  }
 0x157   : > { %6942 = vmatmul.mubr.msk.bf16.gmra.mrb[4].mxu1 %vm1631_vm9, %v9835_v32  ;;  %7121 = vmatprep.mubr.msk.bf16.mxu0 %vm1631_vm9, %v7523_v63  ;;  %9840 = vst [vmem:[#allocation14_spill] sm:$0xff] %v9023_v27  ;;  %v6212_v16 = vrot.slane %v2169_v48, 9  ;;  %v9027_v41 = vcombine.low %v4821_v49, %v4831_v6  ;;  %v2312_v37 = vrot.slane %v8558_v1, 5  ;;  %v4866_v4 = vshll.u32 %v9009_v39, 16  ;;  %v4688_v46 = vld [vmem:[#allocation2 + $0x78] sm:$0xf] }
 0x158   : > { %6945 = vmatprep.mubr.msk.bf16.mxu1 %vm1631_vm9, %v9836_v8  ;;  %6974 = vmatpush3.bf16.msra.mxu1 %v7528_v56  ;;  %v2308_v56 = vrot.slane %v7667_v52, 5  ;;  %v4870_v63 = vshrl.u32 %v9009_v39, 16  ;;  %v9042_v8 = vrot.slane %v4849_v31, 4  ;;  %v4876_v22 = vshll.u32 %v9015_v34, 16  ;;  %v9049_v19 = vld [vmem:[#allocation2 + $0x7c] sm:$0xf] }
 0x159   : > { %6975 = vmatprep.subr.bf16.mxu1 %v7530_v42  ;;  %9844 = vst [vmem:[#allocation18_spill] sm:$0xff] %v9049_v19  ;;  %v9845_v20 = vcombine.low %v8773_v36, %v8785_v47  ;;  %v9055_v11 = vrot.slane %v4857_v28, 4  ;;  %v9057_v45 = vrot.slane %v4860_v14, 5  ;;  %v4881_v49 = vshrl.u32 %v4685_v54, 16  ;;  %v4694_v35 = vld [vmem:[#allocation2 + $0x90] sm:$0xf] }
 0x15a   : > { %v9046_v1 = vsel %vm8239_vm13, %v2307_v9, %v2308_v56  ;;  %v4884_v52 = vshll.u32 %v4685_v54, 16  ;;  %v9846_v48 = vcombine.low %v8796_v13, %v8806_v60  ;;  %v4890_v56 = vshll.u32 %v9025_v15, 16  ;;  %v9090_v32 = vld [vmem:[#allocation2 + $0x94] sm:$0xf] }
 0x15b   : > { %9843 = vst [vmem:[#allocation17_spill] sm:$0xff] %v9046_v1  ;;  %v4894_v6 = vshrl.u32 %v9025_v15, 16  ;;  %v4905_v31 = vshrl.u32 %v4688_v46, 16  ;;  %v4908_v9 = vshll.u32 %v4688_v46, 16  ;;  %v9066_v36 = vrot.slane %v4866_v4, 5  ;;  %9848 = vst [vmem:[#allocation20_spill] sm:$0xff] %v9090_v32 }
 0x15c   : > { %6976 = vmatpush3.bf16.msra.mxu1 %v7530_v42  ;;  %v9035_v42 = vld [vmem:[%s9788_s3 + $0x80] sm:$0xff]   ;;  %v4872_v47 = vrot.slane %v4870_v63, 4  ;;  %v4914_v28 = vshll.u32 %v9049_v19, 16  ;;  %v4918_v14 = vshrl.u32 %v9049_v19, 16  ;;  %v9075_v60 = vsel %vm8239_vm13, %v6212_v16, %v2312_v37  ;;  %v9080_v46 = vld [vmem:[#allocation2 + $0x88] sm:$0xf] }
 0x15d   : > { %9842 = vst [vmem:[#allocation16_spill] sm:$0xff] %v9035_v42  ;;  %7209 = vmatprep.subr.bf16.mxu1 %v9035_v42  ;;  %v9077_v54 = vrot.slane %v2312_v37, 4  ;;  %v4691_v4 = vld [vmem:[#allocation2 + $0x84] sm:$0xf]  ;;  %9847 = vst [vmem:[#allocation19_spill] sm:$0xff] %v9080_v46  ;;  %v7527_v63 = vld [vmem:[#allocation2 + $0xcc] sm:$0xff]   ;;  %v9851_v1 = vcombine.low %v8810_v53, %v8819_v55 }
 0x15e   : > { %7122 = vmatmul.mubr.msk.bf16.gmra.mrb[24].mxu0 %vm1631_vm9, %v7525_v50  ;;  %v4886_v13 = vrot.slane %v4884_v52, 5  ;;  %v9088_v16 = vrot.slane %v4890_v56, 5  ;;  %v4896_v37 = vrot.slane %v4894_v6, 4  ;;  %v4907_v3 = vrot.slane %v4905_v31, 4  ;;  %v9095_v19 = vld [vmem:[#allocation2 + $0x74] sm:$0x1] }
 0x15f   : > { %6946 = vmatmul.mubr.msk.bf16.gmra.mrb[8].mxu1 %vm1631_vm9, %v9845_v20  ;;  %7125 = vmatprep.mubr.msk.bf16.mxu0 %vm1631_vm9, %v7526_v51  ;;  %v9086_v20 = vrot.slane %v4876_v22, 5  ;;  %v4910_v23 = vrot.slane %v4908_v9, 5  ;;  %v4863_v50 = vor.u32 %v9057_v45, %v9055_v11  ;;  %v4873_v42 = vor.u32 %v4872_v47, %v9066_v36  ;;  %9849 = vst [vmem:[#allocation21_spill] sm:$0xff] %v9095_v19  ;;  %v9097_v51 = vld [vmem:[#allocation2 + $0x80] sm:$0x1] }
 0x160   : > { %6949 = vmatprep.mubr.msk.bf16.mxu1 %vm1631_vm9, %v9846_v48  ;;  %v4883_v48 = vrot.slane %v4881_v49, 4  ;;  %9850 = vst [vmem:[#allocation22_spill] sm:$0xff] %v9097_v51  ;;  %v9099_v22 = vrot.slane %v4914_v28, 5  ;;  %v4920_v49 = vrot.slane %v4918_v14, 4  ;;  %v4929_v52 = vshrl.u32 %v4691_v4, 16 }
 0x161   : > { %v4932_v56 = vshll.u32 %v4691_v4, 16  ;;  %v4938_v6 = vshll.u32 %v9080_v46, 16  ;;  %v4942_v31 = vshrl.u32 %v9080_v46, 16  ;;  %v4697_v9 = vld [vmem:[#allocation2 + $0x9c] sm:$0xf]  ;;  %v4953_v11 = vshrl.u32 %v4694_v35, 16 }
 0x162   : > { %v4956_v45 = vshll.u32 %v4694_v35, 16  ;;  %v4962_v47 = vshll.u32 %v9090_v32, 16  ;;  %v4966_v28 = vshrl.u32 %v9090_v32, 16  ;;  %v9852_v14 = vcombine.low %v8835_v18, %v8847_v29 }
 0x163   : > { %v4887_v4 = vor.u32 %v4886_v13, %v4883_v48  ;;  %v4897_v46 = vor.u32 %v4896_v37, %v9088_v16  ;;  %v4900_v27 = vshll.u32 %v9095_v19, 16  ;;  %v4911_v40 = vor.u32 %v4910_v23, %v4907_v3  ;;  %v9122_v48 = vld [vmem:[#allocation2 + $0x8c] sm:$0x1] }
 0x164   : > { %v4921_v53 = vor.u32 %v4920_v49, %v9099_v22  ;;  %v4924_v55 = vshll.u32 %v9097_v51, 16  ;;  %v4977_v35 = vshrl.u32 %v4697_v9, 16  ;;  %v4931_v18 = vrot.slane %v4929_v52, 4  ;;  %v9128_v52 = vld [vmem:[#allocation2 + $0xa0] sm:$0xf] }
 0x165   : > { %v4934_v29 = vrot.slane %v4932_v56, 5  ;;  %v4944_v13 = vrot.slane %v4942_v31, 4  ;;  %v4955_v37 = vrot.slane %v4953_v11, 4  ;;  %v4958_v23 = vrot.slane %v4956_v45, 5 }
 0x166   : > { %7126 = vmatmul.mubr.msk.bf16.gmra.mrb[28].mxu0 %vm1631_vm9, %v7527_v63  ;;  %v9124_v3 = vrot.slane %v4962_v47, 5  ;;  %v4968_v63 = vrot.slane %v4966_v28, 4  ;;  %v4864_v49 = vrot.slane %v4863_v50, 4  ;;  %v4874_v32 = vrot.slane %v4873_v42, 4 }
 0x167   : > { %6950 = vmatmul.mubr.msk.bf16.gmra.mrb[12].mxu1 %vm1631_vm9, %v9851_v1  ;;  %v4980_v1 = vshll.u32 %v4697_v9, 16  ;;  %7137 = vmatprep.mubr.msk.bf16.mxu0 %vm1631_vm9, %v8869_v25  ;;  %v4888_v51 = vrot.slane %v4887_v4, 4  ;;  %v4902_v19 = vrot.slane %v4900_v27, 5  ;;  %v9126_v9 = vld [vmem:[#allocation2 + $0x98] sm:$0x1]  ;;  %v4898_v44 = vrot.slane %v4897_v46, 4 }
 0x168   : > { %6953 = vmatprep.mubr.msk.bf16.mxu1 %vm1631_vm9, %v9852_v14  ;;  %v9120_v14 = vrot.slane %v4938_v6, 5  ;;  %v4912_v25 = vrot.slane %v4911_v40, 4  ;;  %v4979_v56 = vrot.slane %v4977_v35, 4  ;;  %v4922_v31 = vrot.slane %v4921_v53, 4  ;;  %v7531_v27 = vld [vmem:[%s9788_s3 + $0x108] sm:$0xff]  }
 0x169   : > { %v4982_v6 = vrot.slane %v4980_v1, 5  ;;  %v4926_v15 = vrot.slane %v4924_v55, 5  ;;  %v4935_v34 = vor.u32 %v4934_v29, %v4931_v18  ;;  %v4948_v11 = vshll.u32 %v9122_v48, 16  ;;  %v9207_v29 = vld [vmem:[#allocation2 + $0xac] sm:$0xf] }
 0x16a   : > { %v9853_v45 = vcombine.low %v8851_v10, %v8856_v62  ;;  %v4945_v40 = vor.u32 %v4944_v13, %v9120_v14  ;;  %v4959_v42 = vor.u32 %v4958_v23, %v4955_v37  ;;  %v4969_v50 = vor.u32 %v4968_v63, %v9124_v3  ;;  %v5422_v23 = vld [vmem:[#allocation2 + $0x48] sm:$0xe] }
 0x16b   : > { %v4972_v46 = vshll.u32 %v9126_v9, 16  ;;  %v9854_v47 = vcombine.low %v8873_v59, %v8881_v58  ;;  %v9855_v10 = vrot.slane %v8563_v61, 5  ;;  %v4869_v28 = vsel %vm7802_vm8, %v4864_v49, %v9066_v36  ;;  %v9878_v49 = vld [vmem:[#allocation19_spill] sm:$0xff] }
 0x16c   : > { %v4986_v4 = vshll.u32 %v9128_v52, 16  ;;  %v4990_v53 = vshrl.u32 %v9128_v52, 16  ;;  %v4879_v61 = vsel %vm7802_vm8, %v4874_v32, %v9086_v20  ;;  %v4893_v59 = vsel %vm7802_vm8, %v4888_v51, %v9088_v16 }
 0x16d   : > { %v9150_v62 = vsel %vm8239_vm13, %v9077_v54, %v9855_v10  ;;  %v4903_v58 = vsel %vm7802_vm8, %v4898_v44, %v4902_v19  ;;  %v9167_v54 = vld [vmem:[#allocation2 + $0xa4] sm:$0x1]  ;;  %v4983_v36 = vor.u32 %v4982_v6, %v4979_v56  ;;  %v4927_v32 = vsel %vm7802_vm8, %v4922_v31, %v4926_v15  ;;  %v4700_v44 = vld [vmem:[#allocation2 + $0xa8] sm:$0xf]  ;;  %v9859_v6 = vld [vmem:[#allocation3_spill] sm:$0xff] }
 0x16e   : > { %7138 = vmatmul.mubr.msk.bf16.vlgmr.msra.gmra.mrb[0].mxu0 %vm1631_vm9, %v8912_v5  ;;  %v4917_v5 = vsel %vm7802_vm8, %v4912_v25, %v9099_v22  ;;  %v9177_v20 = vrot.slane %v4935_v34, 4  ;;  %v9179_v51 = vrot.slane %v4948_v11, 5  ;;  %v9184_v19 = vrot.slane %v4945_v40, 4  ;;  %v9223_v25 = vld [vmem:[#allocation2 + $0xb4] sm:$0xf]  ;;  %v9858_v56 = vld [vmem:[#allocation4_spill] sm:$0xff] }
 0x16f   : > { %6954 = vmatmul.mubr.msk.bf16.gmra.mrb[16].mxu1 %vm1631_vm9, %v9853_v45  ;;  %7170 = vmatpush3.bf16.msra.mxu0 %v8815_v43  ;;  %v7534_v43 = vld [vmem:[%s9788_s3 + $0x110] sm:$0xff]   ;;  %v9188_v16 = vrot.slane %v4969_v50, 4  ;;  %v9190_v22 = vrot.slane %v4972_v46, 5  ;;  %v9856_v34 = vsel %vm7802_vm8, %v9042_v8, %v9019_v26  ;;  %v9857_v15 = vsel %vm7802_vm8, %v9006_v24, %v8962_v12 }
 0x170   : > { %6957 = vmatprep.mubr.msk.bf16.mxu1 %vm1631_vm9, %v9854_v47  ;;  %7141 = vmatprep.mubr.msk.bf16.mxu0 %vm1631_vm9, %v8971_v17  ;;  %v9186_v17 = vrot.slane %v4959_v42, 4  ;;  %v9202_v55 = vcombine.low %v9857_v15, %v9856_v34  ;;  %v9204_v35 = vrot.slane %v4986_v4, 5  ;;  %v4992_v1 = vrot.slane %v4990_v53, 4  ;;  %v9246_v50 = vld [vmem:[#allocation2 + $0xb0] sm:$0x1] }
 0x171   : > { %7171 = vmatprep.subr.bf16.mxu0 %v7531_v27  ;;  %v4996_v18 = vshll.u32 %v9167_v54, 16  ;;  %v6236_v13 = vcombine.low %v9075_v60, %v9150_v62  ;;  %v9211_v37 = vrot.slane %v4983_v36, 4  ;;  %v5001_v26 = vshrl.u32 %v4700_v44, 16  ;;  %v5424_v53 = vld [vmem:[#allocation2 + $0x60] sm:$0xe]  ;;  %v9863_v36 = vld [vmem:[#allocation6_spill] sm:$0xff] }
 0x172   : > { %v5004_v8 = vshll.u32 %v4700_v44, 16  ;;  %v9213_v63 = vcombine.low %v4869_v28, %v4879_v61  ;;  %v9215_v12 = vcombine.low %v4893_v59, %v4903_v58  ;;  %v9217_v24 = vcombine.low %v4917_v5, %v4927_v32  ;;  %v9864_v32 = vld [vmem:[#allocation9_spill] sm:$0xff]  ;;  %v9357_v42 = vld [vmem:[#allocation2 + $0xc4] sm:$0xf] }
 0x173   : > { %7172 = vmatpush3.bf16.msra.mxu0 %v7531_v27  ;;  %v9860_v31 = vor.u32 %v9858_v56, %v9859_v6  ;;  %v9861_v45 = vcombine.low %v8885_v2, %v8923_v57  ;;  %v4951_v27 = vsel %vm7802_vm8, %v9184_v19, %v9179_v51  ;;  %v7539_v2 = vld [vmem:[%s9788_s3 + $0x118] sm:$0xff]   ;;  %v5423_v57 = vld [vmem:[#allocation2 + $0x54] sm:$0xe]  ;;  %v9862_v46 = vcombine.low %v8975_v7, %v8979_v30  ;;  %v5425_v34 = vld [vmem:[#allocation2 + $0x6c] sm:$0xe] }
 0x174   : > { %7173 = vmatprep.subr.bf16.mxu0 %v7534_v43  ;;  %v4993_v47 = vor.u32 %v4992_v1, %v9204_v35  ;;  %v9256_v10 = vrot.slane %v4996_v18, 5  ;;  %v5010_v28 = vshll.u32 %v9207_v29, 16  ;;  %v6497_v4 = vrot.slane %v5422_v23, 9  ;;  %v9865_v1 = vld [vmem:[#allocation10_spill] sm:$0xff] }
 0x175   : > { %v9228_v11 = vrot.slane %v9860_v31, 4  ;;  %v5003_v59 = vrot.slane %v5001_v26, 4  ;;  %v5006_v7 = vrot.slane %v5004_v8, 5  ;;  %v5014_v30 = vshrl.u32 %v9207_v29, 16 }
 0x176   : > { %7142 = vmatmul.mubr.msk.bf16.gmra.mrb[4].mxu0 %vm1631_vm9, %v9011_v0  ;;  %v5020_v58 = vshll.u32 %v9246_v50, 16  ;;  %v5512_v5 = vrot.slane %v9863_v36, 5  ;;  %v5515_v44 = vrot.slane %v9864_v32, 5  ;;  %v6498_v0 = vrot.slane %v5423_v57, 9  ;;  %v9866_v57 = vld [vmem:[#allocation13_spill] sm:$0xff]  ;;  %v9869_v32 = vld [vmem:[#allocation12_spill] sm:$0xff] }
 0x177   : > { %6958 = vmatmul.mubr.msk.bf16.gmra.mrb[20].mxu1 %vm1631_vm9, %v9861_v45  ;;  %7145 = vmatprep.mubr.msk.bf16.mxu0 %vm1631_vm9, %v9027_v41  ;;  %v5025_v15 = vshrl.u32 %v9223_v25, 16  ;;  %v5519_v18 = vrot.slane %v9865_v1, 5  ;;  %v5522_v26 = vrot.slane %v8957_v38, 5  ;;  %v6499_v8 = vrot.slane %v5424_v53, 9  ;;  %v9867_v53 = vld [vmem:[#allocation15_spill] sm:$0xff] }
 0x178   : > { %6961 = vmatprep.mubr.msk.bf16.mxu1 %vm1631_vm9, %v9862_v46  ;;  %7174 = vmatpush3.bf16.msra.mxu0 %v7534_v43  ;;  %v9274_v23 = vrot.slane %v4993_v47, 4  ;;  %v9278_v41 = vsel %vm8239_vm13, %v6497_v4, %v5512_v5  ;;  %v5514_v43 = vrot.slane %v5512_v5, 4  ;;  %v5526_v56 = vrot.slane %v9009_v39, 5  ;;  %v9868_v5 = vld [vmem:[#allocation11_spill] sm:$0xff] }
 0x179   : > { %7175 = vmatprep.subr.bf16.mxu0 %v7539_v2  ;;  %v9283_v31 = vsel %vm8239_vm13, %v6498_v0, %v5519_v18  ;;  %v5521_v45 = vrot.slane %v5519_v18, 4  ;;  %v5529_v46 = vrot.slane %v9866_v57, 5  ;;  %v6500_v36 = vrot.slane %v5425_v34, 9  ;;  %v9871_v34 = vld [vmem:[#allocation21_spill] sm:$0xff] }
 0x17a   : > { %v9288_v38 = vsel %vm8239_vm13, %v5514_v43, %v5515_v44  ;;  %v9292_v47 = vsel %vm8239_vm13, %v6499_v8, %v5526_v56  ;;  %v5528_v4 = vrot.slane %v5526_v56, 4  ;;  %v5533_v39 = vrot.slane %v9867_v53, 5  ;;  %v3052_v8 = vld [vmem:[#allocation2 + $0x78] sm:$0xf]  ;;  %v9872_v43 = vld [vmem:[#allocation14_spill] sm:$0xff]  ;;  %v9873_v56 = vld [vmem:[#allocation17_spill] sm:$0xff] }
 0x17b   : > { %v9870_v0 = vcombine.low %v9868_v5, %v9869_v32  ;;  %v5007_v1 = vor.u32 %v5006_v7, %v5003_v59  ;;  %v9303_v44 = vsel %vm8239_vm13, %v5521_v45, %v5522_v26  ;;  %v5536_v18 = vrot.slane %v9871_v34, 5  ;;  %v9310_v53 = vld [vmem:[#allocation2 + $0xb8] sm:$0xf] }
 0x17c   : > { %7176 = vmatpush3.bf16.msra.mxu0 %v7539_v2  ;;  %v9874_v57 = vcombine.low %v9872_v43, %v9873_v56  ;;  %v9316_v7 = vsel %vm8239_vm13, %v5528_v4, %v5529_v46  ;;  %v9320_v26 = vsel %vm8239_vm13, %v6500_v36, %v5533_v39  ;;  %v5535_v45 = vrot.slane %v5533_v39, 4  ;;  %v5427_v56 = vld [vmem:[#allocation2 + $0x84] sm:$0xe]  ;;  %v9876_v2 = vld [vmem:[#allocation18_spill] sm:$0xff] }
 0x17d   : > { %v9324_v5 = vrot.slane %v5010_v28, 5  ;;  %v5016_v32 = vrot.slane %v5014_v30, 4  ;;  %v9331_v46 = vrot.slane %v5020_v58, 5  ;;  %v9333_v4 = vrot.slane %v5025_v15, 4  ;;  %v5426_v28 = vld [vmem:[#allocation2 + $0x78] sm:$0xe] }
 0x17e   : > { %7146 = vmatmul.mubr.msk.bf16.gmra.mrb[8].mxu0 %vm1631_vm9, %v9202_v55  ;;  %v9337_v36 = vsel %vm8239_vm13, %v5535_v45, %v5536_v18  ;;  %v3290_v55 = vshrl.u32 %v3052_v8, 16  ;;  %v5034_v30 = vshll.u32 %v9310_v53, 16  ;;  %v3293_v43 = vshll.u32 %v3052_v8, 16  ;;  %v4706_v18 = vld [vmem:[#allocation2 + $0xc0] sm:$0xf]  ;;  %v9875_v45 = vld [vmem:[#allocation5_spill] sm:$0xff] }
 0x17f   : > { %6962 = vmatmul.mubr.msk.bf16.gmra.mrb[24].mxu1 %vm1631_vm9, %v9870_v0  ;;  %v5028_v0 = vshll.u32 %v9223_v25, 16  ;;  %7149 = vmatprep.mubr.msk.bf16.mxu0 %vm1631_vm9, %v9213_v63  ;;  %v5038_v25 = vshrl.u32 %v9310_v53, 16  ;;  %v7532_v63 = vld [vmem:[#allocation2 + $0xc] sm:$0xff]   ;;  %v4999_v58 = vsel %vm7802_vm8, %v9274_v23, %v9256_v10  ;;  %v9347_v15 = vrot.slane %v5007_v1, 4 }
 0x180   : > { %6965 = vmatprep.mubr.msk.bf16.mxu1 %vm1631_vm9, %v9874_v57  ;;  %v3292_v57 = vrot.slane %v3290_v55, 4  ;;  %v3312_v34 = vsel %vm7802_vm8, %v9228_v11, %v9875_v45  ;;  %v5017_v59 = vor.u32 %v5016_v32, %v9324_v5  ;;  %v3295_v39 = vrot.slane %v3293_v43, 5  ;;  %v9877_v10 = vld [vmem:[#allocation22_spill] sm:$0xff] }
 0x181   : > { %v6501_v8 = vrot.slane %v5426_v28, 9  ;;  %v5540_v61 = vrot.slane %v9876_v2, 5  ;;  %v9355_v40 = vrot.slane %v5028_v0, 5  ;;  %v5543_v23 = vrot.slane %v9877_v10, 5  ;;  %v9370_v0 = vld [vmem:[#allocation2 + $0xbc] sm:$0x1] }
 0x182   : > { %v6502_v1 = vrot.slane %v5427_v56, 9  ;;  %v5547_v55 = vrot.slane %v9878_v49, 5  ;;  %v5049_v11 = vshrl.u32 %v4706_v18, 16  ;;  %v3296_v32 = vor.u32 %v3295_v39, %v3292_v57  ;;  %v7533_v57 = vld [vmem:[#allocation2 + $0x18] sm:$0xff]  }
 0x183   : > { %v9367_v28 = vsel %vm8239_vm13, %v6501_v8, %v5540_v61  ;;  %v5542_v2 = vrot.slane %v5540_v61, 4  ;;  %v5052_v43 = vshll.u32 %v4706_v18, 16  ;;  %v5550_v60 = vrot.slane %v9122_v48, 5 }
 0x184   : > { %v9374_v49 = vsel %vm8239_vm13, %v6502_v1, %v5547_v55  ;;  %v5549_v56 = vrot.slane %v5547_v55, 4  ;;  %v5058_v62 = vshll.u32 %v9357_v42, 16  ;;  %v3297_v61 = vrot.slane %v3296_v32, 4 }
 0x185   : > { %v9383_v39 = vsel %vm8239_vm13, %v5542_v2, %v5543_v23  ;;  %v5040_v18 = vrot.slane %v5038_v25, 4  ;;  %v5018_v45 = vrot.slane %v5017_v59, 4  ;;  %v5044_v8 = vshll.u32 %v9370_v0, 16  ;;  %v9401_v25 = vld [vmem:[#allocation2 + $0xc8] sm:$0x1] }
 0x186   : > { %7150 = vmatmul.mubr.msk.bf16.gmra.mrb[12].mxu0 %vm1631_vm9, %v9215_v12  ;;  %v6525_v48 = vcombine.low %v9367_v28, %v9383_v39  ;;  %v9393_v12 = vsel %vm8239_vm13, %v5549_v56, %v5550_v60  ;;  %v3302_v10 = vsel %vm7802_vm8, %v3297_v61, %v9859_v6  ;;  %v5051_v23 = vrot.slane %v5049_v11, 4  ;;  %v4709_v56 = vld [vmem:[#allocation2 + $0xcc] sm:$0xf]  ;;  %v9417_v60 = vld [vmem:[#allocation2 + $0xd0] sm:$0xf] }
 0x187   : > { %6966 = vmatmul.mubr.msk.bf16.gmra.mrb[28].mxu1 %vm1631_vm9, %v6236_v13  ;;  %v5062_v13 = vshrl.u32 %v9357_v42, 16  ;;  %7153 = vmatprep.mubr.msk.bf16.mxu0 %vm1631_vm9, %v9217_v24  ;;  %v6526_v24 = vcombine.low %v9374_v49, %v9393_v12  ;;  %v5054_v1 = vrot.slane %v5052_v43, 5  ;;  %v9403_v55 = vcombine.low %v3302_v10, %v3312_v34  ;;  %v5428_v43 = vld [vmem:[#allocation2 + $0x90] sm:$0xe] }
 0x188   : > { %6977 = vmatprep.mubr.msk.bf16.mxu1 %vm1631_vm9, %v7532_v63  ;;  %v9387_v63 = vrot.slane %v5034_v30, 5  ;;  %v7535_v30 = vld [vmem:[#allocation2 + $0x24] sm:$0xff]   ;;  %v9879_v6 = vsel %vm7802_vm8, %v9177_v20, %v9120_v14  ;;  %v9415_v32 = vrot.slane %v5058_v62, 5  ;;  %v9880_v34 = vsel %vm7802_vm8, %v9188_v16, %v9190_v22  ;;  %v5429_v62 = vld [vmem:[#allocation2 + $0x9c] sm:$0xe] }
 0x189   : > { %v6466_v59 = vcombine.low %v9879_v6, %v4951_v27  ;;  %v5064_v2 = vrot.slane %v5062_v13, 4  ;;  %v9881_v51 = vsel %vm7802_vm8, %v9186_v17, %v9124_v3  ;;  %v9882_v14 = vsel %vm7802_vm8, %v9211_v37, %v9204_v35  ;;  %v9883_v35 = vld [vmem:[#allocation16_spill] sm:$0xff] }
 0x18a   : > { %v6467_v19 = vcombine.low %v9881_v51, %v9880_v34  ;;  %v6468_v20 = vcombine.low %v9882_v14, %v4999_v58  ;;  %v5031_v27 = vor.u32 %v9355_v40, %v9333_v4  ;;  %v5041_v11 = vor.u32 %v5040_v18, %v9387_v63  ;;  %v9884_v13 = vld [vmem:[#allocation20_spill] sm:$0xff] }
 0x18b   : > { %v5013_v3 = vsel %vm7802_vm8, %v9347_v15, %v9324_v5  ;;  %v5023_v17 = vsel %vm7802_vm8, %v5018_v45, %v9331_v46  ;;  %v9445_v16 = vrot.slane %v5044_v8, 5  ;;  %v5068_v22 = vshll.u32 %v9401_v25, 16  ;;  %v7669_v5 = vld [vmem:[%s9788_s3 + $0x88] sm:$0xff]  }
 0x18c   : > { %v5055_v37 = vor.u32 %v5054_v1, %v5051_v23  ;;  %v5073_v40 = vshrl.u32 %v4709_v56, 16  ;;  %v5076_v4 = vshll.u32 %v4709_v56, 16  ;;  %v5082_v58 = vshll.u32 %v9417_v60, 16 }
 0x18d   : > { %v5065_v46 = vor.u32 %v5064_v2, %v9415_v32  ;;  %v6503_v15 = vrot.slane %v5428_v43, 9  ;;  %v5554_v61 = vrot.slane %v9884_v13, 5  ;;  %v5557_v18 = vrot.slane %v9126_v9, 5  ;;  %v7537_v2 = vld [vmem:[#allocation2 + $0x3c] sm:$0xff]   ;;  %v7538_v13 = vld [vmem:[#allocation2 + $0x48] sm:$0xff]  }
 0x18e   : > { %7154 = vmatmul.mubr.msk.bf16.gmra.mrb[16].mxu0 %vm1631_vm9, %v6466_v59  ;;  %v5032_v45 = vrot.slane %v5031_v27, 4  ;;  %v5042_v8 = vrot.slane %v5041_v11, 4  ;;  %v5086_v10 = vshrl.u32 %v9417_v60, 16  ;;  %v5070_v23 = vrot.slane %v5068_v22, 5  ;;  %v7670_v11 = vld [vmem:[%s9788_s3 + $0x90] sm:$0xff]  }
 0x18f   : > { %6978 = vmatmul.mubr.msk.bf16.vlgmr.msra.gmra.mrb[0].mxu1 %vm1631_vm9, %v7533_v57  ;;  %7157 = vmatprep.mubr.msk.bf16.mxu0 %vm1631_vm9, %v6467_v19  ;;  %v6469_v57 = vcombine.low %v5013_v3, %v5023_v17  ;;  %v9462_v1 = vsel %vm8239_vm13, %v6503_v15, %v5554_v61  ;;  %v5556_v6 = vrot.slane %v5554_v61, 4  ;;  %v6504_v59 = vrot.slane %v5429_v62, 9  ;;  %v9475_v3 = vld [vmem:[#allocation2 + $0xd4] sm:$0x1] }
 0x190   : > { %7213 = vmatpush3.bf16.msra.mxu1 %v9883_v35  ;;  %6981 = vmatprep.mubr.msk.bf16.mxu1 %vm1631_vm9, %v7535_v30  ;;  %v7536_v30 = vld [vmem:[#allocation2 + $0x30] sm:$0xff]   ;;  %v5056_v56 = vrot.slane %v5055_v37, 4  ;;  %v5075_v34 = vrot.slane %v5073_v40, 4  ;;  %v5561_v9 = vrot.slane %v9128_v52, 5  ;;  %v5564_v51 = vrot.slane %v9167_v54, 5 }
 0x191   : > { %7210 = vmatprep.subr.bf16.mxu1 %v7669_v5  ;;  %v5066_v19 = vrot.slane %v5065_v46, 4  ;;  %v5078_v14 = vrot.slane %v5076_v4, 5  ;;  %v9466_v27 = vrot.slane %v5082_v58, 5  ;;  %v9473_v43 = vsel %vm8239_vm13, %v5556_v6, %v5557_v18  ;;  %v7671_v58 = vld [vmem:[%s9788_s3 + $0x98] sm:$0xff]   ;;  %v5431_v6 = vld [vmem:[#allocation2 + $0xb4] sm:$0xe] }
 0x192   : > { %v5088_v17 = vrot.slane %v5086_v10, 4  ;;  %v6527_v52 = vcombine.low %v9462_v1, %v9473_v43  ;;  %v9481_v54 = vsel %vm8239_vm13, %v6504_v59, %v5561_v9  ;;  %v5563_v22 = vrot.slane %v5561_v9, 4  ;;  %v7540_v61 = vld [vmem:[#allocation2 + $0x54] sm:$0xff]   ;;  %v7672_v18 = vld [vmem:[#allocation2 + $0x1c] sm:$0xf] }
 0x193   : > { %v5037_v37 = vsel %vm7802_vm8, %v5032_v45, %v9387_v63  ;;  %v5079_v40 = vor.u32 %v5078_v14, %v5075_v34  ;;  %v5092_v4 = vshll.u32 %v9475_v3, 16  ;;  %v5061_v63 = vsel %vm7802_vm8, %v5056_v56, %v9415_v32  ;;  %v5418_v10 = vld [vmem:[#allocation2 + $0x18] sm:$0xe] }
 0x194   : > { %7214 = vmatpush3.bf16.msra.mxu1 %v7669_v5  ;;  %v9487_v35 = vsel %vm8239_vm13, %v5563_v22, %v5564_v51  ;;  %v5430_v5 = vld [vmem:[#allocation2 + $0xa8] sm:$0xe]  ;;  %v5071_v46 = vsel %vm7802_vm8, %v5066_v19, %v5070_v23  ;;  %v5089_v15 = vor.u32 %v5088_v17, %v9466_v27  ;;  %v5484_v45 = vrot.slane %v7672_v18, 5  ;;  %v7673_v19 = vld [vmem:[#allocation2 + $0x20] sm:$0x1] }
 0x195   : > { %7211 = vmatprep.subr.bf16.mxu1 %v7670_v11  ;;  %v6528_v62 = vcombine.low %v9481_v54, %v9487_v35  ;;  %v5080_v59 = vrot.slane %v5079_v40, 4  ;;  %v5571_v34 = vrot.slane %v9246_v50, 5  ;;  %v6493_v9 = vrot.slane %v5418_v10, 9  ;;  %v7674_v17 = vld [vmem:[#allocation2 + $0x28] sm:$0xf]  ;;  %v7542_v10 = vld [vmem:[#allocation2 + $0x6c] sm:$0xff]  }
 0x196   : > { %7158 = vmatmul.mubr.msk.bf16.gmra.mrb[20].mxu0 %vm1631_vm9, %v6468_v20  ;;  %v5047_v20 = vsel %vm7802_vm8, %v5042_v8, %v9445_v16  ;;  %v6471_v8 = vcombine.low %v5061_v63, %v5071_v46  ;;  %v5090_v32 = vrot.slane %v5089_v15, 4  ;;  %v5486_v51 = vrot.slane %v5484_v45, 4  ;;  %v7541_v15 = vld [vmem:[#allocation2 + $0x60] sm:$0xff]  }
 0x197   : > { %6982 = vmatmul.mubr.msk.bf16.gmra.mrb[4].mxu1 %vm1631_vm9, %v7536_v30  ;;  %7161 = vmatprep.mubr.msk.bf16.mxu0 %vm1631_vm9, %v6469_v57  ;;  %v6505_v57 = vrot.slane %v5430_v5, 9  ;;  %v5568_v30 = vrot.slane %v9207_v29, 5  ;;  %v6470_v16 = vcombine.low %v5037_v37, %v5047_v20  ;;  %v5487_v14 = vrot.slane %v7673_v19, 5  ;;  %v5433_v19 = vld [vmem:[#allocation2 + $0xcc] sm:$0xe] }
 0x198   : > { %6985 = vmatprep.mubr.msk.bf16.mxu1 %vm1631_vm9, %v7537_v2  ;;  %7215 = vmatpush3.bf16.msra.mxu1 %v7670_v11  ;;  %v5094_v2 = vrot.slane %v5092_v4, 5  ;;  %v6506_v29 = vrot.slane %v5431_v6, 9  ;;  %v5419_v11 = vld [vmem:[#allocation2 + $0x24] sm:$0xe]  ;;  %v5491_v22 = vrot.slane %v7674_v17, 5  ;;  %v5575_v40 = vrot.slane %v9310_v53, 5 }
 0x199   : > { %7212 = vmatprep.subr.bf16.mxu1 %v7671_v58  ;;  %v9512_v23 = vsel %vm8239_vm13, %v6505_v57, %v5568_v30  ;;  %v5570_v56 = vrot.slane %v5568_v30, 4  ;;  %v5578_v50 = vrot.slane %v9370_v0, 5  ;;  %v5420_v4 = vld [vmem:[#allocation2 + $0x30] sm:$0xe]  ;;  %v5085_v63 = vsel %vm7802_vm8, %v5080_v59, %v9466_v27  ;;  %v7676_v30 = vld [vmem:[#allocation2 + $0x2c] sm:$0x1] }
 0x19a   : > { %v5095_v46 = vsel %vm7802_vm8, %v5090_v32, %v5094_v2  ;;  %v9534_v53 = vsel %vm8239_vm13, %v6506_v29, %v5575_v40  ;;  %v5577_v0 = vrot.slane %v5575_v40, 4  ;;  %v6494_v18 = vrot.slane %v5419_v11, 9  ;;  %v9885_v32 = vld [vmem:[#allocation7_spill] sm:$0xff]  ;;  %v7677_v11 = vld [vmem:[#allocation2 + $0x40] sm:$0xf] }
 0x19b   : > { %v9519_v37 = vsel %vm8239_vm13, %v5570_v56, %v5571_v34  ;;  %v5493_v57 = vrot.slane %v5491_v22, 4  ;;  %v5494_v27 = vrot.slane %v7676_v30, 5  ;;  %v6495_v6 = vrot.slane %v5420_v4, 9 }
 0x19c   : > { %7216 = vmatpush3.bf16.msra.mxu1 %v7671_v58  ;;  %v7675_v58 = vld [vmem:[#allocation2 + $0x34] sm:$0xf]  ;;  %v6529_v20 = vcombine.low %v9512_v23, %v9519_v37  ;;  %v6472_v59 = vcombine.low %v5085_v63, %v5095_v46  ;;  %v5501_v56 = vrot.slane %v9885_v32, 5  ;;  %v5505_v17 = vrot.slane %v7677_v11, 5  ;;  %v3049_v63 = vld [vmem:[#allocation2 + $0x6c] sm:$0xf] }
 0x19d   : > { %v5498_v5 = vrot.slane %v7675_v58, 5  ;;  %v5495_v29 = vsel %vm8239_vm13, %v5493_v57, %v5494_v27  ;;  %v5582_v4 = vrot.slane %v9357_v42, 5  ;;  %v6508_v46 = vrot.slane %v5433_v19, 9 }
 0x19e   : > { %7162 = vmatmul.mubr.msk.bf16.gmra.mrb[24].mxu0 %vm1631_vm9, %v6470_v16  ;;  %v9542_v16 = vsel %vm8239_vm13, %v5577_v0, %v5578_v50  ;;  %v7543_v0 = vld [vmem:[#allocation2 + $0x78] sm:$0xff]   ;;  %v5507_v30 = vrot.slane %v5505_v17, 4  ;;  %v5589_v42 = vrot.slane %v9417_v60, 5  ;;  %v5592_v27 = vrot.slane %v9475_v3, 5 }
 0x19f   : > { %6986 = vmatmul.mubr.msk.bf16.gmra.mrb[8].mxu1 %vm1631_vm9, %v7538_v13  ;;  %7165 = vmatprep.mubr.msk.bf16.mxu0 %vm1631_vm9, %v6471_v8  ;;  %v5485_v13 = vsel %vm8239_vm13, %v6493_v9, %v5484_v45  ;;  %v5432_v8 = vld [vmem:[#allocation2 + $0xc0] sm:$0xe]  ;;  %v5500_v2 = vrot.slane %v5498_v5, 4  ;;  %v6530_v45 = vcombine.low %v9534_v53, %v9542_v16  ;;  %v5421_v9 = vld [vmem:[#allocation2 + $0x3c] sm:$0xe]  ;;  %v5499_v40 = vsel %vm8239_vm13, %v6495_v6, %v5498_v5 }
 0x1a0   : > { %6989 = vmatprep.mubr.msk.bf16.mxu1 %vm1631_vm9, %v7540_v61  ;;  %v5488_v61 = vsel %vm8239_vm13, %v5486_v51, %v5487_v14  ;;  %v6507_v51 = vrot.slane %v5432_v8, 9  ;;  %v5492_v14 = vsel %vm8239_vm13, %v6494_v18, %v5491_v22  ;;  %v6496_v58 = vrot.slane %v5421_v9, 9 }
 0x1a1   : > { %v6517_v34 = vcombine.low %v5485_v13, %v5488_v61  ;;  %v5502_v50 = vsel %vm8239_vm13, %v5500_v2, %v5501_v56  ;;  %v5585_v22 = vrot.slane %v9401_v25, 5  ;;  %v9886_v13 = vld [vmem:[#allocation8_spill] sm:$0xff]  ;;  %v5584_v5 = vrot.slane %v5582_v4, 4  ;;  %v7678_v25 = vld [vmem:[#allocation2 + $0x70] sm:$0xf] }
 0x1a2   : > { %v5508_v61 = vrot.slane %v9886_v13, 5  ;;  %v9564_v18 = vsel %vm8239_vm13, %v6507_v51, %v5582_v4  ;;  %v6519_v57 = vcombine.low %v5499_v40, %v5502_v50  ;;  %v3266_v6 = vshrl.u32 %v3049_v63, 16  ;;  %v7545_v50 = vld [vmem:[#allocation2 + $0x90] sm:$0xff]   ;;  %v7546_v4 = vld [vmem:[#allocation2 + $0x9c] sm:$0xff]  }
 0x1a3   : > { %v3269_v8 = vshll.u32 %v3049_v63, 16  ;;  %v9570_v2 = vsel %vm8239_vm13, %v5584_v5, %v5585_v22  ;;  %v3279_v32 = vshrl.u32 %v7678_v25, 16  ;;  %v5591_v9 = vrot.slane %v5589_v42, 4  ;;  %v3055_v63 = vld [vmem:[#allocation2 + $0x84] sm:$0xf] }
 0x1a4   : > { %v6531_v56 = vcombine.low %v9564_v18, %v9570_v2  ;;  %v3268_v3 = vrot.slane %v3266_v6, 4  ;;  %v3314_v5 = vshrl.u32 %v3055_v63, 16  ;;  %v7547_v6 = vld [vmem:[#allocation2 + $0xa8] sm:$0xff]  }
 0x1a5   : > { %v9582_v60 = vsel %vm8239_vm13, %v5591_v9, %v5592_v27  ;;  %v3271_v51 = vrot.slane %v3269_v8, 5  ;;  %v3281_v40 = vrot.slane %v3279_v32, 4  ;;  %v7548_v8 = vld [vmem:[#allocation2 + $0xb4] sm:$0xff]  }
 0x1a6   : > { %7166 = vmatmul.mubr.msk.bf16.gmra.mrb[28].mxu0 %vm1631_vm9, %v6472_v59  ;;  %v3275_v59 = vshll.u32 %v7678_v25, 16  ;;  %v3316_v25 = vrot.slane %v3314_v5, 4 }
 0x1a7   : > { %6990 = vmatmul.mubr.msk.bf16.gmra.mrb[12].mxu1 %vm1631_vm9, %v7541_v15  ;;  %7177 = vmatprep.mubr.msk.bf16.mxu0 %vm1631_vm9, %v6517_v34  ;;  %v6518_v15 = vcombine.low %v5492_v14, %v5495_v29  ;;  %v9576_v34 = vsel %vm8239_vm13, %v6508_v46, %v5589_v42  ;;  %v5506_v14 = vsel %vm8239_vm13, %v6496_v58, %v5505_v17  ;;  %v7680_v17 = vld [vmem:[#allocation2 + $0x88] sm:$0xf] }
 0x1a8   : > { %6993 = vmatprep.mubr.msk.bf16.mxu1 %vm1631_vm9, %v7542_v10  ;;  %v7544_v10 = vld [vmem:[#allocation2 + $0x84] sm:$0xff]   ;;  %v6532_v19 = vcombine.low %v9576_v34, %v9582_v60  ;;  %v5509_v29 = vsel %vm8239_vm13, %v5507_v30, %v5508_v61  ;;  %v3277_v11 = vrot.slane %v3275_v59, 5  ;;  %v3272_v46 = vor.u32 %v3271_v51, %v3268_v3 }
 0x1a9   : > { %v6520_v22 = vcombine.low %v5506_v14, %v5509_v29  ;;  %v3323_v58 = vshll.u32 %v7680_v17, 16  ;;  %v3327_v21 = vshrl.u32 %v7680_v17, 16  ;;  %v9887_v30 = vcombine.low %v9278_v41, %v9288_v38  ;;  %v3061_v14 = vld [vmem:[#allocation2 + $0x9c] sm:$0xf]  ;;  %v7681_v38 = vld [vmem:[#allocation2 + $0x8c] sm:$0x1] }
 0x1aa   : > { %v3273_v61 = vrot.slane %v3272_v46, 4  ;;  %v3365_v46 = vshll.u32 %v3061_v14, 16 }
 0x1ab   : > { %v9599_v32 = vrot.slane %v3323_v58, 5  ;;  %v3329_v9 = vrot.slane %v3327_v21, 4  ;;  %v9888_v58 = vcombine.low %v9283_v31, %v9303_v44  ;;  %v7549_v21 = vld [vmem:[#allocation2 + $0xc0] sm:$0xff]  }
 0x1ac   : > { %v3278_v29 = vsel %vm7802_vm8, %v3273_v61, %v3277_v11  ;;  %v9889_v61 = vcombine.low %v9292_v47, %v9316_v7  ;;  %v7685_v7 = vld [vmem:[#allocation2 + $0xa4] sm:$0x1] }
 0x1ae   : > { %7178 = vmatmul.mubr.msk.bf16.vlgmr.msra.gmra.mrb[0].mxu0 %vm1631_vm9, %v6518_v15  ;;  %v7679_v15 = vld [vmem:[#allocation2 + $0x74] sm:$0x1] }
 0x1af   : > { %6994 = vmatmul.mubr.msk.bf16.gmra.mrb[16].mxu1 %vm1631_vm9, %v7543_v0  ;;  %7181 = vmatprep.mubr.msk.bf16.mxu0 %vm1631_vm9, %v6519_v57  ;;  %v3282_v0 = vor.u32 %v3281_v40, %v3277_v11  ;;  %v3285_v13 = vshll.u32 %v7679_v15, 16  ;;  %v3058_v57 = vld [vmem:[#allocation2 + $0x90] sm:$0xf]  ;;  %v3333_v40 = vshll.u32 %v7681_v38, 16  ;;  %v3330_v11 = vor.u32 %v3329_v9, %v9599_v32  ;;  %v3064_v9 = vld [vmem:[#allocation2 + $0xa8] sm:$0xf] }
 0x1b0   : > { %6997 = vmatprep.mubr.msk.bf16.mxu1 %vm1631_vm9, %v7544_v10  ;;  %v3317_v10 = vshll.u32 %v3055_v63, 16  ;;  %v3338_v3 = vshrl.u32 %v3058_v57, 16  ;;  %v3341_v51 = vshll.u32 %v3058_v57, 16  ;;  %v3381_v38 = vshll.u32 %v7685_v7, 16 }
 0x1b1   : > { %v3283_v42 = vrot.slane %v3282_v0, 4  ;;  %v3287_v27 = vrot.slane %v3285_v13, 5  ;;  %v7683_v0 = vld [vmem:[#allocation2 + $0xa0] sm:$0xf]  ;;  %v3331_v44 = vrot.slane %v3330_v11, 4  ;;  %v9890_v11 = vcombine.low %v9320_v26, %v9337_v36 }
 0x1b2   : > { %v3319_v59 = vrot.slane %v3317_v10, 5  ;;  %v3371_v15 = vshll.u32 %v7683_v0, 16  ;;  %v3375_v13 = vshrl.u32 %v7683_v0, 16  ;;  %v3340_v10 = vrot.slane %v3338_v3, 4 }
 0x1b3   : > { %v3288_v41 = vsel %vm7802_vm8, %v3283_v42, %v3287_v27  ;;  %v3343_v17 = vrot.slane %v3341_v51, 5  ;;  %v7684_v51 = vld [vmem:[#allocation2 + $0x98] sm:$0x1] }
 0x1b4   : > { %v3320_v5 = vor.u32 %v3319_v59, %v3316_v25  ;;  %v6317_v57 = vcombine.low %v3278_v29, %v3288_v41  ;;  %v9618_v25 = vrot.slane %v3371_v15, 5  ;;  %v3377_v59 = vrot.slane %v3375_v13, 4 }
 0x1b5   : > { %v3344_v3 = vor.u32 %v3343_v17, %v3340_v10  ;;  %v3386_v29 = vshrl.u32 %v3064_v9, 16  ;;  %v3389_v41 = vshll.u32 %v3064_v9, 16 }
 0x1b6   : > { %7182 = vmatmul.mubr.msk.bf16.gmra.mrb[4].mxu0 %vm1631_vm9, %v6520_v22  ;;  %v3362_v22 = vshrl.u32 %v3061_v14, 16  ;;  %v3321_v31 = vrot.slane %v3320_v5, 4  ;;  %v3357_v14 = vshll.u32 %v7684_v51, 16  ;;  %v3070_v51 = vld [vmem:[#allocation2 + $0xc0] sm:$0xf] }
 0x1b7   : > { %6998 = vmatmul.mubr.msk.bf16.gmra.mrb[20].mxu1 %vm1631_vm9, %v7545_v50  ;;  %7185 = vmatprep.mubr.msk.bf16.mxu0 %vm1631_vm9, %v9887_v30  ;;  %v7682_v50 = vld [vmem:[#allocation2 + $0x94] sm:$0xf]  ;;  %v3335_v30 = vrot.slane %v3333_v40, 5  ;;  %v3345_v13 = vrot.slane %v3344_v3, 4 }
 0x1b8   : > { %7001 = vmatprep.mubr.msk.bf16.mxu1 %vm1631_vm9, %v7546_v4  ;;  %v3347_v4 = vshll.u32 %v7682_v50, 16  ;;  %v3351_v63 = vshrl.u32 %v7682_v50, 16  ;;  %v3067_v40 = vld [vmem:[#allocation2 + $0xb4] sm:$0xf]  ;;  %v3326_v0 = vsel %vm7802_vm8, %v3321_v31, %v9599_v32  ;;  %v3359_v5 = vrot.slane %v3357_v14, 5 }
 0x1b9   : > { %v3336_v15 = vsel %vm7802_vm8, %v3331_v44, %v3335_v30  ;;  %v3410_v10 = vshrl.u32 %v3067_v40, 16  ;;  %v3413_v17 = vshll.u32 %v3067_v40, 16  ;;  %v3388_v30 = vrot.slane %v3386_v29, 4  ;;  %v7689_v40 = vld [vmem:[#allocation2 + $0xc4] sm:$0xf] }
 0x1ba   : > { %v9616_v42 = vrot.slane %v3347_v4, 5  ;;  %v3353_v27 = vrot.slane %v3351_v63, 4  ;;  %v3378_v4 = vor.u32 %v3377_v59, %v9618_v25  ;;  %v7686_v63 = vld [vmem:[#allocation2 + $0xac] sm:$0xf]  ;;  %v6319_v36 = vcombine.low %v3326_v0, %v3336_v15 }
 0x1bb   : > { %v3412_v9 = vrot.slane %v3410_v10, 4  ;;  %v3415_v31 = vrot.slane %v3413_v17, 5 }
 0x1bc   : > { %v3354_v47 = vor.u32 %v3353_v27, %v9616_v42  ;;  %v3391_v27 = vrot.slane %v3389_v41, 5  ;;  %v3350_v28 = vsel %vm7802_vm8, %v3345_v13, %v9616_v42  ;;  %v3434_v42 = vshrl.u32 %v3070_v51, 16 }
 0x1bd   : > { %v3437_v41 = vshll.u32 %v3070_v51, 16 }
 0x1be   : > { %7186 = vmatmul.mubr.msk.bf16.gmra.mrb[8].mxu0 %vm1631_vm9, %v9888_v58  ;;  %v7687_v58 = vld [vmem:[#allocation2 + $0xb8] sm:$0xf]  ;;  %v3355_v32 = vrot.slane %v3354_v47, 4 }
 0x1bf   : > { %7002 = vmatmul.mubr.msk.bf16.gmra.mrb[24].mxu1 %vm1631_vm9, %v7547_v6  ;;  %7189 = vmatprep.mubr.msk.bf16.mxu0 %vm1631_vm9, %v9889_v61  ;;  %v3364_v6 = vrot.slane %v3362_v22, 4  ;;  %v3395_v22 = vshll.u32 %v7686_v63, 16  ;;  %v3423_v61 = vshrl.u32 %v7687_v58, 16  ;;  %v3439_v10 = vrot.slane %v3437_v41, 5 }
 0x1c0   : > { %7005 = vmatprep.mubr.msk.bf16.mxu1 %vm1631_vm9, %v7548_v8  ;;  %v3367_v8 = vrot.slane %v3365_v46, 5  ;;  %v3399_v46 = vshrl.u32 %v7686_v63, 16  ;;  %v3360_v39 = vsel %vm7802_vm8, %v3355_v32, %v3359_v5 }
 0x1c1   : > { %v3397_v59 = vrot.slane %v3395_v22, 5  ;;  %v3425_v3 = vrot.slane %v3423_v61, 4  ;;  %v7691_v61 = vld [vmem:[#allocation2 + $0xc8] sm:$0x1] }
 0x1c2   : > { %v3368_v50 = vor.u32 %v3367_v8, %v3364_v6  ;;  %v3379_v8 = vrot.slane %v3378_v4, 4  ;;  %v3401_v26 = vrot.slane %v3399_v46, 4  ;;  %v3447_v4 = vshrl.u32 %v7689_v40, 16 }
 0x1c3   : > { %v6320_v46 = vcombine.low %v3350_v28, %v3360_v39  ;;  %v3453_v32 = vshll.u32 %v7691_v61, 16 }
 0x1c4   : > { %v3369_v6 = vrot.slane %v3368_v50, 4  ;;  %v3402_v29 = vor.u32 %v3401_v26, %v3397_v59  ;;  %v3443_v50 = vshll.u32 %v7689_v40, 16  ;;  %v3449_v49 = vrot.slane %v3447_v4, 4 }
 0x1c5   : > { %v3455_v26 = vrot.slane %v3453_v32, 5 }
 0x1c6   : > { %7190 = vmatmul.mubr.msk.bf16.gmra.mrb[12].mxu0 %vm1631_vm9, %v9890_v11  ;;  %v3374_v47 = vsel %vm7802_vm8, %v3369_v6, %v9618_v25  ;;  %v7690_v25 = vld [vmem:[#allocation2 + $0xbc] sm:$0x1]  ;;  %v3403_v13 = vrot.slane %v3402_v29, 4  ;;  %v3436_v11 = vrot.slane %v3434_v42, 4  ;;  %v3445_v17 = vrot.slane %v3443_v50, 5 }
 0x1c7   : > { %7006 = vmatmul.mubr.msk.bf16.gmra.mrb[28].mxu1 %vm1631_vm9, %v7549_v21  ;;  %v3419_v21 = vshll.u32 %v7687_v58, 16  ;;  %7193 = vmatprep.mubr.msk.bf16.mxu0 %vm1631_vm9, %v6525_v48  ;;  %v7688_v48 = vld [vmem:[#allocation2 + $0xb0] sm:$0x1]  ;;  %v3429_v22 = vshll.u32 %v7690_v25, 16 }
 0x1c8   : > { %7033 = vmatprep.mubr.msk.bf16.mxu1 %vm1631_vm9, %v6317_v57  ;;  %v3383_v57 = vrot.slane %v3381_v38, 5  ;;  %v3405_v14 = vshll.u32 %v7688_v48, 16  ;;  %v3392_v38 = vor.u32 %v3391_v27, %v3388_v30  ;;  %v3440_v43 = vor.u32 %v3439_v10, %v3436_v11 }
 0x1c9   : > { %v3421_v44 = vrot.slane %v3419_v21, 5  ;;  %v3431_v58 = vrot.slane %v3429_v22, 5 }
 0x1ca   : > { %v3384_v7 = vsel %vm7802_vm8, %v3379_v8, %v3383_v57  ;;  %v3393_v15 = vrot.slane %v3392_v38, 4  ;;  %v3407_v5 = vrot.slane %v3405_v14, 5  ;;  %v3441_v8 = vrot.slane %v3440_v43, 4 }
 0x1cb   : > { %v3426_v63 = vor.u32 %v3425_v3, %v3421_v44  ;;  %v6321_v0 = vcombine.low %v3374_v47, %v3384_v7 }
 0x1cc   : > { %v3398_v21 = vsel %vm7802_vm8, %v3393_v15, %v3397_v59  ;;  %v3408_v1 = vsel %vm7802_vm8, %v3403_v13, %v3407_v5  ;;  %v3446_v54 = vsel %vm7802_vm8, %v3441_v8, %v3445_v17 }
 0x1cd   : > { %v6322_v27 = vcombine.low %v3398_v21, %v3408_v1 }
 0x1ce   : > { %7194 = vmatmul.mubr.msk.bf16.gmra.mrb[16].mxu0 %vm1631_vm9, %v6526_v24  ;;  %v3427_v24 = vrot.slane %v3426_v63, 4 }
 0x1cf   : > { %7034 = vmatmul.mubr.msk.bf16.vlgmr.msra.gmra.mrb[16].mxu1 %vm1631_vm9, %v9403_v55  ;;  %v3416_v55 = vor.u32 %v3415_v31, %v3412_v9  ;;  %7197 = vmatprep.mubr.msk.bf16.mxu0 %vm1631_vm9, %v6527_v52  ;;  %v3450_v52 = vor.u32 %v3449_v49, %v3445_v17 }
 0x1d0   : > { %7037 = vmatprep.mubr.msk.bf16.mxu1 %vm1631_vm9, %v6319_v36  ;;  %v3432_v30 = vsel %vm7802_vm8, %v3427_v24, %v3431_v58 }
 0x1d1   : > { %v3417_v12 = vrot.slane %v3416_v55, 4  ;;  %v3451_v59 = vrot.slane %v3450_v52, 4 }
 0x1d3   : > { %v3422_v57 = vsel %vm7802_vm8, %v3417_v12, %v3421_v44  ;;  %v3456_v35 = vsel %vm7802_vm8, %v3451_v59, %v3455_v26 }
 0x1d4   : > { %v6323_v6 = vcombine.low %v3422_v57, %v3432_v30 }
 0x1d6   : > { %7198 = vmatmul.mubr.msk.bf16.gmra.mrb[20].mxu0 %vm1631_vm9, %v6528_v62  ;;  %v6324_v62 = vcombine.low %v3446_v54, %v3456_v35 }
 0x1d7   : > { %7038 = vmatmul.mubr.msk.bf16.gmra.mrb[20].mxu1 %vm1631_vm9, %v6320_v46  ;;  %7201 = vmatprep.mubr.msk.bf16.mxu0 %vm1631_vm9, %v6529_v20 }
 0x1d8   : > { %7041 = vmatprep.mubr.msk.bf16.mxu1 %vm1631_vm9, %v6321_v0 }
 0x1de   : > { %7202 = vmatmul.mubr.msk.bf16.gmra.mrb[24].mxu0 %vm1631_vm9, %v6530_v45 }
 0x1df   : > { %7042 = vmatmul.mubr.msk.bf16.gmra.mrb[24].mxu1 %vm1631_vm9, %v6322_v27  ;;  %7205 = vmatprep.mubr.msk.bf16.mxu0 %vm1631_vm9, %v6531_v56 }
 0x1e0   : > { %7045 = vmatprep.mubr.msk.bf16.mxu1 %vm1631_vm9, %v6323_v6 }
 0x1e6   : > { %7206 = vmatmul.mubr.msk.bf16.gmra.mrb[28].mxu0 %vm1631_vm9, %v6532_v19  ;;  %v9706_v19 = vld [vmem:[%s9789_s4] ss:$0 sm:$0xff] }
 0x1e7   : > { %7046 = vmatmul.mubr.msk.bf16.gmra.mrb[28].mxu1 %vm1631_vm9, %v6324_v62 }
 0x262   : > { %v6979_v33 = vpop.f32.mrb[0].mxu1 }
 0x263   : > { %v2866_v23 = vpop.f32.mrb[1].mxu1 }
 0x264   : > { %v6980_v37 = vpop.f32.mrb[2].mxu1 }
 0x265   : > { %v2869_v20 = vpop.f32.mrb[3].mxu1 }
 0x26a   : > { %v6983_v53 = vpop.f32.mrb[4].mxu1 }
 0x26b   : > { %v2882_v16 = vpop.f32.mrb[5].mxu1 }
 0x26c   : > { %v6984_v45 = vpop.f32.mrb[6].mxu1 }
 0x26d   : > { %v2885_v36 = vpop.f32.mrb[7].mxu1 }
 0x272   : > { %v6987_v9 = vpop.f32.mrb[8].mxu1 }
 0x273   : > { %v2898_v18 = vpop.f32.mrb[9].mxu1 }
 0x274   : > { %v6988_v2 = vpop.f32.mrb[10].mxu1 }
 0x275   : > { %v2901_v56 = vpop.f32.mrb[11].mxu1 }
 0x27a   : > { %v9695_v31 = vpop.f32.mrb[12].mxu1 }
 0x27b   : > { %v9697_v44 = vpop.f32.mrb[13].mxu1 }
 0x27c   : > { %v9699_v3 = vpop.f32.mrb[14].mxu1 }
 0x27d   : > { %v9701_v34 = vpop.f32.mrb[15].mxu1 }
 0x281   : > { %v7179_v60 = vpop.f32.mrb[0].mxu0 }
 0x282   : > { %v7217_v51 = vadd.f32 %v7179_v60, %v6979_v33  ;;  %v5757_v28 = vpop.f32.mrb[1].mxu0 }
 0x283   : > { %v7218_v39 = vadd.f32 %v5757_v28, %v2866_v23  ;;  %v7180_v48 = vpop.f32.mrb[2].mxu0 }
 0x284   : > { %v5925_v14 = vadd.f32 %v7217_v51, %v9706_v19  ;;  %v7219_v47 = vadd.f32 %v7180_v48, %v6980_v37  ;;  %v5760_v7 = vpop.f32.mrb[3].mxu0 }
 0x285   : > { %v5923_v38 = vadd.f32 %v7218_v39, %v9706_v19  ;;  %v7220_v29 = vadd.f32 %v5760_v7, %v2869_v20 }
 0x286   : > { %7550 = vtanh.f32 %v5925_v14  ;;  %v5926_v42 = vadd.f32 %v7219_v47, %v9706_v19 }
 0x287   : > { %7552 = vtanh.f32 %v5923_v38  ;;  %v5924_v41 = vadd.f32 %v7220_v29, %v9706_v19 }
 0x288   : > { %7554 = vtanh.f32 %v5926_v42 }
 0x289   : > { %7556 = vtanh.f32 %v5924_v41  ;;  %v7183_v40 = vpop.f32.mrb[4].mxu0 }
 0x28a   : > { %v7221_v50 = vadd.f32 %v7183_v40, %v6983_v53  ;;  %v5773_v4 = vpop.f32.mrb[5].mxu0 }
 0x28b   : > { %v7222_v55 = vadd.f32 %v5773_v4, %v2882_v16  ;;  %v7184_v63 = vpop.f32.mrb[6].mxu0 }
 0x28c   : > { %v5929_v25 = vadd.f32 %v7221_v50, %v9706_v19  ;;  %v7223_v22 = vadd.f32 %v7184_v63, %v6984_v45  ;;  %v5776_v46 = vpop.f32.mrb[7].mxu0 }
 0x28d   : > { %v5927_v0 = vadd.f32 %v7222_v55, %v9706_v19  ;;  %v7224_v15 = vadd.f32 %v5776_v46, %v2885_v36 }
 0x28e   : > { %7558 = vtanh.f32 %v5929_v25  ;;  %v5930_v13 = vadd.f32 %v7223_v22, %v9706_v19 }
 0x28f   : > { %7560 = vtanh.f32 %v5927_v0  ;;  %v5928_v5 = vadd.f32 %v7224_v15, %v9706_v19 }
 0x290   : > { %v7551_v11 = vpop.eup %7550  ;;  %7562 = vtanh.f32 %v5930_v13 }
 0x291   : > { %v7553_v10 = vpop.eup %7552  ;;  %5989 = vst [vmem:[%s9718_s11 + $0x10] sm:$0xff] %v7551_v11  ;;  %7564 = vtanh.f32 %v5928_v5  ;;  %v7187_v17 = vpop.f32.mrb[8].mxu0 }
 0x292   : > { %v7555_v49 = vpop.eup %7554  ;;  %5987 = vst [vmem:[%s9718_s11] sm:$0xff] %v7553_v10  ;;  %v7225_v12 = vadd.f32 %v7187_v17, %v6987_v9  ;;  %v5789_v24 = vpop.f32.mrb[9].mxu0 }
 0x293   : > { %v7557_v58 = vpop.eup %7556  ;;  %5990 = vst [vmem:[%s9718_s11 + $0x18] sm:$0xff] %v7555_v49  ;;  %v7226_v21 = vadd.f32 %v5789_v24, %v2898_v18  ;;  %v7188_v1 = vpop.f32.mrb[10].mxu0 }
 0x294   : > { %5988 = vst [vmem:[%s9718_s11 + $0x8] sm:$0xff] %v7557_v58  ;;  %v5933_v43 = vadd.f32 %v7225_v12, %v9706_v19  ;;  %v7227_v52 = vadd.f32 %v7188_v1, %v6988_v2  ;;  %v5792_v61 = vpop.f32.mrb[11].mxu0 }
 0x295   : > { %v5931_v32 = vadd.f32 %v7226_v21, %v9706_v19  ;;  %v7228_v57 = vadd.f32 %v5792_v61, %v2901_v56 }
 0x296   : > { %7566 = vtanh.f32 %v5933_v43  ;;  %v5934_v30 = vadd.f32 %v7227_v52, %v9706_v19 }
 0x297   : > { %7568 = vtanh.f32 %v5931_v32  ;;  %v5932_v27 = vadd.f32 %v7228_v57, %v9706_v19 }
 0x298   : > { %v7559_v6 = vpop.eup %7558  ;;  %7570 = vtanh.f32 %v5934_v30 }
 0x299   : > { %v7561_v8 = vpop.eup %7560  ;;  %5993 = vst [vmem:[%s9718_s11 + $0x30] sm:$0xff] %v7559_v6  ;;  %7572 = vtanh.f32 %v5932_v27  ;;  %v7191_v59 = vpop.f32.mrb[12].mxu0 }
 0x29a   : > { %v7563_v26 = vpop.eup %7562  ;;  %5991 = vst [vmem:[%s9718_s11 + $0x20] sm:$0xff] %v7561_v8  ;;  %v7229_v54 = vadd.f32 %v7191_v59, %v9695_v31  ;;  %v5805_v35 = vpop.f32.mrb[13].mxu0 }
 0x29b   : > { %v7565_v62 = vpop.eup %7564  ;;  %5994 = vst [vmem:[%s9718_s11 + $0x38] sm:$0xff] %v7563_v26  ;;  %v7230_v33 = vadd.f32 %v5805_v35, %v9697_v44  ;;  %v7192_v23 = vpop.f32.mrb[14].mxu0 }
 0x29c   : > { %5992 = vst [vmem:[%s9718_s11 + $0x28] sm:$0xff] %v7565_v62  ;;  %v5937_v37 = vadd.f32 %v7229_v54, %v9706_v19  ;;  %v7231_v20 = vadd.f32 %v7192_v23, %v9699_v3  ;;  %v5808_v53 = vpop.f32.mrb[15].mxu0 }
 0x29d   : > { %v5935_v16 = vadd.f32 %v7230_v33, %v9706_v19  ;;  %v7232_v45 = vadd.f32 %v5808_v53, %v9701_v34 }
 0x29e   : > { %7574 = vtanh.f32 %v5937_v37  ;;  %v5938_v36 = vadd.f32 %v7231_v20, %v9706_v19 }
 0x29f   : > { %7576 = vtanh.f32 %v5935_v16  ;;  %v5936_v9 = vadd.f32 %v7232_v45, %v9706_v19 }
 0x2a0   : > { %v7567_v2 = vpop.eup %7566  ;;  %7578 = vtanh.f32 %v5938_v36 }
 0x2a1   : > { %v7569_v31 = vpop.eup %7568  ;;  %5997 = vst [vmem:[%s9718_s11 + $0x50] sm:$0xff] %v7567_v2  ;;  %7580 = vtanh.f32 %v5936_v9  ;;  %v7195_v44 = vpop.f32.mrb[16].mxu0 }
 0x2a2   : > { %v7035_v18 = vpop.f32.mrb[16].mxu1  ;;  %v7571_v60 = vpop.eup %7570  ;;  %5995 = vst [vmem:[%s9718_s11 + $0x40] sm:$0xff] %v7569_v31 }
 0x2a3   : > { %v3684_v56 = vpop.f32.mrb[17].mxu1  ;;  %v7233_v34 = vadd.f32 %v7195_v44, %v7035_v18  ;;  %v5821_v51 = vpop.f32.mrb[17].mxu0  ;;  %5998 = vst [vmem:[%s9718_s11 + $0x58] sm:$0xff] %v7571_v60 }
 0x2a4   : > { %v7036_v3 = vpop.f32.mrb[18].mxu1  ;;  %v7573_v39 = vpop.eup %7572  ;;  %v7234_v48 = vadd.f32 %v5821_v51, %v3684_v56 }
 0x2a5   : > { %v3687_v28 = vpop.f32.mrb[19].mxu1  ;;  %v7196_v14 = vpop.f32.mrb[18].mxu0  ;;  %5996 = vst [vmem:[%s9718_s11 + $0x48] sm:$0xff] %v7573_v39  ;;  %v5941_v47 = vadd.f32 %v7233_v34, %v9706_v19 }
 0x2a6   : > { %v7235_v7 = vadd.f32 %v7196_v14, %v7036_v3  ;;  %v5824_v38 = vpop.f32.mrb[19].mxu0  ;;  %v5939_v29 = vadd.f32 %v7234_v48, %v9706_v19 }
 0x2a7   : > { %v7236_v42 = vadd.f32 %v5824_v38, %v3687_v28  ;;  %7582 = vtanh.f32 %v5941_v47 }
 0x2a8   : > { %v5942_v41 = vadd.f32 %v7235_v7, %v9706_v19  ;;  %7584 = vtanh.f32 %v5939_v29  ;;  %v7575_v4 = vpop.eup %7574 }
 0x2a9   : > { %v5940_v40 = vadd.f32 %v7236_v42, %v9706_v19  ;;  %v7577_v63 = vpop.eup %7576  ;;  %6001 = vst [vmem:[%s9718_s11 + $0x70] sm:$0xff] %v7575_v4  ;;  %v7199_v25 = vpop.f32.mrb[20].mxu0 }
 0x2aa   : > { %v7039_v50 = vpop.f32.mrb[20].mxu1  ;;  %7586 = vtanh.f32 %v5942_v41  ;;  %v7579_v46 = vpop.eup %7578  ;;  %5999 = vst [vmem:[%s9718_s11 + $0x60] sm:$0xff] %v7577_v63 }
 0x2ab   : > { %v3700_v55 = vpop.f32.mrb[21].mxu1  ;;  %7588 = vtanh.f32 %v5940_v40  ;;  %v7237_v0 = vadd.f32 %v7199_v25, %v7039_v50  ;;  %v5837_v15 = vpop.f32.mrb[21].mxu0  ;;  %6002 = vst [vmem:[%s9718_s11 + $0x78] sm:$0xff] %v7579_v46 }
 0x2ac   : > { %v7040_v22 = vpop.f32.mrb[22].mxu1  ;;  %v7581_v5 = vpop.eup %7580  ;;  %v7238_v11 = vadd.f32 %v5837_v15, %v3700_v55 }
 0x2ad   : > { %v3703_v13 = vpop.f32.mrb[23].mxu1  ;;  %v7200_v10 = vpop.f32.mrb[22].mxu0  ;;  %6000 = vst [vmem:[%s9718_s11 + $0x68] sm:$0xff] %v7581_v5  ;;  %v5945_v17 = vadd.f32 %v7237_v0, %v9706_v19 }
 0x2ae   : > { %v7239_v49 = vadd.f32 %v7200_v10, %v7040_v22  ;;  %v5840_v12 = vpop.f32.mrb[23].mxu0  ;;  %v5943_v24 = vadd.f32 %v7238_v11, %v9706_v19 }
 0x2af   : > { %v7240_v58 = vadd.f32 %v5840_v12, %v3703_v13  ;;  %7590 = vtanh.f32 %v5945_v17 }
 0x2b0   : > { %v5946_v21 = vadd.f32 %v7239_v49, %v9706_v19  ;;  %7592 = vtanh.f32 %v5943_v24 }
 0x2b1   : > { %v5944_v1 = vadd.f32 %v7240_v58, %v9706_v19  ;;  %v7583_v52 = vpop.eup %7582  ;;  %v7203_v57 = vpop.f32.mrb[24].mxu0 }
 0x2b2   : > { %v7043_v43 = vpop.f32.mrb[24].mxu1  ;;  %7594 = vtanh.f32 %v5946_v21  ;;  %v7585_v32 = vpop.eup %7584  ;;  %6005 = vst [vmem:[%s9718_s11 + $0x90] sm:$0xff] %v7583_v52 }
 0x2b3   : > { %v3716_v61 = vpop.f32.mrb[25].mxu1  ;;  %7596 = vtanh.f32 %v5944_v1  ;;  %6003 = vst [vmem:[%s9718_s11 + $0x80] sm:$0xff] %v7585_v32  ;;  %v7241_v6 = vadd.f32 %v7203_v57, %v7043_v43  ;;  %v5853_v8 = vpop.f32.mrb[25].mxu0 }
 0x2b4   : > { %v7044_v30 = vpop.f32.mrb[26].mxu1  ;;  %v7587_v27 = vpop.eup %7586  ;;  %v7242_v54 = vadd.f32 %v5853_v8, %v3716_v61 }
 0x2b5   : > { %v3719_v59 = vpop.f32.mrb[27].mxu1  ;;  %v7589_v26 = vpop.eup %7588  ;;  %6006 = vst [vmem:[%s9718_s11 + $0x98] sm:$0xff] %v7587_v27  ;;  %v5949_v62 = vadd.f32 %v7241_v6, %v9706_v19 }
 0x2b6   : > { %v7204_v35 = vpop.f32.mrb[26].mxu0  ;;  %6004 = vst [vmem:[%s9718_s11 + $0x88] sm:$0xff] %v7589_v26  ;;  %v5947_v37 = vadd.f32 %v7242_v54, %v9706_v19 }
 0x2b7   : > { %v7243_v33 = vadd.f32 %v7204_v35, %v7044_v30  ;;  %v5856_v23 = vpop.f32.mrb[27].mxu0  ;;  %7598 = vtanh.f32 %v5949_v62 }
 0x2b8   : > { %v7244_v20 = vadd.f32 %v5856_v23, %v3719_v59  ;;  %7600 = vtanh.f32 %v5947_v37 }
 0x2b9   : > { %v5950_v53 = vadd.f32 %v7243_v33, %v9706_v19  ;;  %v7591_v36 = vpop.eup %7590  ;;  %v7207_v2 = vpop.f32.mrb[28].mxu0 }
 0x2ba   : > { %v5948_v16 = vadd.f32 %v7244_v20, %v9706_v19  ;;  %v7047_v45 = vpop.f32.mrb[28].mxu1  ;;  %v7593_v18 = vpop.eup %7592  ;;  %6009 = vst [vmem:[%s9718_s11 + $0xb0] sm:$0xff] %v7591_v36 }
 0x2bb   : > { %7602 = vtanh.f32 %v5950_v53  ;;  %v3732_v9 = vpop.f32.mrb[29].mxu1  ;;  %6007 = vst [vmem:[%s9718_s11 + $0xa0] sm:$0xff] %v7593_v18  ;;  %v7245_v44 = vadd.f32 %v7207_v2, %v7047_v45  ;;  %v5869_v3 = vpop.f32.mrb[29].mxu0 }
 0x2bc   : > { %7604 = vtanh.f32 %v5948_v16  ;;  %v7048_v56 = vpop.f32.mrb[30].mxu1  ;;  %v7595_v31 = vpop.eup %7594  ;;  %v7246_v51 = vadd.f32 %v5869_v3, %v3732_v9 }
 0x2bd   : > { %v3735_v60 = vpop.f32.mrb[31].mxu1  ;;  %v7597_v34 = vpop.eup %7596  ;;  %6010 = vst [vmem:[%s9718_s11 + $0xb8] sm:$0xff] %v7595_v31  ;;  %v5953_v39 = vadd.f32 %v7245_v44, %v9706_v19 }
 0x2be   : > { %v7208_v28 = vpop.f32.mrb[30].mxu0  ;;  %6008 = vst [vmem:[%s9718_s11 + $0xa8] sm:$0xff] %v7597_v34  ;;  %v5951_v47 = vadd.f32 %v7246_v51, %v9706_v19 }
 0x2bf   : > { %v7247_v48 = vadd.f32 %v7208_v28, %v7048_v56  ;;  %v5872_v14 = vpop.f32.mrb[31].mxu0  ;;  %7606 = vtanh.f32 %v5953_v39 }
 0x2c0   : > { %v7248_v7 = vadd.f32 %v5872_v14, %v3735_v60  ;;  %7608 = vtanh.f32 %v5951_v47 }
 0x2c1   : > { %v5954_v38 = vadd.f32 %v7247_v48, %v9706_v19  ;;  %v7599_v42 = vpop.eup %7598 }
 0x2c2   : > { %v5952_v29 = vadd.f32 %v7248_v7, %v9706_v19  ;;  %v7601_v41 = vpop.eup %7600  ;;  %6013 = vst [vmem:[%s9718_s11 + $0xd0] sm:$0xff] %v7599_v42 }
 0x2c3   : > { %7610 = vtanh.f32 %v5954_v38  ;;  %6011 = vst [vmem:[%s9718_s11 + $0xc0] sm:$0xff] %v7601_v41 }
 0x2c4   : > { %7612 = vtanh.f32 %v5952_v29 }
 0x2c5   : > { %v7603_v40 = vpop.eup %7602 }
 0x2c6   : > { %v7605_v50 = vpop.eup %7604  ;;  %6014 = vst [vmem:[%s9718_s11 + $0xd8] sm:$0xff] %v7603_v40 }
 0x2c7   : > { %6012 = vst [vmem:[%s9718_s11 + $0xc8] sm:$0xff] %v7605_v50 }
 0x2c9   : > { %v7607_v4 = vpop.eup %7606 }
 0x2ca   : > { %v7609_v55 = vpop.eup %7608  ;;  %6017 = vst [vmem:[%s9718_s11 + $0xf0] sm:$0xff] %v7607_v4 }
 0x2cb   : > { %6015 = vst [vmem:[%s9718_s11 + $0xe0] sm:$0xff] %v7609_v55 }
 0x2cd   : > { %v7611_v63 = vpop.eup %7610 }
 0x2ce   : > { %v7613_v25 = vpop.eup %7612  ;;  %6018 = vst [vmem:[%s9718_s11 + $0xf8] sm:$0xff] %v7611_v63 }
 0x2cf   : > { %6016 = vst [vmem:[%s9718_s11 + $0xe8] sm:$0xff] %v7613_v25 }
 0x2d0 PF: > { %s15_s18 = sadd.s32 1, %s7698_s18  }
 0x2d1   : > { %p12_p4 = scmp.ge.s32.totalorder %s15_s18, 4  }
 0x2d3   :  { %14 = sbr.rel (!%p12_p4) target bundleno = 1 (0x1), region = 81 }

</bundles_post_ra>
